<compile_context>
chip_gen: v7x
topology: tpu7x:2x2x1
jax: 0.10.0
libtpu: 0.0.40
codegen_flags: <defaults>
</compile_context>

<pallas_src>
import jax
import jax.numpy as jnp
from jax import lax
from jax.experimental import pallas as pl
from jax.experimental.pallas import tpu as pltpu

# ----- module hyper-parameters (shrunk to small, consistent shapes) ---------
BATCHSIZE = 16       # stands in for the module's BATCHSIZE=500 (padded batch)
BLOCK_B = 8          # batch tile per grid step (production: 128-256, mult of 8)
NV = 6               # nv
NV_PAD = 8           # nv padded to a sublane multiple
LSTM_LAYERS = 2      # lstmlay
UNITS = 32           # stands in for int(100 * lstmsize)=100 (prod: pad to 128)
BACKCAST = 8         # backcast_length
FORECAST = 4         # forecast_length

VMEM_LIMIT_BYTES = 32 * 1024 * 1024   # explicit scoped-VMEM limit (raises v5e's
                                      # 16 MiB default; well under v7x physical)


# ----------------------------- helpers ---------------------------------------

def _bcast_spec(arr):
    """Full-array block, same block for every grid step (weights)."""
    rank = arr.ndim
    return pl.BlockSpec(arr.shape, lambda i, _r=rank: (0,) * _r)


def _batch_spec(block_shape):
    """Block over dim 0 (batch), full over the rest."""
    nrest = len(block_shape) - 1
    return pl.BlockSpec(block_shape, lambda i, _n=nrest: (i,) + (0,) * _n)


def _lstm_gates(g, c, Hn):
    """PyTorch gate order (i, f, g, o), each block Hn wide, -> new (h, c).

    One sigmoid over the full gate vector + one tanh over only the g-gate
    slice (2 EUP passes instead of 4 per cell group)."""
    sg = jax.nn.sigmoid(g)
    i = sg[:, 0:Hn]
    f = sg[:, Hn:2 * Hn]
    o = sg[:, 3 * Hn:4 * Hn]
    gg = jnp.tanh(g[:, 2 * Hn:3 * Hn])
    c_new = f * c + i * gg
    h_new = o * jnp.tanh(c_new)
    return h_new, c_new


# ----------------------------- encoder kernel --------------------------------
# One pallas_call, batch-tiled, for the full 2-layer bidirectional encoder.
# The block of x comes in time-major flattened form (T*BB, nv_pad) so the
# layer-0 input projection for all timesteps / both directions is a single
# lane-dense matmul; the recurrences carry h/c in vregs and keep the layer-0
# per-step outputs in VMEM scratch.

def _encoder_kernel(x_ref, w0_ref, b0_ref, u0f_ref, u0b_ref,
                    w1f_ref, w1b_ref, b1_ref, u1f_ref,
                    enc_ref,
                    xg_scr, h0f_scr, h0b_scr):
    BB, H2 = enc_ref.shape
    H = H2 // 2
    H4 = 4 * H
    T = x_ref.shape[1] // BB

    # layer-0 input gates for all T steps, both dirs: one (T*BB, nvp)@(nvp,8H)
    xg_scr[...] = (jnp.dot(x_ref[0], w0_ref[...],
                           preferred_element_type=jnp.float32) + b0_ref[...])

    zeros = jnp.zeros((BB, H), jnp.float32)

    # ---- layer 0: forward and backward recurrences share one loop ----------
    def l0_body(t, carry):
        hf, cf, hb, cb = carry
        rf = pl.multiple_of(t * BB, BB)
        rb = pl.multiple_of((T - 1 - t) * BB, BB)
        xg_f = xg_scr[pl.ds(rf, BB), :]
        xg_b = xg_scr[pl.ds(rb, BB), :]
        gf = xg_f[:, 0:H4] + jnp.dot(hf, u0f_ref[...],
                                     preferred_element_type=jnp.float32)
        hf, cf = _lstm_gates(gf, cf, H)
        gb = xg_b[:, H4:2 * H4] + jnp.dot(hb, u0b_ref[...],
                                          preferred_element_type=jnp.float32)
        hb, cb = _lstm_gates(gb, cb, H)
        h0f_scr[pl.ds(rf, BB), :] = hf          # output index t
        h0b_scr[pl.ds(rb, BB), :] = hb          # output index T-1-t
        return hf, cf, hb, cb

    lax.fori_loop(0, T, l0_body, (zeros, zeros, zeros, zeros))

    # ---- layer 1 forward: input gates recomputed per step (no (T*BB,4H)
    # scratch); W row-split so the two direction outputs never need a concat.
    def l1_body(t, carry):
        h, c = carry
        r = pl.multiple_of(t * BB, BB)
        g = (jnp.dot(h0f_scr[pl.ds(r, BB), :], w1f_ref[0:H, :],
                     preferred_element_type=jnp.float32)
             + jnp.dot(h0b_scr[pl.ds(r, BB), :], w1f_ref[H:2 * H, :],
                       preferred_element_type=jnp.float32)
             + b1_ref[:, 0:H4]
             + jnp.dot(h, u1f_ref[...], preferred_element_type=jnp.float32))
        return _lstm_gates(g, c, H)

    h1f, _ = lax.fori_loop(0, T, l1_body, (zeros, zeros))

    # ---- layer 1 backward: only output index T-1 is consumed downstream,
    # which is the backward direction's FIRST step from a zero state (so the
    # recurrent term is exactly zero and u1b is never needed). ---------------
    last = pl.multiple_of((T - 1) * BB, BB)
    gb1 = (jnp.dot(h0f_scr[pl.ds(last, BB), :], w1b_ref[0:H, :],
                   preferred_element_type=jnp.float32)
           + jnp.dot(h0b_scr[pl.ds(last, BB), :], w1b_ref[H:2 * H, :],
                     preferred_element_type=jnp.float32)
           + b1_ref[:, H4:2 * H4])
    h1b, _ = _lstm_gates(gb1, zeros, H)

    enc_ref[...] = jnp.concatenate([h1f, h1b], axis=-1)


def _encoder_call(xb, p, *, bs, T, hidden, block_b):
    H = hidden
    nblocks = bs // block_b
    args = (xb, p['w0'], p['b0'], p['u0f'], p['u0b'],
            p['w1f'], p['w1b'], p['b1'], p['u1f'])
    in_specs = ([pl.BlockSpec((1, T * block_b, NV_PAD), lambda i: (i, 0, 0))]
                + [_bcast_spec(a) for a in args[1:]])
    return pl.pallas_call(
        _encoder_kernel,
        grid=(nblocks,),
        out_shape=jax.ShapeDtypeStruct((bs, 2 * H), jnp.float32),
        in_specs=in_specs,
        out_specs=_batch_spec((block_b, 2 * H)),
        scratch_shapes=[
            pltpu.VMEM((T * block_b, 8 * H), jnp.float32),   # layer-0 in-gates
            pltpu.VMEM((T * block_b, H), jnp.float32),       # layer-0 fwd outs
            pltpu.VMEM((T * block_b, H), jnp.float32),       # layer-0 bwd outs
        ],
        compiler_params=pltpu.CompilerParams(
            dimension_semantics=("parallel",),
            vmem_limit_bytes=VMEM_LIMIT_BYTES),
    )(*args)


# ----------------------------- decoder kernel --------------------------------
# One pallas_call, batch-tiled, for ALL forecast steps: dec / decS / decSC
# (2-layer bidir each), the RESTRICT gating and the Linear(2H->1) head.
# All 6 cells of a layer are lane-packed (gate-major weight layout, block-
# diagonal recurrent weights), so each step is 4 lane-dense matmuls and the
# loop carries only 4 packed (BB, 6H) state arrays plus the (BB, 2H) input.

def _decoder_kernel(enc_ref, inds_ref, cinds_ref,
                    wd0_ref, bd0_ref, u0bd_ref,
                    w1bd_ref, bd1_ref, u1bd_ref,
                    linw_ref, linb_ref, out_ref):
    BB, H2 = enc_ref.shape
    H6 = 3 * H2
    F = out_ref.shape[1]

    inds = inds_ref[...] > 0.0          # (BB, 1)
    cinds = cinds_ref[...] > 0.0
    w_lin = linw_ref[...]               # (1, 2H)
    b_lin = linb_ref[...]               # (1, 1)

    lo = enc_ref[...]                   # lstm_out for step 0: [enc_f | enc_b]
    h0 = jnp.zeros((BB, H6), jnp.float32)
    c0 = jnp.zeros((BB, H6), jnp.float32)
    h1 = jnp.zeros((BB, H6), jnp.float32)
    c1 = jnp.zeros((BB, H6), jnp.float32)

    cols = []
    # Forecast recurrence is sequential; F is small & static -> unroll for LLO
    # visibility.  (For large forecast_length switch to lax.fori_loop with the
    # packed states held in VMEM scratch.)
    for _ in range(F):
        # layer 0: all 6 cells share the same input -> 2 fused matmuls
        g0 = (jnp.dot(lo, wd0_ref[...], preferred_element_type=jnp.float32)
              + jnp.dot(h0, u0bd_ref[...], preferred_element_type=jnp.float32)
              + bd0_ref[...])
        h0, c0 = _lstm_gates(g0, c0, H6)
        # layer 1: per-decoder inputs via block-structured W -> 2 fused matmuls
        g1 = (jnp.dot(h0, w1bd_ref[...], preferred_element_type=jnp.float32)
              + jnp.dot(h1, u1bd_ref[...], preferred_element_type=jnp.float32)
              + bd1_ref[...])
        h1, c1 = _lstm_gates(g1, c1, H6)

        x_out = h1[:, 0:H2]             # dec   (fwd | bwd)
        s_out = h1[:, H2:2 * H2]        # decS
        sc_out = h1[:, 2 * H2:3 * H2]   # decSC
        # RESTRICT=True, NOGATE=False gating
        g = jnp.where(inds, x_out - jnp.maximum(s_out, 0.0), x_out)
        g = jnp.where(cinds, g + jnp.maximum(sc_out, 0.0), g)
        # Linear(2H -> 1) as a lane reduction
        cols.append(jnp.sum(g * w_lin, axis=-1, keepdims=True) + b_lin)
        lo = g

    out_ref[...] = jnp.concatenate(cols, axis=-1)   # single lane-dense store


def _decoder_call(enc, inds, cinds, p, lin, *, bs, hidden, forecast, block_b):
    H = hidden
    nblocks = bs // block_b
    lin_w, lin_b = lin
    args = (enc, inds, cinds,
            p['wd0'], p['bd0'], p['u0bd'],
            p['w1bd'], p['bd1'], p['u1bd'],
            lin_w, lin_b)
    in_specs = ([_batch_spec((block_b, 2 * H)),
                 _batch_spec((block_b, 1)),
                 _batch_spec((block_b, 1))]
                + [_bcast_spec(a) for a in args[3:]])
    return pl.pallas_call(
        _decoder_kernel,
        grid=(nblocks,),
        out_shape=jax.ShapeDtypeStruct((bs, forecast), jnp.float32),
        in_specs=in_specs,
        out_specs=_batch_spec((block_b, forecast)),
        compiler_params=pltpu.CompilerParams(
            dimension_semantics=("parallel",),
            vmem_limit_bytes=VMEM_LIMIT_BYTES),
    )(*args)


# ---------------------------- Block.forward ----------------------------------

def block_forward(xt, xorig, params, *, bs=BATCHSIZE, hidden=UNITS,
                  forecast_length=FORECAST, block_b=BLOCK_B):
    del xorig  # padded in the original module but never used on this path
    origbs, T, nvd = xt.shape
    assert bs % block_b == 0
    x = jnp.pad(xt, ((0, bs - origbs), (0, 0), (0, 0)))   # pad batch to bs

    # inds / Cinds row masks (gate the S / SC corrections); 0 on padded rows
    inds = (jnp.sum(x[:, :, 1], axis=1) > 0).astype(jnp.float32)[:, None]
    cinds = (jnp.sum(x[:, :, 2], axis=1) > 0).astype(jnp.float32)[:, None]

    # GIVMAINIC=False -> encoder input has channels 1:3 zeroed
    xin = x.at[:, :, 1:3].set(0.0)
    xin = jnp.pad(xin, ((0, 0), (0, 0), (0, NV_PAD - nvd)))   # nv -> 8

    # batch-block, time-major layout: block i holds rows [i*BB, (i+1)*BB),
    # within a block row = t*BB + b_local, so the encoder kernel can do ONE
    # sequence-wide input projection per block.
    nblocks = bs // block_b
    xb = xin.transpose(1, 0, 2).reshape(T, nblocks, block_b, NV_PAD)
    xb = xb.transpose(1, 0, 2, 3).reshape(nblocks, T * block_b, NV_PAD)

    enc = _encoder_call(xb, params['enc'], bs=bs, T=T, hidden=hidden,
                        block_b=block_b)
    out = _decoder_call(enc, inds, cinds, params['dec'], params['lin'],
                        bs=bs, hidden=hidden, forecast=forecast_length,
                        block_b=block_b)
    return out[:origbs, :]


# ------------------------ deterministic parameter init -----------------------

def _uniform(key, shape, bound):
    return jax.random.uniform(key, shape, jnp.float32, -bound, bound)


def _lstm_dir_params(key, din, hidden):
    """PyTorch-style LSTM layer/dir params, pre-transposed."""
    bound = hidden ** -0.5
    k1, k2, k3, k4 = jax.random.split(key, 4)
    wih = _uniform(k1, (4 * hidden, din), bound)
    whh = _uniform(k2, (4 * hidden, hidden), bound)
    bih = _uniform(k3, (4 * hidden,), bound)
    bhh = _uniform(k4, (4 * hidden,), bound)
    return wih.T, whh.T, bih + bhh            # (din,4H), (H,4H), (4H,)


def make_raw_params(key, *, nv=NV, hidden=UNITS):
    raw = {'enc': {}, 'dec': {}}
    for l in range(LSTM_LAYERS):                       # encoder
        din = nv if l == 0 else 2 * hidden
        for d in range(2):
            key, sub = jax.random.split(key)
            raw['enc'][(l, d)] = _lstm_dir_params(sub, din, hidden)
    for k in range(3):                                 # dec / decS / decSC
        for l in range(LSTM_LAYERS):
            for d in range(2):
                key, sub = jax.random.split(key)
                raw['dec'][(k, l, d)] = _lstm_dir_params(sub, 2 * hidden, hidden)
    key, kw, kb = jax.random.split(key, 3)
    bound = (2 * hidden) ** -0.5
    raw['lin'] = (_uniform(kw, (1, 2 * hidden), bound),
                  _uniform(kb, (1, 1), bound))
    # TODO(synk): self.lstmS / self.lstmSC / self.linSC are constructed in
    # __init__ but never used in forward on this path, so not materialized.
    return raw


def pack_params(raw, *, hidden=UNITS, nv=NV, nv_pad=NV_PAD):
    H = hidden
    enc = raw['enc']
    w0 = jnp.concatenate([enc[(0, 0)][0], enc[(0, 1)][0]], axis=1)   # (nv, 8H)
    w0 = jnp.pad(w0, ((0, nv_pad - nv), (0, 0)))                     # (8, 8H)
    penc = dict(
        w0=w0,
        b0=jnp.concatenate([enc[(0, 0)][2], enc[(0, 1)][2]])[None, :],   # (1,8H)
        u0f=enc[(0, 0)][1], u0b=enc[(0, 1)][1],                          # (H,4H)
        w1f=enc[(1, 0)][0], w1b=enc[(1, 1)][0],                          # (2H,4H)
        b1=jnp.concatenate([enc[(1, 0)][2], enc[(1, 1)][2]])[None, :],   # (1,8H)
        u1f=enc[(1, 0)][1],
        # u1b never needed: layer-1 backward only contributes its first step.
    )

    # Decoder packing: 6 cells per layer, cell index c = 2*decoder + dir.
    # Gate-major column layout: col = gate*6H + c*H + u  (gate order i,f,g,o),
    # so all 6 cells' gate math runs on packed (B, 6H) state arrays and each
    # layer needs exactly one input matmul + one block-diagonal recurrent
    # matmul per step.
    dec = raw['dec']
    n = 6
    cells0 = [dec[(k, 0, d)] for k in range(3) for d in range(2)]
    cells1 = [dec[(k, 1, d)] for k in range(3) for d in range(2)]

    def pack_wih(ws):               # list of (din, 4H) -> (din, 4*n*H)
        din = ws[0].shape[0]
        stk = jnp.stack(ws, axis=1).reshape(din, n, 4, H)
        return jnp.transpose(stk, (0, 2, 1, 3)).reshape(din, 4 * n * H)

    def pack_bias(bls):             # list of (4H,) -> (1, 4*n*H)
        stk = jnp.stack(bls, axis=0).reshape(n, 4, H)
        return jnp.transpose(stk, (1, 0, 2)).reshape(1, 4 * n * H)

    def pack_blockdiag(us):         # list of (H, 4H) -> (n*H, 4*n*H)
        out = jnp.zeros((n * H, 4 * n * H), jnp.float32)
        for c, u in enumerate(us):
            for g in range(4):
                out = out.at[c * H:(c + 1) * H,
                             g * n * H + c * H:g * n * H + (c + 1) * H].set(
                                 u[:, g * H:(g + 1) * H])
        return out

    def pack_layer1_win():          # (6H, 24H): decoder k layer-1 input is
        out = jnp.zeros((n * H, 4 * n * H), jnp.float32)   # h0[:, 2kH:(2k+2)H]
        for k in range(3):
            for d in range(2):
                w = dec[(k, 1, d)][0]              # (2H, 4H)
                c = 2 * k + d
                for g in range(4):
                    out = out.at[2 * k * H:(2 * k + 2) * H,
                                 g * n * H + c * H:g * n * H + (c + 1) * H].set(
                                     w[:, g * H:(g + 1) * H])
        return out

    pdec = dict(
        wd0=pack_wih([c[0] for c in cells0]),          # (2H, 24H)
        bd0=pack_bias([c[2] for c in cells0]),         # (1, 24H)
        u0bd=pack_blockdiag([c[1] for c in cells0]),   # (6H, 24H)
        w1bd=pack_layer1_win(),                        # (6H, 24H)
        bd1=pack_bias([c[2] for c in cells1]),         # (1, 24H)
        u1bd=pack_blockdiag([c[1] for c in cells1]),   # (6H, 24H)
    )
    return {'enc': penc, 'dec': pdec, 'lin': raw['lin']}


# ------------------------ pure-JAX reference (correctness) -------------------

def _lstm_cell_ref(x, h, c, wih_t, whh_t, b):
    H = h.shape[-1]
    g = (jnp.dot(x, wih_t, precision=lax.Precision.HIGHEST)
         + jnp.dot(h, whh_t, precision=lax.Precision.HIGHEST) + b)
    return _lstm_gates(g, c, H)


def reference_forward(xt, raw, *, bs=BATCHSIZE, hidden=UNITS,
                      forecast_length=FORECAST):
    origbs, T, _ = xt.shape
    x = jnp.pad(xt, ((0, bs - origbs), (0, 0), (0, 0)))
    inds = (jnp.sum(x[:, :, 1], axis=1) > 0)[:, None]
    cinds = (jnp.sum(x[:, :, 2], axis=1) > 0)[:, None]
    xin = x.at[:, :, 1:3].set(0.0)

    layer_in = xin
    for l in range(LSTM_LAYERS):
        outs = []
        for d in range(2):
            wih_t, whh_t, b = raw['enc'][(l, d)]
            seq = layer_in if d == 0 else layer_in[:, ::-1, :]
            xs = jnp.swapaxes(seq, 0, 1)
            h0 = jnp.zeros((bs, hidden), jnp.float32)
            c0 = jnp.zeros((bs, hidden), jnp.float32)

            def stepf(carry, x_t, wih_t=wih_t, whh_t=whh_t, b=b):
                h, c = carry
                h, c = _lstm_cell_ref(x_t, h, c, wih_t, whh_t, b)
                return (h, c), h

            _, ys = lax.scan(stepf, (h0, c0), xs)
            ys = jnp.swapaxes(ys, 0, 1)
            if d == 1:
                ys = ys[:, ::-1, :]
            outs.append(ys)
        layer_in = jnp.concatenate(outs, axis=-1)
    lstm_out = layer_in[:, -1, :]

    states = {(k, l, d): (jnp.zeros((bs, hidden), jnp.float32),
                          jnp.zeros((bs, hidden), jnp.float32))
              for k in range(3) for l in range(LSTM_LAYERS) for d in range(2)}
    lin_w, lin_b = raw['lin']
    cols = []
    for _ in range(forecast_length):
        outs_k = []
        for k in range(3):
            layer_x = lstm_out
            for l in range(LSTM_LAYERS):
                hs = []
                for d in range(2):
                    wih_t, whh_t, b = raw['dec'][(k, l, d)]
                    h, c = states[(k, l, d)]
                    h, c = _lstm_cell_ref(layer_x, h, c, wih_t, whh_t, b)
                    states[(k, l, d)] = (h, c)
                    hs.append(h)
                layer_x = jnp.concatenate(hs, axis=-1)
            outs_k.append(layer_x)
        xx, s, sc = outs_k
        g = jnp.where(inds, xx - jnp.maximum(s, 0.0), xx)
        g = jnp.where(cinds, g + jnp.maximum(sc, 0.0), g)
        cols.append(jnp.dot(g, lin_w.T, precision=lax.Precision.HIGHEST) + lin_b)
        lstm_out = g
    outer = jnp.concatenate(cols, axis=1)
    return outer[:origbs, :]


if __name__ == "__main__":
    key = jax.random.PRNGKey(0)
    kparam, kx, kxo = jax.random.split(key, 3)

    raw = make_raw_params(kparam)
    params = pack_params(raw)

    origbs = 6                      # < BATCHSIZE, exercises the pad-to-bs path
    xt = jax.random.normal(kx, (origbs, BACKCAST, NV), jnp.float32)
    xorig = jax.random.normal(kxo, (origbs, BACKCAST, NV), jnp.float32)

    fwd = jax.jit(lambda a, b: block_forward(a, b, params))
    outer = jax.block_until_ready(fwd(xt, xorig))

    assert outer.shape == (origbs, FORECAST), outer.shape
    assert bool(jnp.all(jnp.isfinite(outer)))

    ref = jax.block_until_ready(jax.jit(lambda a: reference_forward(a, raw))(xt))
    err = float(jnp.max(jnp.abs(outer - ref)))
    assert err < 5e-3, f"max abs err vs pure-JAX reference: {err}"

    print("KERNEL_OK")
</pallas_src>

<mosaic_0001>
module attributes {stable_mosaic.version = 11 : i64} {
  func.func @_decoder_kernel(%arg0: i32, %arg1: memref<8x64xf32, #tpu.memory_space<vmem>>, %arg2: memref<8x1xf32, #tpu.memory_space<vmem>>, %arg3: memref<8x1xf32, #tpu.memory_space<vmem>>, %arg4: memref<64x768xf32, #tpu.memory_space<vmem>>, %arg5: memref<1x768xf32, #tpu.memory_space<vmem>>, %arg6: memref<192x768xf32, #tpu.memory_space<vmem>>, %arg7: memref<192x768xf32, #tpu.memory_space<vmem>>, %arg8: memref<1x768xf32, #tpu.memory_space<vmem>>, %arg9: memref<192x768xf32, #tpu.memory_space<vmem>>, %arg10: memref<1x64xf32, #tpu.memory_space<vmem>>, %arg11: memref<1x1xf32, #tpu.memory_space<vmem>>, %arg12: memref<8x4xf32, #tpu.memory_space<vmem>>) attributes {dimension_semantics = [#tpu.dimension_semantics<parallel>], iteration_bounds = array<i64: 2>, scalar_prefetch = 0 : i64, scratch_operands = 0 : i64, tpu.core_type = #tpu.core_type<tc>, window_params = [{transform_indices = @transform_0, window_bounds = array<i64: 8, 64>}, {transform_indices = @transform_1, window_bounds = array<i64: 8, 1>}, {transform_indices = @transform_2, window_bounds = array<i64: 8, 1>}, {pipeline_mode = #tpu.pipeline_mode<synchronous>, transform_indices = @transform_3, window_bounds = array<i64: 64, 768>}, {pipeline_mode = #tpu.pipeline_mode<synchronous>, transform_indices = @transform_4, window_bounds = array<i64: 1, 768>}, {pipeline_mode = #tpu.pipeline_mode<synchronous>, transform_indices = @transform_5, window_bounds = array<i64: 192, 768>}, {pipeline_mode = #tpu.pipeline_mode<synchronous>, transform_indices = @transform_6, window_bounds = array<i64: 192, 768>}, {pipeline_mode = #tpu.pipeline_mode<synchronous>, transform_indices = @transform_7, window_bounds = array<i64: 1, 768>}, {pipeline_mode = #tpu.pipeline_mode<synchronous>, transform_indices = @transform_8, window_bounds = array<i64: 192, 768>}, {pipeline_mode = #tpu.pipeline_mode<synchronous>, transform_indices = @transform_9, window_bounds = array<i64: 1, 64>}, {pipeline_mode = #tpu.pipeline_mode<synchronous>, transform_indices = @transform_10, window_bounds = array<i64: 1, 1>}, {transform_indices = @transform_11, window_bounds = array<i64: 8, 4>}]} {
    %c0 = arith.constant 0 : index
    %c0_0 = arith.constant 0 : index
    %0 = vector.load %arg2[%c0, %c0_0] : memref<8x1xf32, #tpu.memory_space<vmem>>, vector<8x1xf32>
    %cst = arith.constant 0.000000e+00 : f32
    %1 = vector.broadcast %cst : f32 to vector<8x1xf32>
    %2 = arith.cmpf ogt, %0, %1 : vector<8x1xf32>
    %c0_1 = arith.constant 0 : index
    %c0_2 = arith.constant 0 : index
    %3 = vector.load %arg3[%c0_1, %c0_2] : memref<8x1xf32, #tpu.memory_space<vmem>>, vector<8x1xf32>
    %cst_3 = arith.constant 0.000000e+00 : f32
    %4 = vector.broadcast %cst_3 : f32 to vector<8x1xf32>
    %5 = arith.cmpf ogt, %3, %4 : vector<8x1xf32>
    %c0_4 = arith.constant 0 : index
    %c0_5 = arith.constant 0 : index
    %6 = vector.load %arg10[%c0_4, %c0_5] : memref<1x64xf32, #tpu.memory_space<vmem>>, vector<1x64xf32>
    %c0_6 = arith.constant 0 : index
    %c0_7 = arith.constant 0 : index
    %7 = vector.load %arg11[%c0_6, %c0_7] : memref<1x1xf32, #tpu.memory_space<vmem>>, vector<1x1xf32>
    %c0_8 = arith.constant 0 : index
    %c0_9 = arith.constant 0 : index
    %8 = vector.load %arg1[%c0_8, %c0_9] : memref<8x64xf32, #tpu.memory_space<vmem>>, vector<8x64xf32>
    %cst_10 = arith.constant 0.000000e+00 : f32
    %9 = vector.broadcast %cst_10 : f32 to vector<8x192xf32>
    %cst_11 = arith.constant 0.000000e+00 : f32
    %10 = vector.broadcast %cst_11 : f32 to vector<8x192xf32>
    %cst_12 = arith.constant 0.000000e+00 : f32
    %11 = vector.broadcast %cst_12 : f32 to vector<8x192xf32>
    %cst_13 = arith.constant 0.000000e+00 : f32
    %12 = vector.broadcast %cst_13 : f32 to vector<8x192xf32>
    %c0_14 = arith.constant 0 : index
    %c0_15 = arith.constant 0 : index
    %13 = vector.load %arg4[%c0_14, %c0_15] : memref<64x768xf32, #tpu.memory_space<vmem>>, vector<64x768xf32>
    %cst_16 = arith.constant dense<0.000000e+00> : vector<8x768xf32>
    %14 = tpu.matmul %8, %13, %cst_16 {dimension_numbers = #tpu.dot_dimension_numbers<[1], [0], [0], [1], [0, 0, 1, 1], [], []>} : vector<8x64xf32>, vector<64x768xf32>, vector<8x768xf32> -> vector<8x768xf32>
    %c0_17 = arith.constant 0 : index
    %c0_18 = arith.constant 0 : index
    %15 = vector.load %arg6[%c0_17, %c0_18] : memref<192x768xf32, #tpu.memory_space<vmem>>, vector<192x768xf32>
    %cst_19 = arith.constant dense<0.000000e+00> : vector<8x768xf32>
    %16 = tpu.matmul %9, %15, %cst_19 {dimension_numbers = #tpu.dot_dimension_numbers<[1], [0], [0], [1], [0, 0, 1, 1], [], []>} : vector<8x192xf32>, vector<192x768xf32>, vector<8x768xf32> -> vector<8x768xf32>
    %17 = arith.addf %14, %16 : vector<8x768xf32>
    %c0_20 = arith.constant 0 : index
    %c0_21 = arith.constant 0 : index
    %18 = vector.load %arg5[%c0_20, %c0_21] : memref<1x768xf32, #tpu.memory_space<vmem>>, vector<1x768xf32>
    %19 = vector.broadcast %18 : vector<1x768xf32> to vector<8x768xf32>
    %20 = arith.addf %17, %19 : vector<8x768xf32>
    %21 = arith.negf %20 : vector<8x768xf32>
    %22 = math.exp %21 : vector<8x768xf32>
    %cst_22 = arith.constant 1.000000e+00 : f32
    %23 = vector.broadcast %cst_22 : f32 to vector<8x768xf32>
    %24 = arith.addf %23, %22 : vector<8x768xf32>
    %25 = arith.divf %23, %24 : vector<8x768xf32>
    %26 = vector.extract_strided_slice %25 {offsets = [0, 0], sizes = [8, 192], strides = [1, 1]} : vector<8x768xf32> to vector<8x192xf32>
    %27 = vector.extract_strided_slice %25 {offsets = [0, 192], sizes = [8, 192], strides = [1, 1]} : vector<8x768xf32> to vector<8x192xf32>
    %28 = vector.extract_strided_slice %25 {offsets = [0, 576], sizes = [8, 192], strides = [1, 1]} : vector<8x768xf32> to vector<8x192xf32>
    %29 = vector.extract_strided_slice %20 {offsets = [0, 384], sizes = [8, 192], strides = [1, 1]} : vector<8x768xf32> to vector<8x192xf32>
    %30 = math.tanh %29 : vector<8x192xf32>
    %31 = arith.mulf %27, %10 : vector<8x192xf32>
    %32 = arith.mulf %26, %30 : vector<8x192xf32>
    %33 = arith.addf %31, %32 : vector<8x192xf32>
    %34 = math.tanh %33 : vector<8x192xf32>
    %35 = arith.mulf %28, %34 : vector<8x192xf32>
    %c0_23 = arith.constant 0 : index
    %c0_24 = arith.constant 0 : index
    %36 = vector.load %arg7[%c0_23, %c0_24] : memref<192x768xf32, #tpu.memory_space<vmem>>, vector<192x768xf32>
    %cst_25 = arith.constant dense<0.000000e+00> : vector<8x768xf32>
    %37 = tpu.matmul %35, %36, %cst_25 {dimension_numbers = #tpu.dot_dimension_numbers<[1], [0], [0], [1], [0, 0, 1, 1], [], []>} : vector<8x192xf32>, vector<192x768xf32>, vector<8x768xf32> -> vector<8x768xf32>
    %c0_26 = arith.constant 0 : index
    %c0_27 = arith.constant 0 : index
    %38 = vector.load %arg9[%c0_26, %c0_27] : memref<192x768xf32, #tpu.memory_space<vmem>>, vector<192x768xf32>
    %cst_28 = arith.constant dense<0.000000e+00> : vector<8x768xf32>
    %39 = tpu.matmul %11, %38, %cst_28 {dimension_numbers = #tpu.dot_dimension_numbers<[1], [0], [0], [1], [0, 0, 1, 1], [], []>} : vector<8x192xf32>, vector<192x768xf32>, vector<8x768xf32> -> vector<8x768xf32>
    %40 = arith.addf %37, %39 : vector<8x768xf32>
    %c0_29 = arith.constant 0 : index
    %c0_30 = arith.constant 0 : index
    %41 = vector.load %arg8[%c0_29, %c0_30] : memref<1x768xf32, #tpu.memory_space<vmem>>, vector<1x768xf32>
    %42 = vector.broadcast %41 : vector<1x768xf32> to vector<8x768xf32>
    %43 = arith.addf %40, %42 : vector<8x768xf32>
    %44 = arith.negf %43 : vector<8x768xf32>
    %45 = math.exp %44 : vector<8x768xf32>
    %cst_31 = arith.constant 1.000000e+00 : f32
    %46 = vector.broadcast %cst_31 : f32 to vector<8x768xf32>
    %47 = arith.addf %46, %45 : vector<8x768xf32>
    %48 = arith.divf %46, %47 : vector<8x768xf32>
    %49 = vector.extract_strided_slice %48 {offsets = [0, 0], sizes = [8, 192], strides = [1, 1]} : vector<8x768xf32> to vector<8x192xf32>
    %50 = vector.extract_strided_slice %48 {offsets = [0, 192], sizes = [8, 192], strides = [1, 1]} : vector<8x768xf32> to vector<8x192xf32>
    %51 = vector.extract_strided_slice %48 {offsets = [0, 576], sizes = [8, 192], strides = [1, 1]} : vector<8x768xf32> to vector<8x192xf32>
    %52 = vector.extract_strided_slice %43 {offsets = [0, 384], sizes = [8, 192], strides = [1, 1]} : vector<8x768xf32> to vector<8x192xf32>
    %53 = math.tanh %52 : vector<8x192xf32>
    %54 = arith.mulf %50, %12 : vector<8x192xf32>
    %55 = arith.mulf %49, %53 : vector<8x192xf32>
    %56 = arith.addf %54, %55 : vector<8x192xf32>
    %57 = math.tanh %56 : vector<8x192xf32>
    %58 = arith.mulf %51, %57 : vector<8x192xf32>
    %59 = vector.extract_strided_slice %58 {offsets = [0, 0], sizes = [8, 64], strides = [1, 1]} : vector<8x192xf32> to vector<8x64xf32>
    %60 = vector.extract_strided_slice %58 {offsets = [0, 64], sizes = [8, 64], strides = [1, 1]} : vector<8x192xf32> to vector<8x64xf32>
    %61 = vector.extract_strided_slice %58 {offsets = [0, 128], sizes = [8, 64], strides = [1, 1]} : vector<8x192xf32> to vector<8x64xf32>
    %cst_32 = arith.constant 0.000000e+00 : f32
    %62 = vector.broadcast %cst_32 : f32 to vector<8x64xf32>
    %63 = arith.maximumf %60, %62 : vector<8x64xf32>
    %64 = arith.subf %59, %63 : vector<8x64xf32>
    %65 = vector.shape_cast %2 : vector<8x1xi1> to vector<8x1xi1>
    %66 = vector.broadcast %65 : vector<8x1xi1> to vector<8x64xi1>
    %67 = arith.select %66, %64, %59 : vector<8x64xi1>, vector<8x64xf32>
    %cst_33 = arith.constant 0.000000e+00 : f32
    %68 = vector.broadcast %cst_33 : f32 to vector<8x64xf32>
    %69 = arith.maximumf %61, %68 : vector<8x64xf32>
    %70 = arith.addf %67, %69 : vector<8x64xf32>
    %71 = vector.shape_cast %5 : vector<8x1xi1> to vector<8x1xi1>
    %72 = vector.broadcast %71 : vector<8x1xi1> to vector<8x64xi1>
    %73 = arith.select %72, %70, %67 : vector<8x64xi1>, vector<8x64xf32>
    %74 = vector.broadcast %6 : vector<1x64xf32> to vector<8x64xf32>
    %75 = arith.mulf %73, %74 : vector<8x64xf32>
    %cst_34 = arith.constant dense<0.000000e+00> : vector<8xf32>
    %76 = vector.multi_reduction <add>, %75, %cst_34 [1] : vector<8x64xf32> to vector<8xf32>
    %77 = vector.shape_cast %76 : vector<8xf32> to vector<8x1xf32>
    %78 = vector.broadcast %7 : vector<1x1xf32> to vector<8x1xf32>
    %79 = arith.addf %77, %78 : vector<8x1xf32>
    %c0_35 = arith.constant 0 : index
    %c0_36 = arith.constant 0 : index
    %80 = vector.load %arg4[%c0_35, %c0_36] : memref<64x768xf32, #tpu.memory_space<vmem>>, vector<64x768xf32>
    %cst_37 = arith.constant dense<0.000000e+00> : vector<8x768xf32>
    %81 = tpu.matmul %73, %80, %cst_37 {dimension_numbers = #tpu.dot_dimension_numbers<[1], [0], [0], [1], [0, 0, 1, 1], [], []>} : vector<8x64xf32>, vector<64x768xf32>, vector<8x768xf32> -> vector<8x768xf32>
    %c0_38 = arith.constant 0 : index
    %c0_39 = arith.constant 0 : index
    %82 = vector.load %arg6[%c0_38, %c0_39] : memref<192x768xf32, #tpu.memory_space<vmem>>, vector<192x768xf32>
    %cst_40 = arith.constant dense<0.000000e+00> : vector<8x768xf32>
    %83 = tpu.matmul %35, %82, %cst_40 {dimension_numbers = #tpu.dot_dimension_numbers<[1], [0], [0], [1], [0, 0, 1, 1], [], []>} : vector<8x192xf32>, vector<192x768xf32>, vector<8x768xf32> -> vector<8x768xf32>
    %84 = arith.addf %81, %83 : vector<8x768xf32>
    %c0_41 = arith.constant 0 : index
    %c0_42 = arith.constant 0 : index
    %85 = vector.load %arg5[%c0_41, %c0_42] : memref<1x768xf32, #tpu.memory_space<vmem>>, vector<1x768xf32>
    %86 = vector.broadcast %85 : vector<1x768xf32> to vector<8x768xf32>
    %87 = arith.addf %84, %86 : vector<8x768xf32>
    %88 = arith.negf %87 : vector<8x768xf32>
    %89 = math.exp %88 : vector<8x768xf32>
    %cst_43 = arith.constant 1.000000e+00 : f32
    %90 = vector.broadcast %cst_43 : f32 to vector<8x768xf32>
    %91 = arith.addf %90, %89 : vector<8x768xf32>
    %92 = arith.divf %90, %91 : vector<8x768xf32>
    %93 = vector.extract_strided_slice %92 {offsets = [0, 0], sizes = [8, 192], strides = [1, 1]} : vector<8x768xf32> to vector<8x192xf32>
    %94 = vector.extract_strided_slice %92 {offsets = [0, 192], sizes = [8, 192], strides = [1, 1]} : vector<8x768xf32> to vector<8x192xf32>
    %95 = vector.extract_strided_slice %92 {offsets = [0, 576], sizes = [8, 192], strides = [1, 1]} : vector<8x768xf32> to vector<8x192xf32>
    %96 = vector.extract_strided_slice %87 {offsets = [0, 384], sizes = [8, 192], strides = [1, 1]} : vector<8x768xf32> to vector<8x192xf32>
    %97 = math.tanh %96 : vector<8x192xf32>
    %98 = arith.mulf %94, %33 : vector<8x192xf32>
    %99 = arith.mulf %93, %97 : vector<8x192xf32>
    %100 = arith.addf %98, %99 : vector<8x192xf32>
    %101 = math.tanh %100 : vector<8x192xf32>
    %102 = arith.mulf %95, %101 : vector<8x192xf32>
    %c0_44 = arith.constant 0 : index
    %c0_45 = arith.constant 0 : index
    %103 = vector.load %arg7[%c0_44, %c0_45] : memref<192x768xf32, #tpu.memory_space<vmem>>, vector<192x768xf32>
    %cst_46 = arith.constant dense<0.000000e+00> : vector<8x768xf32>
    %104 = tpu.matmul %102, %103, %cst_46 {dimension_numbers = #tpu.dot_dimension_numbers<[1], [0], [0], [1], [0, 0, 1, 1], [], []>} : vector<8x192xf32>, vector<192x768xf32>, vector<8x768xf32> -> vector<8x768xf32>
    %c0_47 = arith.constant 0 : index
    %c0_48 = arith.constant 0 : index
    %105 = vector.load %arg9[%c0_47, %c0_48] : memref<192x768xf32, #tpu.memory_space<vmem>>, vector<192x768xf32>
    %cst_49 = arith.constant dense<0.000000e+00> : vector<8x768xf32>
    %106 = tpu.matmul %58, %105, %cst_49 {dimension_numbers = #tpu.dot_dimension_numbers<[1], [0], [0], [1], [0, 0, 1, 1], [], []>} : vector<8x192xf32>, vector<192x768xf32>, vector<8x768xf32> -> vector<8x768xf32>
    %107 = arith.addf %104, %106 : vector<8x768xf32>
    %c0_50 = arith.constant 0 : index
    %c0_51 = arith.constant 0 : index
    %108 = vector.load %arg8[%c0_50, %c0_51] : memref<1x768xf32, #tpu.memory_space<vmem>>, vector<1x768xf32>
    %109 = vector.broadcast %108 : vector<1x768xf32> to vector<8x768xf32>
    %110 = arith.addf %107, %109 : vector<8x768xf32>
    %111 = arith.negf %110 : vector<8x768xf32>
    %112 = math.exp %111 : vector<8x768xf32>
    %cst_52 = arith.constant 1.000000e+00 : f32
    %113 = vector.broadcast %cst_52 : f32 to vector<8x768xf32>
    %114 = arith.addf %113, %112 : vector<8x768xf32>
    %115 = arith.divf %113, %114 : vector<8x768xf32>
    %116 = vector.extract_strided_slice %115 {offsets = [0, 0], sizes = [8, 192], strides = [1, 1]} : vector<8x768xf32> to vector<8x192xf32>
    %117 = vector.extract_strided_slice %115 {offsets = [0, 192], sizes = [8, 192], strides = [1, 1]} : vector<8x768xf32> to vector<8x192xf32>
    %118 = vector.extract_strided_slice %115 {offsets = [0, 576], sizes = [8, 192], strides = [1, 1]} : vector<8x768xf32> to vector<8x192xf32>
    %119 = vector.extract_strided_slice %110 {offsets = [0, 384], sizes = [8, 192], strides = [1, 1]} : vector<8x768xf32> to vector<8x192xf32>
    %120 = math.tanh %119 : vector<8x192xf32>
    %121 = arith.mulf %117, %56 : vector<8x192xf32>
    %122 = arith.mulf %116, %120 : vector<8x192xf32>
    %123 = arith.addf %121, %122 : vector<8x192xf32>
    %124 = math.tanh %123 : vector<8x192xf32>
    %125 = arith.mulf %118, %124 : vector<8x192xf32>
    %126 = vector.extract_strided_slice %125 {offsets = [0, 0], sizes = [8, 64], strides = [1, 1]} : vector<8x192xf32> to vector<8x64xf32>
    %127 = vector.extract_strided_slice %125 {offsets = [0, 64], sizes = [8, 64], strides = [1, 1]} : vector<8x192xf32> to vector<8x64xf32>
    %128 = vector.extract_strided_slice %125 {offsets = [0, 128], sizes = [8, 64], strides = [1, 1]} : vector<8x192xf32> to vector<8x64xf32>
    %cst_53 = arith.constant 0.000000e+00 : f32
    %129 = vector.broadcast %cst_53 : f32 to vector<8x64xf32>
    %130 = arith.maximumf %127, %129 : vector<8x64xf32>
    %131 = arith.subf %126, %130 : vector<8x64xf32>
    %132 = vector.shape_cast %2 : vector<8x1xi1> to vector<8x1xi1>
    %133 = vector.broadcast %132 : vector<8x1xi1> to vector<8x64xi1>
    %134 = arith.select %133, %131, %126 : vector<8x64xi1>, vector<8x64xf32>
    %cst_54 = arith.constant 0.000000e+00 : f32
    %135 = vector.broadcast %cst_54 : f32 to vector<8x64xf32>
    %136 = arith.maximumf %128, %135 : vector<8x64xf32>
    %137 = arith.addf %134, %136 : vector<8x64xf32>
    %138 = vector.shape_cast %5 : vector<8x1xi1> to vector<8x1xi1>
    %139 = vector.broadcast %138 : vector<8x1xi1> to vector<8x64xi1>
    %140 = arith.select %139, %137, %134 : vector<8x64xi1>, vector<8x64xf32>
    %141 = vector.broadcast %6 : vector<1x64xf32> to vector<8x64xf32>
    %142 = arith.mulf %140, %141 : vector<8x64xf32>
    %cst_55 = arith.constant dense<0.000000e+00> : vector<8xf32>
    %143 = vector.multi_reduction <add>, %142, %cst_55 [1] : vector<8x64xf32> to vector<8xf32>
    %144 = vector.shape_cast %143 : vector<8xf32> to vector<8x1xf32>
    %145 = vector.broadcast %7 : vector<1x1xf32> to vector<8x1xf32>
    %146 = arith.addf %144, %145 : vector<8x1xf32>
    %c0_56 = arith.constant 0 : index
    %c0_57 = arith.constant 0 : index
    %147 = vector.load %arg4[%c0_56, %c0_57] : memref<64x768xf32, #tpu.memory_space<vmem>>, vector<64x768xf32>
    %cst_58 = arith.constant dense<0.000000e+00> : vector<8x768xf32>
    %148 = tpu.matmul %140, %147, %cst_58 {dimension_numbers = #tpu.dot_dimension_numbers<[1], [0], [0], [1], [0, 0, 1, 1], [], []>} : vector<8x64xf32>, vector<64x768xf32>, vector<8x768xf32> -> vector<8x768xf32>
    %c0_59 = arith.constant 0 : index
    %c0_60 = arith.constant 0 : index
    %149 = vector.load %arg6[%c0_59, %c0_60] : memref<192x768xf32, #tpu.memory_space<vmem>>, vector<192x768xf32>
    %cst_61 = arith.constant dense<0.000000e+00> : vector<8x768xf32>
    %150 = tpu.matmul %102, %149, %cst_61 {dimension_numbers = #tpu.dot_dimension_numbers<[1], [0], [0], [1], [0, 0, 1, 1], [], []>} : vector<8x192xf32>, vector<192x768xf32>, vector<8x768xf32> -> vector<8x768xf32>
    %151 = arith.addf %148, %150 : vector<8x768xf32>
    %c0_62 = arith.constant 0 : index
    %c0_63 = arith.constant 0 : index
    %152 = vector.load %arg5[%c0_62, %c0_63] : memref<1x768xf32, #tpu.memory_space<vmem>>, vector<1x768xf32>
    %153 = vector.broadcast %152 : vector<1x768xf32> to vector<8x768xf32>
    %154 = arith.addf %151, %153 : vector<8x768xf32>
    %155 = arith.negf %154 : vector<8x768xf32>
    %156 = math.exp %155 : vector<8x768xf32>
    %cst_64 = arith.constant 1.000000e+00 : f32
    %157 = vector.broadcast %cst_64 : f32 to vector<8x768xf32>
    %158 = arith.addf %157, %156 : vector<8x768xf32>
    %159 = arith.divf %157, %158 : vector<8x768xf32>
    %160 = vector.extract_strided_slice %159 {offsets = [0, 0], sizes = [8, 192], strides = [1, 1]} : vector<8x768xf32> to vector<8x192xf32>
    %161 = vector.extract_strided_slice %159 {offsets = [0, 192], sizes = [8, 192], strides = [1, 1]} : vector<8x768xf32> to vector<8x192xf32>
    %162 = vector.extract_strided_slice %159 {offsets = [0, 576], sizes = [8, 192], strides = [1, 1]} : vector<8x768xf32> to vector<8x192xf32>
    %163 = vector.extract_strided_slice %154 {offsets = [0, 384], sizes = [8, 192], strides = [1, 1]} : vector<8x768xf32> to vector<8x192xf32>
    %164 = math.tanh %163 : vector<8x192xf32>
    %165 = arith.mulf %161, %100 : vector<8x192xf32>
    %166 = arith.mulf %160, %164 : vector<8x192xf32>
    %167 = arith.addf %165, %166 : vector<8x192xf32>
    %168 = math.tanh %167 : vector<8x192xf32>
    %169 = arith.mulf %162, %168 : vector<8x192xf32>
    %c0_65 = arith.constant 0 : index
    %c0_66 = arith.constant 0 : index
    %170 = vector.load %arg7[%c0_65, %c0_66] : memref<192x768xf32, #tpu.memory_space<vmem>>, vector<192x768xf32>
    %cst_67 = arith.constant dense<0.000000e+00> : vector<8x768xf32>
    %171 = tpu.matmul %169, %170, %cst_67 {dimension_numbers = #tpu.dot_dimension_numbers<[1], [0], [0], [1], [0, 0, 1, 1], [], []>} : vector<8x192xf32>, vector<192x768xf32>, vector<8x768xf32> -> vector<8x768xf32>
    %c0_68 = arith.constant 0 : index
    %c0_69 = arith.constant 0 : index
    %172 = vector.load %arg9[%c0_68, %c0_69] : memref<192x768xf32, #tpu.memory_space<vmem>>, vector<192x768xf32>
    %cst_70 = arith.constant dense<0.000000e+00> : vector<8x768xf32>
    %173 = tpu.matmul %125, %172, %cst_70 {dimension_numbers = #tpu.dot_dimension_numbers<[1], [0], [0], [1], [0, 0, 1, 1], [], []>} : vector<8x192xf32>, vector<192x768xf32>, vector<8x768xf32> -> vector<8x768xf32>
    %174 = arith.addf %171, %173 : vector<8x768xf32>
    %c0_71 = arith.constant 0 : index
    %c0_72 = arith.constant 0 : index
    %175 = vector.load %arg8[%c0_71, %c0_72] : memref<1x768xf32, #tpu.memory_space<vmem>>, vector<1x768xf32>
    %176 = vector.broadcast %175 : vector<1x768xf32> to vector<8x768xf32>
    %177 = arith.addf %174, %176 : vector<8x768xf32>
    %178 = arith.negf %177 : vector<8x768xf32>
    %179 = math.exp %178 : vector<8x768xf32>
    %cst_73 = arith.constant 1.000000e+00 : f32
    %180 = vector.broadcast %cst_73 : f32 to vector<8x768xf32>
    %181 = arith.addf %180, %179 : vector<8x768xf32>
    %182 = arith.divf %180, %181 : vector<8x768xf32>
    %183 = vector.extract_strided_slice %182 {offsets = [0, 0], sizes = [8, 192], strides = [1, 1]} : vector<8x768xf32> to vector<8x192xf32>
    %184 = vector.extract_strided_slice %182 {offsets = [0, 192], sizes = [8, 192], strides = [1, 1]} : vector<8x768xf32> to vector<8x192xf32>
    %185 = vector.extract_strided_slice %182 {offsets = [0, 576], sizes = [8, 192], strides = [1, 1]} : vector<8x768xf32> to vector<8x192xf32>
    %186 = vector.extract_strided_slice %177 {offsets = [0, 384], sizes = [8, 192], strides = [1, 1]} : vector<8x768xf32> to vector<8x192xf32>
    %187 = math.tanh %186 : vector<8x192xf32>
    %188 = arith.mulf %184, %123 : vector<8x192xf32>
    %189 = arith.mulf %183, %187 : vector<8x192xf32>
    %190 = arith.addf %188, %189 : vector<8x192xf32>
    %191 = math.tanh %190 : vector<8x192xf32>
    %192 = arith.mulf %185, %191 : vector<8x192xf32>
    %193 = vector.extract_strided_slice %192 {offsets = [0, 0], sizes = [8, 64], strides = [1, 1]} : vector<8x192xf32> to vector<8x64xf32>
    %194 = vector.extract_strided_slice %192 {offsets = [0, 64], sizes = [8, 64], strides = [1, 1]} : vector<8x192xf32> to vector<8x64xf32>
    %195 = vector.extract_strided_slice %192 {offsets = [0, 128], sizes = [8, 64], strides = [1, 1]} : vector<8x192xf32> to vector<8x64xf32>
    %cst_74 = arith.constant 0.000000e+00 : f32
    %196 = vector.broadcast %cst_74 : f32 to vector<8x64xf32>
    %197 = arith.maximumf %194, %196 : vector<8x64xf32>
    %198 = arith.subf %193, %197 : vector<8x64xf32>
    %199 = vector.shape_cast %2 : vector<8x1xi1> to vector<8x1xi1>
    %200 = vector.broadcast %199 : vector<8x1xi1> to vector<8x64xi1>
    %201 = arith.select %200, %198, %193 : vector<8x64xi1>, vector<8x64xf32>
    %cst_75 = arith.constant 0.000000e+00 : f32
    %202 = vector.broadcast %cst_75 : f32 to vector<8x64xf32>
    %203 = arith.maximumf %195, %202 : vector<8x64xf32>
    %204 = arith.addf %201, %203 : vector<8x64xf32>
    %205 = vector.shape_cast %5 : vector<8x1xi1> to vector<8x1xi1>
    %206 = vector.broadcast %205 : vector<8x1xi1> to vector<8x64xi1>
    %207 = arith.select %206, %204, %201 : vector<8x64xi1>, vector<8x64xf32>
    %208 = vector.broadcast %6 : vector<1x64xf32> to vector<8x64xf32>
    %209 = arith.mulf %207, %208 : vector<8x64xf32>
    %cst_76 = arith.constant dense<0.000000e+00> : vector<8xf32>
    %210 = vector.multi_reduction <add>, %209, %cst_76 [1] : vector<8x64xf32> to vector<8xf32>
    %211 = vector.shape_cast %210 : vector<8xf32> to vector<8x1xf32>
    %212 = vector.broadcast %7 : vector<1x1xf32> to vector<8x1xf32>
    %213 = arith.addf %211, %212 : vector<8x1xf32>
    %c0_77 = arith.constant 0 : index
    %c0_78 = arith.constant 0 : index
    %214 = vector.load %arg4[%c0_77, %c0_78] : memref<64x768xf32, #tpu.memory_space<vmem>>, vector<64x768xf32>
    %cst_79 = arith.constant dense<0.000000e+00> : vector<8x768xf32>
    %215 = tpu.matmul %207, %214, %cst_79 {dimension_numbers = #tpu.dot_dimension_numbers<[1], [0], [0], [1], [0, 0, 1, 1], [], []>} : vector<8x64xf32>, vector<64x768xf32>, vector<8x768xf32> -> vector<8x768xf32>
    %c0_80 = arith.constant 0 : index
    %c0_81 = arith.constant 0 : index
    %216 = vector.load %arg6[%c0_80, %c0_81] : memref<192x768xf32, #tpu.memory_space<vmem>>, vector<192x768xf32>
    %cst_82 = arith.constant dense<0.000000e+00> : vector<8x768xf32>
    %217 = tpu.matmul %169, %216, %cst_82 {dimension_numbers = #tpu.dot_dimension_numbers<[1], [0], [0], [1], [0, 0, 1, 1], [], []>} : vector<8x192xf32>, vector<192x768xf32>, vector<8x768xf32> -> vector<8x768xf32>
    %218 = arith.addf %215, %217 : vector<8x768xf32>
    %c0_83 = arith.constant 0 : index
    %c0_84 = arith.constant 0 : index
    %219 = vector.load %arg5[%c0_83, %c0_84] : memref<1x768xf32, #tpu.memory_space<vmem>>, vector<1x768xf32>
    %220 = vector.broadcast %219 : vector<1x768xf32> to vector<8x768xf32>
    %221 = arith.addf %218, %220 : vector<8x768xf32>
    %222 = arith.negf %221 : vector<8x768xf32>
    %223 = math.exp %222 : vector<8x768xf32>
    %cst_85 = arith.constant 1.000000e+00 : f32
    %224 = vector.broadcast %cst_85 : f32 to vector<8x768xf32>
    %225 = arith.addf %224, %223 : vector<8x768xf32>
    %226 = arith.divf %224, %225 : vector<8x768xf32>
    %227 = vector.extract_strided_slice %226 {offsets = [0, 0], sizes = [8, 192], strides = [1, 1]} : vector<8x768xf32> to vector<8x192xf32>
    %228 = vector.extract_strided_slice %226 {offsets = [0, 192], sizes = [8, 192], strides = [1, 1]} : vector<8x768xf32> to vector<8x192xf32>
    %229 = vector.extract_strided_slice %226 {offsets = [0, 576], sizes = [8, 192], strides = [1, 1]} : vector<8x768xf32> to vector<8x192xf32>
    %230 = vector.extract_strided_slice %221 {offsets = [0, 384], sizes = [8, 192], strides = [1, 1]} : vector<8x768xf32> to vector<8x192xf32>
    %231 = math.tanh %230 : vector<8x192xf32>
    %232 = arith.mulf %228, %167 : vector<8x192xf32>
    %233 = arith.mulf %227, %231 : vector<8x192xf32>
    %234 = arith.addf %232, %233 : vector<8x192xf32>
    %235 = math.tanh %234 : vector<8x192xf32>
    %236 = arith.mulf %229, %235 : vector<8x192xf32>
    %c0_86 = arith.constant 0 : index
    %c0_87 = arith.constant 0 : index
    %237 = vector.load %arg7[%c0_86, %c0_87] : memref<192x768xf32, #tpu.memory_space<vmem>>, vector<192x768xf32>
    %cst_88 = arith.constant dense<0.000000e+00> : vector<8x768xf32>
    %238 = tpu.matmul %236, %237, %cst_88 {dimension_numbers = #tpu.dot_dimension_numbers<[1], [0], [0], [1], [0, 0, 1, 1], [], []>} : vector<8x192xf32>, vector<192x768xf32>, vector<8x768xf32> -> vector<8x768xf32>
    %c0_89 = arith.constant 0 : index
    %c0_90 = arith.constant 0 : index
    %239 = vector.load %arg9[%c0_89, %c0_90] : memref<192x768xf32, #tpu.memory_space<vmem>>, vector<192x768xf32>
    %cst_91 = arith.constant dense<0.000000e+00> : vector<8x768xf32>
    %240 = tpu.matmul %192, %239, %cst_91 {dimension_numbers = #tpu.dot_dimension_numbers<[1], [0], [0], [1], [0, 0, 1, 1], [], []>} : vector<8x192xf32>, vector<192x768xf32>, vector<8x768xf32> -> vector<8x768xf32>
    %241 = arith.addf %238, %240 : vector<8x768xf32>
    %c0_92 = arith.constant 0 : index
    %c0_93 = arith.constant 0 : index
    %242 = vector.load %arg8[%c0_92, %c0_93] : memref<1x768xf32, #tpu.memory_space<vmem>>, vector<1x768xf32>
    %243 = vector.broadcast %242 : vector<1x768xf32> to vector<8x768xf32>
    %244 = arith.addf %241, %243 : vector<8x768xf32>
    %245 = arith.negf %244 : vector<8x768xf32>
    %246 = math.exp %245 : vector<8x768xf32>
    %cst_94 = arith.constant 1.000000e+00 : f32
    %247 = vector.broadcast %cst_94 : f32 to vector<8x768xf32>
    %248 = arith.addf %247, %246 : vector<8x768xf32>
    %249 = arith.divf %247, %248 : vector<8x768xf32>
    %250 = vector.extract_strided_slice %249 {offsets = [0, 0], sizes = [8, 192], strides = [1, 1]} : vector<8x768xf32> to vector<8x192xf32>
    %251 = vector.extract_strided_slice %249 {offsets = [0, 192], sizes = [8, 192], strides = [1, 1]} : vector<8x768xf32> to vector<8x192xf32>
    %252 = vector.extract_strided_slice %249 {offsets = [0, 576], sizes = [8, 192], strides = [1, 1]} : vector<8x768xf32> to vector<8x192xf32>
    %253 = vector.extract_strided_slice %244 {offsets = [0, 384], sizes = [8, 192], strides = [1, 1]} : vector<8x768xf32> to vector<8x192xf32>
    %254 = math.tanh %253 : vector<8x192xf32>
    %255 = arith.mulf %251, %190 : vector<8x192xf32>
    %256 = arith.mulf %250, %254 : vector<8x192xf32>
    %257 = arith.addf %255, %256 : vector<8x192xf32>
    %258 = math.tanh %257 : vector<8x192xf32>
    %259 = arith.mulf %252, %258 : vector<8x192xf32>
    %260 = vector.extract_strided_slice %259 {offsets = [0, 0], sizes = [8, 64], strides = [1, 1]} : vector<8x192xf32> to vector<8x64xf32>
    %261 = vector.extract_strided_slice %259 {offsets = [0, 64], sizes = [8, 64], strides = [1, 1]} : vector<8x192xf32> to vector<8x64xf32>
    %262 = vector.extract_strided_slice %259 {offsets = [0, 128], sizes = [8, 64], strides = [1, 1]} : vector<8x192xf32> to vector<8x64xf32>
    %cst_95 = arith.constant 0.000000e+00 : f32
    %263 = vector.broadcast %cst_95 : f32 to vector<8x64xf32>
    %264 = arith.maximumf %261, %263 : vector<8x64xf32>
    %265 = arith.subf %260, %264 : vector<8x64xf32>
    %266 = vector.shape_cast %2 : vector<8x1xi1> to vector<8x1xi1>
    %267 = vector.broadcast %266 : vector<8x1xi1> to vector<8x64xi1>
    %268 = arith.select %267, %265, %260 : vector<8x64xi1>, vector<8x64xf32>
    %cst_96 = arith.constant 0.000000e+00 : f32
    %269 = vector.broadcast %cst_96 : f32 to vector<8x64xf32>
    %270 = arith.maximumf %262, %269 : vector<8x64xf32>
    %271 = arith.addf %268, %270 : vector<8x64xf32>
    %272 = vector.shape_cast %5 : vector<8x1xi1> to vector<8x1xi1>
    %273 = vector.broadcast %272 : vector<8x1xi1> to vector<8x64xi1>
    %274 = arith.select %273, %271, %268 : vector<8x64xi1>, vector<8x64xf32>
    %275 = vector.broadcast %6 : vector<1x64xf32> to vector<8x64xf32>
    %276 = arith.mulf %274, %275 : vector<8x64xf32>
    %cst_97 = arith.constant dense<0.000000e+00> : vector<8xf32>
    %277 = vector.multi_reduction <add>, %276, %cst_97 [1] : vector<8x64xf32> to vector<8xf32>
    %278 = vector.shape_cast %277 : vector<8xf32> to vector<8x1xf32>
    %279 = vector.broadcast %7 : vector<1x1xf32> to vector<8x1xf32>
    %280 = arith.addf %278, %279 : vector<8x1xf32>
    %281 = tpu.concatenate %79, %146, %213, %280 in 1 : vector<8x1xf32>, vector<8x1xf32>, vector<8x1xf32>, vector<8x1xf32> -> vector<8x4xf32>
    %c0_98 = arith.constant 0 : index
    %c0_99 = arith.constant 0 : index
    %282 = vector.load %arg12[%c0_98, %c0_99] : memref<8x4xf32, #tpu.memory_space<vmem>>, vector<8x4xf32>
    tpu.vector_store %arg12[%c0_98, %c0_99], %281 {strides = array<i32>} : memref<8x4xf32, #tpu.memory_space<vmem>>, vector<8x4xf32>,
    return
  }
  func.func @transform_0(%arg0: i32) -> (i32, i32) {
    %c0_i32 = arith.constant 0 : i32
    %c0_i32_0 = arith.constant 0 : i32
    return %arg0, %c0_i32 : i32, i32
  }
  func.func @transform_1(%arg0: i32) -> (i32, i32) {
    %c0_i32 = arith.constant 0 : i32
    %c0_i32_0 = arith.constant 0 : i32
    return %arg0, %c0_i32 : i32, i32
  }
  func.func @transform_2(%arg0: i32) -> (i32, i32) {
    %c0_i32 = arith.constant 0 : i32
    %c0_i32_0 = arith.constant 0 : i32
    return %arg0, %c0_i32 : i32, i32
  }
  func.func @transform_3(%arg0: i32) -> (i32, i32) {
    %c0_i32 = arith.constant 0 : i32
    %c0_i32_0 = arith.constant 0 : i32
    %c0_i32_1 = arith.constant 0 : i32
    return %c0_i32, %c0_i32_0 : i32, i32
  }
  func.func @transform_4(%arg0: i32) -> (i32, i32) {
    %c0_i32 = arith.constant 0 : i32
    %c0_i32_0 = arith.constant 0 : i32
    %c0_i32_1 = arith.constant 0 : i32
    return %c0_i32, %c0_i32_0 : i32, i32
  }
  func.func @transform_5(%arg0: i32) -> (i32, i32) {
    %c0_i32 = arith.constant 0 : i32
    %c0_i32_0 = arith.constant 0 : i32
    %c0_i32_1 = arith.constant 0 : i32
    return %c0_i32, %c0_i32_0 : i32, i32
  }
  func.func @transform_6(%arg0: i32) -> (i32, i32) {
    %c0_i32 = arith.constant 0 : i32
    %c0_i32_0 = arith.constant 0 : i32
    %c0_i32_1 = arith.constant 0 : i32
    return %c0_i32, %c0_i32_0 : i32, i32
  }
  func.func @transform_7(%arg0: i32) -> (i32, i32) {
    %c0_i32 = arith.constant 0 : i32
    %c0_i32_0 = arith.constant 0 : i32
    %c0_i32_1 = arith.constant 0 : i32
    return %c0_i32, %c0_i32_0 : i32, i32
  }
  func.func @transform_8(%arg0: i32) -> (i32, i32) {
    %c0_i32 = arith.constant 0 : i32
    %c0_i32_0 = arith.constant 0 : i32
    %c0_i32_1 = arith.constant 0 : i32
    return %c0_i32, %c0_i32_0 : i32, i32
  }
  func.func @transform_9(%arg0: i32) -> (i32, i32) {
    %c0_i32 = arith.constant 0 : i32
    %c0_i32_0 = arith.constant 0 : i32
    %c0_i32_1 = arith.constant 0 : i32
    return %c0_i32, %c0_i32_0 : i32, i32
  }
  func.func @transform_10(%arg0: i32) -> (i32, i32) {
    %c0_i32 = arith.constant 0 : i32
    %c0_i32_0 = arith.constant 0 : i32
    %c0_i32_1 = arith.constant 0 : i32
    return %c0_i32, %c0_i32_0 : i32, i32
  }
  func.func @transform_11(%arg0: i32) -> (i32, i32) {
    %c0_i32 = arith.constant 0 : i32
    %c0_i32_0 = arith.constant 0 : i32
    return %arg0, %c0_i32 : i32, i32
  }
}

module attributes {stable_mosaic.version = 11 : i64} {
  func.func @_encoder_kernel(%arg0: i32, %arg1: memref<1x64x8xf32, #tpu.memory_space<vmem>>, %arg2: memref<8x256xf32, #tpu.memory_space<vmem>>, %arg3: memref<1x256xf32, #tpu.memory_space<vmem>>, %arg4: memref<32x128xf32, #tpu.memory_space<vmem>>, %arg5: memref<32x128xf32, #tpu.memory_space<vmem>>, %arg6: memref<64x128xf32, #tpu.memory_space<vmem>>, %arg7: memref<64x128xf32, #tpu.memory_space<vmem>>, %arg8: memref<1x256xf32, #tpu.memory_space<vmem>>, %arg9: memref<32x128xf32, #tpu.memory_space<vmem>>, %arg10: memref<8x64xf32, #tpu.memory_space<vmem>>, %arg11: memref<64x256xf32, #tpu.memory_space<vmem>>, %arg12: memref<64x32xf32, #tpu.memory_space<vmem>>, %arg13: memref<64x32xf32, #tpu.memory_space<vmem>>) attributes {dimension_semantics = [#tpu.dimension_semantics<parallel>], iteration_bounds = array<i64: 2>, scalar_prefetch = 0 : i64, scratch_operands = 3 : i64, tpu.core_type = #tpu.core_type<tc>, window_params = [{transform_indices = @transform_0, window_bounds = array<i64: 1, 64, 8>}, {pipeline_mode = #tpu.pipeline_mode<synchronous>, transform_indices = @transform_1, window_bounds = array<i64: 8, 256>}, {pipeline_mode = #tpu.pipeline_mode<synchronous>, transform_indices = @transform_2, window_bounds = array<i64: 1, 256>}, {pipeline_mode = #tpu.pipeline_mode<synchronous>, transform_indices = @transform_3, window_bounds = array<i64: 32, 128>}, {pipeline_mode = #tpu.pipeline_mode<synchronous>, transform_indices = @transform_4, window_bounds = array<i64: 32, 128>}, {pipeline_mode = #tpu.pipeline_mode<synchronous>, transform_indices = @transform_5, window_bounds = array<i64: 64, 128>}, {pipeline_mode = #tpu.pipeline_mode<synchronous>, transform_indices = @transform_6, window_bounds = array<i64: 64, 128>}, {pipeline_mode = #tpu.pipeline_mode<synchronous>, transform_indices = @transform_7, window_bounds = array<i64: 1, 256>}, {pipeline_mode = #tpu.pipeline_mode<synchronous>, transform_indices = @transform_8, window_bounds = array<i64: 32, 128>}, {transform_indices = @transform_9, window_bounds = array<i64: 8, 64>}]} {
    %c0 = arith.constant 0 : index
    %c0_0 = arith.constant 0 : index
    %c0_1 = arith.constant 0 : index
    %0 = vector.load %arg1[%c0, %c0_0, %c0_1] : memref<1x64x8xf32, #tpu.memory_space<vmem>>, vector<1x64x8xf32>
    %1 = vector.shape_cast %0 : vector<1x64x8xf32> to vector<64x8xf32>
    %c0_2 = arith.constant 0 : index
    %c0_3 = arith.constant 0 : index
    %2 = vector.load %arg2[%c0_2, %c0_3] : memref<8x256xf32, #tpu.memory_space<vmem>>, vector<8x256xf32>
    %cst = arith.constant dense<0.000000e+00> : vector<64x256xf32>
    %3 = tpu.matmul %1, %2, %cst {dimension_numbers = #tpu.dot_dimension_numbers<[1], [0], [0], [1], [0, 0, 1, 1], [], []>} : vector<64x8xf32>, vector<8x256xf32>, vector<64x256xf32> -> vector<64x256xf32>
    %c0_4 = arith.constant 0 : index
    %c0_5 = arith.constant 0 : index
    %4 = vector.load %arg3[%c0_4, %c0_5] : memref<1x256xf32, #tpu.memory_space<vmem>>, vector<1x256xf32>
    %5 = vector.broadcast %4 : vector<1x256xf32> to vector<64x256xf32>
    %6 = arith.addf %3, %5 : vector<64x256xf32>
    %c0_6 = arith.constant 0 : index
    %c0_7 = arith.constant 0 : index
    %7 = vector.load %arg11[%c0_6, %c0_7] : memref<64x256xf32, #tpu.memory_space<vmem>>, vector<64x256xf32>
    tpu.vector_store %arg11[%c0_6, %c0_7], %6 {strides = array<i32>} : memref<64x256xf32, #tpu.memory_space<vmem>>, vector<64x256xf32>,
    %cst_8 = arith.constant 0.000000e+00 : f32
    %8 = vector.broadcast %cst_8 : f32 to vector<8x32xf32>
    %c0_i32 = arith.constant 0 : i32
    %c8_i32 = arith.constant 8 : i32
    %9 = arith.addi %c0_i32, %c8_i32 : i32
    %c1_i32 = arith.constant 1 : i32
    %10:4 = scf.for %arg14 = %c0_i32 to %9 step %c1_i32 iter_args(%arg15 = %8, %arg16 = %8, %arg17 = %8, %arg18 = %8) -> (vector<8x32xf32>, vector<8x32xf32>, vector<8x32xf32>, vector<8x32xf32>)  : i32 {
      %c8_i32_25 = arith.constant 8 : i32
      %43 = arith.muli %arg14, %c8_i32_25 : i32
      %44 = tpu.assume_multiple %43, 8 : i32
      %c7_i32 = arith.constant 7 : i32
      %45 = arith.subi %c7_i32, %arg14 : i32
      %c8_i32_26 = arith.constant 8 : i32
      %46 = arith.muli %45, %c8_i32_26 : i32
      %47 = tpu.assume_multiple %46, 8 : i32
      %48 = arith.index_cast %44 : i32 to index
      %c0_27 = arith.constant 0 : index
      %49 = vector.load %arg11[%48, %c0_27] : memref<64x256xf32, #tpu.memory_space<vmem>>, vector<8x256xf32>
      %50 = arith.index_cast %47 : i32 to index
      %c0_28 = arith.constant 0 : index
      %51 = vector.load %arg11[%50, %c0_28] : memref<64x256xf32, #tpu.memory_space<vmem>>, vector<8x256xf32>
      %52 = vector.extract_strided_slice %49 {offsets = [0, 0], sizes = [8, 128], strides = [1, 1]} : vector<8x256xf32> to vector<8x128xf32>
      %c0_29 = arith.constant 0 : index
      %c0_30 = arith.constant 0 : index
      %53 = vector.load %arg4[%c0_29, %c0_30] : memref<32x128xf32, #tpu.memory_space<vmem>>, vector<32x128xf32>
      %cst_31 = arith.constant dense<0.000000e+00> : vector<8x128xf32>
      %54 = tpu.matmul %arg15, %53, %cst_31 {dimension_numbers = #tpu.dot_dimension_numbers<[1], [0], [0], [1], [0, 0, 1, 1], [], []>} : vector<8x32xf32>, vector<32x128xf32>, vector<8x128xf32> -> vector<8x128xf32>
      %55 = arith.addf %52, %54 : vector<8x128xf32>
      %56 = arith.negf %55 : vector<8x128xf32>
      %57 = math.exp %56 : vector<8x128xf32>
      %cst_32 = arith.constant 1.000000e+00 : f32
      %58 = vector.broadcast %cst_32 : f32 to vector<8x128xf32>
      %59 = arith.addf %58, %57 : vector<8x128xf32>
      %60 = arith.divf %58, %59 : vector<8x128xf32>
      %61 = vector.extract_strided_slice %60 {offsets = [0, 0], sizes = [8, 32], strides = [1, 1]} : vector<8x128xf32> to vector<8x32xf32>
      %62 = vector.extract_strided_slice %60 {offsets = [0, 32], sizes = [8, 32], strides = [1, 1]} : vector<8x128xf32> to vector<8x32xf32>
      %63 = vector.extract_strided_slice %60 {offsets = [0, 96], sizes = [8, 32], strides = [1, 1]} : vector<8x128xf32> to vector<8x32xf32>
      %64 = vector.extract_strided_slice %55 {offsets = [0, 64], sizes = [8, 32], strides = [1, 1]} : vector<8x128xf32> to vector<8x32xf32>
      %65 = math.tanh %64 : vector<8x32xf32>
      %66 = arith.mulf %62, %arg16 : vector<8x32xf32>
      %67 = arith.mulf %61, %65 : vector<8x32xf32>
      %68 = arith.addf %66, %67 : vector<8x32xf32>
      %69 = math.tanh %68 : vector<8x32xf32>
      %70 = arith.mulf %63, %69 : vector<8x32xf32>
      %71 = vector.extract_strided_slice %51 {offsets = [0, 128], sizes = [8, 128], strides = [1, 1]} : vector<8x256xf32> to vector<8x128xf32>
      %c0_33 = arith.constant 0 : index
      %c0_34 = arith.constant 0 : index
      %72 = vector.load %arg5[%c0_33, %c0_34] : memref<32x128xf32, #tpu.memory_space<vmem>>, vector<32x128xf32>
      %cst_35 = arith.constant dense<0.000000e+00> : vector<8x128xf32>
      %73 = tpu.matmul %arg17, %72, %cst_35 {dimension_numbers = #tpu.dot_dimension_numbers<[1], [0], [0], [1], [0, 0, 1, 1], [], []>} : vector<8x32xf32>, vector<32x128xf32>, vector<8x128xf32> -> vector<8x128xf32>
      %74 = arith.addf %71, %73 : vector<8x128xf32>
      %75 = arith.negf %74 : vector<8x128xf32>
      %76 = math.exp %75 : vector<8x128xf32>
      %cst_36 = arith.constant 1.000000e+00 : f32
      %77 = vector.broadcast %cst_36 : f32 to vector<8x128xf32>
      %78 = arith.addf %77, %76 : vector<8x128xf32>
      %79 = arith.divf %77, %78 : vector<8x128xf32>
      %80 = vector.extract_strided_slice %79 {offsets = [0, 0], sizes = [8, 32], strides = [1, 1]} : vector<8x128xf32> to vector<8x32xf32>
      %81 = vector.extract_strided_slice %79 {offsets = [0, 32], sizes = [8, 32], strides = [1, 1]} : vector<8x128xf32> to vector<8x32xf32>
      %82 = vector.extract_strided_slice %79 {offsets = [0, 96], sizes = [8, 32], strides = [1, 1]} : vector<8x128xf32> to vector<8x32xf32>
      %83 = vector.extract_strided_slice %74 {offsets = [0, 64], sizes = [8, 32], strides = [1, 1]} : vector<8x128xf32> to vector<8x32xf32>
      %84 = math.tanh %83 : vector<8x32xf32>
      %85 = arith.mulf %81, %arg18 : vector<8x32xf32>
      %86 = arith.mulf %80, %84 : vector<8x32xf32>
      %87 = arith.addf %85, %86 : vector<8x32xf32>
      %88 = math.tanh %87 : vector<8x32xf32>
      %89 = arith.mulf %82, %88 : vector<8x32xf32>
      %90 = arith.index_cast %44 : i32 to index
      %c0_37 = arith.constant 0 : index
      %91 = vector.load %arg12[%90, %c0_37] : memref<64x32xf32, #tpu.memory_space<vmem>>, vector<8x32xf32>
      tpu.vector_store %arg12[%90, %c0_37], %70 {strides = array<i32>} : memref<64x32xf32, #tpu.memory_space<vmem>>, vector<8x32xf32>,
      %92 = arith.index_cast %47 : i32 to index
      %c0_38 = arith.constant 0 : index
      %93 = vector.load %arg13[%92, %c0_38] : memref<64x32xf32, #tpu.memory_space<vmem>>, vector<8x32xf32>
      tpu.vector_store %arg13[%92, %c0_38], %89 {strides = array<i32>} : memref<64x32xf32, #tpu.memory_space<vmem>>, vector<8x32xf32>,
      scf.yield %70, %68, %89, %87 : vector<8x32xf32>, vector<8x32xf32>, vector<8x32xf32>, vector<8x32xf32>
    }
    %c8_i32_9 = arith.constant 8 : i32
    %c0_i32_10 = arith.constant 0 : i32
    %c8_i32_11 = arith.constant 8 : i32
    %11 = arith.addi %c0_i32_10, %c8_i32_11 : i32
    %c1_i32_12 = arith.constant 1 : i32
    %12:2 = scf.for %arg14 = %c0_i32_10 to %11 step %c1_i32_12 iter_args(%arg15 = %8, %arg16 = %8) -> (vector<8x32xf32>, vector<8x32xf32>)  : i32 {
      %c8_i32_25 = arith.constant 8 : i32
      %43 = arith.muli %arg14, %c8_i32_25 : i32
      %44 = tpu.assume_multiple %43, 8 : i32
      %45 = arith.index_cast %44 : i32 to index
      %c0_26 = arith.constant 0 : index
      %46 = vector.load %arg12[%45, %c0_26] : memref<64x32xf32, #tpu.memory_space<vmem>>, vector<8x32xf32>
      %c0_27 = arith.constant 0 : index
      %c0_28 = arith.constant 0 : index
      %47 = vector.load %arg6[%c0_27, %c0_28] : memref<64x128xf32, #tpu.memory_space<vmem>>, vector<32x128xf32>
      %cst_29 = arith.constant dense<0.000000e+00> : vector<8x128xf32>
      %48 = tpu.matmul %46, %47, %cst_29 {dimension_numbers = #tpu.dot_dimension_numbers<[1], [0], [0], [1], [0, 0, 1, 1], [], []>} : vector<8x32xf32>, vector<32x128xf32>, vector<8x128xf32> -> vector<8x128xf32>
      %49 = arith.index_cast %44 : i32 to index
      %c0_30 = arith.constant 0 : index
      %50 = vector.load %arg13[%49, %c0_30] : memref<64x32xf32, #tpu.memory_space<vmem>>, vector<8x32xf32>
      %c32_31 = arith.constant 32 : index
      %c0_32 = arith.constant 0 : index
      %51 = vector.load %arg6[%c32_31, %c0_32] : memref<64x128xf32, #tpu.memory_space<vmem>>, vector<32x128xf32>
      %cst_33 = arith.constant dense<0.000000e+00> : vector<8x128xf32>
      %52 = tpu.matmul %50, %51, %cst_33 {dimension_numbers = #tpu.dot_dimension_numbers<[1], [0], [0], [1], [0, 0, 1, 1], [], []>} : vector<8x32xf32>, vector<32x128xf32>, vector<8x128xf32> -> vector<8x128xf32>
      %53 = arith.addf %48, %52 : vector<8x128xf32>
      %c0_34 = arith.constant 0 : index
      %c0_35 = arith.constant 0 : index
      %54 = vector.load %arg8[%c0_34, %c0_35] : memref<1x256xf32, #tpu.memory_space<vmem>>, vector<1x128xf32>
      %55 = vector.broadcast %54 : vector<1x128xf32> to vector<8x128xf32>
      %56 = arith.addf %53, %55 : vector<8x128xf32>
      %c0_36 = arith.constant 0 : index
      %c0_37 = arith.constant 0 : index
      %57 = vector.load %arg9[%c0_36, %c0_37] : memref<32x128xf32, #tpu.memory_space<vmem>>, vector<32x128xf32>
      %cst_38 = arith.constant dense<0.000000e+00> : vector<8x128xf32>
      %58 = tpu.matmul %arg15, %57, %cst_38 {dimension_numbers = #tpu.dot_dimension_numbers<[1], [0], [0], [1], [0, 0, 1, 1], [], []>} : vector<8x32xf32>, vector<32x128xf32>, vector<8x128xf32> -> vector<8x128xf32>
      %59 = arith.addf %56, %58 : vector<8x128xf32>
      %60 = arith.negf %59 : vector<8x128xf32>
      %61 = math.exp %60 : vector<8x128xf32>
      %cst_39 = arith.constant 1.000000e+00 : f32
      %62 = vector.broadcast %cst_39 : f32 to vector<8x128xf32>
      %63 = arith.addf %62, %61 : vector<8x128xf32>
      %64 = arith.divf %62, %63 : vector<8x128xf32>
      %65 = vector.extract_strided_slice %64 {offsets = [0, 0], sizes = [8, 32], strides = [1, 1]} : vector<8x128xf32> to vector<8x32xf32>
      %66 = vector.extract_strided_slice %64 {offsets = [0, 32], sizes = [8, 32], strides = [1, 1]} : vector<8x128xf32> to vector<8x32xf32>
      %67 = vector.extract_strided_slice %64 {offsets = [0, 96], sizes = [8, 32], strides = [1, 1]} : vector<8x128xf32> to vector<8x32xf32>
      %68 = vector.extract_strided_slice %59 {offsets = [0, 64], sizes = [8, 32], strides = [1, 1]} : vector<8x128xf32> to vector<8x32xf32>
      %69 = math.tanh %68 : vector<8x32xf32>
      %70 = arith.mulf %66, %arg16 : vector<8x32xf32>
      %71 = arith.mulf %65, %69 : vector<8x32xf32>
      %72 = arith.addf %70, %71 : vector<8x32xf32>
      %73 = math.tanh %72 : vector<8x32xf32>
      %74 = arith.mulf %67, %73 : vector<8x32xf32>
      scf.yield %74, %72 : vector<8x32xf32>, vector<8x32xf32>
    }
    %c8_i32_13 = arith.constant 8 : i32
    %c56_i32 = arith.constant 56 : i32
    %13 = tpu.assume_multiple %c56_i32, 8 : i32
    %14 = arith.index_cast %13 : i32 to index
    %c0_14 = arith.constant 0 : index
    %15 = vector.load %arg12[%14, %c0_14] : memref<64x32xf32, #tpu.memory_space<vmem>>, vector<8x32xf32>
    %c0_15 = arith.constant 0 : index
    %c0_16 = arith.constant 0 : index
    %16 = vector.load %arg7[%c0_15, %c0_16] : memref<64x128xf32, #tpu.memory_space<vmem>>, vector<32x128xf32>
    %cst_17 = arith.constant dense<0.000000e+00> : vector<8x128xf32>
    %17 = tpu.matmul %15, %16, %cst_17 {dimension_numbers = #tpu.dot_dimension_numbers<[1], [0], [0], [1], [0, 0, 1, 1], [], []>} : vector<8x32xf32>, vector<32x128xf32>, vector<8x128xf32> -> vector<8x128xf32>
    %18 = arith.index_cast %13 : i32 to index
    %c0_18 = arith.constant 0 : index
    %19 = vector.load %arg13[%18, %c0_18] : memref<64x32xf32, #tpu.memory_space<vmem>>, vector<8x32xf32>
    %c32 = arith.constant 32 : index
    %c0_19 = arith.constant 0 : index
    %20 = vector.load %arg7[%c32, %c0_19] : memref<64x128xf32, #tpu.memory_space<vmem>>, vector<32x128xf32>
    %cst_20 = arith.constant dense<0.000000e+00> : vector<8x128xf32>
    %21 = tpu.matmul %19, %20, %cst_20 {dimension_numbers = #tpu.dot_dimension_numbers<[1], [0], [0], [1], [0, 0, 1, 1], [], []>} : vector<8x32xf32>, vector<32x128xf32>, vector<8x128xf32> -> vector<8x128xf32>
    %22 = arith.addf %17, %21 : vector<8x128xf32>
    %c0_21 = arith.constant 0 : index
    %c128 = arith.constant 128 : index
    %23 = vector.load %arg8[%c0_21, %c128] : memref<1x256xf32, #tpu.memory_space<vmem>>, vector<1x128xf32>
    %24 = vector.broadcast %23 : vector<1x128xf32> to vector<8x128xf32>
    %25 = arith.addf %22, %24 : vector<8x128xf32>
    %26 = arith.negf %25 : vector<8x128xf32>
    %27 = math.exp %26 : vector<8x128xf32>
    %cst_22 = arith.constant 1.000000e+00 : f32
    %28 = vector.broadcast %cst_22 : f32 to vector<8x128xf32>
    %29 = arith.addf %28, %27 : vector<8x128xf32>
    %30 = arith.divf %28, %29 : vector<8x128xf32>
    %31 = vector.extract_strided_slice %30 {offsets = [0, 0], sizes = [8, 32], strides = [1, 1]} : vector<8x128xf32> to vector<8x32xf32>
    %32 = vector.extract_strided_slice %30 {offsets = [0, 32], sizes = [8, 32], strides = [1, 1]} : vector<8x128xf32> to vector<8x32xf32>
    %33 = vector.extract_strided_slice %30 {offsets = [0, 96], sizes = [8, 32], strides = [1, 1]} : vector<8x128xf32> to vector<8x32xf32>
    %34 = vector.extract_strided_slice %25 {offsets = [0, 64], sizes = [8, 32], strides = [1, 1]} : vector<8x128xf32> to vector<8x32xf32>
    %35 = math.tanh %34 : vector<8x32xf32>
    %36 = arith.mulf %32, %8 : vector<8x32xf32>
    %37 = arith.mulf %31, %35 : vector<8x32xf32>
    %38 = arith.addf %36, %37 : vector<8x32xf32>
    %39 = math.tanh %38 : vector<8x32xf32>
    %40 = arith.mulf %33, %39 : vector<8x32xf32>
    %41 = tpu.concatenate %12#0, %40 in 1 : vector<8x32xf32>, vector<8x32xf32> -> vector<8x64xf32>
    %c0_23 = arith.constant 0 : index
    %c0_24 = arith.constant 0 : index
    %42 = vector.load %arg10[%c0_23, %c0_24] : memref<8x64xf32, #tpu.memory_space<vmem>>, vector<8x64xf32>
    tpu.vector_store %arg10[%c0_23, %c0_24], %41 {strides = array<i32>} : memref<8x64xf32, #tpu.memory_space<vmem>>, vector<8x64xf32>,
    return
  }
  func.func @transform_0(%arg0: i32) -> (i32, i32, i32) {
    %c0_i32 = arith.constant 0 : i32
    %c0_i32_0 = arith.constant 0 : i32
    %c0_i32_1 = arith.constant 0 : i32
    return %arg0, %c0_i32, %c0_i32_0 : i32, i32, i32
  }
  func.func @transform_1(%arg0: i32) -> (i32, i32) {
    %c0_i32 = arith.constant 0 : i32
    %c0_i32_0 = arith.constant 0 : i32
    %c0_i32_1 = arith.constant 0 : i32
    return %c0_i32, %c0_i32_0 : i32, i32
  }
  func.func @transform_2(%arg0: i32) -> (i32, i32) {
    %c0_i32 = arith.constant 0 : i32
    %c0_i32_0 = arith.constant 0 : i32
    %c0_i32_1 = arith.constant 0 : i32
    return %c0_i32, %c0_i32_0 : i32, i32
  }
  func.func @transform_3(%arg0: i32) -> (i32, i32) {
    %c0_i32 = arith.constant 0 : i32
    %c0_i32_0 = arith.constant 0 : i32
    %c0_i32_1 = arith.constant 0 : i32
    return %c0_i32, %c0_i32_0 : i32, i32
  }
  func.func @transform_4(%arg0: i32) -> (i32, i32) {
    %c0_i32 = arith.constant 0 : i32
    %c0_i32_0 = arith.constant 0 : i32
    %c0_i32_1 = arith.constant 0 : i32
    return %c0_i32, %c0_i32_0 : i32, i32
  }
  func.func @transform_5(%arg0: i32) -> (i32, i32) {
    %c0_i32 = arith.constant 0 : i32
    %c0_i32_0 = arith.constant 0 : i32
    %c0_i32_1 = arith.constant 0 : i32
    return %c0_i32, %c0_i32_0 : i32, i32
  }
  func.func @transform_6(%arg0: i32) -> (i32, i32) {
    %c0_i32 = arith.constant 0 : i32
    %c0_i32_0 = arith.constant 0 : i32
    %c0_i32_1 = arith.constant 0 : i32
    return %c0_i32, %c0_i32_0 : i32, i32
  }
  func.func @transform_7(%arg0: i32) -> (i32, i32) {
    %c0_i32 = arith.constant 0 : i32
    %c0_i32_0 = arith.constant 0 : i32
    %c0_i32_1 = arith.constant 0 : i32
    return %c0_i32, %c0_i32_0 : i32, i32
  }
  func.func @transform_8(%arg0: i32) -> (i32, i32) {
    %c0_i32 = arith.constant 0 : i32
    %c0_i32_0 = arith.constant 0 : i32
    %c0_i32_1 = arith.constant 0 : i32
    return %c0_i32, %c0_i32_0 : i32, i32
  }
  func.func @transform_9(%arg0: i32) -> (i32, i32) {
    %c0_i32 = arith.constant 0 : i32
    %c0_i32_0 = arith.constant 0 : i32
    return %arg0, %c0_i32 : i32, i32
  }
}

</mosaic_0001>

<bundles_post_ra>
// kernel: _lambda_.2
= control target key start
LH: loop header
LB: loop body
LE: loop exit
PB: predicated region body
PF: predicated region fallthrough
CT: control target
= control target key end

     0   :  { %14 = vsyncpa [#allocation6], 0  ;;  %s2528_s0 = inlined_call_operand.vmem [shape: f32[2,64,8], index: 0, kind: input, shape index: {}]   ;;  %s2529_s1 = inlined_call_operand.vmem [shape: f32[8,256], index: 1, kind: input, shape index: {}]   ;;  %s2530_s2 = inlined_call_operand.hbm [shape: f32[1,256], index: 2, kind: input, shape index: {}]   ;;  %s2531_s3 = inlined_call_operand.vmem [shape: f32[32,128], index: 3, kind: input, shape index: {}]   ;;  %s2532_s4 = inlined_call_operand.hbm [shape: f32[32,128], index: 4, kind: input, shape index: {}]   ;;  %s2533_s5 = inlined_call_operand.hbm [shape: f32[64,128], index: 5, kind: input, shape index: {}]   ;;  %s2534_s6 = inlined_call_operand.hbm [shape: f32[64,128], index: 6, kind: input, shape index: {}]   ;;  %s2535_s7 = inlined_call_operand.hbm [shape: f32[1,256], index: 7, kind: input, shape index: {}]   ;;  %s2536_s8 = inlined_call_operand.hbm [shape: f32[32,128], index: 8, kind: input, shape index: {}]   ;;  %s2537_s9 = inlined_call_operand.vmem [shape: f32[16,64], index: 9, kind: output, shape index: {}]  }
   0x1   :  { %15 = vsyncpa [#allocation8], 0 }
   0x2   :  { %16 = vsyncpa [#allocation11], 0 }
   0x3   :  { %17 = vsyncpa [#allocation14], 0  ;;  %s2196_s30 = smov 0  }
   0x4 LB: > { %s2123_s10 = smov [#allocation7]   ;;  %s2202_s12 = sadd.s32 4294967295, %s2089_s30   ;;  %s2089_s30 = sphi %s2196_s30, %s23_s30  }
   0x5   : > { %s277_s11 = sshll.u32 %s2123_s10, 4  ;;  %p1474_p0 = scmp.ge.s32.totalorder %s2089_s30, 1  ;;  %s2207_s11 = int_to_ptr.vmem [resolvable:$true] %s277_s11 }
   0x6   : > { %p248_p1 = scmp.lt.s32.totalorder %s2089_s30, 3  ;;  %p2538_p2 = scmp.eq.s32.totalorder %s2202_s12, 0 }
   0x7   : > { %s2124_s14 = smov [#allocation10]   ;;  %s2125_s17 = smov [#allocation5]  }
   0x8   : > { %p2209_p3 = pnand %p1474_p0, %p248_p1  ;;  %s303_s15 = sshll.u32 %s2124_s14, 4  ;;  %s2215_s15 = int_to_ptr.vmem [resolvable:$true] %s303_s15 }
   0x9   : > { %s264_s18 = sshll.u32 %s2125_s17, 4  ;;  %s2126_s19 = smov [#allocation9]   ;;  %s2223_s18 = int_to_ptr.vmem [resolvable:$true] %s264_s18 }
   0xa   : > { %s2540_s13 = scalar_select %p2209_p3, 1, 0 }
   0xb   : > { %p1709_p4 = pneg %p2209_p3  ;;  %s2225_s20 = sshll.u32 %s2126_s19, 4  ;;  %s291_s20 = int_to_ptr.vmem [resolvable:$true] %s2225_s20 }
   0xc   : > { %s1867_s23 = scalar_lea.hbm %s2532_s4, 512 }
   0xd   : > { %p2219_p5 = pnand %p2538_p2, %p1709_p4  ;;  %p1868_p6 = scmp.ne.s32.totalorder %s2532_s4, %s1867_s23 }
   0xe   : > { %p1874_p10 = scmp.lt.u32.totalorder %s1867_s23, %s2532_s4 }
   0xf   : > { %p2235_p7 = pneg %p2219_p5 }
  0x11   : > { %p1870_p8 = pnand %p2235_p7, %p1868_p6 }
  0x13   : > { %p1871_p9 = pneg %p1870_p8 }
  0x15   : > { %p1876_p11 = pnand %p1874_p10, %p1871_p9 }
  0x17   : > { %1879 = shalt.err (!%p1876_p11)
}
  0x18   : > { %s1880_s29 = scalar_lea.vmem %s2207_s11, 512  ;;  %p1888_p1 = scmp.lt.s32.totalorder %s2207_s11, %s2207_s11 }
  0x19   : > { %p1881_p12 = scmp.ne.s32.totalorder %s2207_s11, %s1880_s29  ;;  %p1889_p4 = scmp.lt.s32.totalorder %s1880_s29, %s1880_s29 }
  0x1b   : > { %p1883_p13 = pnand %p1881_p12, %p2235_p7  ;;  %p1890_p6 = por %p1889_p4, %p1888_p1 }
  0x1d   : > { %p1884_p0 = pneg %p1883_p13 }
  0x1f   : > { %p1891_p8 = pnand %p1890_p6, %p1884_p0 }
  0x21   : > { %1894 = shalt.err (!%p1891_p8)
}
  0x22   : > { %s2127_s10 = smov 128   ;;  %s2128_s14 = smov 8  }
  0x23   : > { %1715 = dma.hbm_to_vmem [thread:$0]  (!%p2219_p5), %s2532_s4, 512, %s2207_s11, [#allocation8], %s2127_s10, %s2127_s10, %s2128_s14  }
  0x24   : > { %s1895_s23 = scalar_lea.hbm %s2534_s6, 1024 }
  0x25   : > { %p1896_p9 = scmp.ne.s32.totalorder %s2534_s6, %s1895_s23  ;;  %p1902_p12 = scmp.lt.u32.totalorder %s1895_s23, %s2534_s6 }
  0x27   : > { %p1898_p10 = pnand %p1896_p9, %p2235_p7 }
  0x29   : > { %p1899_p11 = pneg %p1898_p10 }
  0x2b   : > { %p1904_p13 = pnand %p1902_p12, %p1899_p11 }
  0x2d   : > { %1907 = shalt.err (!%p1904_p13)
}
  0x2e   : > { %s1908_s11 = scalar_lea.vmem %s2215_s15, 1024  ;;  %p1916_p6 = scmp.lt.s32.totalorder %s2215_s15, %s2215_s15 }
  0x2f   : > { %p1909_p0 = scmp.ne.s32.totalorder %s2215_s15, %s1908_s11  ;;  %p1917_p8 = scmp.lt.s32.totalorder %s1908_s11, %s1908_s11 }
  0x31   : > { %p1911_p1 = pnand %p1909_p0, %p2235_p7  ;;  %p1918_p9 = por %p1917_p8, %p1916_p6 }
  0x33   : > { %p1912_p4 = pneg %p1911_p1 }
  0x35   : > { %p1919_p10 = pnand %p1918_p9, %p1912_p4 }
  0x37   : > { %1922 = shalt.err (!%p1919_p10)
}
  0x38   : > { %1721 = dma.hbm_to_vmem [thread:$0]  (!%p2219_p5), %s2534_s6, 1024, %s2215_s15, [#allocation11], %s2127_s10, %s2127_s10, %s2128_s14  }
  0x39   : > { %s1923_s22 = scalar_lea.hbm %s2530_s2, 32 }
  0x3a   : > { %p1924_p11 = scmp.ne.s32.totalorder %s2530_s2, %s1923_s22  ;;  %p1930_p0 = scmp.lt.u32.totalorder %s1923_s22, %s2530_s2 }
  0x3c   : > { %p1926_p12 = pnand %p1924_p11, %p2235_p7 }
  0x3e   : > { %p1927_p13 = pneg %p1926_p12 }
  0x40   : > { %p1932_p1 = pnand %p1930_p0, %p1927_p13 }
  0x42   : > { %1935 = shalt.err (!%p1932_p1)
}
  0x43   : > { %s1936_s15 = scalar_lea.vmem %s2223_s18, 32  ;;  %p1944_p9 = scmp.lt.s32.totalorder %s2223_s18, %s2223_s18 }
  0x44   : > { %p1937_p4 = scmp.ne.s32.totalorder %s2223_s18, %s1936_s15  ;;  %p1945_p10 = scmp.lt.s32.totalorder %s1936_s15, %s1936_s15 }
  0x46   : > { %p1939_p6 = pnand %p1937_p4, %p2235_p7  ;;  %p1946_p11 = por %p1945_p10, %p1944_p9 }
  0x48   : > { %p1940_p8 = pneg %p1939_p6 }
  0x4a   : > { %p1947_p12 = pnand %p1946_p11, %p1940_p8 }
  0x4c   : > { %1950 = shalt.err (!%p1947_p12)
}
  0x4d   : > { %1712 = dma.hbm_to_vmem [thread:$0]  (!%p2219_p5), %s2530_s2, 32, %s2223_s18, [#allocation6]  }
  0x4e   : > { %s1951_s19 = scalar_lea.hbm %s2533_s5, 1024 }
  0x4f   : > { %p1952_p13 = scmp.ne.s32.totalorder %s2533_s5, %s1951_s19  ;;  %p1958_p4 = scmp.lt.u32.totalorder %s1951_s19, %s2533_s5 }
  0x51   : > { %p1954_p0 = pnand %p1952_p13, %p2235_p7 }
  0x53   : > { %p1955_p1 = pneg %p1954_p0 }
  0x55   : > { %p1960_p6 = pnand %p1958_p4, %p1955_p1 }
  0x57   : > { %1963 = shalt.err (!%p1960_p6)
}
  0x58   : > { %s1964_s25 = scalar_lea.vmem %s291_s20, 1024  ;;  %p1972_p11 = scmp.lt.s32.totalorder %s291_s20, %s291_s20 }
  0x59   : > { %p1965_p8 = scmp.ne.s32.totalorder %s291_s20, %s1964_s25  ;;  %p1973_p12 = scmp.lt.s32.totalorder %s1964_s25, %s1964_s25 }
  0x5b   : > { %p1967_p9 = pnand %p1965_p8, %p2235_p7  ;;  %p1974_p2 = por %p1973_p12, %p1972_p11 }
  0x5d   : > { %p1968_p10 = pneg %p1967_p9 }
  0x5f   : > { %p1975_p3 = pnand %p1974_p2, %p1968_p10 }
  0x61   : > { %1978 = shalt.err (!%p1975_p3)
}
  0x62   : > { %1718 = dma.hbm_to_vmem [thread:$0]  (!%p2219_p5), %s2533_s5, 1024, %s291_s20, [#allocation8], %s2127_s10, %s2127_s10, %s2128_s14  }
  0x63   : > { %s2129_s15 = smov [#allocation12]   ;;  %s2130_s11 = smov [#allocation13]  }
  0x64   : > { %s317_s28 = sshll.u32 %s2129_s15, 4  ;;  %s327_s29 = sshll.u32 %s2130_s11, 4  ;;  %s318_s28 = int_to_ptr.vmem [resolvable:$true] %s317_s28  ;;  %s328_s29 = int_to_ptr.vmem [resolvable:$true] %s327_s29 }
  0x65   : > { %s1979_s21 = scalar_lea.hbm %s2535_s7, 32 }
  0x66   : > { %p1980_p2 = scmp.ne.s32.totalorder %s2535_s7, %s1979_s21  ;;  %p1986_p0 = scmp.lt.u32.totalorder %s1979_s21, %s2535_s7 }
  0x68   : > { %p1982_p3 = pnand %p1980_p2, %p2235_p7 }
  0x6a   : > { %p1983_p13 = pneg %p1982_p3 }
  0x6c   : > { %p1988_p1 = pnand %p1986_p0, %p1983_p13 }
  0x6e   : > { %1991 = shalt.err (!%p1988_p1)
}
  0x6f   : > { %s1992_s20 = scalar_lea.vmem %s318_s28, 32  ;;  %p2000_p9 = scmp.lt.s32.totalorder %s318_s28, %s318_s28 }
  0x70   : > { %p1993_p4 = scmp.ne.s32.totalorder %s318_s28, %s1992_s20  ;;  %p2001_p10 = scmp.lt.s32.totalorder %s1992_s20, %s1992_s20 }
  0x72   : > { %p1995_p6 = pnand %p1993_p4, %p2235_p7  ;;  %p2002_p11 = por %p2001_p10, %p2000_p9 }
  0x74   : > { %p1996_p8 = pneg %p1995_p6 }
  0x76   : > { %p2003_p12 = pnand %p2002_p11, %p1996_p8 }
  0x78   : > { %2006 = shalt.err (!%p2003_p12)
}
  0x79   : > { %1724 = dma.hbm_to_vmem [thread:$0]  (!%p2219_p5), %s2535_s7, 32, %s318_s28, [#allocation11]  }
  0x7a   : > { %s2007_s17 = scalar_lea.hbm %s2536_s8, 512 }
  0x7b   : > { %p2008_p2 = scmp.ne.s32.totalorder %s2536_s8, %s2007_s17  ;;  %p2014_p0 = scmp.lt.u32.totalorder %s2007_s17, %s2536_s8 }
  0x7d   : > { %p2010_p3 = pnand %p2008_p2, %p2235_p7 }
  0x7f   : > { %p2011_p13 = pneg %p2010_p3 }
  0x81   : > { %p2016_p1 = pnand %p2014_p0, %p2011_p13 }
  0x83   : > { %2019 = shalt.err (!%p2016_p1)
}
  0x84   : > { %s2020_s24 = scalar_lea.vmem %s328_s29, 512  ;;  %p2028_p9 = scmp.lt.s32.totalorder %s328_s29, %s328_s29 }
  0x85   : > { %p2021_p4 = scmp.ne.s32.totalorder %s328_s29, %s2020_s24  ;;  %p2029_p10 = scmp.lt.s32.totalorder %s2020_s24, %s2020_s24 }
  0x87   : > { %p2023_p6 = pnand %p2021_p4, %p2235_p7  ;;  %p2030_p11 = por %p2029_p10, %p2028_p9 }
  0x89   : > { %p2024_p8 = pneg %p2023_p6 }
  0x8b   : > { %p2031_p12 = pnand %p2030_p11, %p2024_p8 }
  0x8d   : > { %2034 = shalt.err (!%p2031_p12)
}
  0x8e   : > { %1727 = dma.hbm_to_vmem [thread:$0]  (!%p2219_p5), %s2536_s8, 512, %s328_s29, [#allocation14], %s2127_s10, %s2127_s10, %s2128_s14  }
  0x8f   : > { %p2543_p2 = scmp.ne.s32.totalorder %s2540_s13, 0 }
  0x90   : > { %p2544_p7 = scmp.eq.s32.totalorder (!%p2543_p2), %s2202_s12, 0 }
  0x91   : > { %351 = sbr.rel (%p2543_p2) target bundleno = 2419 (0x973), region = 56 }
  0x98   : > { %2072 = dma.done.wait (%p2544_p7), [#allocation6], 32   ;;  %p2545_p3 = pmov %p2544_p7 }
  0x9a   : > { %2074 = vsyncadd (%p2545_p3), [#allocation6], 4294967264  ;;  %p2546_p13 = pmov %p2545_p3 }
  0x9b   : > { %p2547_p0 = pmov %p2545_p3 }
  0x9c   : > { %2076 = dma.done.wait (%p2546_p13), [#allocation8], 1536  }
  0x9d   : > { %2078 = vsyncadd (%p2547_p0), [#allocation8], 4294965760  ;;  %p2548_p1 = pmov %p2547_p0 }
  0x9e   : > { %p2549_p5 = pmov %p2547_p0 }
  0x9f   : > { %2080 = dma.done.wait (%p2548_p1), [#allocation11], 1056  }
  0xa0   : > { %2082 = vsyncadd (%p2549_p5), [#allocation11], 4294966240  ;;  %p2550_p4 = pmov %p2547_p0 }
  0xa1   : > { %p2551_p6 = pmov %p2547_p0 }
  0xa2   : > { %2084 = dma.done.wait (%p2550_p4), [#allocation14], 512  }
  0xa3   : > { %2086 = vsyncadd (%p2551_p6), [#allocation14], 4294966784  ;;  %p406_p8 = scmp.lt.s32.totalorder %s2202_s12, 1  ;;  %v2131_v0 = vmov 0.0   ;;  %v424_v1 = vld [vmem:[%s2529_s1 + $0x8] sm:$0xff]  ;;  %v423_v2 = vld [vmem:[%s2529_s1] sm:$0xff]  ;;  %v427_v11 = vlaneseq }
  0xa4   : > { %526 = vmatprep.mubr.f32.mxu0 %v2131_v0  ;;  %550 = vmatprep.mubr.f32.mxu1 %v2131_v0  ;;  %vm437_vm0 = vcmask 64512   ;;  %v425_v14 = vld [vmem:[#allocation5] sm:$0x3]  ;;  %v2419_v50 = vmov 0.0   ;;  %v2421_v51 = vmov 0.0   ;;  %v2423_v52 = vmov 0.0  }
  0xa5   : > { %s2554_s12 = smov (!%p406_p8, %s2202_s12), 1  ;;  %462 = vmatprep.subr.mxu0 %v424_v1  ;;  %1679 = vmatprep.subr.mxu1 %v424_v1  ;;  %v428_v12 = vshrl.u32 %v427_v11, 7  ;;  %v2425_v53 = vmov 0.0  }
  0xa6   : > { %s1522_s13 = sshll.u32 %s2554_s12, 6  ;;  %s1491_s16 = sshll.u32 %s2554_s12, 3  ;;  %463 = vmatpush1.msra.mxu0 %v423_v2  ;;  %1680 = vmatpush1.msra.mxu1 %v423_v2 }
  0xa7   : > { %s410_s14 = scalar_lea.vmem %s2528_s0, %s1522_s13  ;;  %s2397_s18 = scalar_lea.vmem %s2537_s9, %s1491_s16  ;;  %v429_v13 = vsub.s32 0, %v428_v12  ;;  %v433_v15 = vsub.s32 1, %v428_v12 }
  0xa8   : > { %v415_v3 = vld [vmem:[%s410_s14] sm:$0xff]  ;;  %v416_v5 = vld [vmem:[%s410_s14 + $0x8] sm:$0xff]  ;;  %v417_v7 = vld [vmem:[%s410_s14 + $0x10] sm:$0xff]  ;;  %s2427_s12 = smov 0  }
  0xa9   : > { %v419_v4 = vld [vmem:[%s410_s14 + $0x20] sm:$0xff]  ;;  %1492 = vmatmul.mubr.msk.f32.vlgmr.msra.gmra.mrb[0].mxu0 %vm437_vm0, %v415_v3  ;;  %v420_v6 = vld [vmem:[%s410_s14 + $0x28] sm:$0xff]  ;;  %v421_v8 = vld [vmem:[%s410_s14 + $0x30] sm:$0xff]  ;;  %v430_v16 = vrot.slane %v425_v14, %v429_v13  ;;  %v434_v17 = vrot.slane %v425_v14, %v433_v15 }
  0xaa   : > { %1496 = vmatmul.mubr.msk.f32.vlgmr.msra.gmra.mrb[0].mxu1 %vm437_vm0, %v419_v4  ;;  %532 = vmatprep.mubr.f32.mxu0 %v2131_v0  ;;  %v418_v9 = vld [vmem:[%s410_s14 + $0x18] sm:$0xff] }
  0xab   : > { %556 = vmatprep.mubr.f32.mxu1 %v2131_v0  ;;  %v422_v10 = vld [vmem:[%s410_s14 + $0x38] sm:$0xff] }
  0xad   : > { %1493 = vmatmul.mubr.msk.f32.gmra.mrb[2].mxu0 %vm437_vm0, %v416_v5 }
  0xae   : > { %1497 = vmatmul.mubr.msk.f32.gmra.mrb[2].mxu1 %vm437_vm0, %v420_v6  ;;  %538 = vmatprep.mubr.f32.mxu0 %v2131_v0 }
  0xaf   : > { %562 = vmatprep.mubr.f32.mxu1 %v2131_v0 }
  0xb1   : > { %1494 = vmatmul.mubr.msk.f32.gmra.mrb[4].mxu0 %vm437_vm0, %v417_v7 }
  0xb2   : > { %1498 = vmatmul.mubr.msk.f32.gmra.mrb[4].mxu1 %vm437_vm0, %v421_v8  ;;  %544 = vmatprep.mubr.f32.mxu0 %v2131_v0 }
  0xb3   : > { %568 = vmatprep.mubr.f32.mxu1 %v2131_v0 }
  0xb5   : > { %1495 = vmatmul.mubr.msk.f32.gmra.mrb[6].mxu0 %vm437_vm0, %v418_v9 }
  0xb6   : > { %1499 = vmatmul.mubr.msk.f32.gmra.mrb[6].mxu1 %vm437_vm0, %v422_v10 }
 0x17c   : > { %v528_v18 = vpop.f32.mrb[0].mxu0 }
 0x17d   : > { %v552_v19 = vpop.f32.mrb[0].mxu1  ;;  %v529_v20 = vadd.f32 %v528_v18, %v430_v16  ;;  %v530_v22 = vpop.f32.mrb[1].mxu0 }
 0x17e   : > { %v553_v21 = vadd.f32 %v552_v19, %v430_v16  ;;  %v554_v23 = vpop.f32.mrb[1].mxu1  ;;  %v531_v24 = vadd.f32 %v530_v22, %v434_v17 }
 0x17f   : > { %v555_v25 = vadd.f32 %v554_v23, %v434_v17  ;;  %575 = vst [vmem:[#allocation2] sm:$0xff] %v529_v20 }
 0x180   : > { %583 = vst [vmem:[#allocation2 + $0x40] sm:$0xff] %v553_v21  ;;  %576 = vst [vmem:[#allocation2 + $0x8] sm:$0xff] %v531_v24  ;;  %v534_v26 = vpop.f32.mrb[2].mxu0 }
 0x181   : > { %584 = vst [vmem:[#allocation2 + $0x48] sm:$0xff] %v555_v25  ;;  %v558_v27 = vpop.f32.mrb[2].mxu1  ;;  %v535_v28 = vadd.f32 %v534_v26, %v430_v16  ;;  %v536_v30 = vpop.f32.mrb[3].mxu0 }
 0x182   : > { %v559_v29 = vadd.f32 %v558_v27, %v430_v16  ;;  %v560_v31 = vpop.f32.mrb[3].mxu1  ;;  %v537_v32 = vadd.f32 %v536_v30, %v434_v17 }
 0x183   : > { %v561_v33 = vadd.f32 %v560_v31, %v434_v17  ;;  %577 = vst [vmem:[#allocation2 + $0x10] sm:$0xff] %v535_v28 }
 0x184   : > { %585 = vst [vmem:[#allocation2 + $0x50] sm:$0xff] %v559_v29  ;;  %578 = vst [vmem:[#allocation2 + $0x18] sm:$0xff] %v537_v32  ;;  %v540_v34 = vpop.f32.mrb[4].mxu0 }
 0x185   : > { %586 = vst [vmem:[#allocation2 + $0x58] sm:$0xff] %v561_v33  ;;  %v564_v35 = vpop.f32.mrb[4].mxu1  ;;  %v541_v36 = vadd.f32 %v540_v34, %v430_v16  ;;  %v542_v38 = vpop.f32.mrb[5].mxu0 }
 0x186   : > { %v565_v37 = vadd.f32 %v564_v35, %v430_v16  ;;  %v566_v39 = vpop.f32.mrb[5].mxu1  ;;  %v543_v40 = vadd.f32 %v542_v38, %v434_v17 }
 0x187   : > { %v567_v41 = vadd.f32 %v566_v39, %v434_v17  ;;  %579 = vst [vmem:[#allocation2 + $0x20] sm:$0xff] %v541_v36 }
 0x188   : > { %587 = vst [vmem:[#allocation2 + $0x60] sm:$0xff] %v565_v37  ;;  %580 = vst [vmem:[#allocation2 + $0x28] sm:$0xff] %v543_v40  ;;  %v546_v42 = vpop.f32.mrb[6].mxu0 }
 0x189   : > { %588 = vst [vmem:[#allocation2 + $0x68] sm:$0xff] %v567_v41  ;;  %v570_v43 = vpop.f32.mrb[6].mxu1  ;;  %v547_v44 = vadd.f32 %v546_v42, %v430_v16  ;;  %v548_v46 = vpop.f32.mrb[7].mxu0 }
 0x18a   : > { %v571_v45 = vadd.f32 %v570_v43, %v430_v16  ;;  %v572_v47 = vpop.f32.mrb[7].mxu1  ;;  %v549_v48 = vadd.f32 %v548_v46, %v434_v17 }
 0x18b   : > { %v573_v49 = vadd.f32 %v572_v47, %v434_v17  ;;  %581 = vst [vmem:[#allocation2 + $0x30] sm:$0xff] %v547_v44 }
 0x18c   : > { %589 = vst [vmem:[#allocation2 + $0x70] sm:$0xff] %v571_v45  ;;  %582 = vst [vmem:[#allocation2 + $0x38] sm:$0xff] %v549_v48 }
 0x18d   : > { %590 = vst [vmem:[#allocation2 + $0x78] sm:$0xff] %v573_v49 }
 0x18e LB: >> { %v616_v54 = vld [vmem:[%s2531_s3] sm:$0xff]  ;;  %v617_v55 = vld [vmem:[%s2531_s3 + $0x8] sm:$0xff]  ;;  %v618_v56 = vld [vmem:[%s2531_s3 + $0x10] sm:$0xff]  ;;  %v2132_v57 = vmov 0.0|0.0   ;;  %s2133_s16 = smov 32   ;;  %vm2134_vm1 = vmmov 0   ;;  %s2109_s12 = sphi %s2427_s12, %s596_s12   ;;  %v2105_v53 = vphi %v2425_v53, %v720_v53   ;;  %v2101_v52 = vphi %v2423_v52, %v714_v52   ;;  %v2097_v51 = vphi %v2421_v51, %v824_v51   ;;  %v2093_v50 = vphi %v2419_v50, %v818_v50  }
 0x18f   : >> { %1637 = vmatprep.subr.bf16.mxu0 %v2132_v57  ;;  %v1638_v58 = vpack.c.bf16 %v617_v55, %v616_v54  ;;  %1643 = vmatprep.subr.bf16.mxu1 %v2132_v57  ;;  %v619_v59 = vld [vmem:[%s2531_s3 + $0x18] sm:$0xff]  ;;  %v721_v60 = vld [vmem:[#allocation7] sm:$0xff]  ;;  %v722_v61 = vld [vmem:[#allocation7 + $0x8] sm:$0xff]  ;;  %v2135_v63 = vmov 0.0   ;;  %vm623_vm2 = vcmask 261120   ;;  %s1500_s26 = sshll.u32 %s2109_s12, 3 }
 0x190   : >> { %621 = vrot.lane.b32.xlu0 %v2105_v53, %s2133_s16  ;;  %v1644_v62 = vpack.c.bf16 %v722_v61, %v721_v60  ;;  %1568 = vmatprep.mubr.msk.f32.mxu0 %vm2134_vm1, %v2135_v63  ;;  %v723_v1 = vld [vmem:[#allocation7 + $0x10] sm:$0xff]  ;;  %v724_v2 = vld [vmem:[#allocation7 + $0x18] sm:$0xff]  ;;  %v1641_v3 = vpack.c.bf16 %v619_v59, %v618_v56  ;;  %s602_s10 = ssub.s32 7, %s2109_s12  ;;  %s604_s14 = sshra.s32 %s1500_s26, 3 }
 0x191   : >> { %1639 = vmatpush3.bf16.msra.mxu0 %v1638_v58  ;;  %1579 = vmatprep.mubr.msk.f32.mxu1 %vm2134_vm1, %v2135_v63  ;;  %v1647_v4 = vpack.c.bf16 %v724_v2, %v723_v1  ;;  %s2460_s29 = sshll.u32 %s602_s10, 3  ;;  %s1523_s20 = sshll.u32 %s604_s14, 4 }
 0x192   : >> { %1640 = vmatprep.subr.bf16.mxu0 %v2132_v57  ;;  %1645 = vmatpush3.bf16.msra.mxu1 %v1644_v62  ;;  %s610_s27 = sshra.s32 %s2460_s29, 3  ;;  %s608_s11 = scalar_lea.vmem [#allocation2], %s1523_s20 }
 0x193   : >> { %1646 = vmatprep.subr.bf16.mxu1 %v2132_v57  ;;  %s1524_s15 = sshll.u32 %s610_s27, 4  ;;  %s2136_s19 = smov 64  }
 0x194   : >> { %726 = vrot.lane.b32.xlu0 %v2097_v51, %s2133_s16  ;;  %v609_v7 = vld [vmem:[%s608_s11] sm:$0xff]  ;;  %s614_s17 = scalar_lea.vmem [#allocation2], %s1524_s15  ;;  %s829_s21 = scalar_lea.vmem [#allocation3], %s1500_s26 }
 0x195   : >> { %1642 = vmatpush3.bf16.msra.mxu0 %v1641_v3  ;;  %v615_v11 = vld [vmem:[%s614_s17 + $0x8] sm:$0xff]  ;;  %s835_s22 = scalar_lea.vmem [#allocation4], %s2460_s29  ;;  %s596_s12 = sadd.s32 1, %s2109_s12  }
 0x196   : >> { %1648 = vmatpush3.bf16.msra.mxu1 %v1647_v4  ;;  %p593_p9 = scmp.ge.s32.totalorder %s596_s12, 8  }
 0x197   : > { %v2489_v39 = vmov (%p593_p9), 0.0   ;;  %v2491_v40 = vmov (%p593_p9), 0.0   ;;  %s2493_s23 = smov (%p593_p9), 0  }
 0x202   : >> { %v622_v5 = vpop.permute.xlu0 %621 }
 0x203   : >> { %1569 = vmatmul.mubr.msk.f32.vlgmr.msra.gmra.mrb[0].mxu0 %vm623_vm2, %v622_v5 }
 0x206   : >> { %v727_v6 = vpop.permute.xlu0 %726 }
 0x207   : >> { %1580 = vmatmul.mubr.msk.f32.vlgmr.msra.gmra.mrb[0].mxu1 %vm623_vm2, %v727_v6 }
 0x2d6   : >> { %v692_v8 = vpop.f32.mrb[0].mxu0 }
 0x2d7   : >> { %v696_v9 = vadd.f32 %v692_v8, %v609_v7  ;;  %v1570_v10 = vpop.f32.mrb[1].mxu0 }
 0x2d9   : >> { %1835 = vtanh.f32 %v696_v9  ;;  %v1507_v17 = vmul.f32 -1.442695, %v696_v9 }
 0x2da   : >> { %v796_v12 = vpop.f32.mrb[0].mxu1 }
 0x2db   : >> { %v800_v13 = vadd.f32 %v796_v12, %v615_v11  ;;  %v1581_v14 = vpop.f32.mrb[1].mxu1 }
 0x2dd   : >> { %1837 = vtanh.f32 %v800_v13  ;;  %v1509_v18 = vmul.f32 -1.442695, %v800_v13 }
 0x2de   : >> { %1839 = vpow2.f32 %v1507_v17 }
 0x2df   : >> { %1841 = vpow2.f32 %v1509_v18 }
 0x2e3   : >> { %v1836_v15 = vpop.eup %1835 }
 0x2e4   : >> { %706 = vrot.lane.b32.xlu1 %v1836_v15, %s2136_s19 }
 0x2e7   : >> { %v1838_v16 = vpop.eup %1837 }
 0x2e8   : >> { %810 = vrot.lane.b32.xlu1 %v1838_v16, %s2136_s19  ;;  %v1840_v19 = vpop.eup %1839 }
 0x2e9   : >> { %v700_v20 = vadd.f32 1.0, %v1840_v19  ;;  %v1842_v21 = vpop.eup %1841 }
 0x2ea   : >> { %v804_v22 = vadd.f32 1.0, %v1842_v21 }
 0x2eb   : >> { %1843 = vrcp.f32 %v700_v20 }
 0x2ec   : >> { %1845 = vrcp.f32 %v804_v22 }
 0x2f5   : >> { %v1844_v23 = vpop.eup %1843 }
 0x2f6   : >> { %v1846_v26 = vpop.eup %1845  ;;  %v704_v29 = vmul.f32 %v2101_v52, %v1844_v23 }
 0x2f7   : >> { %v808_v31 = vmul.f32 %v2093_v50, %v1846_v26 }
 0x356   : >> { %v707_v24 = vpop.permute.xlu1 %706 }
 0x357   : >> { %v709_v25 = vmul.f32 %v1844_v23, %v707_v24 }
 0x359   : >> { %711 = vrot.lane.b32.xlu0 %v709_v25, %s2133_s16 }
 0x35a   : >> { %v811_v27 = vpop.permute.xlu1 %810 }
 0x35b   : >> { %v813_v28 = vmul.f32 %v1846_v26, %v811_v27 }
 0x35d   : >> { %815 = vrot.lane.b32.xlu1 %v813_v28, %s2133_s16 }
 0x3cb   : >> { %v712_v30 = vpop.permute.xlu0 %711 }
 0x3cc   : >> { %v714_v52 = vadd.f32 %v712_v30, %v704_v29  }
 0x3ce   : >> { %1847 = vtanh.f32 %v714_v52 }
 0x3cf   : >> { %v816_v32 = vpop.permute.xlu1 %815 }
 0x3d0   : >> { %v818_v50 = vadd.f32 %v816_v32, %v808_v31  }
 0x3d2   : >> { %1849 = vtanh.f32 %v818_v50 }
 0x3d8   : >> { %v1848_v33 = vpop.eup %1847 }
 0x3d9   : >> { %717 = vrot.lane.b32.xlu0 %v1848_v33, %s2136_s19 }
 0x3dc   : >> { %v1850_v34 = vpop.eup %1849 }
 0x3dd   : >> { %821 = vrot.lane.b32.xlu1 %v1850_v34, %s2136_s19 }
 0x44b   : >> { %v718_v35 = vpop.permute.xlu0 %717 }
 0x44c   : >> { %v720_v53 = vmul.f32 %v1844_v23, %v718_v35  }
 0x44e   : >> { %826 = vrot.lane.b32.xlu0 %v720_v53, %s2133_s16 }
 0x44f   : >> { %v822_v36 = vpop.permute.xlu1 %821 }
 0x450   : >> { %v824_v51 = vmul.f32 %v1846_v26, %v822_v36  }
 0x452   : >> { %832 = vrot.lane.b32.xlu1 %v824_v51, %s2133_s16 }
 0x4bf   : > { %595 = sbr.rel (!%p593_p9) target bundleno = 398 (0x18e), region = 133 }
 0x4c0   : >> { %v827_v37 = vpop.permute.xlu0 %826 }
 0x4c1   : >> { %830 = vst.msk [vmem:[%s829_s21] sm:$0xff] %vm623_vm2, %v827_v37 }
 0x4c4   : >> { %v833_v38 = vpop.permute.xlu1 %832 }
 0x4c5   : >> { %836 = vst.msk [vmem:[%s835_s22] sm:$0xff] %vm623_vm2, %v833_v38 }
 0x4c6 LB: >> { %v848_v41 = vld [vmem:[#allocation9] sm:$0xff]  ;;  %v849_v42 = vld [vmem:[#allocation9 + $0x8] sm:$0xff]  ;;  %v850_v43 = vld [vmem:[#allocation9 + $0x10] sm:$0xff]  ;;  %v2137_v44 = vmov 0.0|0.0   ;;  %s2138_s12 = smov 32   ;;  %vm2139_vm3 = vmmov 0   ;;  %s2121_s23 = sphi %s2493_s23, %s842_s23   ;;  %v2117_v40 = vphi %v2491_v40, %v2552_v40   ;;  %v2113_v39 = vphi %v2489_v39, %v1110_v39  }
 0x4c7   : >> { %1655 = vmatprep.subr.bf16.mxu0 %v2137_v44  ;;  %v1656_v45 = vpack.c.bf16 %v849_v42, %v848_v41  ;;  %v851_v46 = vld [vmem:[#allocation9 + $0x18] sm:$0xff]  ;;  %1649 = vmatprep.subr.bf16.mxu1 %v2137_v44  ;;  %v854_v47 = vld [vmem:[#allocation9 + $0x20] sm:$0xff]  ;;  %v855_v48 = vld [vmem:[#allocation9 + $0x28] sm:$0xff]  ;;  %v2140_v50 = vmov 0.0   ;;  %s1510_s24 = sshll.u32 %s2121_s23, 3  ;;  %s2141_s13 = smov 64  }
 0x4c8   : >> { %1018 = vrot.lane.b32.xlu0 %v2117_v40, %s2138_s12  ;;  %v1650_v49 = vpack.c.bf16 %v855_v48, %v854_v47  ;;  %1601 = vmatprep.mubr.msk.f32.mxu0 %vm2139_vm3, %v2140_v50  ;;  %v856_v51 = vld [vmem:[#allocation9 + $0x30] sm:$0xff]  ;;  %v1659_v52 = vpack.c.bf16 %v851_v46, %v850_v43  ;;  %v857_v53 = vld [vmem:[#allocation9 + $0x38] sm:$0xff]  ;;  %v1013_v54 = vld [vmem:[#allocation13] sm:$0xff]  ;;  %s846_s28 = scalar_lea.vmem [#allocation3], %s1510_s24  ;;  %s852_s25 = scalar_lea.vmem [#allocation4], %s1510_s24 }
 0x4c9   : >> { %1657 = vmatpush3.bf16.msra.mxu0 %v1656_v45  ;;  %1590 = vmatprep.mubr.msk.f32.mxu1 %vm2139_vm3, %v2140_v50  ;;  %v1014_v55 = vld [vmem:[#allocation13 + $0x8] sm:$0xff]  ;;  %v1653_v56 = vpack.c.bf16 %v857_v53, %v856_v51  ;;  %v847_v57 = vld [vmem:[%s846_s28] sm:$0xff]  ;;  %v1015_v59 = vld [vmem:[#allocation13 + $0x10] sm:$0xff]  ;;  %s842_s23 = sadd.s32 1, %s2121_s23  }
 0x4ca   : >> { %1658 = vmatprep.subr.bf16.mxu0 %v2137_v44  ;;  %1651 = vmatpush3.bf16.msra.mxu1 %v1650_v49  ;;  %v1662_v58 = vpack.c.bf16 %v1014_v55, %v1013_v54  ;;  %v1016_v60 = vld [vmem:[#allocation13 + $0x18] sm:$0xff]  ;;  %p839_p10 = scmp.ge.s32.totalorder %s842_s23, 8  }
 0x4cb   : >> { %1652 = vmatprep.subr.bf16.mxu1 %v2137_v44  ;;  %v1665_v62 = vpack.c.bf16 %v1016_v60, %v1015_v59  ;;  %v1513_v3 = vld [vmem:[#allocation12] ss:$0 sm:$0xff]  ;;  %v1126_v21 = vld [vmem:[#allocation10 + $0x28] sm:$0xff] (%p839_p10)  ;;  %v2142_v23 = vmov (%p839_p10), 0.0|0.0   ;;  %v1127_v26 = vld [vmem:[#allocation10 + $0x30] sm:$0xff] (%p839_p10)  ;;  %vm2143_vm4 = vmmov (%p839_p10), 0  }
 0x4cc   : >> { %v853_v61 = vld [vmem:[%s852_s25] sm:$0xff]  ;;  %v1120_v25 = vld [vmem:[#allocation10 + $0x8] sm:$0xff] (%p839_p10)  ;;  %v1121_v29 = vld [vmem:[#allocation10 + $0x10] sm:$0xff] (%p839_p10)  ;;  %s2144_s16 = smov (%p839_p10), 64   ;;  %s2145_s26 = smov (%p839_p10), 32   ;;  %vm1317_vm5 = vcmask (%p839_p10), 523264  }
 0x4cd   : >> { %1660 = vmatpush3.bf16.msra.mxu0 %v1659_v52  ;;  %v1125_v20 = vld [vmem:[#allocation10 + $0x20] sm:$0xff] (%p839_p10)  ;;  %v1128_v27 = vld [vmem:[#allocation10 + $0x38] sm:$0xff] (%p839_p10) }
 0x4ce   : >> { %1661 = vmatprep.subr.bf16.mxu0 %v2137_v44  ;;  %1654 = vmatpush3.bf16.msra.mxu1 %v1653_v56  ;;  %v1119_v22 = vld [vmem:[#allocation10] sm:$0xff] (%p839_p10)  ;;  %v1668_v24 = vpack.c.bf16 (%p839_p10), %v1126_v21, %v1125_v20  ;;  %v1122_v30 = vld [vmem:[#allocation10 + $0x18] sm:$0xff] (%p839_p10)  ;;  %v1671_v31 = vpack.c.bf16 (%p839_p10), %v1128_v27, %v1127_v26 }
 0x4cf   : > { %1673 = vmatprep.subr.bf16.mxu1 (%p839_p10), %v2142_v23  ;;  %v1674_v28 = vpack.c.bf16 (%p839_p10), %v1120_v25, %v1119_v22  ;;  %v1677_v32 = vpack.c.bf16 (%p839_p10), %v1122_v30, %v1121_v29  ;;  %v1124_v33 = vld [vmem:[#allocation4 + $0x38] sm:$0xff] (%p839_p10)  ;;  %v1518_v37 = vld [vmem:[#allocation12 + $0x1] ss:$0 sm:$0xff] (%p839_p10) }
 0x4d0   : >> { %1602 = vmatmul.mubr.msk.f32.vlgmr.msra.gmra.mrb[0].mxu0 %vm623_vm2, %v847_v57  ;;  %v1118_v34 = vld [vmem:[#allocation3 + $0x38] sm:$0xff] (%p839_p10) }
 0x4d1   : >> { %1663 = vmatpush3.bf16.msra.mxu0 %v1662_v58  ;;  %1591 = vmatmul.mubr.msk.f32.vlgmr.msra.gmra.mrb[0].mxu1 %vm623_vm2, %v853_v61 }
 0x4d2   : >> { %1664 = vmatprep.subr.bf16.mxu0 %v2137_v44  ;;  %1612 = vmatprep.mubr.msk.f32.mxu0 %vm2139_vm3, %v2140_v50 }
 0x4d3   : > { %1634 = vmatprep.mubr.msk.f32.mxu1 (%p839_p10), %vm2143_vm4, %v2131_v0  ;;  %1675 = vmatpush3.bf16.msra.mxu1 (%p839_p10), %v1674_v28 }
 0x4d4   : > { %1676 = vmatprep.subr.bf16.mxu1 (%p839_p10), %v2142_v23 }
 0x4d5   : >> { %1666 = vmatpush3.bf16.msra.mxu0 %v1665_v62 }
 0x4d6   : > { %1667 = vmatprep.subr.bf16.mxu0 (%p839_p10), %v2142_v23 }
 0x4d7   : > { %1678 = vmatpush3.bf16.msra.mxu1 (%p839_p10), %v1677_v32 }
 0x53a   : >> { %v1019_v63 = vpop.permute.xlu0 %1018 }
 0x53b   : >> { %1613 = vmatmul.mubr.msk.f32.vlgmr.msra.gmra.mrb[0].mxu0 %vm623_vm2, %v1019_v63 }
 0x53c   : > { %1623 = vmatprep.mubr.msk.f32.mxu0 (%p839_p10), %vm2143_vm4, %v2131_v0  ;;  %1669 = vmatpush3.bf16.msra.mxu0 (%p839_p10), %v1668_v24 }
 0x53d   : > { %1670 = vmatprep.subr.bf16.mxu0 (%p839_p10), %v2142_v23 }
 0x540   : > { %1672 = vmatpush3.bf16.msra.mxu0 (%p839_p10), %v1671_v31 }
 0x5a4   : >> { %v928_v1 = vpop.f32.mrb[0].mxu1 }
 0x5a5   : >> { %v1592_v2 = vpop.f32.mrb[1].mxu1  ;;  %v1681_v4 = vadd.f32 %v1513_v3, %v928_v1  ;;  %1635 = vmatmul.mubr.msk.f32.vlgmr.msra.gmra.mrb[0].mxu1 (%p839_p10), %vm623_vm2, %v1118_v34 }
 0x60e   : >> { %v1088_v5 = vpop.f32.mrb[0].mxu0 }
 0x60f   : >> { %v1682_v6 = vadd.f32 %v1681_v4, %v1088_v5  ;;  %v1614_v7 = vpop.f32.mrb[1].mxu0  ;;  %1624 = vmatmul.mubr.msk.f32.vlgmr.msra.gmra.mrb[0].mxu0 (%p839_p10), %vm623_vm2, %v1124_v33 }
 0x611   : >> { %1851 = vtanh.f32 %v1682_v6  ;;  %v1515_v9 = vmul.f32 -1.442695, %v1682_v6 }
 0x613   : >> { %1853 = vpow2.f32 %v1515_v9 }
 0x61b   : >> { %v1852_v8 = vpop.eup %1851 }
 0x61c   : >> { %1102 = vrot.lane.b32.xlu0 %v1852_v8, %s2141_s13 }
 0x61d   : >> { %v1854_v10 = vpop.eup %1853 }
 0x61e   : >> { %v1096_v11 = vadd.f32 1.0, %v1854_v10 }
 0x620   : >> { %1855 = vrcp.f32 %v1096_v11 }
 0x62a   : >> { %v1856_v12 = vpop.eup %1855 }
 0x62b   : >> { %v1100_v15 = vmul.f32 %v2113_v39, %v1856_v12 }
 0x678   : > { %v1272_v36 = vpop.f32.mrb[0].mxu1 (%p839_p10) }
 0x679   : > { %v1636_v0 = vpop.f32.mrb[1].mxu1 (%p839_p10) }
 0x68e   : >> { %v1103_v13 = vpop.permute.xlu0 %1102 }
 0x68f   : >> { %v1105_v14 = vmul.f32 %v1856_v12, %v1103_v13 }
 0x691   : >> { %1107 = vrot.lane.b32.xlu1 %v1105_v14, %s2138_s12 }
 0x6e2   : > { %v1199_v35 = vpop.f32.mrb[0].mxu0 (%p839_p10) }
 0x6e3   : > { %v1625_v38 = vpop.f32.mrb[1].mxu0 (%p839_p10) }
 0x703   : >> { %v1108_v16 = vpop.permute.xlu1 %1107 }
 0x704   : >> { %v1110_v39 = vadd.f32 %v1108_v16, %v1100_v15  }
 0x706   : >> { %1857 = vtanh.f32 %v1110_v39  ;;  %v1273_v39 = vadd.f32 (%p839_p10), %v1272_v36, %v1199_v35 }
 0x710   : >> { %v1858_v17 = vpop.eup %1857 }
 0x711   : >> { %1113 = vrot.lane.b32.xlu1 %v1858_v17, %s2141_s13 }
 0x780   : > { %841 = sbr.rel (!%p839_p10) target bundleno = 1222 (0x4c6), region = 144 }
 0x783   : >> { %v1114_v18 = vpop.permute.xlu1 %1113 }
 0x784   : >> { %v1116_v19 = vmul.f32 %v1856_v12, %v1114_v18  }
 0x786   : >> { %v2552_v40 = vmov %v1116_v19 }
 0x787   : > { %v1283_v40 = vadd.f32 %v1518_v37, %v1273_v39 }
 0x789   : > { %1859 = vtanh.f32 %v1283_v40  ;;  %v1519_v42 = vmul.f32 -1.442695, %v1283_v40 }
 0x78b   : > { %1861 = vpow2.f32 %v1519_v42 }
 0x793   : > { %v1860_v41 = vpop.eup %1859 }
 0x794   : > { %1293 = vrot.lane.b32.xlu0 %v1860_v41, %s2144_s16 }
 0x795   : > { %v1862_v43 = vpop.eup %1861 }
 0x796   : > { %v1287_v44 = vadd.f32 1.0, %v1862_v43 }
 0x798   : > { %1863 = vrcp.f32 %v1287_v44 }
 0x7a2   : > { %v1864_v45 = vpop.eup %1863 }
 0x7a3   : > { %v1291_v48 = vmul.f32 0.0, %v1864_v45 }
 0x806   : > { %v1294_v46 = vpop.permute.xlu0 %1293 }
 0x807   : > { %v1296_v47 = vmul.f32 %v1864_v45, %v1294_v46 }
 0x809   : > { %1298 = vrot.lane.b32.xlu0 %v1296_v47, %s2145_s26 }
 0x87b   : > { %v1299_v49 = vpop.permute.xlu0 %1298 }
 0x87c   : > { %v1301_v50 = vadd.f32 %v1299_v49, %v1291_v48 }
 0x87e   : > { %1865 = vtanh.f32 %v1301_v50 }
 0x888   : > { %v1866_v51 = vpop.eup %1865 }
 0x889   : > { %1304 = vrot.lane.b32.xlu1 %v1866_v51, %s2144_s16 }
 0x88d   : > { %1309 = vrot.lane.b32.xlu1 %v1116_v19, %s2145_s26 }
 0x8fb   : > { %v1305_v52 = vpop.permute.xlu1 %1304 }
 0x8fc   : > { %v1307_v53 = vmul.f32 %v1864_v45, %v1305_v52 }
 0x8fe   : > { %1313 = vrot.lane.b32.xlu0 %v1307_v53, %s2144_s16 }
 0x8ff   : > { %v1310_v54 = vpop.permute.xlu1 %1309 }
 0x970   : > { %v1314_v55 = vpop.permute.xlu0 %1313 }
 0x971   : > { %v1316_v56 = vsel %vm623_vm2, %v1310_v54, %v1314_v55 }
 0x972   : > { %1318 = vst.msk [vmem:[%s2397_s18] sm:$0xff] %vm1317_vm5, %v1316_v56 }
 0x973 PF: > { %s23_s30 = sadd.s32 1, %s2089_s30  }
 0x974   : > { %p20_p11 = scmp.ge.s32.totalorder %s23_s30, 4  }
 0x976   :  { %22 = sbr.rel (!%p20_p11) target bundleno = 4 (0x4), region = 155 }
 0x97d   :  { %1338 = vsyncpa [#allocation6], 1 }
 0x97e   :  { %1340 = vsyncpa [#allocation6 + $0x1], 1 }
 0x97f   :  { %1341 = vsyncpa [#allocation8], 1 }
 0x980   :  { %1342 = vsyncpa [#allocation11], 1 }
 0x981   :  { %1343 = vsyncpa [#allocation14], 1 }

// kernel: _lambda_.3
= control target key start
LH: loop header
LB: loop body
LE: loop exit
PB: predicated region body
PF: predicated region fallthrough
CT: control target
= control target key end

     0   :  { %s10353_s0 = inlined_call_operand.vmem [shape: f32[16,64], index: 0, kind: input, shape index: {}]   ;;  %s10354_s1 = inlined_call_operand.vmem [shape: f32[16,1], index: 1, kind: input, shape index: {}]   ;;  %s10355_s2 = inlined_call_operand.vmem [shape: f32[16,1], index: 2, kind: input, shape index: {}]   ;;  %s10356_s3 = inlined_call_operand.vmem [shape: f32[64,768], index: 3, kind: input, shape index: {}]   ;;  %s10357_s4 = inlined_call_operand.hbm [shape: f32[1,768], index: 4, kind: input, shape index: {}]   ;;  %s10358_s5 = inlined_call_operand.vmem [shape: f32[192,768], index: 5, kind: input, shape index: {}]   ;;  %s10359_s6 = inlined_call_operand.hbm [shape: f32[192,768], index: 6, kind: input, shape index: {}]   ;;  %s10360_s7 = inlined_call_operand.hbm [shape: f32[1,768], index: 7, kind: input, shape index: {}]   ;;  %s10361_s8 = inlined_call_operand.hbm [shape: f32[192,768], index: 8, kind: input, shape index: {}]   ;;  %s10362_s9 = inlined_call_operand.vmem [shape: f32[1,64], index: 9, kind: input, shape index: {}]   ;;  %s10363_s10 = inlined_call_operand.<no memory space> [shape: f32[1,1], index: 10, kind: input, shape index: {}]   ;;  %s10364_s11 = inlined_call_operand.vmem [shape: f32[16,4], index: 11, kind: output, shape index: {}]  }
   0x1   :  { %v16_v0 = vstv %s10363_s10 }
   0x2   :  { %17 = vst [vmem:[#allocation2] sm:$0x1] %v16_v0 }
   0x3   :  { %18 = vsyncpa [#allocation4], 0 }
   0x4   :  { %19 = vsyncpa [#allocation6], 0 }
   0x5   :  { %20 = vsyncpa [#allocation9], 0  ;;  %s7775_s19 = smov 0  }
   0x6 LB: > { %s7700_s20 = smov [#allocation5]   ;;  %s7781_s22 = sadd.s32 4294967295, %s7698_s19   ;;  %s7698_s19 = sphi %s7775_s19, %s26_s19  }
   0x7   : > { %s332_s21 = sshll.u32 %s7700_s20, 4  ;;  %p5216_p0 = scmp.ge.s32.totalorder %s7698_s19, 1  ;;  %s7786_s21 = int_to_ptr.vmem [resolvable:$true] %s332_s21 }
   0x8   : > { %p303_p1 = scmp.lt.s32.totalorder %s7698_s19, 3  ;;  %p10365_p2 = scmp.eq.s32.totalorder %s7781_s22, 0 }
   0x9   : > { %s7701_s23 = smov [#allocation3]   ;;  %s7702_s26 = smov [#allocation7]  }
   0xa   : > { %p7788_p3 = pnand %p5216_p0, %p303_p1  ;;  %s319_s24 = sshll.u32 %s7701_s23, 4  ;;  %s7794_s24 = int_to_ptr.vmem [resolvable:$true] %s319_s24 }
   0xb   : > { %s346_s27 = sshll.u32 %s7702_s26, 4  ;;  %s7703_s28 = smov [#allocation8]   ;;  %s7802_s27 = int_to_ptr.vmem [resolvable:$true] %s346_s27 }
   0xc   : > { %s10869_s10 = scalar_select %p7788_p3, 1, 0 }
   0xd   : > { %p7301_p4 = pneg %p7788_p3  ;;  %s7804_s29 = sshll.u32 %s7703_s28, 4  ;;  %s357_s29 = int_to_ptr.vmem [resolvable:$true] %s7804_s29 }
   0xe   : > { %s7568_s13 = scalar_lea.hbm %s10359_s6, 18432 }
   0xf   : > { %p7798_p5 = pnand %p10365_p2, %p7301_p4  ;;  %p7569_p6 = scmp.ne.s32.totalorder %s10359_s6, %s7568_s13 }
  0x10   : > { %p7575_p10 = scmp.lt.u32.totalorder %s7568_s13, %s10359_s6 }
  0x11   : > { %p7814_p7 = pneg %p7798_p5 }
  0x13   : > { %p7571_p8 = pnand %p7814_p7, %p7569_p6 }
  0x15   : > { %p7572_p9 = pneg %p7571_p8 }
  0x17   : > { %p7577_p11 = pnand %p7575_p10, %p7572_p9 }
  0x19   : > { %7580 = shalt.err (!%p7577_p11)
}
  0x1a   : > { %s7581_s20 = scalar_lea.vmem %s7786_s21, 18432  ;;  %p7589_p1 = scmp.lt.s32.totalorder %s7786_s21, %s7786_s21 }
  0x1b   : > { %p7582_p12 = scmp.ne.s32.totalorder %s7786_s21, %s7581_s20  ;;  %p7590_p4 = scmp.lt.s32.totalorder %s7581_s20, %s7581_s20 }
  0x1d   : > { %p7584_p13 = pnand %p7582_p12, %p7814_p7  ;;  %p7591_p6 = por %p7590_p4, %p7589_p1 }
  0x1f   : > { %p7585_p0 = pneg %p7584_p13 }
  0x21   : > { %p7592_p8 = pnand %p7591_p6, %p7585_p0 }
  0x23   : > { %7595 = shalt.err (!%p7592_p8)
}
  0x24   : > { %s7704_s23 = smov 768   ;;  %s7705_s26 = smov 48  }
  0x25   : > { %7307 = dma.hbm_to_vmem [thread:$0]  (!%p7798_p5), %s10359_s6, 18432, %s7786_s21, [#allocation6], %s7704_s23, %s7704_s23, %s7705_s26  }
  0x26   : > { %s7596_s14 = scalar_lea.hbm %s10357_s4, 96 }
  0x27   : > { %p7597_p9 = scmp.ne.s32.totalorder %s10357_s4, %s7596_s14  ;;  %p7603_p12 = scmp.lt.u32.totalorder %s7596_s14, %s10357_s4 }
  0x29   : > { %p7599_p10 = pnand %p7597_p9, %p7814_p7 }
  0x2b   : > { %p7600_p11 = pneg %p7599_p10 }
  0x2d   : > { %p7605_p13 = pnand %p7603_p12, %p7600_p11 }
  0x2f   : > { %7608 = shalt.err (!%p7605_p13)
}
  0x30   : > { %s7609_s21 = scalar_lea.vmem %s7794_s24, 96  ;;  %p7617_p6 = scmp.lt.s32.totalorder %s7794_s24, %s7794_s24 }
  0x31   : > { %p7610_p0 = scmp.ne.s32.totalorder %s7794_s24, %s7609_s21  ;;  %p7618_p8 = scmp.lt.s32.totalorder %s7609_s21, %s7609_s21 }
  0x33   : > { %p7612_p1 = pnand %p7610_p0, %p7814_p7  ;;  %p7619_p9 = por %p7618_p8, %p7617_p6 }
  0x35   : > { %p7613_p4 = pneg %p7612_p1 }
  0x37   : > { %p7620_p10 = pnand %p7619_p9, %p7613_p4 }
  0x39   : > { %7623 = shalt.err (!%p7620_p10)
}
  0x3a   : > { %7304 = dma.hbm_to_vmem [thread:$0]  (!%p7798_p5), %s10357_s4, 96, %s7794_s24, [#allocation4]  }
  0x3b   : > { %s7624_s14 = scalar_lea.hbm %s10360_s7, 96 }
  0x3c   : > { %p7625_p11 = scmp.ne.s32.totalorder %s10360_s7, %s7624_s14  ;;  %p7631_p0 = scmp.lt.u32.totalorder %s7624_s14, %s10360_s7 }
  0x3e   : > { %p7627_p12 = pnand %p7625_p11, %p7814_p7 }
  0x40   : > { %p7628_p13 = pneg %p7627_p12 }
  0x42   : > { %p7633_p1 = pnand %p7631_p0, %p7628_p13 }
  0x44   : > { %7636 = shalt.err (!%p7633_p1)
}
  0x45   : > { %s7637_s24 = scalar_lea.vmem %s7802_s27, 96  ;;  %p7645_p9 = scmp.lt.s32.totalorder %s7802_s27, %s7802_s27 }
  0x46   : > { %p7638_p4 = scmp.ne.s32.totalorder %s7802_s27, %s7637_s24  ;;  %p7646_p10 = scmp.lt.s32.totalorder %s7637_s24, %s7637_s24 }
  0x48   : > { %p7640_p6 = pnand %p7638_p4, %p7814_p7  ;;  %p7647_p11 = por %p7646_p10, %p7645_p9 }
  0x4a   : > { %p7641_p8 = pneg %p7640_p6 }
  0x4c   : > { %p7648_p12 = pnand %p7647_p11, %p7641_p8 }
  0x4e   : > { %7651 = shalt.err (!%p7648_p12)
}
  0x4f   : > { %7310 = dma.hbm_to_vmem [thread:$0]  (!%p7798_p5), %s10360_s7, 96, %s7802_s27, [#allocation6]  }
  0x50   : > { %s7652_s13 = scalar_lea.hbm %s10361_s8, 18432 }
  0x51   : > { %p7653_p13 = scmp.ne.s32.totalorder %s10361_s8, %s7652_s13  ;;  %p7659_p4 = scmp.lt.u32.totalorder %s7652_s13, %s10361_s8 }
  0x53   : > { %p7655_p0 = pnand %p7653_p13, %p7814_p7 }
  0x55   : > { %p7656_p1 = pneg %p7655_p0 }
  0x57   : > { %p7661_p6 = pnand %p7659_p4, %p7656_p1 }
  0x59   : > { %7664 = shalt.err (!%p7661_p6)
}
  0x5a   : > { %s7665_s20 = scalar_lea.vmem %s357_s29, 18432  ;;  %p7673_p11 = scmp.lt.s32.totalorder %s357_s29, %s357_s29 }
  0x5b   : > { %p7666_p8 = scmp.ne.s32.totalorder %s357_s29, %s7665_s20  ;;  %p7674_p12 = scmp.lt.s32.totalorder %s7665_s20, %s7665_s20 }
  0x5d   : > { %p7668_p9 = pnand %p7666_p8, %p7814_p7  ;;  %p7675_p2 = por %p7674_p12, %p7673_p11 }
  0x5f   : > { %p7669_p10 = pneg %p7668_p9 }
  0x61   : > { %p7676_p3 = pnand %p7675_p2, %p7669_p10 }
  0x63   : > { %7679 = shalt.err (!%p7676_p3)
}
  0x64   : > { %7313 = dma.hbm_to_vmem [thread:$0]  (!%p7798_p5), %s10361_s8, 18432, %s357_s29, [#allocation9], %s7704_s23, %s7704_s23, %s7705_s26  }
  0x65   : > { %p10872_p13 = scmp.ne.s32.totalorder %s10869_s10, 0 }
  0x67   : > { %399 = sbr.rel (%p10872_p13) target bundleno = 5073 (0x13d1), region = 64 }
  0x6e   : > { %p10873_p7 = scmp.eq.s32.totalorder %s7781_s22, 0 }
  0x70   : > { %7685 = dma.done.wait (%p10873_p7), [#allocation4], 96   ;;  %p10874_p0 = pmov %p10873_p7 }
  0x72   : > { %7687 = vsyncadd (%p10874_p0), [#allocation4], 4294967200  ;;  %p10875_p2 = pmov %p10874_p0 }
  0x73   : > { %p10876_p3 = pmov %p10874_p0 }
  0x74   : > { %7689 = dma.done.wait (%p10875_p2), [#allocation6], 18528  }
  0x75   : > { %7691 = vsyncadd (%p10876_p3), [#allocation6], 4294948768  ;;  %p10877_p1 = pmov %p10874_p0 }
  0x76   : > { %p10878_p5 = pmov %p10874_p0 }
  0x77   : > { %7693 = dma.done.wait (%p10877_p1), [#allocation9], 18432  }
  0x78   : > { %7695 = vsyncadd (%p10878_p5), [#allocation9], 4294948864  ;;  %v10367_v1 = vmov 0.0   ;;  %v529_v2 = vld [vmem:[%s10358_s5 + $0x8] sm:$0xff]  ;;  %v535_v3 = vld [vmem:[%s10358_s5 + $0x38] sm:$0xff]  ;;  %p457_p4 = scmp.lt.s32.totalorder %s7781_s22, 1 }
  0x79   : > { %740 = vmatprep.mubr.f32.mxu0 %v10367_v1  ;;  %956 = vmatprep.mubr.f32.mxu1 %v10367_v1  ;;  %v528_v4 = vld [vmem:[%s10358_s5] sm:$0xff]  ;;  %v7931_v5 = vpack.c.bf16 %v535_v3, %v529_v2  ;;  %v534_v6 = vld [vmem:[%s10358_s5 + $0x30] sm:$0xff]  ;;  %v541_v7 = vld [vmem:[%s10358_s5 + $0x68] sm:$0xff]  ;;  %vm672_vm0 = vcmask 523264   ;;  %s7707_s12 = smov 64   ;;  %s7709_s10 = smov 2  }
  0x7a   : > { %v547_v8 = vld [vmem:[%s10358_s5 + $0x98] sm:$0xff]  ;;  %v7942_v9 = vpack.c.bf16 %v534_v6, %v528_v4  ;;  %v540_v11 = vld [vmem:[%s10358_s5 + $0x60] sm:$0xff]  ;;  %v546_v12 = vld [vmem:[%s10358_s5 + $0x90] sm:$0xff]  ;;  %s11739_s22 = smov (!%p457_p4, %s7781_s22), 1  ;;  %s7710_s25 = smov 1   ;;  %vm5088_vm5 = vcmask 7168  }
  0x7b   : > { %10879 = vst [vmem:[#allocation13_spill] sm:$0xff] %v7931_v5  ;;  %v7944_v10 = vpack.c.bf16 %v547_v8, %v541_v7  ;;  %v553_v13 = vld [vmem:[%s10358_s5 + $0xc8] sm:$0xff]  ;;  %5318 = vmatprep.subr.bf16.mxu0 %v7931_v5  ;;  %v559_v14 = vld [vmem:[%s10358_s5 + $0xf8] sm:$0xff]  ;;  %v7960_v15 = vpack.c.bf16 %v546_v12, %v540_v11  ;;  %v552_v17 = vld [vmem:[%s10358_s5 + $0xc0] sm:$0xff]  ;;  %s8120_s29 = sshll.u32 %s11739_s22, 3  ;;  %s7711_s16 = smov 3  }
  0x7c   : > { %5320 = vmatpush1.bf16.msra.mxu0 %v7942_v9  ;;  %v7963_v16 = vpack.c.bf16 %v559_v14, %v553_v13  ;;  %v558_v18 = vld [vmem:[%s10358_s5 + $0xf0] sm:$0xff]  ;;  %v565_v19 = vld [vmem:[%s10358_s5 + $0x128] sm:$0xff]  ;;  %v571_v20 = vld [vmem:[%s10358_s5 + $0x158] sm:$0xff]  ;;  %s460_s30 = scalar_lea.vmem %s10353_s0, %s8120_s29  ;;  %s468_s15 = scalar_lea.vmem %s10355_s2, %s8120_s29  ;;  %vm5090_vm6 = vcmask 15360   ;;  %vm5092_vm7 = vcmask 23552   ;;  %vm5094_vm8 = vcmask 31744  }
  0x7d   : > { %10880 = vst [vmem:[#allocation14_spill] sm:$0xff] %v7944_v10  ;;  %10881 = vst [vmem:[#allocation15_spill] sm:$0xff] %v7960_v15  ;;  %5322 = vmatprep.subr.bf16.mxu0 %v7944_v10  ;;  %v7978_v21 = vpack.c.bf16 %v558_v18, %v552_v17  ;;  %v7981_v22 = vpack.c.bf16 %v571_v20, %v565_v19  ;;  %v564_v23 = vld [vmem:[%s10358_s5 + $0x120] sm:$0xff]  ;;  %v570_v24 = vld [vmem:[%s10358_s5 + $0x150] sm:$0xff]  ;;  %s464_s20 = scalar_lea.vmem %s10354_s1, %s8120_s29  ;;  %s472_s22 = scalar_lea.vmem %s10364_s11, %s8120_s29 }
  0x7e   : > { %10882 = vst [vmem:[#allocation16_spill] sm:$0xff] %v7963_v16  ;;  %v577_v25 = vld [vmem:[%s10358_s5 + $0x188] sm:$0xff]  ;;  %v583_v26 = vld [vmem:[%s10358_s5 + $0x1b8] sm:$0xff]  ;;  %v8002_v29 = vpack.c.bf16 %v570_v24, %v564_v23  ;;  %v576_v30 = vld [vmem:[%s10358_s5 + $0x180] sm:$0xff] }
  0x7f   : > { %10883 = vst [vmem:[#allocation17_spill] sm:$0xff] %v7978_v21  ;;  %10884 = vst [vmem:[#allocation18_spill] sm:$0xff] %v7981_v22  ;;  %v481_v27 = vld [vmem:[%s10356_s3 + $0x8] sm:$0xff]  ;;  %v487_v28 = vld [vmem:[%s10356_s3 + $0x38] sm:$0xff]  ;;  %v8013_v33 = vpack.c.bf16 %v583_v26, %v577_v25 }
  0x80   : > { %5324 = vmatpush1.bf16.msra.mxu0 %v7960_v15  ;;  %10885 = vst [vmem:[#allocation19_spill] sm:$0xff] %v8002_v29  ;;  %v8007_v31 = vpack.c.bf16 %v487_v28, %v481_v27  ;;  %v480_v32 = vld [vmem:[%s10356_s3] sm:$0xff]  ;;  %v582_v34 = vld [vmem:[%s10358_s5 + $0x1b0] sm:$0xff]  ;;  %v589_v35 = vld [vmem:[%s10358_s5 + $0x1e8] sm:$0xff] }
  0x81   : > { %5326 = vmatprep.subr.bf16.mxu0 %v7963_v16  ;;  %10887 = vst [vmem:[#allocation21_spill] sm:$0xff] %v8013_v33  ;;  %v486_v36 = vld [vmem:[%s10356_s3 + $0x30] sm:$0xff]  ;;  %v595_v37 = vld [vmem:[%s10358_s5 + $0x218] sm:$0xff]  ;;  %v493_v39 = vld [vmem:[%s10356_s3 + $0x68] sm:$0xff]  ;;  %v8046_v44 = vpack.c.bf16 %v582_v34, %v576_v30 }
  0x82   : > { %10886 = vst [vmem:[#allocation20_spill] sm:$0xff] %v8007_v31  ;;  %5462 = vmatprep.subr.bf16.mxu1 %v8007_v31  ;;  %v8028_v38 = vpack.c.bf16 %v486_v36, %v480_v32  ;;  %v499_v40 = vld [vmem:[%s10356_s3 + $0x98] sm:$0xff]  ;;  %v492_v42 = vld [vmem:[%s10356_s3 + $0x60] sm:$0xff]  ;;  %v498_v43 = vld [vmem:[%s10356_s3 + $0x90] sm:$0xff]  ;;  %v8058_v48 = vpack.c.bf16 %v595_v37, %v589_v35 }
  0x83   : > { %v8037_v41 = vpack.c.bf16 %v499_v40, %v493_v39  ;;  %10890 = vst [vmem:[#allocation24_spill] sm:$0xff] %v8046_v44  ;;  %v588_v45 = vld [vmem:[%s10358_s5 + $0x1e0] sm:$0xff]  ;;  %v8052_v46 = vpack.c.bf16 %v498_v43, %v492_v42  ;;  %v505_v47 = vld [vmem:[%s10356_s3 + $0xc8] sm:$0xff]  ;;  %v594_v49 = vld [vmem:[%s10358_s5 + $0x210] sm:$0xff] }
  0x84   : > { %5328 = vmatpush1.bf16.msra.mxu0 %v7978_v21  ;;  %10888 = vst [vmem:[#allocation22_spill] sm:$0xff] %v8028_v38  ;;  %5464 = vmatpush1.bf16.msra.mxu1 %v8028_v38  ;;  %10892 = vst [vmem:[#allocation26_spill] sm:$0xff] %v8058_v48  ;;  %v601_v50 = vld [vmem:[%s10358_s5 + $0x248] sm:$0xff]  ;;  %v511_v51 = vld [vmem:[%s10356_s3 + $0xf8] sm:$0xff]  ;;  %v8091_v58 = vpack.c.bf16 %v594_v49, %v588_v45 }
  0x85   : > { %5330 = vmatprep.subr.bf16.mxu0 %v7981_v22  ;;  %10889 = vst [vmem:[#allocation23_spill] sm:$0xff] %v8037_v41  ;;  %10891 = vst [vmem:[#allocation25_spill] sm:$0xff] %v8052_v46  ;;  %5466 = vmatprep.subr.bf16.mxu1 %v8037_v41  ;;  %v607_v52 = vld [vmem:[%s10358_s5 + $0x278] sm:$0xff]  ;;  %v8073_v53 = vpack.c.bf16 %v511_v51, %v505_v47  ;;  %v504_v54 = vld [vmem:[%s10356_s3 + $0xc0] sm:$0xff] }
  0x86   : > { %v510_v55 = vld [vmem:[%s10356_s3 + $0xf0] sm:$0xff]  ;;  %v517_v56 = vld [vmem:[%s10356_s3 + $0x128] sm:$0xff]  ;;  %v523_v57 = vld [vmem:[%s10356_s3 + $0x158] sm:$0xff]  ;;  %10894 = vst [vmem:[#allocation28_spill] sm:$0xff] %v8091_v58  ;;  %v8100_v61 = vpack.c.bf16 %v607_v52, %v601_v50 }
  0x87   : > { %10893 = vst [vmem:[#allocation27_spill] sm:$0xff] %v8073_v53  ;;  %v600_v59 = vld [vmem:[%s10358_s5 + $0x240] sm:$0xff]  ;;  %v8097_v60 = vpack.c.bf16 %v510_v55, %v504_v54  ;;  %v606_v62 = vld [vmem:[%s10358_s5 + $0x270] sm:$0xff]  ;;  %v8106_v63 = vpack.c.bf16 %v523_v57, %v517_v56  ;;  %v613_v3 = vld [vmem:[%s10358_s5 + $0x2a8] sm:$0xff] }
  0x88   : > { %5332 = vmatpush1.bf16.msra.mxu0 %v8002_v29  ;;  %5468 = vmatpush1.bf16.msra.mxu1 %v8052_v46  ;;  %10896 = vst [vmem:[#allocation30_spill] sm:$0xff] %v8100_v61  ;;  %v516_v0 = vld [vmem:[%s10356_s3 + $0x120] sm:$0xff]  ;;  %v522_v2 = vld [vmem:[%s10356_s3 + $0x150] sm:$0xff]  ;;  %v619_v4 = vld [vmem:[%s10358_s5 + $0x2d8] sm:$0xff]  ;;  %v8123_v6 = vpack.c.bf16 %v606_v62, %v600_v59 }
  0x89   : > { %5334 = vmatprep.subr.bf16.mxu0 %v8013_v33  ;;  %10895 = vst [vmem:[#allocation29_spill] sm:$0xff] %v8097_v60  ;;  %5470 = vmatprep.subr.bf16.mxu1 %v8073_v53  ;;  %10897 = vst [vmem:[#allocation31_spill] sm:$0xff] %v8106_v63  ;;  %v8126_v7 = vpack.c.bf16 %v522_v2, %v516_v0  ;;  %v8129_v8 = vpack.c.bf16 %v619_v4, %v613_v3  ;;  %v612_v11 = vld [vmem:[%s10358_s5 + $0x2a0] sm:$0xff]  ;;  %v618_v12 = vld [vmem:[%s10358_s5 + $0x2d0] sm:$0xff] }
  0x8a   : > { %10898 = vst [vmem:[#allocation32_spill] sm:$0xff] %v8123_v6  ;;  %v625_v13 = vld [vmem:[%s10358_s5 + $0x308] sm:$0xff]  ;;  %v631_v14 = vld [vmem:[%s10358_s5 + $0x338] sm:$0xff]  ;;  %v8149_v17 = vpack.c.bf16 %v618_v12, %v612_v11  ;;  %v8152_v18 = vld [vmem:[%s460_s30] sm:$0xff] }
  0x8b   : > { %10899 = vst [vmem:[#allocation33_spill] sm:$0xff] %v8126_v7  ;;  %10900 = vst [vmem:[#allocation34_spill] sm:$0xff] %v8129_v8  ;;  %v8155_v19 = vpack.c.bf16 %v631_v14, %v625_v13  ;;  %v624_v20 = vld [vmem:[%s10358_s5 + $0x300] sm:$0xff]  ;;  %v630_v23 = vld [vmem:[%s10358_s5 + $0x330] sm:$0xff] }
  0x8c   : > { %5336 = vmatpush1.bf16.msra.mxu0 %v8046_v44  ;;  %5472 = vmatpush1.bf16.msra.mxu1 %v8097_v60  ;;  %10901 = vst [vmem:[#allocation35_spill] sm:$0xff] %v8149_v17  ;;  %v637_v24 = vld [vmem:[%s10358_s5 + $0x368] sm:$0xff]  ;;  %v643_v25 = vld [vmem:[%s10358_s5 + $0x398] sm:$0xff]  ;;  %v8172_v26 = vpack.c.bf16 %v630_v23, %v624_v20  ;;  %v636_v27 = vld [vmem:[%s10358_s5 + $0x360] sm:$0xff] }
  0x8d   : > { %5338 = vmatprep.subr.bf16.mxu0 %v8058_v48  ;;  %5474 = vmatprep.subr.bf16.mxu1 %v8106_v63  ;;  %10902 = vst [vmem:[#allocation36_spill] sm:$0xff] %v8155_v19  ;;  %v642_v28 = vld [vmem:[%s10358_s5 + $0x390] sm:$0xff]  ;;  %v8182_v30 = vpack.c.bf16 %v643_v25, %v637_v24  ;;  %v649_v32 = vld [vmem:[%s10358_s5 + $0x3c8] sm:$0xff]  ;;  %v483_v34 = vld [vmem:[%s10356_s3 + $0x18] sm:$0xff] }
  0x8e   : > { %10903 = vst [vmem:[#allocation37_spill] sm:$0xff] %v8172_v26  ;;  %v489_v35 = vld [vmem:[%s10356_s3 + $0x48] sm:$0xff]  ;;  %v655_v36 = vld [vmem:[%s10358_s5 + $0x3f8] sm:$0xff]  ;;  %v482_v39 = vld [vmem:[%s10356_s3 + $0x10] sm:$0xff]  ;;  %v8210_v45 = vpack.c.bf16 %v642_v28, %v636_v27 }
  0x8f   : > { %10904 = vst [vmem:[#allocation38_spill] sm:$0xff] %v8182_v30  ;;  %v8196_v37 = vpack.c.bf16 %v489_v35, %v483_v34  ;;  %v488_v40 = vld [vmem:[%s10356_s3 + $0x40] sm:$0xff]  ;;  %v495_v43 = vld [vmem:[%s10356_s3 + $0x78] sm:$0xff]  ;;  %v654_v49 = vld [vmem:[%s10358_s5 + $0x3f0] sm:$0xff]  ;;  %v8223_v51 = vpack.c.bf16 %v655_v36, %v649_v32 }
  0x90   : > { %5340 = vmatpush1.bf16.msra.mxu0 %v8091_v58  ;;  %5476 = vmatpush1.bf16.msra.mxu1 %v8126_v7  ;;  %v8204_v42 = vpack.c.bf16 %v488_v40, %v482_v39  ;;  %v648_v47 = vld [vmem:[%s10358_s5 + $0x3c0] sm:$0xff]  ;;  %v501_v50 = vld [vmem:[%s10356_s3 + $0xa8] sm:$0xff]  ;;  %v494_v55 = vld [vmem:[%s10356_s3 + $0x70] sm:$0xff] }
  0x91   : > { %5342 = vmatprep.subr.bf16.mxu0 %v8100_v61  ;;  %10905 = vst [vmem:[#allocation39_spill] sm:$0xff] %v8196_v37  ;;  %5478 = vmatprep.subr.bf16.mxu1 %v8196_v37  ;;  %10907 = vst [vmem:[#allocation41_spill] sm:$0xff] %v8223_v51  ;;  %v661_v52 = vld [vmem:[%s10358_s5 + $0x428] sm:$0xff]  ;;  %v8229_v54 = vpack.c.bf16 %v501_v50, %v495_v43  ;;  %v500_v56 = vld [vmem:[%s10356_s3 + $0xa0] sm:$0xff]  ;;  %v8255_v4 = vpack.c.bf16 %v654_v49, %v648_v47 }
  0x92   : > { %10906 = vst [vmem:[#allocation40_spill] sm:$0xff] %v8204_v42  ;;  %v667_v57 = vld [vmem:[%s10358_s5 + $0x458] sm:$0xff]  ;;  %v8240_v59 = vpack.c.bf16 %v500_v56, %v494_v55  ;;  %v513_v0 = vld [vmem:[%s10356_s3 + $0x108] sm:$0xff]  ;;  %v506_v3 = vld [vmem:[%s10356_s3 + $0xd0] sm:$0xff] }
  0x93   : > { %5231 = vmatmul.mubr.msk.f32.vlgmr.msra.gmra.mrb[0].mxu1 %vm672_vm0, %v8152_v18  ;;  %10908 = vst [vmem:[#allocation42_spill] sm:$0xff] %v8229_v54  ;;  %v507_v62 = vld [vmem:[%s10356_s3 + $0xd8] sm:$0xff]  ;;  %10911 = vst [vmem:[#allocation45_spill] sm:$0xff] %v8255_v4  ;;  %v660_v11 = vld [vmem:[%s10358_s5 + $0x420] sm:$0xff]  ;;  %v8267_v14 = vpack.c.bf16 %v667_v57, %v661_v52 }
  0x94   : > { %5344 = vmatpush1.bf16.msra.mxu0 %v8123_v6  ;;  %1027 = vmatprep.mubr.f32.mxu1 %v10367_v1  ;;  %10909 = vst [vmem:[#allocation43_spill] sm:$0xff] %v8240_v59  ;;  %v8249_v2 = vpack.c.bf16 %v513_v0, %v507_v62  ;;  %v666_v12 = vld [vmem:[%s10358_s5 + $0x450] sm:$0xff]  ;;  %v512_v13 = vld [vmem:[%s10356_s3 + $0x100] sm:$0xff]  ;;  %v531_v20 = vld [vmem:[%s10358_s5 + $0x18] sm:$0xff] }
  0x95   : > { %5346 = vmatprep.subr.bf16.mxu0 %v8129_v8  ;;  %5480 = vmatpush1.bf16.msra.mxu1 %v8204_v42  ;;  %10912 = vst [vmem:[#allocation46_spill] sm:$0xff] %v8267_v14  ;;  %v8273_v23 = vpack.c.bf16 %v512_v13, %v506_v3  ;;  %v519_v24 = vld [vmem:[%s10356_s3 + $0x138] sm:$0xff]  ;;  %v525_v25 = vld [vmem:[%s10356_s3 + $0x168] sm:$0xff]  ;;  %v518_v32 = vld [vmem:[%s10356_s3 + $0x130] sm:$0xff]  ;;  %v8294_v35 = vpack.c.bf16 %v666_v12, %v660_v11 }
  0x96   : > { %5482 = vmatprep.subr.bf16.mxu1 %v8229_v54  ;;  %10910 = vst [vmem:[#allocation44_spill] sm:$0xff] %v8249_v2  ;;  %v537_v27 = vld [vmem:[%s10358_s5 + $0x48] sm:$0xff]  ;;  %v8285_v28 = vpack.c.bf16 %v525_v25, %v519_v24  ;;  %v524_v34 = vld [vmem:[%s10356_s3 + $0x160] sm:$0xff]  ;;  %v530_v39 = vld [vmem:[%s10358_s5 + $0x10] sm:$0xff] }
  0x97   : > { %10913 = vst [vmem:[#allocation47_spill] sm:$0xff] %v8273_v23  ;;  %10915 = vst [vmem:[#allocation49_spill] sm:$0xff] %v8294_v35  ;;  %v8297_v36 = vpack.c.bf16 %v537_v27, %v531_v20  ;;  %v536_v40 = vld [vmem:[%s10358_s5 + $0x40] sm:$0xff]  ;;  %v8306_v43 = vpack.c.bf16 %v524_v34, %v518_v32  ;;  %v543_v47 = vld [vmem:[%s10358_s5 + $0x78] sm:$0xff] }
  0x98   : > { %5348 = vmatpush1.bf16.msra.mxu0 %v8149_v17  ;;  %10914 = vst [vmem:[#allocation48_spill] sm:$0xff] %v8285_v28  ;;  %v549_v49 = vld [vmem:[%s10358_s5 + $0xa8] sm:$0xff]  ;;  %v8316_v50 = vpack.c.bf16 %v536_v40, %v530_v39  ;;  %v542_v55 = vld [vmem:[%s10358_s5 + $0x70] sm:$0xff]  ;;  %v548_v56 = vld [vmem:[%s10358_s5 + $0xa0] sm:$0xff] }
  0x99   : > { %5350 = vmatprep.subr.bf16.mxu0 %v8155_v19  ;;  %5484 = vmatpush1.bf16.msra.mxu1 %v8240_v59  ;;  %10916 = vst [vmem:[#allocation50_spill] sm:$0xff] %v8297_v36  ;;  %10917 = vst [vmem:[#allocation51_spill] sm:$0xff] %v8306_v43  ;;  %v8319_v52 = vpack.c.bf16 %v549_v49, %v543_v47  ;;  %v555_v57 = vld [vmem:[%s10358_s5 + $0xd8] sm:$0xff]  ;;  %v561_v62 = vld [vmem:[%s10358_s5 + $0x108] sm:$0xff]  ;;  %v8336_v0 = vpack.c.bf16 %v548_v56, %v542_v55 }
  0x9a   : > { %5486 = vmatprep.subr.bf16.mxu1 %v8249_v2  ;;  %10918 = vst [vmem:[#allocation52_spill] sm:$0xff] %v8316_v50  ;;  %v8340_v3 = vpack.c.bf16 %v561_v62, %v555_v57  ;;  %v554_v11 = vld [vmem:[%s10358_s5 + $0xd0] sm:$0xff]  ;;  %v560_v12 = vld [vmem:[%s10358_s5 + $0x100] sm:$0xff]  ;;  %v567_v13 = vld [vmem:[%s10358_s5 + $0x138] sm:$0xff] }
  0x9b   : > { %10919 = vst [vmem:[#allocation53_spill] sm:$0xff] %v8319_v52  ;;  %10920 = vst [vmem:[#allocation54_spill] sm:$0xff] %v8336_v0  ;;  %v573_v20 = vld [vmem:[%s10358_s5 + $0x168] sm:$0xff]  ;;  %v8358_v24 = vpack.c.bf16 %v560_v12, %v554_v11  ;;  %v566_v27 = vld [vmem:[%s10358_s5 + $0x130] sm:$0xff] }
  0x9c   : > { %5352 = vmatpush1.bf16.msra.mxu0 %v8172_v26  ;;  %10921 = vst [vmem:[#allocation55_spill] sm:$0xff] %v8340_v3  ;;  %v8361_v25 = vpack.c.bf16 %v573_v20, %v567_v13  ;;  %v572_v32 = vld [vmem:[%s10358_s5 + $0x160] sm:$0xff]  ;;  %v579_v34 = vld [vmem:[%s10358_s5 + $0x198] sm:$0xff]  ;;  %v585_v39 = vld [vmem:[%s10358_s5 + $0x1c8] sm:$0xff] }
  0x9d   : > { %5354 = vmatprep.subr.bf16.mxu0 %v8182_v30  ;;  %5488 = vmatpush1.bf16.msra.mxu1 %v8273_v23  ;;  %10922 = vst [vmem:[#allocation56_spill] sm:$0xff] %v8358_v24  ;;  %v8376_v40 = vpack.c.bf16 %v572_v32, %v566_v27  ;;  %v8379_v47 = vpack.c.bf16 %v585_v39, %v579_v34  ;;  %v578_v49 = vld [vmem:[%s10358_s5 + $0x190] sm:$0xff]  ;;  %v584_v55 = vld [vmem:[%s10358_s5 + $0x1c0] sm:$0xff]  ;;  %v591_v56 = vld [vmem:[%s10358_s5 + $0x1f8] sm:$0xff] }
  0x9e   : > { %5490 = vmatprep.subr.bf16.mxu1 %v8285_v28  ;;  %10923 = vst [vmem:[#allocation57_spill] sm:$0xff] %v8361_v25  ;;  %v597_v57 = vld [vmem:[%s10358_s5 + $0x228] sm:$0xff]  ;;  %v8394_v62 = vpack.c.bf16 %v584_v55, %v578_v49  ;;  %v590_v12 = vld [vmem:[%s10358_s5 + $0x1f0] sm:$0xff]  ;;  %v596_v13 = vld [vmem:[%s10358_s5 + $0x220] sm:$0xff] }
  0x9f   : > { %10924 = vst [vmem:[#allocation58_spill] sm:$0xff] %v8376_v40  ;;  %10925 = vst [vmem:[#allocation59_spill] sm:$0xff] %v8379_v47  ;;  %v8397_v11 = vpack.c.bf16 %v597_v57, %v591_v56  ;;  %v603_v20 = vld [vmem:[%s10358_s5 + $0x258] sm:$0xff]  ;;  %v609_v27 = vld [vmem:[%s10358_s5 + $0x288] sm:$0xff]  ;;  %v8412_v32 = vpack.c.bf16 %v596_v13, %v590_v12 }
  0xa0   : > { %5356 = vmatpush1.bf16.msra.mxu0 %v8210_v45  ;;  %10926 = vst [vmem:[#allocation60_spill] sm:$0xff] %v8394_v62  ;;  %v8415_v34 = vpack.c.bf16 %v609_v27, %v603_v20  ;;  %v602_v39 = vld [vmem:[%s10358_s5 + $0x250] sm:$0xff]  ;;  %v608_v49 = vld [vmem:[%s10358_s5 + $0x280] sm:$0xff]  ;;  %v615_v55 = vld [vmem:[%s10358_s5 + $0x2b8] sm:$0xff] }
  0xa1   : > { %5358 = vmatprep.subr.bf16.mxu0 %v8223_v51  ;;  %5492 = vmatpush1.bf16.msra.mxu1 %v8306_v43  ;;  %10927 = vst [vmem:[#allocation61_spill] sm:$0xff] %v8397_v11  ;;  %10928 = vst [vmem:[#allocation62_spill] sm:$0xff] %v8412_v32  ;;  %v621_v56 = vld [vmem:[%s10358_s5 + $0x2e8] sm:$0xff]  ;;  %v8430_v57 = vpack.c.bf16 %v608_v49, %v602_v39  ;;  %v614_v13 = vld [vmem:[%s10358_s5 + $0x2b0] sm:$0xff] }
  0xa2   : > { %10929 = vst [vmem:[#allocation63_spill] sm:$0xff] %v8415_v34  ;;  %v8433_v12 = vpack.c.bf16 %v621_v56, %v615_v55  ;;  %v620_v20 = vld [vmem:[%s10358_s5 + $0x2e0] sm:$0xff]  ;;  %v627_v27 = vld [vmem:[%s10358_s5 + $0x318] sm:$0xff]  ;;  %v633_v39 = vld [vmem:[%s10358_s5 + $0x348] sm:$0xff] }
  0xa3   : > { %10930 = vst [vmem:[#allocation64_spill] sm:$0xff] %v8430_v57  ;;  %v8448_v49 = vpack.c.bf16 %v620_v20, %v614_v13  ;;  %v8451_v55 = vpack.c.bf16 %v633_v39, %v627_v27  ;;  %v626_v56 = vld [vmem:[%s10358_s5 + $0x310] sm:$0xff]  ;;  %v639_v7 = vld [vmem:[%s10358_s5 + $0x378] sm:$0xff]  ;;  %v645_v13 = vld [vmem:[%s10358_s5 + $0x3a8] sm:$0xff] }
  0xa4   : > { %5360 = vmatpush1.bf16.msra.mxu0 %v8255_v4  ;;  %5232 = vmatmul.mubr.msk.f32.vlgmr.msra.gmra.mrb[2].mxu1 %vm672_vm0, %v8152_v18  ;;  %10931 = vst [vmem:[#allocation65_spill] sm:$0xff] %v8433_v12  ;;  %v8469_v27 = vpack.c.bf16 %v645_v13, %v639_v7  ;;  %v638_v39 = vld [vmem:[%s10358_s5 + $0x370] sm:$0xff]  ;;  %v644_v43 = vld [vmem:[%s10358_s5 + $0x3a0] sm:$0xff]  ;;  %v651_v63 = vld [vmem:[%s10358_s5 + $0x3d8] sm:$0xff] }
  0xa5   : > { %5362 = vmatprep.subr.bf16.mxu0 %v8267_v14  ;;  %1546 = vmatprep.mubr.f32.mxu1 %v10367_v1  ;;  %10932 = vst [vmem:[#allocation66_spill] sm:$0xff] %v8448_v49  ;;  %10933 = vst [vmem:[#allocation67_spill] sm:$0xff] %v8451_v55  ;;  %v8484_v7 = vpack.c.bf16 %v644_v43, %v638_v39  ;;  %v650_v13 = vld [vmem:[%s10358_s5 + $0x3d0] sm:$0xff]  ;;  %v656_v28 = vld [vmem:[%s10358_s5 + $0x400] sm:$0xff] }
  0xa6   : > { %10935 = vst [vmem:[#allocation69_spill] sm:$0xff] %v8469_v27  ;;  %v663_v60 = vld [vmem:[%s10358_s5 + $0x438] sm:$0xff]  ;;  %v669_v43 = vld [vmem:[%s10358_s5 + $0x468] sm:$0xff]  ;;  %v668_v23 = vld [vmem:[%s10358_s5 + $0x460] sm:$0xff] }
  0xa7   : > { %10936 = vst [vmem:[#allocation70_spill] sm:$0xff] %v8484_v7  ;;  %v8505_v39 = vpack.c.bf16 %v669_v43, %v663_v60  ;;  %v533_v53 = vld [vmem:[%s10358_s5 + $0x28] sm:$0xff]  ;;  %v532_v43 = vld [vmem:[%s10358_s5 + $0x20] sm:$0xff]  ;;  %v538_v2 = vld [vmem:[%s10358_s5 + $0x50] sm:$0xff] }
  0xa8   : > { %5364 = vmatpush1.bf16.msra.mxu0 %v8294_v35  ;;  %v545_v46 = vld [vmem:[%s10358_s5 + $0x88] sm:$0xff]  ;;  %v550_v59 = vld [vmem:[%s10358_s5 + $0xb0] sm:$0xff]  ;;  %v556_v54 = vld [vmem:[%s10358_s5 + $0xe0] sm:$0xff] }
  0xa9   : > { %5366 = vmatprep.subr.bf16.mxu0 %v8297_v36  ;;  %10939 = vst [vmem:[#allocation73_spill] sm:$0xff] %v8505_v39  ;;  %v557_v41 = vld [vmem:[%s10358_s5 + $0xe8] sm:$0xff]  ;;  %v562_v38 = vld [vmem:[%s10358_s5 + $0x110] sm:$0xff] }
  0xaa   : > { %v569_v42 = vld [vmem:[%s10358_s5 + $0x148] sm:$0xff]  ;;  %v574_v31 = vld [vmem:[%s10358_s5 + $0x170] sm:$0xff] }
  0xab   : > { %741 = vmatmul.mubr.f32.vlgmr.msra.gmra.mrb[0].mxu0 %v10367_v1  ;;  %v581_v37 = vld [vmem:[%s10358_s5 + $0x1a8] sm:$0xff] }
  0xac   : > { %5368 = vmatpush1.bf16.msra.mxu0 %v8316_v50  ;;  %811 = vmatprep.mubr.f32.mxu0 %v10367_v1  ;;  %v632_v1 = vld [vmem:[%s10358_s5 + $0x340] sm:$0xff] }
  0xad   : > { %5370 = vmatprep.subr.bf16.mxu0 %v8319_v52  ;;  %v8466_v20 = vpack.c.bf16 %v632_v1, %v626_v56  ;;  %v657_v1 = vld [vmem:[%s10358_s5 + $0x408] sm:$0xff] }
  0xae   : > { %v8487_v56 = vpack.c.bf16 %v657_v1, %v651_v63  ;;  %v8502_v63 = vpack.c.bf16 %v656_v28, %v650_v13  ;;  %v662_v1 = vld [vmem:[%s10358_s5 + $0x430] sm:$0xff]  ;;  %v539_v28 = vld [vmem:[%s10358_s5 + $0x58] sm:$0xff] }
  0xaf   : > { %10934 = vst [vmem:[#allocation68_spill] sm:$0xff] %v8466_v20  ;;  %v8520_v60 = vpack.c.bf16 %v668_v23, %v662_v1  ;;  %v8523_v13 = vpack.c.bf16 %v539_v28, %v533_v53  ;;  %v551_v23 = vld [vmem:[%s10358_s5 + $0xb8] sm:$0xff]  ;;  %v8538_v53 = vpack.c.bf16 %v538_v2, %v532_v43  ;;  %v544_v28 = vld [vmem:[%s10358_s5 + $0x80] sm:$0xff]  ;;  %v10944_v43 = vmov 0.0  }
  0xb0   : > { %5372 = vmatpush1.bf16.msra.mxu0 %v8336_v0  ;;  %10937 = vst [vmem:[#allocation71_spill] sm:$0xff] %v8487_v56  ;;  %10938 = vst [vmem:[#allocation72_spill] sm:$0xff] %v8502_v63  ;;  %v8541_v1 = vpack.c.bf16 %v551_v23, %v545_v46  ;;  %v563_v2 = vld [vmem:[%s10358_s5 + $0x118] sm:$0xff]  ;;  %v8557_v46 = vpack.c.bf16 %v550_v59, %v544_v28 }
  0xb1   : > { %5374 = vmatprep.subr.bf16.mxu0 %v8340_v3  ;;  %10940 = vst [vmem:[#allocation74_spill] sm:$0xff] %v8520_v60  ;;  %10941 = vst [vmem:[#allocation75_spill] sm:$0xff] %v8523_v13  ;;  %v8561_v23 = vpack.c.bf16 %v563_v2, %v557_v41  ;;  %v575_v59 = vld [vmem:[%s10358_s5 + $0x178] sm:$0xff]  ;;  %v8576_v41 = vpack.c.bf16 %v562_v38, %v556_v54  ;;  %v568_v2 = vld [vmem:[%s10358_s5 + $0x140] sm:$0xff] }
  0xb2   : > { %10942 = vst [vmem:[#allocation76_spill] sm:$0xff] %v8538_v53  ;;  %10943 = vst [vmem:[#allocation77_spill] sm:$0xff] %v8541_v1  ;;  %v8579_v28 = vpack.c.bf16 %v575_v59, %v569_v42  ;;  %v587_v38 = vld [vmem:[%s10358_s5 + $0x1d8] sm:$0xff]  ;;  %v8594_v42 = vpack.c.bf16 %v574_v31, %v568_v2  ;;  %v580_v59 = vld [vmem:[%s10358_s5 + $0x1a0] sm:$0xff] }
  0xb3   : > { %10945 = vst [vmem:[#allocation78_spill] sm:$0xff] %v8557_v46  ;;  %10946 = vst [vmem:[#allocation79_spill] sm:$0xff] %v8561_v23  ;;  %v8597_v54 = vpack.c.bf16 %v587_v38, %v581_v37  ;;  %v599_v31 = vld [vmem:[%s10358_s5 + $0x238] sm:$0xff]  ;;  %v592_v38 = vld [vmem:[%s10358_s5 + $0x200] sm:$0xff] }
  0xb4   : > { %5376 = vmatpush1.bf16.msra.mxu0 %v8358_v24  ;;  %10947 = vst [vmem:[#allocation80_spill] sm:$0xff] %v8576_v41  ;;  %10948 = vst [vmem:[#allocation81_spill] sm:$0xff] %v8579_v28 }
  0xb5   : > { %5378 = vmatprep.subr.bf16.mxu0 %v8361_v25  ;;  %10949 = vst [vmem:[#allocation82_spill] sm:$0xff] %v8594_v42  ;;  %10950 = vst [vmem:[#allocation83_spill] sm:$0xff] %v8597_v54  ;;  %v1371_v25 = vld [vmem:[#allocation8 + $0x108] sm:$0xff] }
  0xb8   : > { %5380 = vmatpush1.bf16.msra.mxu0 %v8376_v40 }
  0xb9   : > { %5382 = vmatprep.subr.bf16.mxu0 %v8379_v47  ;;  %v1342_v47 = vld [vmem:[#allocation8 + $0x20] sm:$0xff] }
  0xbc   : > { %5384 = vmatpush1.bf16.msra.mxu0 %v8394_v62 }
  0xbd   : > { %5386 = vmatprep.subr.bf16.mxu0 %v8397_v11  ;;  %v1345_v11 = vld [vmem:[#allocation8 + $0x38] sm:$0xff] }
  0xc0   : > { %5388 = vmatpush1.bf16.msra.mxu0 %v8412_v32 }
  0xc1   : > { %5390 = vmatprep.subr.bf16.mxu0 %v8415_v34 }
  0xc4   : > { %5392 = vmatpush1.bf16.msra.mxu0 %v8430_v57 }
  0xc5   : > { %5394 = vmatprep.subr.bf16.mxu0 %v8433_v12  ;;  %v641_v12 = vld [vmem:[%s10358_s5 + $0x388] sm:$0xff] }
  0xc8   : > { %5396 = vmatpush1.bf16.msra.mxu0 %v8448_v49  ;;  %v634_v49 = vld [vmem:[%s10358_s5 + $0x350] sm:$0xff] }
  0xc9   : > { %5398 = vmatprep.subr.bf16.mxu0 %v8451_v55  ;;  %v629_v55 = vld [vmem:[%s10358_s5 + $0x328] sm:$0xff] }
  0xcc   : > { %5400 = vmatpush1.bf16.msra.mxu0 %v8466_v20  ;;  %v622_v20 = vld [vmem:[%s10358_s5 + $0x2f0] sm:$0xff] }
  0xcd   : > { %5402 = vmatprep.subr.bf16.mxu0 %v8469_v27  ;;  %v617_v27 = vld [vmem:[%s10358_s5 + $0x2c8] sm:$0xff] }
  0xd0   : > { %5404 = vmatpush1.bf16.msra.mxu0 %v8484_v7  ;;  %v610_v7 = vld [vmem:[%s10358_s5 + $0x290] sm:$0xff] }
  0xd1   : > { %5406 = vmatprep.subr.bf16.mxu0 %v8487_v56  ;;  %v605_v56 = vld [vmem:[%s10358_s5 + $0x268] sm:$0xff] }
  0xd4   : > { %5408 = vmatpush1.bf16.msra.mxu0 %v8502_v63  ;;  %v598_v63 = vld [vmem:[%s10358_s5 + $0x230] sm:$0xff] }
  0xd5   : > { %5410 = vmatprep.subr.bf16.mxu0 %v8505_v39  ;;  %v593_v39 = vld [vmem:[%s10358_s5 + $0x208] sm:$0xff] }
  0xd6   : > { %v8615_v2 = vpack.c.bf16 %v599_v31, %v593_v39  ;;  %v8630_v39 = vpack.c.bf16 %v598_v63, %v592_v38  ;;  %v604_v31 = vld [vmem:[%s10358_s5 + $0x260] sm:$0xff]  ;;  %v623_v63 = vld [vmem:[%s10358_s5 + $0x2f8] sm:$0xff] }
  0xd7   : > { %v8651_v38 = vpack.c.bf16 %v623_v63, %v617_v27  ;;  %v628_v63 = vld [vmem:[%s10358_s5 + $0x320] sm:$0xff] }
  0xd8   : > { %5412 = vmatpush1.bf16.msra.mxu0 %v8520_v60  ;;  %v586_v60 = vld [vmem:[%s10358_s5 + $0x1d0] sm:$0xff]  ;;  %10952 = vst [vmem:[#allocation85_spill] sm:$0xff] %v8615_v2  ;;  %10953 = vst [vmem:[#allocation86_spill] sm:$0xff] %v8630_v39 }
  0xd9   : > { %5414 = vmatprep.subr.bf16.mxu0 %v8523_v13  ;;  %v8612_v37 = vpack.c.bf16 %v586_v60, %v580_v59  ;;  %v611_v60 = vld [vmem:[%s10358_s5 + $0x298] sm:$0xff]  ;;  %10956 = vst [vmem:[#allocation89_spill] sm:$0xff] %v8651_v38 }
  0xda   : > { %v8633_v59 = vpack.c.bf16 %v611_v60, %v605_v56  ;;  %v8648_v56 = vpack.c.bf16 %v610_v7, %v604_v31  ;;  %v616_v60 = vld [vmem:[%s10358_s5 + $0x2c0] sm:$0xff]  ;;  %v635_v7 = vld [vmem:[%s10358_s5 + $0x358] sm:$0xff] }
  0xdb   : > { %812 = vmatmul.mubr.f32.vlgmr.msra.gmra.mrb[2].mxu0 %v10944_v43  ;;  %10951 = vst [vmem:[#allocation84_spill] sm:$0xff] %v8612_v37  ;;  %v8666_v27 = vpack.c.bf16 %v622_v20, %v616_v60  ;;  %v8669_v31 = vpack.c.bf16 %v635_v7, %v629_v55  ;;  %v647_v20 = vld [vmem:[%s10358_s5 + $0x3b8] sm:$0xff]  ;;  %v8684_v55 = vpack.c.bf16 %v634_v49, %v628_v63  ;;  %v640_v7 = vld [vmem:[%s10358_s5 + $0x380] sm:$0xff] }
  0xdc   : > { %5416 = vmatpush1.bf16.msra.mxu0 %v8538_v53  ;;  %882 = vmatprep.mubr.f32.mxu0 %v10944_v43  ;;  %10954 = vst [vmem:[#allocation87_spill] sm:$0xff] %v8633_v59  ;;  %10955 = vst [vmem:[#allocation88_spill] sm:$0xff] %v8648_v56  ;;  %v8687_v60 = vpack.c.bf16 %v647_v20, %v641_v12  ;;  %v659_v49 = vld [vmem:[%s10358_s5 + $0x418] sm:$0xff]  ;;  %v652_v20 = vld [vmem:[%s10358_s5 + $0x3e0] sm:$0xff] }
  0xdd   : > { %5418 = vmatprep.subr.bf16.mxu0 %v8541_v1  ;;  %10957 = vst [vmem:[#allocation90_spill] sm:$0xff] %v8666_v27  ;;  %10958 = vst [vmem:[#allocation91_spill] sm:$0xff] %v8669_v31 }
  0xde   : > { %10959 = vst [vmem:[#allocation92_spill] sm:$0xff] %v8684_v55  ;;  %10960 = vst [vmem:[#allocation93_spill] sm:$0xff] %v8687_v60 }
  0xe0   : > { %5420 = vmatpush1.bf16.msra.mxu0 %v8557_v46 }
  0xe1   : > { %5422 = vmatprep.subr.bf16.mxu0 %v8561_v23 }
  0xe4   : > { %5424 = vmatpush1.bf16.msra.mxu0 %v8576_v41 }
  0xe5   : > { %5426 = vmatprep.subr.bf16.mxu0 %v8579_v28 }
  0xe8   : > { %5428 = vmatpush1.bf16.msra.mxu0 %v8594_v42  ;;  %v1348_v42 = vld [vmem:[#allocation8 + $0x50] sm:$0xff] }
  0xe9   : > { %5430 = vmatprep.subr.bf16.mxu0 %v8597_v54 }
  0xec   : > { %5432 = vmatpush1.bf16.msra.mxu0 %v8612_v37  ;;  %v1338_v37 = vld [vmem:[#allocation8] sm:$0xff] }
  0xed   : > { %5434 = vmatprep.subr.bf16.mxu0 %v8615_v2 }
  0xf0   : > { %5436 = vmatpush1.bf16.msra.mxu0 %v8630_v39 }
  0xf1   : > { %5438 = vmatprep.subr.bf16.mxu0 %v8633_v59 }
  0xf4   : > { %5440 = vmatpush1.bf16.msra.mxu0 %v8648_v56  ;;  %v653_v56 = vld [vmem:[%s10358_s5 + $0x3e8] sm:$0xff] }
  0xf5   : > { %5442 = vmatprep.subr.bf16.mxu0 %v8651_v38  ;;  %v646_v38 = vld [vmem:[%s10358_s5 + $0x3b0] sm:$0xff]  ;;  %v8705_v63 = vpack.c.bf16 %v659_v49, %v653_v56  ;;  %v664_v49 = vld [vmem:[%s10358_s5 + $0x440] sm:$0xff] }
  0xf6   : > { %v8702_v12 = vpack.c.bf16 %v646_v38, %v640_v7  ;;  %v671_v38 = vld [vmem:[%s10358_s5 + $0x478] sm:$0xff] }
  0xf7   : > { %10962 = vst [vmem:[#allocation95_spill] sm:$0xff] %v8705_v63 }
  0xf8   : > { %5444 = vmatpush1.bf16.msra.mxu0 %v8666_v27  ;;  %10961 = vst [vmem:[#allocation94_spill] sm:$0xff] %v8702_v12  ;;  %v665_v27 = vld [vmem:[%s10358_s5 + $0x448] sm:$0xff] }
  0xf9   : > { %5446 = vmatprep.subr.bf16.mxu0 %v8669_v31  ;;  %v658_v31 = vld [vmem:[%s10358_s5 + $0x410] sm:$0xff]  ;;  %v8723_v7 = vpack.c.bf16 %v671_v38, %v665_v27  ;;  %v484_v38 = vld [vmem:[%s10356_s3 + $0x20] sm:$0xff] }
  0xfa   : > { %v8720_v56 = vpack.c.bf16 %v658_v31, %v652_v20  ;;  %v491_v31 = vld [vmem:[%s10356_s3 + $0x58] sm:$0xff] }
  0xfb   : > { %10964 = vst [vmem:[#allocation97_spill] sm:$0xff] %v8723_v7 }
  0xfc   : > { %5448 = vmatpush1.bf16.msra.mxu0 %v8684_v55  ;;  %10963 = vst [vmem:[#allocation96_spill] sm:$0xff] %v8720_v56  ;;  %v485_v55 = vld [vmem:[%s10356_s3 + $0x28] sm:$0xff] }
  0xfd   : > { %5450 = vmatprep.subr.bf16.mxu0 %v8687_v60  ;;  %v670_v60 = vld [vmem:[%s10358_s5 + $0x470] sm:$0xff]  ;;  %v8741_v20 = vpack.c.bf16 %v491_v31, %v485_v55  ;;  %v496_v31 = vld [vmem:[%s10356_s3 + $0x80] sm:$0xff] }
  0xfe   : > { %v8738_v27 = vpack.c.bf16 %v670_v60, %v664_v49  ;;  %v503_v60 = vld [vmem:[%s10356_s3 + $0xb8] sm:$0xff] }
  0xff   : > { %10966 = vst [vmem:[#allocation99_spill] sm:$0xff] %v8741_v20 }
 0x100   : > { %5452 = vmatpush1.bf16.msra.mxu0 %v8702_v12  ;;  %10965 = vst [vmem:[#allocation98_spill] sm:$0xff] %v8738_v27  ;;  %v497_v12 = vld [vmem:[%s10356_s3 + $0x88] sm:$0xff] }
 0x101   : > { %5454 = vmatprep.subr.bf16.mxu0 %v8705_v63  ;;  %v490_v63 = vld [vmem:[%s10356_s3 + $0x50] sm:$0xff]  ;;  %v8759_v49 = vpack.c.bf16 %v503_v60, %v497_v12  ;;  %v508_v60 = vld [vmem:[%s10356_s3 + $0xe0] sm:$0xff] }
 0x102   : > { %v8756_v55 = vpack.c.bf16 %v490_v63, %v484_v38  ;;  %v515_v63 = vld [vmem:[%s10356_s3 + $0x118] sm:$0xff] }
 0x103   : > { %10968 = vst [vmem:[#allocation101_spill] sm:$0xff] %v8759_v49 }
 0x104   : > { %5456 = vmatpush1.bf16.msra.mxu0 %v8720_v56  ;;  %10967 = vst [vmem:[#allocation100_spill] sm:$0xff] %v8756_v55  ;;  %v509_v56 = vld [vmem:[%s10356_s3 + $0xe8] sm:$0xff] }
 0x105   : > { %5458 = vmatprep.subr.bf16.mxu0 %v8723_v7  ;;  %v502_v7 = vld [vmem:[%s10356_s3 + $0xb0] sm:$0xff]  ;;  %v8779_v38 = vpack.c.bf16 %v515_v63, %v509_v56  ;;  %v520_v63 = vld [vmem:[%s10356_s3 + $0x140] sm:$0xff] }
 0x106   : > { %v8775_v12 = vpack.c.bf16 %v502_v7, %v496_v31  ;;  %v527_v7 = vld [vmem:[%s10356_s3 + $0x178] sm:$0xff] }
 0x107   : > { %10970 = vst [vmem:[#allocation103_spill] sm:$0xff] %v8779_v38 }
 0x108   : > { %5460 = vmatpush1.bf16.msra.mxu0 %v8738_v27  ;;  %10969 = vst [vmem:[#allocation102_spill] sm:$0xff] %v8775_v12 }
 0x109   : > { %5494 = vmatprep.subr.bf16.mxu0 %v8741_v20  ;;  %v514_v20 = vld [vmem:[%s10356_s3 + $0x110] sm:$0xff] }
 0x10a   : > { %v8794_v56 = vpack.c.bf16 %v514_v20, %v508_v60 }
 0x10b   : > { %883 = vmatmul.mubr.f32.vlgmr.msra.gmra.mrb[4].mxu0 %v10944_v43 }
 0x10c   : > { %5496 = vmatpush1.bf16.msra.mxu0 %v8756_v55  ;;  %1098 = vmatprep.mubr.f32.mxu0 %v10944_v43  ;;  %v521_v55 = vld [vmem:[%s10356_s3 + $0x148] sm:$0xff]  ;;  %10971 = vst [vmem:[#allocation104_spill] sm:$0xff] %v8794_v56 }
 0x10d   : > { %5498 = vmatprep.subr.bf16.mxu0 %v8759_v49  ;;  %v8797_v31 = vpack.c.bf16 %v527_v7, %v521_v55  ;;  %v526_v49 = vld [vmem:[%s10356_s3 + $0x170] sm:$0xff] }
 0x10e   : > { %v8806_v27 = vpack.c.bf16 %v526_v49, %v520_v63 }
 0x10f   : > { %10972 = vst [vmem:[#allocation105_spill] sm:$0xff] %v8797_v31 }
 0x110   : > { %5500 = vmatpush1.bf16.msra.mxu0 %v8775_v12  ;;  %10973 = vst [vmem:[#allocation106_spill] sm:$0xff] %v8806_v27 }
 0x111   : > { %5502 = vmatprep.subr.bf16.mxu0 %v8779_v38 }
 0x114   : > { %5504 = vmatpush1.bf16.msra.mxu0 %v8794_v56  ;;  %v1107_v56 = vlaneseq }
 0x115   : > { %5506 = vmatprep.subr.bf16.mxu0 %v8797_v31  ;;  %v8816_v31 = vld [vmem:[#allocation3] sm:$0x3f] }
 0x116   : > { %v8813_v49 = vshrl.u32 %v1107_v56, 7 }
 0x118   : > { %5508 = vmatpush1.bf16.msra.mxu0 %v8806_v27  ;;  %v10471_v63 = vsub.s32 0, %v8813_v49 }
 0x11b   : > { %5233 = vmatmul.mubr.msk.f32.vlgmr.msra.gmra.mrb[4].mxu0 %vm672_vm0, %v8152_v18  ;;  %v8821_v18 = vrot.slane %v8816_v31, %v10471_v63 }
 0x11c   : > { %1688 = vmatprep.mubr.f32.mxu0 %v10944_v43 }
 0x11d   : > { %10974 = vst [vmem:[#allocation107_spill] sm:$0xff] %v8821_v18 }
 0x166   : > { %v958_v20 = vpop.f32.mrb[0].mxu1 }
 0x167   : > { %v960_v55 = vpop.f32.mrb[1].mxu1 }
 0x177   : > { %v1029_v57 = vpop.f32.mrb[2].mxu1 }
 0x178   : > { %v1031_v59 = vpop.f32.mrb[3].mxu1 }
 0x17e   : > { %v742_v60 = vpop.f32.mrb[0].mxu0 }
 0x17f   : > { %v959_v7 = vadd.f32 %v958_v20, %v742_v60  ;;  %v744_v38 = vpop.f32.mrb[1].mxu0 }
 0x180   : > { %v961_v12 = vadd.f32 %v960_v55, %v744_v38  ;;  %v10478_v38 = vsub.s32 3, %v8813_v49 }
 0x181   : > { %v1137_v27 = vadd.f32 %v8821_v18, %v959_v7  ;;  %v1339_v18 = vld [vmem:[#allocation8 + $0x8] sm:$0xff] }
 0x182   : > { %v8828_v56 = vrot.slane %v8816_v31, %v10478_v38  ;;  %v8834_v38 = vpack.c.bf16 %v1345_v11, %v1339_v18  ;;  %v1362_v18 = vld [vmem:[#allocation8 + $0xc0] sm:$0xff] }
 0x183   : > { %v5234_v34 = vmul.f32 -1.442695, %v1137_v27 }
 0x184   : > { %10975 = vst [vmem:[#allocation108_spill] sm:$0xff] %v8828_v56  ;;  %10976 = vst [vmem:[#allocation109_spill] sm:$0xff] %v8834_v38  ;;  %5510 = vmatprep.subr.bf16.mxu1 %v8834_v38 }
 0x185   : > { %7344 = vpow2.f32 %v5234_v34 }
 0x18f   : > { %v7345_v20 = vpop.eup %7344 }
 0x190   : > { %v1158_v60 = vadd.f32 1.0, %v7345_v20  ;;  %v1344_v20 = vld [vmem:[#allocation8 + $0x30] sm:$0xff] }
 0x191   : > { %v8836_v62 = vpack.c.bf16 %v1344_v20, %v1338_v37  ;;  %v1375_v37 = vld [vmem:[#allocation8 + $0x128] sm:$0xff] }
 0x192   : > { %7346 = vrcp.f32 %v1158_v60  ;;  %v1369_v60 = vld [vmem:[#allocation8 + $0xf8] sm:$0xff] }
 0x193   : > { %10977 = vst [vmem:[#allocation110_spill] sm:$0xff] %v8836_v62  ;;  %5512 = vmatpush1.bf16.msra.mxu1 %v8836_v62  ;;  %v1416_v62 = vld [vmem:[#allocation8 + $0x270] sm:$0xff] }
 0x19c   : > { %v7347_v27 = vpop.eup %7346 }
 0x1ae   : > { %v813_v55 = vpop.f32.mrb[2].mxu0 }
 0x1af   : > { %v8830_v39 = vadd.f32 %v1029_v57, %v813_v55  ;;  %v815_v32 = vpop.f32.mrb[3].mxu0  ;;  %v1351_v57 = vld [vmem:[#allocation8 + $0x68] sm:$0xff]  ;;  %v1357_v55 = vld [vmem:[#allocation8 + $0x98] sm:$0xff] }
 0x1b0   : > { %v1032_v2 = vadd.f32 %v1031_v59, %v815_v32  ;;  %v8838_v32 = vpack.c.bf16 %v1357_v55, %v1351_v57  ;;  %v1356_v59 = vld [vmem:[#allocation8 + $0x90] sm:$0xff]  ;;  %v10487_v55 = vsub.s32 1, %v8813_v49 }
 0x1b2   : > { %v1140_v63 = vadd.f32 %v8828_v56, %v1032_v2  ;;  %10978 = vst [vmem:[#allocation111_spill] sm:$0xff] %v8838_v32  ;;  %v1350_v2 = vld [vmem:[#allocation8 + $0x60] sm:$0xff]  ;;  %5514 = vmatprep.subr.bf16.mxu1 %v8838_v32 }
 0x1b3   : > { %v1374_v56 = vld [vmem:[#allocation8 + $0x120] sm:$0xff] }
 0x1b4   : > { %7348 = vtanh.f32 %v1140_v63  ;;  %v1363_v63 = vld [vmem:[#allocation8 + $0xc8] sm:$0xff] }
 0x1b5   : > { %v8845_v11 = vpack.c.bf16 %v1369_v60, %v1363_v63  ;;  %v10488_v60 = vsub.s32 4, %v8813_v49 }
 0x1b7   : > { %10980 = vst [vmem:[#allocation113_spill] sm:$0xff] %v8845_v11 }
 0x1be   : > { %v7349_v34 = vpop.eup %7348 }
 0x1bf   : > { %v1177_v7 = vmul.f32 %v7349_v34, %v7347_v27  ;;  %v8842_v27 = vpack.c.bf16 %v1356_v59, %v1350_v2  ;;  %v1368_v34 = vld [vmem:[#allocation8 + $0xf0] sm:$0xff]  ;;  %v8859_v2 = vrot.slane %v8816_v31, %v10487_v55 }
 0x1c0   : > { %v8848_v20 = vpack.c.bf16 %v1368_v34, %v1362_v18  ;;  %v8866_v34 = vrot.slane %v8816_v31, %v10488_v60 }
 0x1c1   : > { %1181 = vrot.lane.b32.xlu0 %v1177_v7, %s7707_s12  ;;  %10979 = vst [vmem:[#allocation112_spill] sm:$0xff] %v8842_v27  ;;  %v1381_v7 = vld [vmem:[#allocation8 + $0x158] sm:$0xff]  ;;  %5516 = vmatpush1.bf16.msra.mxu1 %v8842_v27  ;;  %10983 = vst [vmem:[#allocation116_spill] sm:$0xff] %v8859_v2  ;;  %v1138_v59 = vadd.f32 %v8859_v2, %v961_v12  ;;  %v1392_v2 = vld [vmem:[#allocation8 + $0x1b0] sm:$0xff] }
 0x1c2   : > { %10981 = vst [vmem:[#allocation114_spill] sm:$0xff] %v8848_v20  ;;  %5518 = vmatprep.subr.bf16.mxu1 %v8845_v11  ;;  %v8851_v57 = vpack.c.bf16 %v1381_v7, %v1375_v37  ;;  %10984 = vst [vmem:[#allocation117_spill] sm:$0xff] %v8866_v34  ;;  %v1398_v27 = vld [vmem:[#allocation8 + $0x1e0] sm:$0xff] }
 0x1c3   : > { %v5235_v63 = vmul.f32 -1.442695, %v1138_v59  ;;  %v1387_v59 = vld [vmem:[#allocation8 + $0x188] sm:$0xff] }
 0x1c4   : > { %10982 = vst [vmem:[#allocation115_spill] sm:$0xff] %v8851_v57 }
 0x1c5   : > { %5520 = vmatpush1.bf16.msra.mxu1 %v8848_v20  ;;  %7350 = vpow2.f32 %v5235_v63  ;;  %v1393_v63 = vld [vmem:[#allocation8 + $0x1b8] sm:$0xff] }
 0x1c6   : > { %5522 = vmatprep.subr.bf16.mxu1 %v8851_v57  ;;  %v1380_v57 = vld [vmem:[#allocation8 + $0x150] sm:$0xff]  ;;  %v8877_v60 = vpack.c.bf16 %v1393_v63, %v1387_v59  ;;  %v1410_v63 = vld [vmem:[#allocation8 + $0x240] sm:$0xff] }
 0x1c7   : > { %v8873_v12 = vpack.c.bf16 %v1380_v57, %v1374_v56  ;;  %v1404_v57 = vld [vmem:[#allocation8 + $0x210] sm:$0xff] }
 0x1c8   : > { %10986 = vst [vmem:[#allocation119_spill] sm:$0xff] %v8877_v60  ;;  %v8885_v32 = vpack.c.bf16 %v1404_v57, %v1398_v27  ;;  %v1422_v27 = vld [vmem:[#allocation8 + $0x2a0] sm:$0xff] }
 0x1c9   : > { %10985 = vst [vmem:[#allocation118_spill] sm:$0xff] %v8873_v12  ;;  %5524 = vmatpush1.bf16.msra.mxu1 %v8873_v12  ;;  %v1417_v12 = vld [vmem:[#allocation8 + $0x278] sm:$0xff] }
 0x1ca   : > { %5526 = vmatprep.subr.bf16.mxu1 %v8877_v60  ;;  %10989 = vst [vmem:[#allocation122_spill] sm:$0xff] %v8885_v32  ;;  %v8891_v60 = vpack.c.bf16 %v1416_v62, %v1410_v63  ;;  %v1435_v62 = vld [vmem:[#allocation8 + $0x308] sm:$0xff]  ;;  %v1441_v63 = vld [vmem:[#allocation8 + $0x338] sm:$0xff] }
 0x1cc   : > { %10991 = vst [vmem:[#allocation124_spill] sm:$0xff] %v8891_v60 }
 0x1cf   : > { %v7351_v18 = vpop.eup %7350 }
 0x1d0   : > { %v1159_v37 = vadd.f32 1.0, %v7351_v18  ;;  %v1386_v18 = vld [vmem:[#allocation8 + $0x180] sm:$0xff] }
 0x1d1   : > { %v8879_v11 = vpack.c.bf16 %v1392_v2, %v1386_v18  ;;  %v1423_v2 = vld [vmem:[#allocation8 + $0x2a8] sm:$0xff]  ;;  %v1429_v18 = vld [vmem:[#allocation8 + $0x2d8] sm:$0xff] }
 0x1d2   : > { %7352 = vrcp.f32 %v1159_v37  ;;  %v1411_v37 = vld [vmem:[#allocation8 + $0x248] sm:$0xff] }
 0x1d3   : > { %10987 = vst [vmem:[#allocation120_spill] sm:$0xff] %v8879_v11  ;;  %5528 = vmatpush1.bf16.msra.mxu1 %v8879_v11  ;;  %v8887_v59 = vpack.c.bf16 %v1417_v12, %v1411_v37 }
 0x1d5   : > { %10990 = vst [vmem:[#allocation123_spill] sm:$0xff] %v8887_v59 }
 0x1dc   : > { %v8893_v11 = vpop.eup %7352 }
 0x1ee   : > { %v1100_v7 = vpop.f32.mrb[4].mxu0 }
 0x1ef   : > { %v8869_v20 = vadd.f32 %v8866_v34, %v1100_v7  ;;  %v8871_v55 = vpop.f32.mrb[5].mxu0  ;;  %v1399_v7 = vld [vmem:[#allocation8 + $0x1e8] sm:$0xff]  ;;  %v1405_v34 = vld [vmem:[#allocation8 + $0x218] sm:$0xff] }
 0x1f0   : > { %v8883_v56 = vpack.c.bf16 %v1405_v34, %v1399_v7  ;;  %v8896_v34 = vpack.c.bf16 %v1429_v18, %v1423_v2  ;;  %v1428_v7 = vld [vmem:[#allocation8 + $0x2d0] sm:$0xff]  ;;  %v8905_v2 = vpack.c.bf16 %v1441_v63, %v1435_v62  ;;  %v1458_v63 = vld [vmem:[#allocation8 + $0x3c0] sm:$0xff] }
 0x1f1   : > { %7354 = vtanh.f32 %v8869_v20  ;;  %v8900_v37 = vpack.c.bf16 %v1428_v7, %v1422_v27  ;;  %v1440_v18 = vld [vmem:[#allocation8 + $0x330] sm:$0xff]  ;;  %v1446_v27 = vld [vmem:[#allocation8 + $0x360] sm:$0xff] }
 0x1f2   : > { %10988 = vst [vmem:[#allocation121_spill] sm:$0xff] %v8883_v56  ;;  %5530 = vmatprep.subr.bf16.mxu1 %v8883_v56  ;;  %10992 = vst [vmem:[#allocation125_spill] sm:$0xff] %v8896_v34  ;;  %v1453_v56 = vld [vmem:[#allocation8 + $0x398] sm:$0xff]  ;;  %v1452_v7 = vld [vmem:[#allocation8 + $0x390] sm:$0xff] }
 0x1f3   : > { %5532 = vmatpush1.bf16.msra.mxu1 %v8885_v32  ;;  %10993 = vst [vmem:[#allocation126_spill] sm:$0xff] %v8900_v37  ;;  %10994 = vst [vmem:[#allocation127_spill] sm:$0xff] %v8905_v2  ;;  %v1447_v32 = vld [vmem:[#allocation8 + $0x368] sm:$0xff] }
 0x1f4   : > { %5534 = vmatprep.subr.bf16.mxu1 %v8887_v59  ;;  %v1434_v59 = vld [vmem:[#allocation8 + $0x300] sm:$0xff] }
 0x1f5   : > { %v8907_v38 = vpack.c.bf16 %v1440_v18, %v1434_v59  ;;  %v1471_v59 = vld [vmem:[#allocation8 + $0x428] sm:$0xff]  ;;  %v1477_v18 = vld [vmem:[#allocation8 + $0x458] sm:$0xff] }
 0x1f7   : > { %5536 = vmatpush1.bf16.msra.mxu1 %v8891_v60  ;;  %10995 = vst [vmem:[#allocation128_spill] sm:$0xff] %v8907_v38  ;;  %v1459_v60 = vld [vmem:[#allocation8 + $0x3c8] sm:$0xff] }
 0x1f8   : > { %5538 = vmatprep.subr.bf16.mxu1 %v8896_v34  ;;  %v1464_v34 = vld [vmem:[#allocation8 + $0x3f0] sm:$0xff] }
 0x1fb   : > { %v7355_v12 = vpop.eup %7354  ;;  %5540 = vmatpush1.bf16.msra.mxu1 %v8900_v37  ;;  %v8913_v37 = vpack.c.bf16 %v1452_v7, %v1446_v27  ;;  %v1470_v27 = vld [vmem:[#allocation8 + $0x420] sm:$0xff]  ;;  %v8923_v7 = vpack.c.bf16 %v1348_v42, %v1342_v47  ;;  %v1367_v47 = vld [vmem:[#allocation8 + $0xe8] sm:$0xff]  ;;  %v1373_v42 = vld [vmem:[#allocation8 + $0x118] sm:$0xff] }
 0x1fc   : > { %v1178_v57 = vmul.f32 %v7355_v12, %v8893_v11  ;;  %v8909_v12 = vpack.c.bf16 %v1453_v56, %v1447_v32  ;;  %5542 = vmatprep.subr.bf16.mxu1 %v8905_v2  ;;  %v1343_v32 = vld [vmem:[#allocation8 + $0x28] sm:$0xff]  ;;  %v1349_v56 = vld [vmem:[#allocation8 + $0x58] sm:$0xff]  ;;  %v8921_v2 = vpack.c.bf16 %v1464_v34, %v1458_v63  ;;  %v1354_v34 = vld [vmem:[#allocation8 + $0x80] sm:$0xff] }
 0x1fd   : > { %10997 = vst [vmem:[#allocation130_spill] sm:$0xff] %v8913_v37  ;;  %v8918_v54 = vpack.c.bf16 %v1349_v56, %v1343_v32  ;;  %11001 = vst [vmem:[#allocation134_spill] sm:$0xff] %v8923_v7  ;;  %v1361_v32 = vld [vmem:[#allocation8 + $0xb8] sm:$0xff]  ;;  %v1347_v56 = vld [vmem:[#allocation8 + $0x48] sm:$0xff] }
 0x1fe   : > { %1183 = vrot.lane.b32.xlu0 %v1178_v57, %s7707_s12  ;;  %10996 = vst [vmem:[#allocation129_spill] sm:$0xff] %v8909_v12  ;;  %v1465_v57 = vld [vmem:[#allocation8 + $0x3f8] sm:$0xff]  ;;  %11000 = vst [vmem:[#allocation133_spill] sm:$0xff] %v8921_v2  ;;  %v1360_v63 = vld [vmem:[#allocation8 + $0xb0] sm:$0xff] }
 0x1ff   : > { %5544 = vmatpush1.bf16.msra.mxu1 %v8907_v38  ;;  %v8916_v62 = vpack.c.bf16 %v1465_v57, %v1459_v60  ;;  %10999 = vst [vmem:[#allocation132_spill] sm:$0xff] %v8918_v54  ;;  %v8926_v60 = vpack.c.bf16 %v1477_v18, %v1471_v59  ;;  %v1476_v57 = vld [vmem:[#allocation8 + $0x450] sm:$0xff]  ;;  %v1341_v38 = vld [vmem:[#allocation8 + $0x18] sm:$0xff]  ;;  %5606 = vmatprep.subr.bf16.mxu0 %v8918_v54 }
 0x200   : > { %5546 = vmatprep.subr.bf16.mxu1 %v8909_v12  ;;  %v1355_v12 = vld [vmem:[#allocation8 + $0x88] sm:$0xff]  ;;  %5608 = vmatpush1.bf16.msra.mxu0 %v8923_v7  ;;  %v8935_v59 = vpack.c.bf16 %v1476_v57, %v1470_v27  ;;  %v1340_v18 = vld [vmem:[#allocation8 + $0x10] sm:$0xff]  ;;  %v8938_v54 = vpack.c.bf16 %v1373_v42, %v1367_v47  ;;  %v1353_v7 = vld [vmem:[#allocation8 + $0x78] sm:$0xff] }
 0x201   : > { %10998 = vst [vmem:[#allocation131_spill] sm:$0xff] %v8916_v62  ;;  %11002 = vst [vmem:[#allocation135_spill] sm:$0xff] %v8926_v60  ;;  %v8930_v40 = vpack.c.bf16 %v1361_v32, %v1355_v12  ;;  %v8941_v12 = vpack.c.bf16 %v1347_v56, %v1341_v38  ;;  %v1346_v32 = vld [vmem:[#allocation8 + $0x40] sm:$0xff]  ;;  %v1379_v27 = vld [vmem:[#allocation8 + $0x148] sm:$0xff] }
 0x202   : > { %11005 = vst [vmem:[#allocation138_spill] sm:$0xff] %v8935_v59  ;;  %11006 = vst [vmem:[#allocation139_spill] sm:$0xff] %v8938_v54  ;;  %v1385_v57 = vld [vmem:[#allocation8 + $0x178] sm:$0xff]  ;;  %v1378_v47 = vld [vmem:[#allocation8 + $0x140] sm:$0xff]  ;;  %v8950_v38 = vpack.c.bf16 %v1346_v32, %v1340_v18 }
 0x203   : > { %5548 = vmatpush1.bf16.msra.mxu1 %v8913_v37  ;;  %11003 = vst [vmem:[#allocation136_spill] sm:$0xff] %v8930_v40  ;;  %v8932_v37 = vpack.c.bf16 %v1360_v63, %v1354_v34  ;;  %5610 = vmatprep.subr.bf16.mxu0 %v8930_v40  ;;  %11007 = vst [vmem:[#allocation140_spill] sm:$0xff] %v8941_v12  ;;  %v1372_v34 = vld [vmem:[#allocation8 + $0x110] sm:$0xff]  ;;  %v1359_v63 = vld [vmem:[#allocation8 + $0xa8] sm:$0xff]  ;;  %v8947_v40 = vpack.c.bf16 %v1385_v57, %v1379_v27 }
 0x204   : > { %5550 = vmatprep.subr.bf16.mxu1 %v8916_v62  ;;  %v1366_v62 = vld [vmem:[#allocation8 + $0xe0] sm:$0xff]  ;;  %v1384_v42 = vld [vmem:[#allocation8 + $0x170] sm:$0xff]  ;;  %11010 = vst [vmem:[#allocation143_spill] sm:$0xff] %v8950_v38  ;;  %v1391_v56 = vld [vmem:[#allocation8 + $0x1a8] sm:$0xff] }
 0x205   : > { %11004 = vst [vmem:[#allocation137_spill] sm:$0xff] %v8932_v37  ;;  %5612 = vmatpush1.bf16.msra.mxu0 %v8932_v37  ;;  %v8944_v28 = vpack.c.bf16 %v1372_v34, %v1366_v62  ;;  %11009 = vst [vmem:[#allocation142_spill] sm:$0xff] %v8947_v40  ;;  %v1352_v37 = vld [vmem:[#allocation8 + $0x70] sm:$0xff]  ;;  %v1358_v62 = vld [vmem:[#allocation8 + $0xa0] sm:$0xff]  ;;  %v8956_v27 = vpack.c.bf16 %v1384_v42, %v1378_v47 }
 0x206   : > { %5614 = vmatprep.subr.bf16.mxu0 %v8938_v54  ;;  %v1397_v34 = vld [vmem:[#allocation8 + $0x1d8] sm:$0xff]  ;;  %v1390_v32 = vld [vmem:[#allocation8 + $0x1a0] sm:$0xff]  ;;  %v1396_v57 = vld [vmem:[#allocation8 + $0x1d0] sm:$0xff] }
 0x207   : > { %5552 = vmatpush1.bf16.msra.mxu1 %v8921_v2  ;;  %11008 = vst [vmem:[#allocation141_spill] sm:$0xff] %v8944_v28  ;;  %v1365_v2 = vld [vmem:[#allocation8 + $0xd8] sm:$0xff]  ;;  %11012 = vst [vmem:[#allocation145_spill] sm:$0xff] %v8956_v27  ;;  %v8960_v18 = vpack.c.bf16 %v1397_v34, %v1391_v56  ;;  %v1364_v42 = vld [vmem:[#allocation8 + $0xd0] sm:$0xff]  ;;  %v8970_v56 = vpack.c.bf16 %v1396_v57, %v1390_v32 }
 0x208   : > { %5554 = vmatprep.subr.bf16.mxu1 %v8926_v60  ;;  %v8953_v60 = vpack.c.bf16 %v1359_v63, %v1353_v7  ;;  %v8963_v7 = vpack.c.bf16 %v1358_v62, %v1352_v37  ;;  %v1403_v63 = vld [vmem:[#allocation8 + $0x208] sm:$0xff]  ;;  %v1409_v54 = vld [vmem:[#allocation8 + $0x238] sm:$0xff]  ;;  %v8967_v47 = vpack.c.bf16 %v1371_v25, %v1365_v2  ;;  %v1402_v62 = vld [vmem:[#allocation8 + $0x200] sm:$0xff] }
 0x209   : > { %5616 = vmatpush1.bf16.msra.mxu0 %v8944_v28  ;;  %11013 = vst [vmem:[#allocation146_spill] sm:$0xff] %v8960_v18  ;;  %v1370_v28 = vld [vmem:[#allocation8 + $0x100] sm:$0xff]  ;;  %11016 = vst [vmem:[#allocation149_spill] sm:$0xff] %v8970_v56  ;;  %v8973_v37 = vpack.c.bf16 %v1409_v54, %v1403_v63  ;;  %v1408_v34 = vld [vmem:[#allocation8 + $0x230] sm:$0xff] }
 0x20a   : > { %11011 = vst [vmem:[#allocation144_spill] sm:$0xff] %v8953_v60  ;;  %5618 = vmatprep.subr.bf16.mxu0 %v8947_v40  ;;  %11014 = vst [vmem:[#allocation147_spill] sm:$0xff] %v8963_v7  ;;  %v1383_v40 = vld [vmem:[#allocation8 + $0x168] sm:$0xff]  ;;  %v1421_v2 = vld [vmem:[#allocation8 + $0x298] sm:$0xff]  ;;  %v8982_v54 = vpack.c.bf16 %v1408_v34, %v1402_v62 }
 0x20b   : > { %5556 = vmatpush1.bf16.msra.mxu1 %v8935_v59  ;;  %11015 = vst [vmem:[#allocation148_spill] sm:$0xff] %v8967_v47  ;;  %v1377_v59 = vld [vmem:[#allocation8 + $0x138] sm:$0xff]  ;;  %11017 = vst [vmem:[#allocation150_spill] sm:$0xff] %v8973_v37  ;;  %v1415_v25 = vld [vmem:[#allocation8 + $0x268] sm:$0xff] }
 0x20c   : > { %5558 = vmatprep.subr.bf16.mxu1 %v8941_v12  ;;  %v1376_v12 = vld [vmem:[#allocation8 + $0x130] sm:$0xff]  ;;  %v1389_v32 = vld [vmem:[#allocation8 + $0x198] sm:$0xff]  ;;  %v1395_v57 = vld [vmem:[#allocation8 + $0x1c8] sm:$0xff]  ;;  %11020 = vst [vmem:[#allocation153_spill] sm:$0xff] %v8982_v54  ;;  %v8985_v63 = vpack.c.bf16 %v1421_v2, %v1415_v25  ;;  %v5237_v2 = vmul.f32 -1.442695, %v8869_v20 }
 0x20d   : > { %5620 = vmatpush1.bf16.msra.mxu0 %v8956_v27  ;;  %v1382_v27 = vld [vmem:[#allocation8 + $0x160] sm:$0xff]  ;;  %v1401_v62 = vld [vmem:[#allocation8 + $0x1f8] sm:$0xff]  ;;  %v1407_v34 = vld [vmem:[#allocation8 + $0x228] sm:$0xff] }
 0x20e   : > { %1547 = vmatmul.mubr.f32.vlgmr.msra.gmra.mrb[4].mxu1 %v10944_v43  ;;  %5622 = vmatprep.subr.bf16.mxu0 %v8960_v18  ;;  %11021 = vst [vmem:[#allocation154_spill] sm:$0xff] %v8985_v63  ;;  %v8988_v18 = vpack.c.bf16 %v1382_v27, %v1376_v12  ;;  %v1426_v27 = vld [vmem:[#allocation8 + $0x2c0] sm:$0xff]  ;;  %v1419_v20 = vld [vmem:[#allocation8 + $0x288] sm:$0xff]  ;;  %7356 = vpow2.f32 %v5237_v2 }
 0x20f   : > { %5560 = vmatpush1.bf16.msra.mxu1 %v8950_v38  ;;  %1617 = vmatprep.mubr.f32.mxu1 %v10944_v43  ;;  %v8976_v38 = vpack.c.bf16 %v1370_v28, %v1364_v42  ;;  %v1414_v28 = vld [vmem:[#allocation8 + $0x260] sm:$0xff]  ;;  %v1420_v42 = vld [vmem:[#allocation8 + $0x290] sm:$0xff] }
 0x210   : > { %5562 = vmatprep.subr.bf16.mxu1 %v8953_v60  ;;  %v8979_v60 = vpack.c.bf16 %v1383_v40, %v1377_v59  ;;  %11022 = vst [vmem:[#allocation155_spill] sm:$0xff] %v8988_v18  ;;  %v1427_v40 = vld [vmem:[#allocation8 + $0x2c8] sm:$0xff]  ;;  %v1433_v59 = vld [vmem:[#allocation8 + $0x2f8] sm:$0xff]  ;;  %v8994_v25 = vpack.c.bf16 %v1420_v42, %v1414_v28  ;;  %v1400_v28 = vld [vmem:[#allocation8 + $0x1f0] sm:$0xff] }
 0x211   : > { %11018 = vst [vmem:[#allocation151_spill] sm:$0xff] %v8976_v38  ;;  %5624 = vmatpush1.bf16.msra.mxu0 %v8970_v56  ;;  %v1394_v56 = vld [vmem:[#allocation8 + $0x1c0] sm:$0xff]  ;;  %v8998_v12 = vpack.c.bf16 %v1433_v59, %v1427_v40 }
 0x212   : > { %11019 = vst [vmem:[#allocation152_spill] sm:$0xff] %v8979_v60  ;;  %5626 = vmatprep.subr.bf16.mxu0 %v8973_v37  ;;  %11024 = vst [vmem:[#allocation157_spill] sm:$0xff] %v8994_v25  ;;  %v1432_v37 = vld [vmem:[#allocation8 + $0x2f0] sm:$0xff]  ;;  %v1406_v42 = vld [vmem:[#allocation8 + $0x220] sm:$0xff] }
 0x213   : > { %5564 = vmatpush1.bf16.msra.mxu1 %v8963_v7  ;;  %v1388_v7 = vld [vmem:[#allocation8 + $0x190] sm:$0xff]  ;;  %11025 = vst [vmem:[#allocation158_spill] sm:$0xff] %v8998_v12  ;;  %v9007_v40 = vpack.c.bf16 %v1432_v37, %v1426_v27  ;;  %v1431_v37 = vld [vmem:[#allocation8 + $0x2e8] sm:$0xff] }
 0x214   : > { %5566 = vmatprep.subr.bf16.mxu1 %v8967_v47  ;;  %v8991_v47 = vpack.c.bf16 %v1395_v57, %v1389_v32  ;;  %v9001_v32 = vpack.c.bf16 %v1394_v56, %v1388_v7  ;;  %v1439_v57 = vld [vmem:[#allocation8 + $0x328] sm:$0xff]  ;;  %v1438_v7 = vld [vmem:[#allocation8 + $0x320] sm:$0xff]  ;;  %v1444_v56 = vld [vmem:[#allocation8 + $0x350] sm:$0xff] }
 0x215   : > { %5628 = vmatpush1.bf16.msra.mxu0 %v8982_v54  ;;  %v1413_v54 = vld [vmem:[#allocation8 + $0x258] sm:$0xff]  ;;  %11028 = vst [vmem:[#allocation161_spill] sm:$0xff] %v9007_v40  ;;  %v9019_v2 = vpack.c.bf16 %v1444_v56, %v1438_v7 }
 0x216   : > { %11023 = vst [vmem:[#allocation156_spill] sm:$0xff] %v8991_v47  ;;  %5630 = vmatprep.subr.bf16.mxu0 %v8985_v63  ;;  %11026 = vst [vmem:[#allocation159_spill] sm:$0xff] %v9001_v32  ;;  %v9013_v63 = vpack.c.bf16 %v1406_v42, %v1400_v28  ;;  %v1437_v28 = vld [vmem:[#allocation8 + $0x318] sm:$0xff]  ;;  %v1443_v42 = vld [vmem:[#allocation8 + $0x348] sm:$0xff] }
 0x217   : > { %5568 = vmatpush1.bf16.msra.mxu1 %v8976_v38  ;;  %v9004_v38 = vpack.c.bf16 %v1407_v34, %v1401_v62  ;;  %v9016_v62 = vpack.c.bf16 %v1419_v20, %v1413_v54  ;;  %v1412_v34 = vld [vmem:[#allocation8 + $0x250] sm:$0xff]  ;;  %11032 = vst [vmem:[#allocation165_spill] sm:$0xff] %v9019_v2  ;;  %v9033_v56 = vpack.c.bf16 %v1443_v42, %v1437_v28  ;;  %v1455_v28 = vld [vmem:[#allocation8 + $0x3a8] sm:$0xff] }
 0x218   : > { %5570 = vmatprep.subr.bf16.mxu1 %v8979_v60  ;;  %v1445_v60 = vld [vmem:[#allocation8 + $0x358] sm:$0xff]  ;;  %11030 = vst [vmem:[#allocation163_spill] sm:$0xff] %v9013_v63  ;;  %v1424_v54 = vld [vmem:[#allocation8 + $0x2b0] sm:$0xff]  ;;  %v7357_v7 = vpop.eup %7356  ;;  %v1451_v42 = vld [vmem:[#allocation8 + $0x388] sm:$0xff] }
 0x219   : > { %11027 = vst [vmem:[#allocation160_spill] sm:$0xff] %v9004_v38  ;;  %5632 = vmatpush1.bf16.msra.mxu0 %v8994_v25  ;;  %v9010_v59 = vpack.c.bf16 %v1445_v60, %v1439_v57  ;;  %11031 = vst [vmem:[#allocation164_spill] sm:$0xff] %v9016_v62  ;;  %v1425_v25 = vld [vmem:[#allocation8 + $0x2b8] sm:$0xff]  ;;  %v1430_v57 = vld [vmem:[#allocation8 + $0x2e0] sm:$0xff] }
 0x21a   : > { %5634 = vmatprep.subr.bf16.mxu0 %v8998_v12  ;;  %v9026_v27 = vpack.c.bf16 %v1431_v37, %v1425_v25  ;;  %v9030_v20 = vpack.c.bf16 %v1430_v57, %v1424_v54  ;;  %11036 = vst [vmem:[#allocation169_spill] sm:$0xff] %v9033_v56  ;;  %v1175_v37 = vmul.f32 0.0, %v8893_v11  ;;  %v1449_v57 = vld [vmem:[#allocation8 + $0x378] sm:$0xff]  ;;  %v1454_v11 = vld [vmem:[#allocation8 + $0x3a0] sm:$0xff] }
 0x21b   : > { %5572 = vmatpush1.bf16.msra.mxu1 %v8988_v18  ;;  %11029 = vst [vmem:[#allocation162_spill] sm:$0xff] %v9010_v59  ;;  %v1217_v18 = vld [vmem:[#allocation5 + $0xb8] sm:$0xff] }
 0x21c   : > { %5574 = vmatprep.subr.bf16.mxu1 %v8991_v47  ;;  %v1418_v47 = vld [vmem:[#allocation8 + $0x280] sm:$0xff]  ;;  %11034 = vst [vmem:[#allocation167_spill] sm:$0xff] %v9026_v27  ;;  %11035 = vst [vmem:[#allocation168_spill] sm:$0xff] %v9030_v20 }
 0x21d   : > { %5636 = vmatpush1.bf16.msra.mxu0 %v9007_v40  ;;  %v9023_v60 = vpack.c.bf16 %v1418_v47, %v1412_v34  ;;  %v1436_v47 = vld [vmem:[#allocation8 + $0x310] sm:$0xff]  ;;  %v1442_v34 = vld [vmem:[#allocation8 + $0x340] sm:$0xff] }
 0x21e   : > { %5638 = vmatprep.subr.bf16.mxu0 %v9010_v59  ;;  %v1161_v59 = vadd.f32 1.0, %v7357_v7  ;;  %v9036_v25 = vpack.c.bf16 %v1442_v34, %v1436_v47  ;;  %v9047_v7 = vpack.c.bf16 %v1455_v28, %v1449_v57  ;;  %v1457_v47 = vld [vmem:[#allocation8 + $0x3b8] sm:$0xff]  ;;  %v1448_v34 = vld [vmem:[#allocation8 + $0x370] sm:$0xff] }
 0x21f   : > { %5576 = vmatpush1.bf16.msra.mxu1 %v9001_v32  ;;  %11033 = vst [vmem:[#allocation166_spill] sm:$0xff] %v9023_v60  ;;  %v9049_v40 = vpack.c.bf16 %v1457_v47, %v1451_v42  ;;  %v9051_v12 = vpack.c.bf16 %v1454_v11, %v1448_v34  ;;  %v1460_v42 = vld [vmem:[#allocation8 + $0x3d0] sm:$0xff]  ;;  %v1466_v47 = vld [vmem:[#allocation8 + $0x400] sm:$0xff] }
 0x220   : > { %5578 = vmatprep.subr.bf16.mxu1 %v9004_v38  ;;  %11037 = vst [vmem:[#allocation170_spill] sm:$0xff] %v9036_v25  ;;  %7358 = vrcp.f32 %v1161_v59  ;;  %11039 = vst [vmem:[#allocation172_spill] sm:$0xff] %v9047_v7  ;;  %v1462_v34 = vld [vmem:[#allocation8 + $0x3e0] sm:$0xff]  ;;  %v9063_v11 = vpack.c.bf16 %v1466_v47, %v1460_v42  ;;  %v1480_v42 = vld [vmem:[#allocation8 + $0x470] sm:$0xff] }
 0x221   : > { %5640 = vmatpush1.bf16.msra.mxu0 %v9019_v2  ;;  %11040 = vst [vmem:[#allocation173_spill] sm:$0xff] %v9049_v40  ;;  %11041 = vst [vmem:[#allocation174_spill] sm:$0xff] %v9051_v12  ;;  %v1213_v32 = vld [vmem:[#allocation5 + $0x98] sm:$0xff] }
 0x222   : > { %5642 = vmatprep.subr.bf16.mxu0 %v9049_v40  ;;  %11045 = vst [vmem:[#allocation178_spill] sm:$0xff] %v9063_v11 }
 0x223   : > { %5580 = vmatpush1.bf16.msra.mxu1 %v9013_v63  ;;  %v1199_v63 = vld [vmem:[#allocation5 + $0x28] sm:$0xff] }
 0x224   : > { %5582 = vmatprep.subr.bf16.mxu1 %v9016_v62  ;;  %v1195_v62 = vld [vmem:[#allocation5 + $0x8] sm:$0xff] }
 0x227   : > { %5584 = vmatpush1.bf16.msra.mxu1 %v9023_v60  ;;  %v1469_v60 = vld [vmem:[#allocation8 + $0x418] sm:$0xff] }
 0x228   : > { %5586 = vmatprep.subr.bf16.mxu1 %v9026_v27  ;;  %v1463_v27 = vld [vmem:[#allocation8 + $0x3e8] sm:$0xff] }
 0x229   : > { %v9060_v28 = vpack.c.bf16 %v1469_v60, %v1463_v27  ;;  %v1475_v60 = vld [vmem:[#allocation8 + $0x448] sm:$0xff]  ;;  %v1481_v27 = vld [vmem:[#allocation8 + $0x478] sm:$0xff] }
 0x22b   : > { %5588 = vmatpush1.bf16.msra.mxu1 %v9030_v20  ;;  %v1461_v20 = vld [vmem:[#allocation8 + $0x3d8] sm:$0xff]  ;;  %11044 = vst [vmem:[#allocation177_spill] sm:$0xff] %v9060_v28 }
 0x22c   : > { %5590 = vmatprep.subr.bf16.mxu1 %v9033_v56  ;;  %v1450_v56 = vld [vmem:[#allocation8 + $0x380] sm:$0xff] }
 0x22f   : > { %5592 = vmatpush1.bf16.msra.mxu1 %v9036_v25  ;;  %v1467_v25 = vld [vmem:[#allocation8 + $0x408] sm:$0xff] }
 0x230   : > { %5594 = vmatprep.subr.bf16.mxu1 %v9047_v7  ;;  %v9058_v57 = vpack.c.bf16 %v1467_v25, %v1461_v20  ;;  %v1472_v25 = vld [vmem:[#allocation8 + $0x430] sm:$0xff]  ;;  %v1478_v7 = vld [vmem:[#allocation8 + $0x460] sm:$0xff] }
 0x231   : > { %v9074_v47 = vpack.c.bf16 %v1478_v7, %v1472_v25  ;;  %v1198_v7 = vld [vmem:[#allocation5 + $0x20] sm:$0xff]  ;;  %v1204_v25 = vld [vmem:[#allocation5 + $0x50] sm:$0xff] }
 0x232   : > { %11043 = vst [vmem:[#allocation176_spill] sm:$0xff] %v9058_v57 }
 0x233   : > { %v9040_v2 = vpop.permute.xlu0 %1181  ;;  %5596 = vmatpush1.bf16.msra.mxu1 %v9051_v12  ;;  %v9071_v12 = vpack.c.bf16 %v1481_v27, %v1475_v60  ;;  %11049 = vst [vmem:[#allocation182_spill] sm:$0xff] %v9074_v47  ;;  %v1200_v60 = vld [vmem:[#allocation5 + $0x30] sm:$0xff]  ;;  %v7359_v27 = vpop.eup %7358 }
 0x234   : > { %v9043_v54 = vadd.f32 %v9040_v2, %v1175_v37  ;;  %v1456_v37 = vld [vmem:[#allocation8 + $0x3b0] sm:$0xff]  ;;  %5598 = vmatprep.subr.bf16.mxu1 %v9058_v57 }
 0x235   : > { %v9054_v59 = vpack.c.bf16 %v1456_v37, %v1450_v56  ;;  %v1468_v56 = vld [vmem:[#allocation8 + $0x410] sm:$0xff]  ;;  %v1473_v37 = vld [vmem:[#allocation8 + $0x438] sm:$0xff]  ;;  %11048 = vst [vmem:[#allocation181_spill] sm:$0xff] %v9071_v12 }
 0x236   : > { %11038 = vst [vmem:[#allocation171_spill] sm:$0xff] %v9043_v54  ;;  %7360 = vtanh.f32 %v9043_v54  ;;  %v1479_v54 = vld [vmem:[#allocation8 + $0x468] sm:$0xff]  ;;  %v9067_v40 = vpack.c.bf16 %v1468_v56, %v1462_v34  ;;  %v1201_v57 = vld [vmem:[#allocation5 + $0x38] sm:$0xff] }
 0x237   : > { %11042 = vst [vmem:[#allocation175_spill] sm:$0xff] %v9054_v59  ;;  %5644 = vmatpush1.bf16.msra.mxu0 %v9054_v59  ;;  %v9069_v20 = vpack.c.bf16 %v1479_v54, %v1473_v37  ;;  %v1474_v59 = vld [vmem:[#allocation8 + $0x440] sm:$0xff]  ;;  %5600 = vmatpush1.bf16.msra.mxu1 %v9063_v11  ;;  %v9080_v34 = vpack.c.bf16 %v1201_v57, %v1195_v62  ;;  %v1205_v56 = vld [vmem:[#allocation5 + $0x58] sm:$0xff] }
 0x238   : > { %5646 = vmatprep.subr.bf16.mxu0 %v9060_v28  ;;  %11046 = vst [vmem:[#allocation179_spill] sm:$0xff] %v9067_v40  ;;  %v9078_v54 = vpack.c.bf16 %v1480_v42, %v1474_v59  ;;  %v1194_v37 = vld [vmem:[#allocation5] sm:$0xff]  ;;  %v9083_v28 = vpack.c.bf16 %v1205_v56, %v1199_v63  ;;  %v1207_v11 = vld [vmem:[#allocation5 + $0x68] sm:$0xff]  ;;  %v9091_v63 = vpack.c.bf16 %v1204_v25, %v1198_v7  ;;  %v1212_v56 = vld [vmem:[#allocation5 + $0x90] sm:$0xff] }
 0x239   : > { %11047 = vst [vmem:[#allocation180_spill] sm:$0xff] %v9069_v20  ;;  %5602 = vmatprep.subr.bf16.mxu1 %v9069_v20  ;;  %11051 = vst [vmem:[#allocation184_spill] sm:$0xff] %v9080_v34  ;;  %v9086_v62 = vpack.c.bf16 %v1200_v60, %v1194_v37  ;;  %v9093_v57 = vpack.c.bf16 %v1213_v32, %v1207_v11  ;;  %v1206_v42 = vld [vmem:[#allocation5 + $0x60] sm:$0xff]  ;;  %v1216_v37 = vld [vmem:[#allocation5 + $0xb0] sm:$0xff]  ;;  %v11058_v11 = vsub.s32 2, %v8813_v49 }
 0x23a   : > { %11050 = vst [vmem:[#allocation183_spill] sm:$0xff] %v9078_v54  ;;  %11052 = vst [vmem:[#allocation185_spill] sm:$0xff] %v9083_v28  ;;  %v1219_v60 = vld [vmem:[#allocation5 + $0xc8] sm:$0xff]  ;;  %v9102_v32 = vpack.c.bf16 %v1212_v56, %v1206_v42  ;;  %v1218_v7 = vld [vmem:[#allocation5 + $0xc0] sm:$0xff] }
 0x23b   : > { %5648 = vmatpush1.bf16.msra.mxu0 %v9067_v40  ;;  %v1211_v40 = vld [vmem:[#allocation5 + $0x88] sm:$0xff]  ;;  %5604 = vmatpush1.bf16.msra.mxu1 %v9074_v47  ;;  %11053 = vst [vmem:[#allocation186_spill] sm:$0xff] %v9086_v62  ;;  %11054 = vst [vmem:[#allocation187_spill] sm:$0xff] %v9091_v63  ;;  %v1224_v25 = vld [vmem:[#allocation5 + $0xf0] sm:$0xff] }
 0x23c   : > { %5650 = vmatprep.subr.bf16.mxu0 %v9071_v12  ;;  %5654 = vmatprep.subr.bf16.mxu1 %v9080_v34  ;;  %11055 = vst [vmem:[#allocation188_spill] sm:$0xff] %v9093_v57  ;;  %v1210_v12 = vld [vmem:[#allocation5 + $0x80] sm:$0xff]  ;;  %v1223_v59 = vld [vmem:[#allocation5 + $0xe8] sm:$0xff]  ;;  %v1229_v34 = vld [vmem:[#allocation5 + $0x118] sm:$0xff] }
 0x23d   : > { %11057 = vst [vmem:[#allocation190_spill] sm:$0xff] %v9102_v32  ;;  %v9116_v42 = vpack.c.bf16 %v1229_v34, %v1223_v59  ;;  %v1228_v56 = vld [vmem:[#allocation5 + $0x110] sm:$0xff]  ;;  %v1241_v47 = vld [vmem:[#allocation5 + $0x178] sm:$0xff]  ;;  %v1230_v59 = vld [vmem:[#allocation5 + $0x120] sm:$0xff] }
 0x23e   : > { %1618 = vmatmul.mubr.f32.vlgmr.msra.gmra.mrb[6].mxu1 %v10944_v43 }
 0x23f   : > { %5652 = vmatpush1.bf16.msra.mxu0 %v9078_v54  ;;  %5656 = vmatpush1.bf16.msra.mxu1 %v9086_v62  ;;  %11062 = vst [vmem:[#allocation194_spill] sm:$0xff] %v9116_v42  ;;  %v1231_v62 = vld [vmem:[#allocation5 + $0x128] sm:$0xff]  ;;  %v1237_v54 = vld [vmem:[#allocation5 + $0x158] sm:$0xff] }
 0x240   : > { %v7361_v38 = vpop.eup %7360  ;;  %5750 = vmatprep.subr.bf16.mxu0 %v9083_v28  ;;  %5658 = vmatprep.subr.bf16.mxu1 %v9093_v57  ;;  %v1222_v28 = vld [vmem:[#allocation5 + $0xe0] sm:$0xff]  ;;  %v9127_v34 = vpack.c.bf16 %v1237_v54, %v1231_v62  ;;  %v1247_v57 = vld [vmem:[#allocation5 + $0x1a8] sm:$0xff] }
 0x241   : > { %v1192_v20 = vmul.f32 %v7361_v38, %v7359_v27  ;;  %v9097_v38 = vpack.c.bf16 %v1217_v18, %v1211_v40  ;;  %v1225_v27 = vld [vmem:[#allocation5 + $0xf8] sm:$0xff]  ;;  %v9111_v18 = vpack.c.bf16 %v1216_v37, %v1210_v12  ;;  %v9125_v37 = vpack.c.bf16 %v1228_v56, %v1222_v28  ;;  %v1248_v56 = vld [vmem:[#allocation5 + $0x1b0] sm:$0xff] }
 0x242   : > { %1689 = vmatmul.mubr.f32.vlgmr.msra.gmra.mrb[6].mxu0 %v10944_v43  ;;  %v9113_v40 = vpack.c.bf16 %v1225_v27, %v1219_v60  ;;  %11065 = vst [vmem:[#allocation197_spill] sm:$0xff] %v9127_v34  ;;  %v1236_v60 = vld [vmem:[#allocation5 + $0x150] sm:$0xff]  ;;  %v1234_v27 = vld [vmem:[#allocation5 + $0x140] sm:$0xff] }
 0x243   : > { %1697 = vrot.lane.b32.xlu1 %v1192_v20, %s7707_s12  ;;  %11056 = vst [vmem:[#allocation189_spill] sm:$0xff] %v9097_v38  ;;  %v9107_v20 = vrot.slane %v8816_v31, %v11058_v11  ;;  %5752 = vmatpush1.bf16.msra.mxu0 %v9091_v63  ;;  %11060 = vst [vmem:[#allocation192_spill] sm:$0xff] %v9111_v18  ;;  %v1235_v11 = vld [vmem:[#allocation5 + $0x148] sm:$0xff]  ;;  %v9119_v63 = vpack.c.bf16 %v1224_v25, %v1218_v7  ;;  %v1240_v7 = vld [vmem:[#allocation5 + $0x170] sm:$0xff] }
 0x244   : > { %11061 = vst [vmem:[#allocation193_spill] sm:$0xff] %v9113_v40  ;;  %5754 = vmatprep.subr.bf16.mxu0 %v9097_v38  ;;  %5660 = vmatpush1.bf16.msra.mxu1 %v9102_v32  ;;  %11064 = vst [vmem:[#allocation196_spill] sm:$0xff] %v9125_v37  ;;  %v9130_v38 = vpack.c.bf16 %v1241_v47, %v1235_v11  ;;  %v1243_v25 = vld [vmem:[#allocation5 + $0x188] sm:$0xff]  ;;  %v1249_v32 = vld [vmem:[#allocation5 + $0x1b8] sm:$0xff]  ;;  %v9137_v54 = vpack.c.bf16 %v1240_v7, %v1234_v27 }
 0x245   : > { %11059 = vst [vmem:[#allocation191_spill] sm:$0xff] %v9107_v20  ;;  %11063 = vst [vmem:[#allocation195_spill] sm:$0xff] %v9119_v63  ;;  %v1139_v12 = vadd.f32 %v9107_v20, %v8830_v39  ;;  %5662 = vmatprep.subr.bf16.mxu1 %v9113_v40  ;;  %v1253_v39 = vld [vmem:[#allocation5 + $0x1d8] sm:$0xff]  ;;  %v9139_v62 = vpack.c.bf16 %v1249_v32, %v1243_v25  ;;  %v1242_v47 = vld [vmem:[#allocation5 + $0x180] sm:$0xff] }
 0x246   : > { %11066 = vst [vmem:[#allocation198_spill] sm:$0xff] %v9130_v38  ;;  %11068 = vst [vmem:[#allocation200_spill] sm:$0xff] %v9137_v54  ;;  %v1246_v11 = vld [vmem:[#allocation5 + $0x1a0] sm:$0xff]  ;;  %v1252_v20 = vld [vmem:[#allocation5 + $0x1d0] sm:$0xff] }
 0x247   : > { %5756 = vmatpush1.bf16.msra.mxu0 %v9111_v18  ;;  %v9133_v18 = vpack.c.bf16 %v1236_v60, %v1230_v59  ;;  %v5236_v28 = vmul.f32 -1.442695, %v1139_v12  ;;  %11069 = vst [vmem:[#allocation201_spill] sm:$0xff] %v9139_v62  ;;  %v1261_v59 = vld [vmem:[#allocation5 + $0x218] sm:$0xff]  ;;  %v1259_v60 = vld [vmem:[#allocation5 + $0x208] sm:$0xff]  ;;  %v9150_v27 = vpack.c.bf16 %v1252_v20, %v1246_v11  ;;  %v1254_v7 = vld [vmem:[#allocation5 + $0x1e0] sm:$0xff] }
 0x248   : > { %5758 = vmatprep.subr.bf16.mxu0 %v9116_v42  ;;  %5664 = vmatpush1.bf16.msra.mxu1 %v9119_v63  ;;  %v9142_v42 = vpack.c.bf16 %v1253_v39, %v1247_v57  ;;  %v1255_v63 = vld [vmem:[#allocation5 + $0x1e8] sm:$0xff]  ;;  %v1265_v12 = vld [vmem:[#allocation5 + $0x238] sm:$0xff]  ;;  %v1260_v25 = vld [vmem:[#allocation5 + $0x210] sm:$0xff]  ;;  %v11076_v20 = vsub.s32 5, %v8813_v49 }
 0x249   : > { %11067 = vst [vmem:[#allocation199_spill] sm:$0xff] %v9133_v18  ;;  %5666 = vmatprep.subr.bf16.mxu1 %v9127_v34  ;;  %7362 = vpow2.f32 %v5236_v28  ;;  %11072 = vst [vmem:[#allocation204_spill] sm:$0xff] %v9150_v27  ;;  %v9152_v57 = vpack.c.bf16 %v1261_v59, %v1255_v63  ;;  %v1258_v39 = vld [vmem:[#allocation5 + $0x200] sm:$0xff]  ;;  %v1273_v28 = vld [vmem:[#allocation5 + $0x278] sm:$0xff] }
 0x24a   : > { %11070 = vst [vmem:[#allocation202_spill] sm:$0xff] %v9142_v42  ;;  %v1277_v32 = vld [vmem:[#allocation5 + $0x298] sm:$0xff]  ;;  %v9163_v63 = vrot.slane %v8816_v31, %v11076_v20  ;;  %v1283_v31 = vld [vmem:[#allocation5 + $0x2c8] sm:$0xff] }
 0x24b   : > { %5760 = vmatpush1.bf16.msra.mxu0 %v9125_v37  ;;  %v9145_v37 = vpack.c.bf16 %v1248_v56, %v1242_v47  ;;  %11073 = vst [vmem:[#allocation205_spill] sm:$0xff] %v9152_v57  ;;  %v1264_v47 = vld [vmem:[#allocation5 + $0x230] sm:$0xff]  ;;  %v1267_v56 = vld [vmem:[#allocation5 + $0x248] sm:$0xff]  ;;  %v1289_v20 = vld [vmem:[#allocation5 + $0x2f8] sm:$0xff] }
 0x24c   : > { %5762 = vmatprep.subr.bf16.mxu0 %v9130_v38  ;;  %5668 = vmatpush1.bf16.msra.mxu1 %v9133_v18  ;;  %v9155_v38 = vpack.c.bf16 %v1265_v12, %v1259_v60  ;;  %v1271_v18 = vld [vmem:[#allocation5 + $0x268] sm:$0xff]  ;;  %11077 = vst [vmem:[#allocation208_spill] sm:$0xff] %v9163_v63  ;;  %v9167_v11 = vpack.c.bf16 %v1264_v47, %v1258_v39  ;;  %v1266_v60 = vld [vmem:[#allocation5 + $0x240] sm:$0xff]  ;;  %v1272_v12 = vld [vmem:[#allocation5 + $0x270] sm:$0xff] }
 0x24d   : > { %11071 = vst [vmem:[#allocation203_spill] sm:$0xff] %v9145_v37  ;;  %5670 = vmatprep.subr.bf16.mxu1 %v9139_v62  ;;  %v9169_v59 = vpack.c.bf16 %v1273_v28, %v1267_v56  ;;  %v1285_v62 = vld [vmem:[#allocation5 + $0x2d8] sm:$0xff]  ;;  %v1142_v39 = vadd.f32 %v9163_v63, %v8871_v55  ;;  %v1284_v56 = vld [vmem:[#allocation5 + $0x2d0] sm:$0xff]  ;;  %v1282_v28 = vld [vmem:[#allocation5 + $0x2c0] sm:$0xff] }
 0x24e   : > { %11074 = vst [vmem:[#allocation206_spill] sm:$0xff] %v9155_v38  ;;  %11078 = vst [vmem:[#allocation209_spill] sm:$0xff] %v9167_v11  ;;  %v1295_v55 = vld [vmem:[#allocation5 + $0x328] sm:$0xff]  ;;  %v1301_v63 = vld [vmem:[#allocation5 + $0x358] sm:$0xff] }
 0x24f   : > { %5764 = vmatpush1.bf16.msra.mxu0 %v9137_v54  ;;  %v9158_v54 = vpack.c.bf16 %v1260_v25, %v1254_v7  ;;  %11079 = vst [vmem:[#allocation210_spill] sm:$0xff] %v9169_v59  ;;  %v9172_v7 = vpack.c.bf16 %v1277_v32, %v1271_v18  ;;  %v1276_v25 = vld [vmem:[#allocation5 + $0x290] sm:$0xff]  ;;  %v1278_v32 = vld [vmem:[#allocation5 + $0x2a0] sm:$0xff]  ;;  %v1313_v34 = vld [vmem:[#allocation5 + $0x3b8] sm:$0xff] }
 0x250   : > { %5766 = vmatprep.subr.bf16.mxu0 %v9142_v42  ;;  %5672 = vmatpush1.bf16.msra.mxu1 %v9145_v37  ;;  %v1270_v42 = vld [vmem:[#allocation5 + $0x260] sm:$0xff]  ;;  %v1279_v37 = vld [vmem:[#allocation5 + $0x2a8] sm:$0xff] }
 0x251   : > { %11075 = vst [vmem:[#allocation207_spill] sm:$0xff] %v9158_v54  ;;  %5674 = vmatprep.subr.bf16.mxu1 %v9152_v57  ;;  %11080 = vst [vmem:[#allocation211_spill] sm:$0xff] %v9172_v7  ;;  %v9181_v47 = vpack.c.bf16 %v1276_v25, %v1270_v42  ;;  %v9183_v18 = vpack.c.bf16 %v1285_v62, %v1279_v37  ;;  %v5238_v42 = vmul.f32 -1.442695, %v1142_v39  ;;  %v1290_v25 = vld [vmem:[#allocation5 + $0x300] sm:$0xff]  ;;  %v1307_v39 = vld [vmem:[#allocation5 + $0x388] sm:$0xff] }
 0x253   : > { %5768 = vmatpush1.bf16.msra.mxu0 %v9150_v27  ;;  %v9175_v27 = vpack.c.bf16 %v1272_v12, %v1266_v60  ;;  %11082 = vst [vmem:[#allocation213_spill] sm:$0xff] %v9181_v47  ;;  %11083 = vst [vmem:[#allocation214_spill] sm:$0xff] %v9183_v18  ;;  %v1288_v60 = vld [vmem:[#allocation5 + $0x2f0] sm:$0xff]  ;;  %v1291_v12 = vld [vmem:[#allocation5 + $0x308] sm:$0xff]  ;;  %v7363_v57 = vpop.eup %7362  ;;  %7364 = vpow2.f32 %v5238_v42 }
 0x254   : > { %5770 = vmatprep.subr.bf16.mxu0 %v9155_v38  ;;  %5676 = vmatpush1.bf16.msra.mxu1 %v9158_v54  ;;  %v9186_v38 = vpack.c.bf16 %v1289_v20, %v1283_v31  ;;  %v1297_v54 = vld [vmem:[#allocation5 + $0x338] sm:$0xff]  ;;  %v9193_v37 = vpack.c.bf16 %v1288_v60, %v1282_v28  ;;  %v1296_v31 = vld [vmem:[#allocation5 + $0x330] sm:$0xff]  ;;  %v1294_v20 = vld [vmem:[#allocation5 + $0x320] sm:$0xff] }
 0x255   : > { %11081 = vst [vmem:[#allocation212_spill] sm:$0xff] %v9175_v27  ;;  %5678 = vmatprep.subr.bf16.mxu1 %v9169_v59  ;;  %v9195_v62 = vpack.c.bf16 %v1297_v54, %v1291_v12  ;;  %v9198_v59 = vpack.c.bf16 %v1301_v63, %v1295_v55  ;;  %v1302_v63 = vld [vmem:[#allocation5 + $0x360] sm:$0xff]  ;;  %v1308_v28 = vld [vmem:[#allocation5 + $0x390] sm:$0xff]  ;;  %v9210_v12 = vpack.c.bf16 %v1313_v34, %v1307_v39  ;;  %v1319_v42 = vld [vmem:[#allocation5 + $0x3e8] sm:$0xff] }
 0x256   : > { %11084 = vst [vmem:[#allocation215_spill] sm:$0xff] %v9186_v38  ;;  %11086 = vst [vmem:[#allocation217_spill] sm:$0xff] %v9193_v37  ;;  %v1306_v60 = vld [vmem:[#allocation5 + $0x380] sm:$0xff]  ;;  %v1312_v55 = vld [vmem:[#allocation5 + $0x3b0] sm:$0xff] }
 0x257   : > { %5772 = vmatpush1.bf16.msra.mxu0 %v9167_v11  ;;  %v9189_v11 = vpack.c.bf16 %v1284_v56, %v1278_v32  ;;  %11087 = vst [vmem:[#allocation218_spill] sm:$0xff] %v9195_v62  ;;  %11088 = vst [vmem:[#allocation219_spill] sm:$0xff] %v9198_v59  ;;  %v1303_v32 = vld [vmem:[#allocation5 + $0x368] sm:$0xff]  ;;  %v1309_v56 = vld [vmem:[#allocation5 + $0x398] sm:$0xff] }
 0x258   : > { %5774 = vmatprep.subr.bf16.mxu0 %v9172_v7  ;;  %5680 = vmatpush1.bf16.msra.mxu1 %v9175_v27  ;;  %v1160_v7 = vadd.f32 1.0, %v7363_v57  ;;  %v1300_v27 = vld [vmem:[#allocation5 + $0x350] sm:$0xff]  ;;  %v9207_v57 = vpack.c.bf16 %v1309_v56, %v1303_v32  ;;  %11092 = vst [vmem:[#allocation223_spill] sm:$0xff] %v9210_v12  ;;  %v1318_v32 = vld [vmem:[#allocation5 + $0x3e0] sm:$0xff] }
 0x259   : > { %11085 = vst [vmem:[#allocation216_spill] sm:$0xff] %v9189_v11  ;;  %5682 = vmatprep.subr.bf16.mxu1 %v9183_v18  ;;  %v9205_v54 = vpack.c.bf16 %v1300_v27, %v1294_v20  ;;  %v9217_v27 = vpack.c.bf16 %v1312_v55, %v1306_v60  ;;  %v1314_v20 = vld [vmem:[#allocation5 + $0x3c0] sm:$0xff]  ;;  %v1320_v34 = vld [vmem:[#allocation5 + $0x3f0] sm:$0xff] }
 0x25a   : > { %11091 = vst [vmem:[#allocation222_spill] sm:$0xff] %v9207_v57  ;;  %7366 = vrcp.f32 %v1160_v7  ;;  %v1324_v39 = vld [vmem:[#allocation5 + $0x410] sm:$0xff] }
 0x25b   : > { %5776 = vmatpush1.bf16.msra.mxu0 %v9181_v47  ;;  %v9201_v47 = vpack.c.bf16 %v1296_v31, %v1290_v25  ;;  %11090 = vst [vmem:[#allocation221_spill] sm:$0xff] %v9205_v54  ;;  %v1315_v25 = vld [vmem:[#allocation5 + $0x3c8] sm:$0xff]  ;;  %v1321_v31 = vld [vmem:[#allocation5 + $0x3f8] sm:$0xff]  ;;  %11094 = vst [vmem:[#allocation225_spill] sm:$0xff] %v9217_v27  ;;  %v9229_v60 = vpack.c.bf16 %v1324_v39, %v1318_v32 }
 0x25c   : > { %5778 = vmatprep.subr.bf16.mxu0 %v9186_v38  ;;  %5684 = vmatpush1.bf16.msra.mxu1 %v9189_v11  ;;  %v1325_v38 = vld [vmem:[#allocation5 + $0x418] sm:$0xff]  ;;  %v9219_v7 = vpack.c.bf16 %v1321_v31, %v1315_v25  ;;  %v1326_v25 = vld [vmem:[#allocation5 + $0x420] sm:$0xff] }
 0x25d   : > { %11089 = vst [vmem:[#allocation220_spill] sm:$0xff] %v9201_v47  ;;  %5686 = vmatprep.subr.bf16.mxu1 %v9195_v62  ;;  %v9222_v56 = vpack.c.bf16 %v1325_v38, %v1319_v42  ;;  %11098 = vst [vmem:[#allocation229_spill] sm:$0xff] %v9229_v60  ;;  %v1332_v38 = vld [vmem:[#allocation5 + $0x450] sm:$0xff]  ;;  %v1330_v42 = vld [vmem:[#allocation5 + $0x440] sm:$0xff] }
 0x25e   : > { %11095 = vst [vmem:[#allocation226_spill] sm:$0xff] %v9219_v7 }
 0x25f   : > { %5780 = vmatpush1.bf16.msra.mxu0 %v9193_v37  ;;  %v9213_v37 = vpack.c.bf16 %v1308_v28, %v1302_v63  ;;  %11096 = vst [vmem:[#allocation227_spill] sm:$0xff] %v9222_v56  ;;  %v1331_v63 = vld [vmem:[#allocation5 + $0x448] sm:$0xff]  ;;  %v1337_v28 = vld [vmem:[#allocation5 + $0x478] sm:$0xff] }
 0x260   : > { %5782 = vmatprep.subr.bf16.mxu0 %v9198_v59  ;;  %5688 = vmatpush1.bf16.msra.mxu1 %v9201_v47  ;;  %v1327_v59 = vld [vmem:[#allocation5 + $0x428] sm:$0xff]  ;;  %v1333_v47 = vld [vmem:[#allocation5 + $0x458] sm:$0xff]  ;;  %v9234_v31 = vpack.c.bf16 %v1337_v28, %v1331_v63 }
 0x261   : > { %11093 = vst [vmem:[#allocation224_spill] sm:$0xff] %v9213_v37  ;;  %5690 = vmatprep.subr.bf16.mxu1 %v9207_v57  ;;  %v9231_v55 = vpack.c.bf16 %v1333_v47, %v1327_v59  ;;  %v7365_v57 = vpop.eup %7364  ;;  %v1197_v63 = vld [vmem:[#allocation5 + $0x18] sm:$0xff]  ;;  %v1203_v28 = vld [vmem:[#allocation5 + $0x48] sm:$0xff] }
 0x262   : > { %11100 = vst [vmem:[#allocation231_spill] sm:$0xff] %v9234_v31  ;;  %v1162_v47 = vadd.f32 1.0, %v7365_v57 }
 0x263   : > { %5784 = vmatpush1.bf16.msra.mxu0 %v9205_v54  ;;  %v9225_v54 = vpack.c.bf16 %v1320_v34, %v1314_v20  ;;  %11099 = vst [vmem:[#allocation230_spill] sm:$0xff] %v9231_v55  ;;  %v9237_v20 = vpack.c.bf16 %v1332_v38, %v1326_v25  ;;  %v9250_v38 = vpack.c.bf16 %v1203_v28, %v1197_v63  ;;  %v1214_v28 = vld [vmem:[#allocation5 + $0xa0] sm:$0xff] }
 0x264   : > { %5786 = vmatprep.subr.bf16.mxu0 %v9210_v12  ;;  %5692 = vmatpush1.bf16.msra.mxu1 %v9213_v37  ;;  %v1336_v12 = vld [vmem:[#allocation5 + $0x470] sm:$0xff]  ;;  %v7367_v37 = vpop.eup %7366  ;;  %7368 = vrcp.f32 %v1162_v47 }
 0x265   : > { %11097 = vst [vmem:[#allocation228_spill] sm:$0xff] %v9225_v54  ;;  %5694 = vmatprep.subr.bf16.mxu1 %v9219_v7  ;;  %11101 = vst [vmem:[#allocation232_spill] sm:$0xff] %v9237_v20  ;;  %v9241_v59 = vpack.c.bf16 %v1336_v12, %v1330_v42  ;;  %v1176_v34 = vmul.f32 0.0, %v7367_v37  ;;  %v1196_v42 = vld [vmem:[#allocation5 + $0x10] sm:$0xff] }
 0x266   : > { %11103 = vst [vmem:[#allocation234_spill] sm:$0xff] %v9250_v38  ;;  %v1208_v47 = vld [vmem:[#allocation5 + $0x70] sm:$0xff] }
 0x267   : > { %5788 = vmatpush1.bf16.msra.mxu0 %v9217_v27  ;;  %11102 = vst [vmem:[#allocation233_spill] sm:$0xff] %v9241_v59  ;;  %v1251_v27 = vld [vmem:[#allocation5 + $0x1c8] sm:$0xff] }
 0x268   : > { %5790 = vmatprep.subr.bf16.mxu0 %v9222_v56  ;;  %5696 = vmatpush1.bf16.msra.mxu1 %v9225_v54  ;;  %v1245_v56 = vld [vmem:[#allocation5 + $0x198] sm:$0xff] }
 0x269   : > { %5698 = vmatprep.subr.bf16.mxu1 %v9231_v55 }
 0x26b   : > { %5792 = vmatpush1.bf16.msra.mxu0 %v9229_v60  ;;  %v1239_v60 = vld [vmem:[#allocation5 + $0x168] sm:$0xff] }
 0x26c   : > { %5794 = vmatprep.subr.bf16.mxu0 %v9234_v31  ;;  %5700 = vmatpush1.bf16.msra.mxu1 %v9237_v20  ;;  %v1227_v31 = vld [vmem:[#allocation5 + $0x108] sm:$0xff] }
 0x26d   : > { %5702 = vmatprep.subr.bf16.mxu1 %v9250_v38 }
 0x26e   : > { %v7369_v37 = vpop.eup %7368 }
 0x26f   : > { %5796 = vmatpush1.bf16.msra.mxu0 %v9241_v59 }
 0x270   : > { %v1184_v32 = vpop.permute.xlu0 %1183  ;;  %5798 = vmatprep.subr.bf16.mxu0 %v7931_v5 }
 0x271   : > { %v1185_v39 = vsel %vm672_vm0, %v9040_v2, %v1184_v32  ;;  %v1209_v32 = vld [vmem:[#allocation5 + $0x78] sm:$0xff] }
 0x272   : > { %v9247_v25 = vadd.f32 %v1185_v39, %v1176_v34  ;;  %v1202_v34 = vld [vmem:[#allocation5 + $0x40] sm:$0xff]  ;;  %v1215_v39 = vld [vmem:[#allocation5 + $0xa8] sm:$0xff] }
 0x273   : > { %v9256_v59 = vpack.c.bf16 %v1202_v34, %v1196_v42  ;;  %v9274_v42 = vpack.c.bf16 %v1214_v28, %v1208_v47  ;;  %v1220_v34 = vld [vmem:[#allocation5 + $0xd0] sm:$0xff] }
 0x274   : > { %7370 = vtanh.f32 %v9247_v25  ;;  %v1232_v28 = vld [vmem:[#allocation5 + $0x130] sm:$0xff] }
 0x275   : > { %11104 = vst [vmem:[#allocation235_spill] sm:$0xff] %v9256_v59  ;;  %11105 = vst [vmem:[#allocation236_spill] sm:$0xff] %v9274_v42 }
 0x27e   : > { %v7371_v57 = vpop.eup %7370 }
 0x27f   : > { %v1193_v2 = vmul.f32 %v7371_v57, %v7369_v37  ;;  %v9268_v57 = vpack.c.bf16 %v1215_v39, %v1209_v32  ;;  %v1226_v32 = vld [vmem:[#allocation5 + $0x100] sm:$0xff]  ;;  %v1233_v39 = vld [vmem:[#allocation5 + $0x138] sm:$0xff] }
 0x280   : > { %v9286_v47 = vpack.c.bf16 %v1226_v32, %v1220_v34  ;;  %v9298_v34 = vpack.c.bf16 %v1251_v27, %v1245_v56  ;;  %v1244_v32 = vld [vmem:[#allocation5 + $0x190] sm:$0xff]  ;;  %v1269_v27 = vld [vmem:[#allocation5 + $0x258] sm:$0xff]  ;;  %v1275_v56 = vld [vmem:[#allocation5 + $0x288] sm:$0xff] }
 0x281   : > { %1699 = vrot.lane.b32.xlu1 %v1193_v2, %s7707_s12  ;;  %v1221_v2 = vld [vmem:[#allocation5 + $0xd8] sm:$0xff] }
 0x282   : > { %11106 = vst [vmem:[#allocation237_spill] sm:$0xff] %v9286_v47  ;;  %11109 = vst [vmem:[#allocation240_spill] sm:$0xff] %v9298_v34 }
 0x2b5   : > { %v1698_v12 = vpop.permute.xlu1 %1697 }
 0x2f3   : > { %v9258_v63 = vpop.permute.xlu1 %1699 }
 0x2f4   : > { %5239 = vmatprep.mubr.msk.f32.mxu1 %vm672_vm0, %v9258_v63  ;;  %5241 = vmatprep.mubr.msk.f32.mxu0 %vm672_vm0, %v9258_v63  ;;  %v9266_v37 = vsel %vm672_vm0, %v1698_v12, %v9258_v63  ;;  %v9280_v12 = vpack.c.bf16 %v1227_v31, %v1221_v2  ;;  %v9290_v31 = vpack.c.bf16 %v1239_v60, %v1233_v39  ;;  %v1238_v2 = vld [vmem:[#allocation5 + $0x160] sm:$0xff]  ;;  %v1257_v60 = vld [vmem:[#allocation5 + $0x1f8] sm:$0xff]  ;;  %v1263_v39 = vld [vmem:[#allocation5 + $0x228] sm:$0xff] }
 0x2f5   : > { %1770 = vmatmul.mubr.f32.vlgmr.msra.gmra.mrb[4].mxu1 %v9266_v37  ;;  %1912 = vmatmul.mubr.f32.vlgmr.msra.gmra.mrb[6].mxu0 %v9266_v37 }
 0x2f6   : > { %5704 = vmatpush1.bf16.msra.mxu1 %v9256_v59  ;;  %5800 = vmatpush1.bf16.msra.mxu0 %v7942_v9  ;;  %11107 = vst [vmem:[#allocation238_spill] sm:$0xff] %v9290_v31 }
 0x2f7   : > { %5240 = vmatprep.mubr.msk.f32.mxu1 %vm672_vm0, %v9258_v63  ;;  %5249 = vmatprep.mubr.msk.f32.mxu0 %vm672_vm0, %v9258_v63 }
 0x2f8   : > { %5706 = vmatprep.subr.bf16.mxu1 %v9268_v57  ;;  %5802 = vmatprep.subr.bf16.mxu0 %v7944_v10  ;;  %v9294_v10 = vpack.c.bf16 %v1238_v2, %v1232_v28  ;;  %v9306_v28 = vpack.c.bf16 %v1263_v39, %v1257_v60  ;;  %v1256_v2 = vld [vmem:[#allocation5 + $0x1f0] sm:$0xff]  ;;  %v1281_v60 = vld [vmem:[#allocation5 + $0x2b8] sm:$0xff]  ;;  %v1287_v39 = vld [vmem:[#allocation5 + $0x2e8] sm:$0xff] }
 0x2fa   : > { %5708 = vmatpush1.bf16.msra.mxu1 %v9274_v42  ;;  %5804 = vmatpush1.bf16.msra.mxu0 %v7960_v15  ;;  %11108 = vst [vmem:[#allocation239_spill] sm:$0xff] %v9294_v10  ;;  %11111 = vst [vmem:[#allocation242_spill] sm:$0xff] %v9306_v28 }
 0x2fb   : > { %5710 = vmatprep.subr.bf16.mxu1 %v9280_v12  ;;  %5806 = vmatprep.subr.bf16.mxu0 %v7963_v16  ;;  %v1250_v16 = vld [vmem:[#allocation5 + $0x1c0] sm:$0xff] }
 0x2fc   : > { %v9302_v15 = vpack.c.bf16 %v1250_v16, %v1244_v32  ;;  %v9314_v16 = vpack.c.bf16 %v1275_v56, %v1269_v27  ;;  %v1268_v32 = vld [vmem:[#allocation5 + $0x250] sm:$0xff]  ;;  %v1293_v27 = vld [vmem:[#allocation5 + $0x318] sm:$0xff]  ;;  %v1299_v56 = vld [vmem:[#allocation5 + $0x348] sm:$0xff] }
 0x2fe   : > { %5712 = vmatpush1.bf16.msra.mxu1 %v9286_v47  ;;  %5808 = vmatpush1.bf16.msra.mxu0 %v7978_v21  ;;  %11110 = vst [vmem:[#allocation241_spill] sm:$0xff] %v9302_v15  ;;  %11113 = vst [vmem:[#allocation244_spill] sm:$0xff] %v9314_v16 }
 0x2ff   : > { %5714 = vmatprep.subr.bf16.mxu1 %v9290_v31  ;;  %5810 = vmatprep.subr.bf16.mxu0 %v7981_v22  ;;  %v1262_v22 = vld [vmem:[#allocation5 + $0x220] sm:$0xff] }
 0x300   : > { %v9310_v21 = vpack.c.bf16 %v1262_v22, %v1256_v2  ;;  %v9322_v22 = vpack.c.bf16 %v1287_v39, %v1281_v60  ;;  %v1280_v2 = vld [vmem:[#allocation5 + $0x2b0] sm:$0xff]  ;;  %v1305_v60 = vld [vmem:[#allocation5 + $0x378] sm:$0xff]  ;;  %v1311_v39 = vld [vmem:[#allocation5 + $0x3a8] sm:$0xff] }
 0x302   : > { %5716 = vmatpush1.bf16.msra.mxu1 %v9294_v10  ;;  %5812 = vmatpush1.bf16.msra.mxu0 %v8002_v29  ;;  %11112 = vst [vmem:[#allocation243_spill] sm:$0xff] %v9310_v21  ;;  %11115 = vst [vmem:[#allocation246_spill] sm:$0xff] %v9322_v22 }
 0x303   : > { %5718 = vmatprep.subr.bf16.mxu1 %v9298_v34  ;;  %5814 = vmatprep.subr.bf16.mxu0 %v8013_v33  ;;  %v1274_v33 = vld [vmem:[#allocation5 + $0x280] sm:$0xff] }
 0x304   : > { %v9318_v29 = vpack.c.bf16 %v1274_v33, %v1268_v32  ;;  %v9330_v33 = vpack.c.bf16 %v1299_v56, %v1293_v27  ;;  %v1292_v32 = vld [vmem:[#allocation5 + $0x310] sm:$0xff]  ;;  %v1317_v27 = vld [vmem:[#allocation5 + $0x3d8] sm:$0xff]  ;;  %v1323_v56 = vld [vmem:[#allocation5 + $0x408] sm:$0xff] }
 0x306   : > { %5720 = vmatpush1.bf16.msra.mxu1 %v9302_v15  ;;  %5816 = vmatpush1.bf16.msra.mxu0 %v8046_v44  ;;  %11114 = vst [vmem:[#allocation245_spill] sm:$0xff] %v9318_v29  ;;  %11117 = vst [vmem:[#allocation248_spill] sm:$0xff] %v9330_v33 }
 0x307   : > { %5722 = vmatprep.subr.bf16.mxu1 %v9306_v28  ;;  %5818 = vmatprep.subr.bf16.mxu0 %v8058_v48  ;;  %v1286_v48 = vld [vmem:[#allocation5 + $0x2e0] sm:$0xff] }
 0x308   : > { %v9326_v44 = vpack.c.bf16 %v1286_v48, %v1280_v2  ;;  %v9338_v48 = vpack.c.bf16 %v1311_v39, %v1305_v60  ;;  %v1304_v2 = vld [vmem:[#allocation5 + $0x370] sm:$0xff]  ;;  %v1329_v60 = vld [vmem:[#allocation5 + $0x438] sm:$0xff]  ;;  %v1335_v39 = vld [vmem:[#allocation5 + $0x468] sm:$0xff] }
 0x30a   : > { %5724 = vmatpush1.bf16.msra.mxu1 %v9310_v21  ;;  %5820 = vmatpush1.bf16.msra.mxu0 %v8091_v58  ;;  %11116 = vst [vmem:[#allocation247_spill] sm:$0xff] %v9326_v44  ;;  %11119 = vst [vmem:[#allocation250_spill] sm:$0xff] %v9338_v48 }
 0x30b   : > { %5726 = vmatprep.subr.bf16.mxu1 %v9314_v16  ;;  %5822 = vmatprep.subr.bf16.mxu0 %v8100_v61  ;;  %v1298_v61 = vld [vmem:[#allocation5 + $0x340] sm:$0xff] }
 0x30c   : > { %v9334_v58 = vpack.c.bf16 %v1298_v61, %v1292_v32  ;;  %v9346_v61 = vpack.c.bf16 %v1323_v56, %v1317_v27  ;;  %v1316_v32 = vld [vmem:[#allocation5 + $0x3d0] sm:$0xff] }
 0x30d   : > { %v11128_v56 = vld [vmem:[#allocation82_spill] sm:$0xff] }
 0x30e   : > { %5728 = vmatpush1.bf16.msra.mxu1 %v9318_v29  ;;  %5824 = vmatpush1.bf16.msra.mxu0 %v8123_v6  ;;  %11118 = vst [vmem:[#allocation249_spill] sm:$0xff] %v9334_v58  ;;  %11121 = vst [vmem:[#allocation252_spill] sm:$0xff] %v9346_v61 }
 0x30f   : > { %5730 = vmatprep.subr.bf16.mxu1 %v9322_v22  ;;  %5826 = vmatprep.subr.bf16.mxu0 %v8129_v8  ;;  %v1310_v8 = vld [vmem:[#allocation5 + $0x3a0] sm:$0xff] }
 0x310   : > { %v9342_v6 = vpack.c.bf16 %v1310_v8, %v1304_v2  ;;  %v9354_v8 = vpack.c.bf16 %v1335_v39, %v1329_v60  ;;  %v1328_v2 = vld [vmem:[#allocation5 + $0x430] sm:$0xff]  ;;  %v11131_v39 = vld [vmem:[#allocation60_spill] sm:$0xff] }
 0x311   : > { %v11130_v60 = vld [vmem:[#allocation83_spill] sm:$0xff] }
 0x312   : > { %5732 = vmatpush1.bf16.msra.mxu1 %v9326_v44  ;;  %5828 = vmatpush1.bf16.msra.mxu0 %v8149_v17  ;;  %11120 = vst [vmem:[#allocation251_spill] sm:$0xff] %v9342_v6  ;;  %11123 = vst [vmem:[#allocation254_spill] sm:$0xff] %v9354_v8 }
 0x313   : > { %5734 = vmatprep.subr.bf16.mxu1 %v9330_v33  ;;  %5830 = vmatprep.subr.bf16.mxu0 %v8155_v19  ;;  %v1322_v19 = vld [vmem:[#allocation5 + $0x400] sm:$0xff] }
 0x314   : > { %v9350_v17 = vpack.c.bf16 %v1322_v19, %v1316_v32  ;;  %v11125_v19 = vld [vmem:[#allocation57_spill] sm:$0xff]  ;;  %v11129_v32 = vld [vmem:[#allocation59_spill] sm:$0xff] }
 0x316   : > { %5736 = vmatpush1.bf16.msra.mxu1 %v9334_v58  ;;  %5832 = vmatpush1.bf16.msra.mxu0 %v8172_v26  ;;  %11122 = vst [vmem:[#allocation253_spill] sm:$0xff] %v9350_v17 }
 0x317   : > { %5738 = vmatprep.subr.bf16.mxu1 %v9338_v48  ;;  %5834 = vmatprep.subr.bf16.mxu0 %v8182_v30  ;;  %v1334_v30 = vld [vmem:[#allocation5 + $0x460] sm:$0xff] }
 0x318   : > { %v9358_v27 = vpack.c.bf16 %v1334_v30, %v1328_v2  ;;  %v11126_v30 = vld [vmem:[#allocation81_spill] sm:$0xff]  ;;  %v11132_v2 = vld [vmem:[#allocation84_spill] sm:$0xff] }
 0x31a   : > { %5740 = vmatpush1.bf16.msra.mxu1 %v9342_v6  ;;  %5836 = vmatpush1.bf16.msra.mxu0 %v8210_v45  ;;  %11124 = vst [vmem:[#allocation255_spill] sm:$0xff] %v9358_v27 }
 0x31b   : > { %5742 = vmatprep.subr.bf16.mxu1 %v9346_v61  ;;  %5838 = vmatprep.subr.bf16.mxu0 %v8223_v51 }
 0x31e   : > { %5744 = vmatpush1.bf16.msra.mxu1 %v9350_v17  ;;  %5840 = vmatpush1.bf16.msra.mxu0 %v8255_v4 }
 0x31f   : > { %5746 = vmatprep.subr.bf16.mxu1 %v9354_v8  ;;  %5842 = vmatprep.subr.bf16.mxu0 %v8267_v14 }
 0x322   : > { %5748 = vmatpush1.bf16.msra.mxu1 %v9358_v27  ;;  %5844 = vmatpush1.bf16.msra.mxu0 %v8294_v35 }
 0x323   : > { %5846 = vmatprep.subr.bf16.mxu1 %v8297_v36  ;;  %5894 = vmatprep.subr.bf16.mxu0 %v8523_v13 }
 0x325   : > { %1841 = vmatmul.mubr.f32.vlgmr.msra.gmra.mrb[6].mxu1 %v9266_v37  ;;  %2114 = vmatmul.mubr.f32.vlgmr.msra.gmra.mrb[8].mxu0 %v9266_v37 }
 0x326   : > { %5848 = vmatpush1.bf16.msra.mxu1 %v8316_v50  ;;  %5250 = vmatprep.mubr.msk.f32.mxu1 %vm672_vm0, %v9258_v63 }
 0x327   : > { %5896 = vmatpush1.bf16.msra.mxu0 %v8538_v53  ;;  %5251 = vmatprep.mubr.msk.f32.mxu0 %vm672_vm0, %v9258_v63  ;;  %v11127_v63 = vld [vmem:[#allocation58_spill] sm:$0xff] }
 0x328   : > { %5850 = vmatprep.subr.bf16.mxu1 %v8319_v52  ;;  %5898 = vmatprep.subr.bf16.mxu0 %v8541_v1 }
 0x32a   : > { %5852 = vmatpush1.bf16.msra.mxu1 %v8336_v0 }
 0x32b   : > { %5900 = vmatpush1.bf16.msra.mxu0 %v8557_v46  ;;  %5854 = vmatprep.subr.bf16.mxu1 %v8340_v3 }
 0x32c   : > { %5902 = vmatprep.subr.bf16.mxu0 %v8561_v23  ;;  %v11133_v23 = vld [vmem:[#allocation61_spill] sm:$0xff] }
 0x32e   : > { %5856 = vmatpush1.bf16.msra.mxu1 %v8358_v24  ;;  %v11134_v24 = vld [vmem:[#allocation85_spill] sm:$0xff] }
 0x32f   : > { %5904 = vmatpush1.bf16.msra.mxu0 %v8576_v41  ;;  %5858 = vmatprep.subr.bf16.mxu1 %v11125_v19  ;;  %v11135_v41 = vld [vmem:[#allocation62_spill] sm:$0xff] }
 0x330   : > { %5906 = vmatprep.subr.bf16.mxu0 %v11126_v30  ;;  %v11136_v19 = vld [vmem:[#allocation86_spill] sm:$0xff]  ;;  %v11137_v30 = vld [vmem:[#allocation63_spill] sm:$0xff] }
 0x332   : > { %5860 = vmatpush1.bf16.msra.mxu1 %v11127_v63  ;;  %v11138_v63 = vld [vmem:[#allocation87_spill] sm:$0xff] }
 0x333   : > { %5908 = vmatpush1.bf16.msra.mxu0 %v11128_v56  ;;  %5862 = vmatprep.subr.bf16.mxu1 %v11129_v32  ;;  %v11139_v56 = vld [vmem:[#allocation64_spill] sm:$0xff] }
 0x334   : > { %5910 = vmatprep.subr.bf16.mxu0 %v11130_v60  ;;  %v11140_v32 = vld [vmem:[#allocation88_spill] sm:$0xff]  ;;  %v11141_v60 = vld [vmem:[#allocation65_spill] sm:$0xff] }
 0x336   : > { %5864 = vmatpush1.bf16.msra.mxu1 %v11131_v39  ;;  %v11142_v39 = vld [vmem:[#allocation89_spill] sm:$0xff] }
 0x337   : > { %5912 = vmatpush1.bf16.msra.mxu0 %v11132_v2  ;;  %5866 = vmatprep.subr.bf16.mxu1 %v11133_v23  ;;  %v11143_v2 = vld [vmem:[#allocation66_spill] sm:$0xff] }
 0x338   : > { %5914 = vmatprep.subr.bf16.mxu0 %v11134_v24  ;;  %v11144_v23 = vld [vmem:[#allocation90_spill] sm:$0xff]  ;;  %v11145_v24 = vld [vmem:[#allocation67_spill] sm:$0xff] }
 0x33a   : > { %5868 = vmatpush1.bf16.msra.mxu1 %v11135_v41  ;;  %v11146_v41 = vld [vmem:[#allocation91_spill] sm:$0xff] }
 0x33b   : > { %5916 = vmatpush1.bf16.msra.mxu0 %v11136_v19  ;;  %5870 = vmatprep.subr.bf16.mxu1 %v11137_v30  ;;  %v11147_v19 = vld [vmem:[#allocation68_spill] sm:$0xff] }
 0x33c   : > { %5918 = vmatprep.subr.bf16.mxu0 %v11138_v63  ;;  %v11148_v30 = vld [vmem:[#allocation92_spill] sm:$0xff]  ;;  %v11149_v63 = vld [vmem:[#allocation69_spill] sm:$0xff] }
 0x33e   : > { %5872 = vmatpush1.bf16.msra.mxu1 %v11139_v56  ;;  %v11150_v56 = vld [vmem:[#allocation93_spill] sm:$0xff] }
 0x33f   : > { %5920 = vmatpush1.bf16.msra.mxu0 %v11140_v32  ;;  %5874 = vmatprep.subr.bf16.mxu1 %v11141_v60  ;;  %v11151_v32 = vld [vmem:[#allocation70_spill] sm:$0xff] }
 0x340   : > { %5922 = vmatprep.subr.bf16.mxu0 %v11142_v39  ;;  %v11152_v60 = vld [vmem:[#allocation94_spill] sm:$0xff]  ;;  %v11153_v39 = vld [vmem:[#allocation71_spill] sm:$0xff] }
 0x342   : > { %5876 = vmatpush1.bf16.msra.mxu1 %v11143_v2  ;;  %v11154_v2 = vld [vmem:[#allocation95_spill] sm:$0xff] }
 0x343   : > { %5924 = vmatpush1.bf16.msra.mxu0 %v11144_v23  ;;  %5878 = vmatprep.subr.bf16.mxu1 %v11145_v24  ;;  %v11155_v23 = vld [vmem:[#allocation72_spill] sm:$0xff] }
 0x344   : > { %5926 = vmatprep.subr.bf16.mxu0 %v11146_v41  ;;  %v11156_v24 = vld [vmem:[#allocation96_spill] sm:$0xff]  ;;  %v11157_v41 = vld [vmem:[#allocation73_spill] sm:$0xff] }
 0x346   : > { %5880 = vmatpush1.bf16.msra.mxu1 %v11147_v19  ;;  %v11158_v19 = vld [vmem:[#allocation97_spill] sm:$0xff] }
 0x347   : > { %5928 = vmatpush1.bf16.msra.mxu0 %v11148_v30  ;;  %5882 = vmatprep.subr.bf16.mxu1 %v11149_v63  ;;  %v11159_v30 = vld [vmem:[#allocation74_spill] sm:$0xff] }
 0x348   : > { %5930 = vmatprep.subr.bf16.mxu0 %v11150_v56  ;;  %v11160_v63 = vld [vmem:[#allocation98_spill] sm:$0xff]  ;;  %v11161_v56 = vld [vmem:[#allocation39_spill] sm:$0xff] }
 0x34a   : > { %5884 = vmatpush1.bf16.msra.mxu1 %v11151_v32  ;;  %v11162_v32 = vld [vmem:[#allocation20_spill] sm:$0xff] }
 0x34b   : > { %5932 = vmatpush1.bf16.msra.mxu0 %v11152_v60  ;;  %5886 = vmatprep.subr.bf16.mxu1 %v11153_v39  ;;  %v11177_v39 = vld [vmem:[#allocation109_spill] sm:$0xff] }
 0x34c   : > { %5934 = vmatprep.subr.bf16.mxu0 %v11154_v2  ;;  %v11163_v2 = vld [vmem:[#allocation40_spill] sm:$0xff] }
 0x34e   : > { %5888 = vmatpush1.bf16.msra.mxu1 %v11155_v23  ;;  %v11164_v23 = vld [vmem:[#allocation22_spill] sm:$0xff] }
 0x34f   : > { %5936 = vmatpush1.bf16.msra.mxu0 %v11156_v24  ;;  %5890 = vmatprep.subr.bf16.mxu1 %v11157_v41  ;;  %v11165_v24 = vld [vmem:[#allocation42_spill] sm:$0xff]  ;;  %v11166_v41 = vld [vmem:[#allocation23_spill] sm:$0xff] }
 0x350   : > { %5938 = vmatprep.subr.bf16.mxu0 %v11158_v19  ;;  %v11176_v19 = vld [vmem:[#allocation33_spill] sm:$0xff] }
 0x352   : > { %5892 = vmatpush1.bf16.msra.mxu1 %v11159_v30  ;;  %v11170_v30 = vld [vmem:[#allocation27_spill] sm:$0xff] }
 0x353   : > { %5940 = vmatpush1.bf16.msra.mxu0 %v11160_v63  ;;  %5958 = vmatprep.subr.bf16.mxu1 %v11161_v56  ;;  %v11167_v63 = vld [vmem:[#allocation43_spill] sm:$0xff]  ;;  %v11168_v56 = vld [vmem:[#allocation25_spill] sm:$0xff] }
 0x354   : > { %5942 = vmatprep.subr.bf16.mxu0 %v11162_v32  ;;  %v11169_v32 = vld [vmem:[#allocation44_spill] sm:$0xff] }
 0x355   : > { %2185 = vmatmul.mubr.f32.vlgmr.msra.gmra.mrb[8].mxu1 %v9266_v37 }
 0x356   : > { %2256 = vmatmul.mubr.f32.vlgmr.msra.gmra.mrb[10].mxu0 %v9266_v37  ;;  %5960 = vmatpush1.bf16.msra.mxu1 %v11163_v2  ;;  %v11171_v37 = vld [vmem:[#allocation47_spill] sm:$0xff]  ;;  %v11172_v2 = vld [vmem:[#allocation29_spill] sm:$0xff] }
 0x357   : > { %5944 = vmatpush1.bf16.msra.mxu0 %v11164_v23  ;;  %5962 = vmatprep.subr.bf16.mxu1 %v11165_v24  ;;  %v11173_v23 = vld [vmem:[#allocation48_spill] sm:$0xff]  ;;  %v11174_v24 = vld [vmem:[#allocation31_spill] sm:$0xff] }
 0x358   : > { %5946 = vmatprep.subr.bf16.mxu0 %v11166_v41  ;;  %2331 = vmatprep.mubr.f32.mxu0 %v10944_v43  ;;  %v11175_v41 = vld [vmem:[#allocation51_spill] sm:$0xff] }
 0x359   : > { %2402 = vmatprep.mubr.f32.mxu1 %v10944_v43 }
 0x35a   : > { %5964 = vmatpush1.bf16.msra.mxu1 %v11167_v63  ;;  %v11178_v63 = vld [vmem:[#allocation99_spill] sm:$0xff] }
 0x35b   : > { %5948 = vmatpush1.bf16.msra.mxu0 %v11168_v56  ;;  %5966 = vmatprep.subr.bf16.mxu1 %v11169_v32  ;;  %v1918_v56 = vld [vmem:[#allocation7] sm:$0x3f]  ;;  %v11179_v32 = vsub.s32 1, %v8813_v49 }
 0x35c   : > { %5950 = vmatprep.subr.bf16.mxu0 %v11170_v30 }
 0x35d   : > { %v9442_v30 = vrot.slane %v1918_v56, %v11179_v32  ;;  %v11183_v32 = vsub.s32 0, %v8813_v49 }
 0x35e   : > { %5968 = vmatpush1.bf16.msra.mxu1 %v11171_v37 }
 0x35f   : > { %5952 = vmatpush1.bf16.msra.mxu0 %v11172_v2  ;;  %5970 = vmatprep.subr.bf16.mxu1 %v11173_v23  ;;  %11180 = vst [vmem:[#allocation256_spill] sm:$0xff] %v9442_v30  ;;  %v9452_v0 = vrot.slane %v1918_v56, %v11183_v32 }
 0x360   : > { %5954 = vmatprep.subr.bf16.mxu0 %v11174_v24 }
 0x361   : > { %11184 = vst [vmem:[#allocation258_spill] sm:$0xff] %v9452_v0 }
 0x362   : > { %5972 = vmatpush1.bf16.msra.mxu1 %v11175_v41  ;;  %v11181_v41 = vsub.s32 4, %v8813_v49 }
 0x363   : > { %5956 = vmatpush1.bf16.msra.mxu0 %v11176_v19  ;;  %5990 = vmatprep.subr.bf16.mxu1 %v11177_v39 }
 0x364   : > { %5974 = vmatprep.subr.bf16.mxu0 %v11178_v63  ;;  %v9447_v19 = vrot.slane %v1918_v56, %v11181_v41 }
 0x366   : > { %11182 = vst [vmem:[#allocation257_spill] sm:$0xff] %v9447_v19 }
 0x3c8   : > { %v1771_v37 = vpop.f32.mrb[4].mxu1  ;;  %v1913_v60 = vpop.f32.mrb[6].mxu0 }
 0x3c9   : > { %v1773_v2 = vpop.f32.mrb[5].mxu1  ;;  %v1915_v3 = vpop.f32.mrb[7].mxu0  ;;  %v1954_v39 = vadd.f32 %v9447_v19, %v1913_v60  ;;  %v1950_v1 = vadd.f32 %v9452_v0, %v1771_v37  ;;  %v11185_v60 = vsub.s32 3, %v8813_v49 }
 0x3ca   : > { %v1951_v23 = vadd.f32 %v9442_v30, %v1773_v2 }
 0x3cc   : > { %v5243_v24 = vmul.f32 -1.442695, %v1951_v23 }
 0x3ce   : > { %7372 = vpow2.f32 %v5243_v24  ;;  %v5242_v24 = vmul.f32 -1.442695, %v1950_v1  ;;  %v475_v1 = vld [vmem:[%s468_s15] sm:$0xff] }
 0x3cf   : > { %7374 = vtanh.f32 %v1954_v39  ;;  %vm476_vm1 = vcmp.gt.f32.partialorder %v475_v1, 0.0 }
 0x3d8   : > { %v7373_v63 = vpop.eup %7372 }
 0x3d9   : > { %v1972_v46 = vadd.f32 1.0, %v7373_v63  ;;  %v7375_v2 = vpop.eup %7374  ;;  %v9458_v63 = vrot.slane %v1918_v56, %v11185_v60 }
 0x3db   : > { %7376 = vrcp.f32 %v1972_v46  ;;  %11186 = vst [vmem:[#allocation259_spill] sm:$0xff] %v9458_v63 }
 0x3dc   : > { %7378 = vpow2.f32 %v5242_v24 }
 0x3e5   : > { %v7377_v23 = vpop.eup %7376 }
 0x3e6   : > { %v1991_v30 = vmul.f32 %v7377_v23, %v7375_v2  ;;  %v7379_v41 = vpop.eup %7378  ;;  %v473_v2 = vld [vmem:[%s464_s20] sm:$0xff] }
 0x3e7   : > { %v1971_v46 = vadd.f32 1.0, %v7379_v41  ;;  %vm474_vm2 = vcmp.gt.f32.partialorder %v473_v2, 0.0 }
 0x3e8   : > { %1996 = vrot.lane.b32.xlu1 %v1991_v30, %s7707_s12  ;;  %v7708_v30 = vmov 0  }
 0x3e9   : > { %7380 = vrcp.f32 %v1971_v46  ;;  %7343 = vset.pattern.permute.xlu1 %v7708_v30  ;;  %v2020_v37 = vsel %vm476_vm1, 1, %v7708_v30  ;;  %7342 = vset.pattern.permute.xlu0 %v7708_v30  ;;  %v2013_v60 = vsel %vm474_vm2, 1, %v7708_v30  ;;  %v11187_v46 = vsub.s32 2, %v8813_v49 }
 0x3ea   : > { %v5245_v30 = vmul.f32 -1.442695, %v1954_v39 }
 0x3ec   : > { %2022 = vperm.xlu1 %7343, %v2020_v37  }
 0x3f3   : > { %v7381_v24 = vpop.eup %7380 }
 0x3f8   : > { %v1842_v19 = vpop.f32.mrb[6].mxu1 }
 0x3f9   : > { %v1844_v52 = vpop.f32.mrb[7].mxu1 }
 0x3fa   : > { %v1953_v32 = vadd.f32 %v9458_v63, %v1844_v52  ;;  %v11189_v63 = vsub.s32 5, %v8813_v49  ;;  %v1988_v49 = vmul.f32 0.0, %v7377_v23 }
 0x3fc   : > { %7382 = vtanh.f32 %v1953_v32  ;;  %v9472_v32 = vrot.slane %v1918_v56, %v11187_v46  ;;  %v9477_v0 = vrot.slane %v1918_v56, %v11189_v63 }
 0x3fe   : > { %11188 = vst [vmem:[#allocation260_spill] sm:$0xff] %v9472_v32  ;;  %v1952_v1 = vadd.f32 %v9472_v32, %v1842_v19  ;;  %11190 = vst [vmem:[#allocation261_spill] sm:$0xff] %v9477_v0  ;;  %v1955_v53 = vadd.f32 %v9477_v0, %v1915_v3  ;;  %v11220_v0 = vld [vmem:[#allocation124_spill] sm:$0xff]  ;;  %v11224_v32 = vld [vmem:[#allocation126_spill] sm:$0xff] }
 0x400   : > { %v5244_v37 = vmul.f32 -1.442695, %v1952_v1  ;;  %v5246_v2 = vmul.f32 -1.442695, %v1955_v53 }
 0x402   : > { %7384 = vpow2.f32 %v5244_v37 }
 0x403   : > { %7386 = vpow2.f32 %v5246_v2 }
 0x406   : > { %v7383_v52 = vpop.eup %7382 }
 0x407   : > { %v1990_v41 = vmul.f32 %v7383_v52, %v7381_v24 }
 0x409   : > { %1994 = vrot.lane.b32.xlu0 %v1990_v41, %s7707_s12 }
 0x40c   : > { %v7385_v24 = vpop.eup %7384 }
 0x40d   : > { %2015 = vperm.xlu0 %7342, %v2013_v60   ;;  %v1973_v52 = vadd.f32 1.0, %v7385_v24  ;;  %v7387_v41 = vpop.eup %7386 }
 0x40e   : > { %v1975_v46 = vadd.f32 1.0, %v7387_v41 }
 0x40f   : > { %7388 = vrcp.f32 %v1973_v52 }
 0x410   : > { %7390 = vpow2.f32 %v5245_v30 }
 0x411   : > { %7392 = vrcp.f32 %v1975_v46 }
 0x419   : > { %v7389_v60 = vpop.eup %7388 }
 0x41a   : > { %v1989_v19 = vmul.f32 0.0, %v7389_v60  ;;  %v7391_v63 = vpop.eup %7390 }
 0x41b   : > { %v1974_v53 = vadd.f32 1.0, %v7391_v63  ;;  %v7393_v39 = vpop.eup %7392 }
 0x45a   : > { %v1997_v50 = vpop.permute.xlu1 %1996 }
 0x46b   : > { %v9489_v41 = vpop.permute.xlu1 %2022 }
 0x46c   : > { %11193 = vst [vmem:[#allocation264_spill] sm:$0xff] %v9489_v41  ;;  %vm2024_vm4 = vcmp.eq.s32.totalorder %v9489_v41, 1  ;;  %v11210_v41 = vld [vmem:[#allocation119_spill] sm:$0xff] }
 0x47b   : > { %v1995_v1 = vpop.permute.xlu0 %1994 }
 0x47c   : > { %v1998_v37 = vsel %vm672_vm0, %v1995_v1, %v1997_v50  ;;  %v9483_v3 = vadd.f32 %v1995_v1, %v1988_v49 }
 0x47d   : > { %v9481_v56 = vadd.f32 %v1998_v37, %v1989_v19 }
 0x47e   : > { %11192 = vst [vmem:[#allocation263_spill] sm:$0xff] %v9483_v3 }
 0x47f   : > { %11191 = vst [vmem:[#allocation262_spill] sm:$0xff] %v9481_v56  ;;  %7394 = vtanh.f32 %v9481_v56  ;;  %v11217_v56 = vld [vmem:[#allocation147_spill] sm:$0xff] }
 0x480   : > { %7396 = vtanh.f32 %v9483_v3  ;;  %v11215_v3 = vld [vmem:[#allocation144_spill] sm:$0xff] }
 0x481   : > { %7398 = vrcp.f32 %v1974_v53  ;;  %v11196_v53 = vld [vmem:[#allocation100_spill] sm:$0xff] }
 0x489   : > { %v7395_v24 = vpop.eup %7394 }
 0x48a   : > { %v2006_v2 = vmul.f32 %v7395_v24, %v7393_v39  ;;  %v7397_v30 = vpop.eup %7396  ;;  %v11197_v39 = vld [vmem:[#allocation110_spill] sm:$0xff]  ;;  %v11198_v24 = vld [vmem:[#allocation101_spill] sm:$0xff] }
 0x48b   : > { %v7399_v50 = vpop.eup %7398 }
 0x48c   : > { %v2007_v52 = vmax.f32 %v2006_v2, 0.0  ;;  %v2005_v23 = vmul.f32 %v7399_v50, %v7397_v30  ;;  %v9491_v60 = vpop.permute.xlu0 %2015  ;;  %v11200_v50 = vld [vmem:[#allocation102_spill] sm:$0xff] }
 0x48d   : > { %11194 = vst [vmem:[#allocation265_spill] sm:$0xff] %v9491_v60  ;;  %vm2017_vm3 = vcmp.eq.s32.totalorder %v9491_v60, 1  ;;  %v11211_v60 = vld [vmem:[#allocation140_spill] sm:$0xff] }
 0x48e   : > { %2009 = vrot.lane.b32.xlu1 %v2007_v52, %s7707_s12 }
 0x492   : > { %2539 = vrot.lane.b32.xlu1 %v2005_v23, %s7707_s12 }
 0x500   : > { %v2010_v46 = vpop.permute.xlu1 %2009 }
 0x501   : > { %v2012_v19 = vsub.f32 %v2005_v23, %v2010_v46  ;;  %v11203_v46 = vld [vmem:[#allocation113_spill] sm:$0xff] }
 0x503   : > { %v2018_v1 = vsel %vm2017_vm3, %v2012_v19, %v2005_v23  ;;  %v11202_v23 = vld [vmem:[#allocation103_spill] sm:$0xff]  ;;  %v11204_v19 = vld [vmem:[#allocation104_spill] sm:$0xff] }
 0x504   : > { %v2019_v37 = vadd.f32 %v2018_v1, %v2007_v52  ;;  %v11199_v52 = vld [vmem:[#allocation111_spill] sm:$0xff] }
 0x506   : > { %v9499_v49 = vsel %vm2024_vm4, %v2019_v37, %v2018_v1  ;;  %v11205_v1 = vld [vmem:[#allocation114_spill] sm:$0xff]  ;;  %v11206_v37 = vld [vmem:[#allocation105_spill] sm:$0xff] }
 0x507   : > { %11195 = vst [vmem:[#allocation266_spill] sm:$0xff] %v9499_v49  ;;  %2263 = vrot.lane.b32.xlu0 %v9499_v49, %s7707_s12  ;;  %v11207_v49 = vld [vmem:[#allocation115_spill] sm:$0xff] }
 0x50b   : > { %2541 = vrot.lane.b32.xlu0 %v2006_v2, %s7707_s12  ;;  %v11201_v2 = vld [vmem:[#allocation112_spill] sm:$0xff] }
 0x579   : > { %v2264_v63 = vpop.permute.xlu0 %2263 }
 0x57a   : > { %5252 = vmatmul.mubr.msk.f32.vlgmr.msra.gmra.mrb[8].mxu0 %vm672_vm0, %v2264_v63  ;;  %5253 = vmatmul.mubr.msk.f32.vlgmr.msra.gmra.mrb[8].mxu1 %vm672_vm0, %v2264_v63 }
 0x57b   : > { %5976 = vmatpush1.bf16.msra.mxu0 %v11196_v53  ;;  %5992 = vmatpush1.bf16.msra.mxu1 %v11197_v39  ;;  %v11209_v39 = vld [vmem:[#allocation118_spill] sm:$0xff] }
 0x57c   : > { %5978 = vmatprep.subr.bf16.mxu0 %v11198_v24  ;;  %5994 = vmatprep.subr.bf16.mxu1 %v11199_v52  ;;  %v11208_v52 = vld [vmem:[#allocation106_spill] sm:$0xff] }
 0x57d   : > { %v2542_v30 = vpop.permute.xlu0 %2541  ;;  %2473 = vmatprep.mubr.f32.mxu0 %v10944_v43 }
 0x57e   : > { %5260 = vmatprep.mubr.msk.f32.mxu1 %vm672_vm0, %v2542_v30 }
 0x57f   : > { %5980 = vmatpush1.bf16.msra.mxu0 %v11200_v50  ;;  %5996 = vmatpush1.bf16.msra.mxu1 %v11201_v2  ;;  %v11212_v2 = vld [vmem:[#allocation120_spill] sm:$0xff] }
 0x580   : > { %5982 = vmatprep.subr.bf16.mxu0 %v11202_v23  ;;  %5998 = vmatprep.subr.bf16.mxu1 %v11203_v46  ;;  %v11213_v46 = vld [vmem:[#allocation143_spill] sm:$0xff] }
 0x583   : > { %5984 = vmatpush1.bf16.msra.mxu0 %v11204_v19  ;;  %6000 = vmatpush1.bf16.msra.mxu1 %v11205_v1  ;;  %v11214_v1 = vld [vmem:[#allocation121_spill] sm:$0xff] }
 0x584   : > { %5986 = vmatprep.subr.bf16.mxu0 %v11206_v37  ;;  %6002 = vmatprep.subr.bf16.mxu1 %v11207_v49  ;;  %v11216_v49 = vld [vmem:[#allocation122_spill] sm:$0xff] }
 0x587   : > { %5988 = vmatpush1.bf16.msra.mxu0 %v11208_v52  ;;  %6004 = vmatpush1.bf16.msra.mxu1 %v11209_v39  ;;  %v11218_v39 = vld [vmem:[#allocation123_spill] sm:$0xff] }
 0x588   : > { %6006 = vmatprep.subr.bf16.mxu1 %v11210_v41  ;;  %6038 = vmatprep.subr.bf16.mxu0 %v11211_v60  ;;  %v11219_v41 = vld [vmem:[#allocation148_spill] sm:$0xff] }
 0x58a   : > { %5254 = vmatmul.mubr.msk.f32.vlgmr.msra.gmra.mrb[10].mxu0 %vm672_vm0, %v2264_v63  ;;  %v11221_v63 = vld [vmem:[#allocation151_spill] sm:$0xff] }
 0x58b   : > { %6008 = vmatpush1.bf16.msra.mxu1 %v11212_v2  ;;  %6040 = vmatpush1.bf16.msra.mxu0 %v11213_v46  ;;  %v11222_v2 = vld [vmem:[#allocation125_spill] sm:$0xff]  ;;  %v11223_v46 = vld [vmem:[#allocation152_spill] sm:$0xff] }
 0x58c   : > { %5261 = vmatprep.mubr.msk.f32.mxu0 %vm672_vm0, %v2542_v30  ;;  %6010 = vmatprep.subr.bf16.mxu1 %v11214_v1  ;;  %v11225_v1 = vld [vmem:[#allocation155_spill] sm:$0xff] }
 0x58d   : > { %6042 = vmatprep.subr.bf16.mxu0 %v11215_v3  ;;  %v11226_v3 = vld [vmem:[#allocation127_spill] sm:$0xff] }
 0x58f   : > { %6012 = vmatpush1.bf16.msra.mxu1 %v11216_v49  ;;  %6044 = vmatpush1.bf16.msra.mxu0 %v11217_v56  ;;  %v11227_v49 = vld [vmem:[#allocation156_spill] sm:$0xff] }
 0x590   : > { %6014 = vmatprep.subr.bf16.mxu1 %v11218_v39  ;;  %6046 = vmatprep.subr.bf16.mxu0 %v11219_v41  ;;  %v11228_v56 = vld [vmem:[#allocation128_spill] sm:$0xff]  ;;  %v11229_v39 = vld [vmem:[#allocation159_spill] sm:$0xff]  ;;  %v11230_v41 = vld [vmem:[#allocation129_spill] sm:$0xff] }
 0x593   : > { %6016 = vmatpush1.bf16.msra.mxu1 %v11220_v0  ;;  %6048 = vmatpush1.bf16.msra.mxu0 %v11221_v63  ;;  %v11231_v0 = vld [vmem:[#allocation160_spill] sm:$0xff]  ;;  %v11232_v63 = vld [vmem:[#allocation130_spill] sm:$0xff] }
 0x594   : > { %6018 = vmatprep.subr.bf16.mxu1 %v11222_v2  ;;  %6050 = vmatprep.subr.bf16.mxu0 %v11223_v46  ;;  %v11233_v2 = vld [vmem:[#allocation163_spill] sm:$0xff] }
 0x595   : > { %v11234_v46 = vld [vmem:[#allocation131_spill] sm:$0xff] }
 0x597   : > { %6020 = vmatpush1.bf16.msra.mxu1 %v11224_v32  ;;  %6052 = vmatpush1.bf16.msra.mxu0 %v11225_v1  ;;  %v11235_v32 = vld [vmem:[#allocation164_spill] sm:$0xff]  ;;  %v11236_v1 = vld [vmem:[#allocation133_spill] sm:$0xff] }
 0x598   : > { %6022 = vmatprep.subr.bf16.mxu1 %v11226_v3  ;;  %6054 = vmatprep.subr.bf16.mxu0 %v11227_v49  ;;  %v11237_v3 = vld [vmem:[#allocation166_spill] sm:$0xff]  ;;  %v11238_v49 = vld [vmem:[#allocation135_spill] sm:$0xff] }
 0x59b   : > { %6024 = vmatpush1.bf16.msra.mxu1 %v11228_v56  ;;  %6056 = vmatpush1.bf16.msra.mxu0 %v11229_v39  ;;  %v11239_v56 = vld [vmem:[#allocation167_spill] sm:$0xff]  ;;  %v11240_v39 = vld [vmem:[#allocation138_spill] sm:$0xff] }
 0x59c   : > { %6026 = vmatprep.subr.bf16.mxu1 %v11230_v41  ;;  %6058 = vmatprep.subr.bf16.mxu0 %v11231_v0  ;;  %v11241_v41 = vld [vmem:[#allocation168_spill] sm:$0xff]  ;;  %v2540_v0 = vpop.permute.xlu1 %2539 }
 0x59f   : > { %6028 = vmatpush1.bf16.msra.mxu1 %v11232_v63  ;;  %6060 = vmatpush1.bf16.msra.mxu0 %v11233_v2  ;;  %v11242_v63 = vld [vmem:[#allocation169_spill] sm:$0xff]  ;;  %v11243_v2 = vld [vmem:[#allocation132_spill] sm:$0xff] }
 0x5a0   : > { %6030 = vmatprep.subr.bf16.mxu1 %v11234_v46  ;;  %6062 = vmatprep.subr.bf16.mxu0 %v11235_v32  ;;  %v2543_v46 = vsel %vm672_vm0, %v2540_v0, %v2542_v30  ;;  %v11244_v32 = vld [vmem:[#allocation170_spill] sm:$0xff] }
 0x5a1   : > { %v11252_v0 = vld [vmem:[#allocation178_spill] sm:$0xff] }
 0x5a3   : > { %6032 = vmatpush1.bf16.msra.mxu1 %v11236_v1  ;;  %6064 = vmatpush1.bf16.msra.mxu0 %v11237_v3  ;;  %v11245_v1 = vld [vmem:[#allocation134_spill] sm:$0xff]  ;;  %v11253_v3 = vld [vmem:[#allocation141_spill] sm:$0xff] }
 0x5a4   : > { %6034 = vmatprep.subr.bf16.mxu1 %v11238_v49  ;;  %6066 = vmatprep.subr.bf16.mxu0 %v11239_v56  ;;  %v11246_v49 = vld [vmem:[#allocation172_spill] sm:$0xff] }
 0x5a5   : > { %v11247_v56 = vld [vmem:[#allocation136_spill] sm:$0xff] }
 0x5a7   : > { %6036 = vmatpush1.bf16.msra.mxu1 %v11240_v39  ;;  %6068 = vmatpush1.bf16.msra.mxu0 %v11241_v41  ;;  %v11248_v39 = vld [vmem:[#allocation174_spill] sm:$0xff]  ;;  %v11249_v41 = vld [vmem:[#allocation137_spill] sm:$0xff] }
 0x5a8   : > { %6070 = vmatprep.subr.bf16.mxu0 %v11242_v63  ;;  %6086 = vmatprep.subr.bf16.mxu1 %v11243_v2  ;;  %v11250_v63 = vld [vmem:[#allocation176_spill] sm:$0xff]  ;;  %v11251_v2 = vld [vmem:[#allocation139_spill] sm:$0xff] }
 0x5aa   : > { %2612 = vmatmul.mubr.f32.vlgmr.msra.gmra.mrb[10].mxu1 %v2543_v46 }
 0x5ab   : > { %6072 = vmatpush1.bf16.msra.mxu0 %v11244_v32  ;;  %6088 = vmatpush1.bf16.msra.mxu1 %v11245_v1  ;;  %v11254_v32 = vld [vmem:[#allocation180_spill] sm:$0xff]  ;;  %v11255_v1 = vld [vmem:[#allocation142_spill] sm:$0xff] }
 0x5ac   : > { %5262 = vmatprep.mubr.msk.f32.mxu1 %vm672_vm0, %v2542_v30  ;;  %6074 = vmatprep.subr.bf16.mxu0 %v11246_v49  ;;  %v11256_v30 = vld [vmem:[#allocation182_spill] sm:$0xff]  ;;  %v11257_v49 = vld [vmem:[#allocation145_spill] sm:$0xff] }
 0x5ad   : > { %6090 = vmatprep.subr.bf16.mxu1 %v11247_v56  ;;  %v11258_v56 = vld [vmem:[#allocation146_spill] sm:$0xff] }
 0x5af   : > { %6076 = vmatpush1.bf16.msra.mxu0 %v11248_v39  ;;  %6092 = vmatpush1.bf16.msra.mxu1 %v11249_v41  ;;  %v11259_v41 = vld [vmem:[#allocation149_spill] sm:$0xff] }
 0x5b0   : > { %6078 = vmatprep.subr.bf16.mxu0 %v11250_v63  ;;  %6094 = vmatprep.subr.bf16.mxu1 %v11251_v2  ;;  %v11260_v2 = vld [vmem:[#allocation150_spill] sm:$0xff] }
 0x5b3   : > { %6080 = vmatpush1.bf16.msra.mxu0 %v11252_v0  ;;  %6096 = vmatpush1.bf16.msra.mxu1 %v11253_v3  ;;  %v11261_v3 = vld [vmem:[#allocation153_spill] sm:$0xff] }
 0x5b4   : > { %6082 = vmatprep.subr.bf16.mxu0 %v11254_v32  ;;  %6098 = vmatprep.subr.bf16.mxu1 %v11255_v1  ;;  %v11262_v1 = vld [vmem:[#allocation154_spill] sm:$0xff] }
 0x5b7   : > { %6084 = vmatpush1.bf16.msra.mxu0 %v11256_v30  ;;  %6100 = vmatpush1.bf16.msra.mxu1 %v11257_v49  ;;  %v11264_v49 = vld [vmem:[#allocation158_spill] sm:$0xff] }
 0x5b8   : > { %6102 = vmatprep.subr.bf16.mxu1 %v11258_v56  ;;  %6182 = vmatprep.subr.bf16.mxu0 %v9250_v38  ;;  %v11263_v56 = vld [vmem:[#allocation157_spill] sm:$0xff] }
 0x5ba   : > { %2683 = vmatmul.mubr.f32.vlgmr.msra.gmra.mrb[12].mxu0 %v2543_v46 }
 0x5bb   : > { %6104 = vmatpush1.bf16.msra.mxu1 %v11259_v41  ;;  %6184 = vmatpush1.bf16.msra.mxu0 %v9256_v59  ;;  %v11265_v41 = vld [vmem:[#allocation161_spill] sm:$0xff] }
 0x5bc   : > { %6106 = vmatprep.subr.bf16.mxu1 %v11260_v2  ;;  %6186 = vmatprep.subr.bf16.mxu0 %v9268_v57  ;;  %v11266_v2 = vld [vmem:[#allocation162_spill] sm:$0xff] }
 0x5bf   : > { %6108 = vmatpush1.bf16.msra.mxu1 %v11261_v3  ;;  %6188 = vmatpush1.bf16.msra.mxu0 %v9274_v42  ;;  %v11267_v3 = vld [vmem:[#allocation165_spill] sm:$0xff] }
 0x5c0   : > { %6110 = vmatprep.subr.bf16.mxu1 %v11262_v1  ;;  %6190 = vmatprep.subr.bf16.mxu0 %v9280_v12  ;;  %v11268_v1 = vld [vmem:[#allocation173_spill] sm:$0xff] }
 0x5c3   : > { %6112 = vmatpush1.bf16.msra.mxu1 %v11263_v56  ;;  %6192 = vmatpush1.bf16.msra.mxu0 %v9286_v47  ;;  %v11269_v56 = vld [vmem:[#allocation175_spill] sm:$0xff] }
 0x5c4   : > { %6114 = vmatprep.subr.bf16.mxu1 %v11264_v49  ;;  %6194 = vmatprep.subr.bf16.mxu0 %v9290_v31  ;;  %v11270_v49 = vld [vmem:[#allocation177_spill] sm:$0xff] }
 0x5c7   : > { %6116 = vmatpush1.bf16.msra.mxu1 %v11265_v41  ;;  %6196 = vmatpush1.bf16.msra.mxu0 %v9294_v10  ;;  %v11271_v41 = vld [vmem:[#allocation179_spill] sm:$0xff] }
 0x5c8   : > { %6118 = vmatprep.subr.bf16.mxu1 %v11266_v2  ;;  %6198 = vmatprep.subr.bf16.mxu0 %v9298_v34  ;;  %v11272_v2 = vld [vmem:[#allocation181_spill] sm:$0xff] }
 0x5cb   : > { %6120 = vmatpush1.bf16.msra.mxu1 %v11267_v3  ;;  %6200 = vmatpush1.bf16.msra.mxu0 %v9302_v15  ;;  %v11273_v3 = vld [vmem:[#allocation183_spill] sm:$0xff] }
 0x5cc   : > { %6122 = vmatprep.subr.bf16.mxu1 %v11268_v1  ;;  %6202 = vmatprep.subr.bf16.mxu0 %v9306_v28  ;;  %v11274_v1 = vld [vmem:[#allocation184_spill] sm:$0xff] }
 0x5cf   : > { %6124 = vmatpush1.bf16.msra.mxu1 %v11269_v56  ;;  %6204 = vmatpush1.bf16.msra.mxu0 %v9310_v21  ;;  %v11286_v56 = vld [vmem:[#allocation212_spill] sm:$0xff] }
 0x5d0   : > { %6126 = vmatprep.subr.bf16.mxu1 %v11270_v49  ;;  %6206 = vmatprep.subr.bf16.mxu0 %v9314_v16  ;;  %v11275_v49 = vld [vmem:[#allocation186_spill] sm:$0xff] }
 0x5d3   : > { %6128 = vmatpush1.bf16.msra.mxu1 %v11271_v41  ;;  %6208 = vmatpush1.bf16.msra.mxu0 %v9318_v29  ;;  %v11276_v41 = vld [vmem:[#allocation188_spill] sm:$0xff] }
 0x5d4   : > { %6130 = vmatprep.subr.bf16.mxu1 %v11272_v2  ;;  %6210 = vmatprep.subr.bf16.mxu0 %v9322_v22  ;;  %v11277_v2 = vld [vmem:[#allocation190_spill] sm:$0xff] }
 0x5d7   : > { %6132 = vmatpush1.bf16.msra.mxu1 %v11273_v3  ;;  %6212 = vmatpush1.bf16.msra.mxu0 %v9326_v44  ;;  %v11284_v3 = vld [vmem:[#allocation207_spill] sm:$0xff] }
 0x5d8   : > { %6134 = vmatprep.subr.bf16.mxu1 %v11274_v1  ;;  %6214 = vmatprep.subr.bf16.mxu0 %v9330_v33  ;;  %v11278_v1 = vld [vmem:[#allocation195_spill] sm:$0xff] }
 0x5da   : > { %2754 = vmatmul.mubr.f32.vlgmr.msra.gmra.mrb[12].mxu1 %v2543_v46  ;;  %v11279_v46 = vld [vmem:[#allocation197_spill] sm:$0xff] }
 0x5db   : > { %6136 = vmatpush1.bf16.msra.mxu1 %v11275_v49  ;;  %6216 = vmatpush1.bf16.msra.mxu0 %v9334_v58  ;;  %v11280_v49 = vld [vmem:[#allocation199_spill] sm:$0xff] }
 0x5dc   : > { %6138 = vmatprep.subr.bf16.mxu1 %v11276_v41  ;;  %6218 = vmatprep.subr.bf16.mxu0 %v9338_v48  ;;  %v11281_v41 = vld [vmem:[#allocation201_spill] sm:$0xff] }
 0x5df   : > { %6140 = vmatpush1.bf16.msra.mxu1 %v11277_v2  ;;  %6220 = vmatpush1.bf16.msra.mxu0 %v9342_v6  ;;  %v11282_v2 = vld [vmem:[#allocation203_spill] sm:$0xff] }
 0x5e0   : > { %6142 = vmatprep.subr.bf16.mxu1 %v9113_v40  ;;  %6222 = vmatprep.subr.bf16.mxu0 %v9346_v61  ;;  %v11283_v40 = vld [vmem:[#allocation205_spill] sm:$0xff] }
 0x5e3   : > { %6144 = vmatpush1.bf16.msra.mxu1 %v11278_v1  ;;  %6224 = vmatpush1.bf16.msra.mxu0 %v9350_v17  ;;  %v11285_v1 = vld [vmem:[#allocation210_spill] sm:$0xff]  ;;  %v11294_v17 = vld [vmem:[#allocation117_spill] sm:$0xff] }
 0x5e4   : > { %6146 = vmatprep.subr.bf16.mxu1 %v11279_v46  ;;  %6226 = vmatprep.subr.bf16.mxu0 %v9354_v8  ;;  %v11289_v46 = vld [vmem:[#allocation224_spill] sm:$0xff] }
 0x5e7   : > { %6148 = vmatpush1.bf16.msra.mxu1 %v11280_v49  ;;  %6228 = vmatpush1.bf16.msra.mxu0 %v9358_v27  ;;  %v11287_v49 = vld [vmem:[#allocation220_spill] sm:$0xff] }
 0x5e8   : > { %6150 = vmatprep.subr.bf16.mxu1 %v11281_v41  ;;  %6278 = vmatprep.subr.bf16.mxu0 %v7931_v5  ;;  %v11288_v41 = vld [vmem:[#allocation222_spill] sm:$0xff] }
 0x5eb   : > { %6152 = vmatpush1.bf16.msra.mxu1 %v11282_v2 }
 0x5ec   : > { %6154 = vmatprep.subr.bf16.mxu1 %v11283_v40  ;;  %v11292_v40 = vld [vmem:[#allocation116_spill] sm:$0xff] }
 0x5ef   : > { %6156 = vmatpush1.bf16.msra.mxu1 %v11284_v3 }
 0x5f0   : > { %6158 = vmatprep.subr.bf16.mxu1 %v11285_v1  ;;  %v11291_v1 = vld [vmem:[#allocation107_spill] sm:$0xff] }
 0x5f3   : > { %6160 = vmatpush1.bf16.msra.mxu1 %v11286_v56  ;;  %v11290_v56 = vld [vmem:[#allocation185_spill] sm:$0xff] }
 0x5f4   : > { %6162 = vmatprep.subr.bf16.mxu1 %v9183_v18 }
 0x5f7   : > { %6164 = vmatpush1.bf16.msra.mxu1 %v9189_v11 }
 0x5f8   : > { %6166 = vmatprep.subr.bf16.mxu1 %v9195_v62 }
 0x5fb   : > { %6168 = vmatpush1.bf16.msra.mxu1 %v11287_v49 }
 0x5fc   : > { %6170 = vmatprep.subr.bf16.mxu1 %v11288_v41 }
 0x5ff   : > { %6172 = vmatpush1.bf16.msra.mxu1 %v11289_v46 }
 0x600   : > { %6174 = vmatprep.subr.bf16.mxu1 %v9219_v7  ;;  %v11293_v7 = vld [vmem:[#allocation108_spill] sm:$0xff] }
 0x603   : > { %6176 = vmatpush1.bf16.msra.mxu1 %v9225_v54 }
 0x604   : > { %6178 = vmatprep.subr.bf16.mxu1 %v9231_v55 }
 0x607   : > { %6180 = vmatpush1.bf16.msra.mxu1 %v9237_v20 }
 0x608   : > { %6230 = vmatprep.subr.bf16.mxu1 %v11290_v56 }
 0x64d   : > { %v2333_v18 = vpop.f32.mrb[8].mxu0  ;;  %v2404_v11 = vpop.f32.mrb[8].mxu1 }
 0x64e   : > { %v2480_v62 = vadd.f32 %v2333_v18, %v11291_v1  ;;  %v2335_v3 = vpop.f32.mrb[9].mxu0  ;;  %v2406_v49 = vpop.f32.mrb[9].mxu1 }
 0x64f   : > { %v2481_v41 = vadd.f32 %v2335_v3, %v11292_v40  ;;  %v2483_v54 = vadd.f32 %v2406_v49, %v11293_v7 }
 0x650   : > { %v5255_v2 = vmul.f32 -1.442695, %v2480_v62 }
 0x651   : > { %v5256_v46 = vmul.f32 -1.442695, %v2481_v41 }
 0x652   : > { %7400 = vpow2.f32 %v5255_v2 }
 0x653   : > { %7402 = vpow2.f32 %v5256_v46 }
 0x654   : > { %7404 = vtanh.f32 %v2483_v54 }
 0x65c   : > { %v7401_v5 = vpop.eup %7400 }
 0x65d   : > { %v2501_v55 = vadd.f32 1.0, %v7401_v5  ;;  %v2475_v27 = vpop.f32.mrb[10].mxu0  ;;  %v7403_v20 = vpop.eup %7402  ;;  %v11295_v5 = vld [vmem:[#allocation191_spill] sm:$0xff] }
 0x65e   : > { %v2477_v56 = vpop.f32.mrb[11].mxu0  ;;  %v2502_v8 = vadd.f32 1.0, %v7403_v20  ;;  %v2484_v18 = vadd.f32 %v2475_v27, %v11294_v17  ;;  %v7405_v1 = vpop.eup %7404  ;;  %v2482_v46 = vadd.f32 %v2404_v11, %v11295_v5  ;;  %v11296_v20 = vld [vmem:[#allocation208_spill] sm:$0xff] }
 0x65f   : > { %7406 = vrcp.f32 %v2501_v55  ;;  %v2485_v7 = vadd.f32 %v2477_v56, %v11296_v20 }
 0x660   : > { %7408 = vrcp.f32 %v2502_v8  ;;  %v5257_v54 = vmul.f32 -1.442695, %v2482_v46  ;;  %v5258_v55 = vmul.f32 -1.442695, %v2484_v18 }
 0x661   : > { %7410 = vtanh.f32 %v2484_v18  ;;  %v5259_v8 = vmul.f32 -1.442695, %v2485_v7 }
 0x662   : > { %7412 = vpow2.f32 %v5257_v54 }
 0x663   : > { %7414 = vpow2.f32 %v5258_v55 }
 0x664   : > { %7416 = vpow2.f32 %v5259_v8 }
 0x669   : > { %v7407_v3 = vpop.eup %7406 }
 0x66a   : > { %v2520_v62 = vmul.f32 %v7407_v3, %v7405_v1  ;;  %v7409_v41 = vpop.eup %7408 }
 0x66b   : > { %v7411_v2 = vpop.eup %7410 }
 0x66c   : > { %2524 = vrot.lane.b32.xlu1 %v2520_v62, %s7707_s12  ;;  %v2521_v49 = vmul.f32 %v7411_v2, %v7409_v41  ;;  %v7413_v27 = vpop.eup %7412  ;;  %v11297_v62 = vld [vmem:[#allocation171_spill] sm:$0xff] }
 0x66d   : > { %v2503_v17 = vadd.f32 1.0, %v7413_v27  ;;  %v7415_v1 = vpop.eup %7414  ;;  %v2518_v40 = vmul.f32 %v7409_v41, %v11297_v62  ;;  %v11300_v62 = vld [vmem:[#allocation14_spill] sm:$0xff] }
 0x66e   : > { %2526 = vrot.lane.b32.xlu0 %v2521_v49, %s7707_s12  ;;  %v2504_v3 = vadd.f32 1.0, %v7415_v1  ;;  %v7417_v2 = vpop.eup %7416  ;;  %v11298_v1 = vld [vmem:[#allocation187_spill] sm:$0xff] }
 0x66f   : > { %7418 = vrcp.f32 %v2503_v17  ;;  %v2505_v11 = vadd.f32 1.0, %v7417_v2  ;;  %v11301_v2 = vld [vmem:[#allocation192_spill] sm:$0xff] }
 0x670   : > { %7420 = vrcp.f32 %v2504_v3  ;;  %v11299_v3 = vld [vmem:[#allocation189_spill] sm:$0xff] }
 0x679   : > { %v7419_v49 = vpop.eup %7418 }
 0x67a   : > { %v2519_v56 = vmul.f32 %v7419_v49, %v9247_v25  ;;  %v7421_v17 = vpop.eup %7420  ;;  %v11302_v49 = vld [vmem:[#allocation15_spill] sm:$0xff] }
 0x6de   : > { %v2525_v61 = vpop.permute.xlu1 %2524 }
 0x6df   : > { %v9649_v6 = vadd.f32 %v2525_v61, %v2518_v40 }
 0x6e0   : > { %v2527_v18 = vpop.permute.xlu0 %2526 }
 0x6e1   : > { %7422 = vtanh.f32 %v9649_v6  ;;  %v2528_v7 = vsel %vm672_vm0, %v2525_v61, %v2527_v18  ;;  %v11305_v18 = vld [vmem:[#allocation196_spill] sm:$0xff] }
 0x6e2   : > { %v9654_v46 = vadd.f32 %v2528_v7, %v2519_v56  ;;  %7424 = vrcp.f32 %v2505_v11  ;;  %v11303_v11 = vld [vmem:[#allocation194_spill] sm:$0xff]  ;;  %v11304_v56 = vld [vmem:[#allocation16_spill] sm:$0xff]  ;;  %v11306_v7 = vld [vmem:[#allocation17_spill] sm:$0xff] }
 0x6e4   : > { %7426 = vtanh.f32 %v9654_v46 }
 0x6eb   : > { %v7423_v41 = vpop.eup %7422 }
 0x6ec   : > { %v2535_v54 = vmul.f32 %v7423_v41, %v7421_v17  ;;  %v7425_v40 = vpop.eup %7424  ;;  %v11307_v17 = vld [vmem:[#allocation198_spill] sm:$0xff] }
 0x6ed   : > { %v11308_v41 = vld [vmem:[#allocation18_spill] sm:$0xff] }
 0x6ee   : > { %2762 = vrot.lane.b32.xlu1 %v2535_v54, %s7707_s12  ;;  %v7427_v55 = vpop.eup %7426  ;;  %v11309_v54 = vld [vmem:[#allocation200_spill] sm:$0xff] }
 0x6ef   : > { %v2536_v27 = vmul.f32 %v7427_v55, %v7425_v40  ;;  %v11310_v40 = vld [vmem:[#allocation19_spill] sm:$0xff]  ;;  %v11311_v55 = vld [vmem:[#allocation202_spill] sm:$0xff] }
 0x6f1   : > { %2764 = vrot.lane.b32.xlu0 %v2536_v27, %s7707_s12  ;;  %v11312_v27 = vld [vmem:[#allocation21_spill] sm:$0xff] }
 0x760   : > { %v2763_v8 = vpop.permute.xlu1 %2762 }
 0x763   : > { %v2765_v25 = vpop.permute.xlu0 %2764 }
 0x764   : > { %5263 = vmatprep.mubr.msk.f32.mxu1 %vm672_vm0, %v2765_v25  ;;  %5264 = vmatprep.mubr.msk.f32.mxu0 %vm672_vm0, %v2765_v25  ;;  %v9662_v61 = vsel %vm672_vm0, %v2763_v8, %v2765_v25  ;;  %v11313_v8 = vld [vmem:[#allocation204_spill] sm:$0xff] }
 0x765   : > { %2835 = vmatmul.mubr.f32.vlgmr.msra.gmra.mrb[10].mxu1 %v9662_v61  ;;  %2906 = vmatmul.mubr.f32.vlgmr.msra.gmra.mrb[12].mxu0 %v9662_v61 }
 0x766   : > { %6232 = vmatpush1.bf16.msra.mxu1 %v11298_v1  ;;  %6280 = vmatpush1.bf16.msra.mxu0 %v7942_v9 }
 0x767   : > { %5265 = vmatprep.mubr.msk.f32.mxu1 %vm672_vm0, %v2765_v25  ;;  %5271 = vmatprep.mubr.msk.f32.mxu0 %vm672_vm0, %v2765_v25 }
 0x768   : > { %6234 = vmatprep.subr.bf16.mxu1 %v11299_v3  ;;  %6282 = vmatprep.subr.bf16.mxu0 %v11300_v62 }
 0x76a   : > { %6236 = vmatpush1.bf16.msra.mxu1 %v11301_v2  ;;  %6284 = vmatpush1.bf16.msra.mxu0 %v11302_v49 }
 0x76b   : > { %6238 = vmatprep.subr.bf16.mxu1 %v11303_v11  ;;  %6286 = vmatprep.subr.bf16.mxu0 %v11304_v56  ;;  %v11314_v11 = vld [vmem:[#allocation24_spill] sm:$0xff]  ;;  %v11315_v56 = vld [vmem:[#allocation206_spill] sm:$0xff] }
 0x76e   : > { %6240 = vmatpush1.bf16.msra.mxu1 %v11305_v18  ;;  %6288 = vmatpush1.bf16.msra.mxu0 %v11306_v7  ;;  %v11316_v18 = vld [vmem:[#allocation26_spill] sm:$0xff]  ;;  %v11317_v7 = vld [vmem:[#allocation209_spill] sm:$0xff] }
 0x76f   : > { %6242 = vmatprep.subr.bf16.mxu1 %v11307_v17  ;;  %6290 = vmatprep.subr.bf16.mxu0 %v11308_v41  ;;  %v11318_v17 = vld [vmem:[#allocation28_spill] sm:$0xff]  ;;  %v11319_v41 = vld [vmem:[#allocation211_spill] sm:$0xff] }
 0x772   : > { %6244 = vmatpush1.bf16.msra.mxu1 %v11309_v54  ;;  %6292 = vmatpush1.bf16.msra.mxu0 %v11310_v40  ;;  %v11320_v54 = vld [vmem:[#allocation30_spill] sm:$0xff]  ;;  %v11321_v40 = vld [vmem:[#allocation213_spill] sm:$0xff] }
 0x773   : > { %6246 = vmatprep.subr.bf16.mxu1 %v11311_v55  ;;  %6294 = vmatprep.subr.bf16.mxu0 %v11312_v27  ;;  %v11322_v55 = vld [vmem:[#allocation32_spill] sm:$0xff]  ;;  %v11323_v27 = vld [vmem:[#allocation215_spill] sm:$0xff] }
 0x776   : > { %6248 = vmatpush1.bf16.msra.mxu1 %v11313_v8  ;;  %6296 = vmatpush1.bf16.msra.mxu0 %v11314_v11  ;;  %v11324_v8 = vld [vmem:[#allocation34_spill] sm:$0xff]  ;;  %v11325_v11 = vld [vmem:[#allocation217_spill] sm:$0xff] }
 0x777   : > { %6250 = vmatprep.subr.bf16.mxu1 %v11315_v56  ;;  %6298 = vmatprep.subr.bf16.mxu0 %v11316_v18  ;;  %v11326_v56 = vld [vmem:[#allocation35_spill] sm:$0xff] }
 0x778   : > { %v11327_v18 = vld [vmem:[#allocation219_spill] sm:$0xff] }
 0x77a   : > { %6252 = vmatpush1.bf16.msra.mxu1 %v11317_v7  ;;  %6300 = vmatpush1.bf16.msra.mxu0 %v11318_v17  ;;  %v11328_v7 = vld [vmem:[#allocation36_spill] sm:$0xff]  ;;  %v11329_v17 = vld [vmem:[#allocation221_spill] sm:$0xff] }
 0x77b   : > { %6254 = vmatprep.subr.bf16.mxu1 %v11319_v41  ;;  %6302 = vmatprep.subr.bf16.mxu0 %v11320_v54  ;;  %v11330_v54 = vld [vmem:[#allocation223_spill] sm:$0xff] }
 0x77e   : > { %6256 = vmatpush1.bf16.msra.mxu1 %v11321_v40  ;;  %6304 = vmatpush1.bf16.msra.mxu0 %v11322_v55  ;;  %v11331_v40 = vld [vmem:[#allocation38_spill] sm:$0xff]  ;;  %v11332_v55 = vld [vmem:[#allocation225_spill] sm:$0xff] }
 0x77f   : > { %6258 = vmatprep.subr.bf16.mxu1 %v11323_v27  ;;  %6306 = vmatprep.subr.bf16.mxu0 %v11324_v8  ;;  %v11333_v8 = vld [vmem:[#allocation227_spill] sm:$0xff] }
 0x782   : > { %6260 = vmatpush1.bf16.msra.mxu1 %v11325_v11  ;;  %6308 = vmatpush1.bf16.msra.mxu0 %v11326_v56  ;;  %v11334_v56 = vld [vmem:[#allocation229_spill] sm:$0xff] }
 0x783   : > { %6262 = vmatprep.subr.bf16.mxu1 %v11327_v18  ;;  %6310 = vmatprep.subr.bf16.mxu0 %v11328_v7  ;;  %v11335_v7 = vld [vmem:[#allocation231_spill] sm:$0xff] }
 0x786   : > { %6264 = vmatpush1.bf16.msra.mxu1 %v11329_v17  ;;  %6312 = vmatpush1.bf16.msra.mxu0 %v8172_v26  ;;  %v11336_v26 = vld [vmem:[#allocation233_spill] sm:$0xff] }
 0x787   : > { %6266 = vmatprep.subr.bf16.mxu1 %v11330_v54  ;;  %6314 = vmatprep.subr.bf16.mxu0 %v11331_v40 }
 0x78a   : > { %6268 = vmatpush1.bf16.msra.mxu1 %v11332_v55  ;;  %6316 = vmatpush1.bf16.msra.mxu0 %v8210_v45 }
 0x78b   : > { %6270 = vmatprep.subr.bf16.mxu1 %v11333_v8  ;;  %6318 = vmatprep.subr.bf16.mxu0 %v8223_v51  ;;  %v11337_v51 = vld [vmem:[#allocation52_spill] sm:$0xff]  ;;  %v11347_v8 = vld [vmem:[#allocation57_spill] sm:$0xff] }
 0x78e   : > { %6272 = vmatpush1.bf16.msra.mxu1 %v11334_v56  ;;  %6320 = vmatpush1.bf16.msra.mxu0 %v8255_v4  ;;  %v11338_v4 = vld [vmem:[#allocation76_spill] sm:$0xff] }
 0x78f   : > { %6274 = vmatprep.subr.bf16.mxu1 %v11335_v7  ;;  %6322 = vmatprep.subr.bf16.mxu0 %v8267_v14  ;;  %v11339_v14 = vld [vmem:[#allocation53_spill] sm:$0xff]  ;;  %v11344_v7 = vld [vmem:[#allocation79_spill] sm:$0xff]  ;;  %v11345_v56 = vld [vmem:[#allocation56_spill] sm:$0xff] }
 0x792   : > { %6276 = vmatpush1.bf16.msra.mxu1 %v11336_v26  ;;  %6324 = vmatpush1.bf16.msra.mxu0 %v8294_v35  ;;  %v11340_v26 = vld [vmem:[#allocation77_spill] sm:$0xff]  ;;  %v11341_v35 = vld [vmem:[#allocation54_spill] sm:$0xff] }
 0x793   : > { %6326 = vmatprep.subr.bf16.mxu0 %v8297_v36  ;;  %6374 = vmatprep.subr.bf16.mxu1 %v8523_v13  ;;  %v11342_v36 = vld [vmem:[#allocation78_spill] sm:$0xff]  ;;  %v11343_v13 = vld [vmem:[#allocation55_spill] sm:$0xff] }
 0x795   : > { %2977 = vmatmul.mubr.f32.vlgmr.msra.gmra.mrb[12].mxu1 %v9662_v61  ;;  %3123 = vmatmul.mubr.f32.vlgmr.msra.gmra.mrb[14].mxu0 %v9662_v61 }
 0x796   : > { %6328 = vmatpush1.bf16.msra.mxu0 %v11337_v51  ;;  %5272 = vmatprep.mubr.msk.f32.mxu0 %vm672_vm0, %v2765_v25  ;;  %v11346_v51 = vld [vmem:[#allocation80_spill] sm:$0xff] }
 0x797   : > { %6376 = vmatpush1.bf16.msra.mxu1 %v11338_v4  ;;  %5273 = vmatprep.mubr.msk.f32.mxu1 %vm672_vm0, %v2765_v25  ;;  %v11348_v4 = vld [vmem:[#allocation81_spill] sm:$0xff]  ;;  %v11349_v25 = vld [vmem:[#allocation58_spill] sm:$0xff] }
 0x798   : > { %6330 = vmatprep.subr.bf16.mxu0 %v11339_v14  ;;  %6378 = vmatprep.subr.bf16.mxu1 %v11340_v26  ;;  %v11350_v14 = vld [vmem:[#allocation82_spill] sm:$0xff]  ;;  %v11351_v26 = vld [vmem:[#allocation59_spill] sm:$0xff] }
 0x79a   : > { %6332 = vmatpush1.bf16.msra.mxu0 %v11341_v35  ;;  %v11352_v35 = vld [vmem:[#allocation83_spill] sm:$0xff] }
 0x79b   : > { %6380 = vmatpush1.bf16.msra.mxu1 %v11342_v36  ;;  %6334 = vmatprep.subr.bf16.mxu0 %v11343_v13  ;;  %v11353_v36 = vld [vmem:[#allocation60_spill] sm:$0xff] }
 0x79c   : > { %6382 = vmatprep.subr.bf16.mxu1 %v11344_v7  ;;  %v11354_v13 = vld [vmem:[#allocation84_spill] sm:$0xff]  ;;  %v11355_v7 = vld [vmem:[#allocation61_spill] sm:$0xff] }
 0x79e   : > { %6336 = vmatpush1.bf16.msra.mxu0 %v11345_v56  ;;  %v11356_v56 = vld [vmem:[#allocation85_spill] sm:$0xff] }
 0x79f   : > { %6384 = vmatpush1.bf16.msra.mxu1 %v11346_v51  ;;  %6338 = vmatprep.subr.bf16.mxu0 %v11347_v8  ;;  %v11357_v51 = vld [vmem:[#allocation62_spill] sm:$0xff] }
 0x7a0   : > { %6386 = vmatprep.subr.bf16.mxu1 %v11348_v4  ;;  %v11358_v8 = vld [vmem:[#allocation86_spill] sm:$0xff]  ;;  %v11359_v4 = vld [vmem:[#allocation63_spill] sm:$0xff] }
 0x7a2   : > { %6340 = vmatpush1.bf16.msra.mxu0 %v11349_v25  ;;  %v11360_v25 = vld [vmem:[#allocation87_spill] sm:$0xff] }
 0x7a3   : > { %6388 = vmatpush1.bf16.msra.mxu1 %v11350_v14  ;;  %6342 = vmatprep.subr.bf16.mxu0 %v11351_v26  ;;  %v11361_v14 = vld [vmem:[#allocation64_spill] sm:$0xff] }
 0x7a4   : > { %6390 = vmatprep.subr.bf16.mxu1 %v11352_v35  ;;  %v11362_v26 = vld [vmem:[#allocation88_spill] sm:$0xff]  ;;  %v11363_v35 = vld [vmem:[#allocation65_spill] sm:$0xff] }
 0x7a6   : > { %6344 = vmatpush1.bf16.msra.mxu0 %v11353_v36  ;;  %v11364_v36 = vld [vmem:[#allocation89_spill] sm:$0xff] }
 0x7a7   : > { %6392 = vmatpush1.bf16.msra.mxu1 %v11354_v13  ;;  %6346 = vmatprep.subr.bf16.mxu0 %v11355_v7  ;;  %v11365_v13 = vld [vmem:[#allocation66_spill] sm:$0xff] }
 0x7a8   : > { %6394 = vmatprep.subr.bf16.mxu1 %v11356_v56  ;;  %v11366_v7 = vld [vmem:[#allocation90_spill] sm:$0xff]  ;;  %v11367_v56 = vld [vmem:[#allocation67_spill] sm:$0xff] }
 0x7aa   : > { %6348 = vmatpush1.bf16.msra.mxu0 %v11357_v51  ;;  %v11368_v51 = vld [vmem:[#allocation91_spill] sm:$0xff] }
 0x7ab   : > { %6396 = vmatpush1.bf16.msra.mxu1 %v11358_v8  ;;  %6350 = vmatprep.subr.bf16.mxu0 %v11359_v4  ;;  %v11369_v8 = vld [vmem:[#allocation68_spill] sm:$0xff] }
 0x7ac   : > { %6398 = vmatprep.subr.bf16.mxu1 %v11360_v25  ;;  %v11370_v4 = vld [vmem:[#allocation92_spill] sm:$0xff]  ;;  %v11371_v25 = vld [vmem:[#allocation69_spill] sm:$0xff] }
 0x7ae   : > { %6352 = vmatpush1.bf16.msra.mxu0 %v11361_v14  ;;  %v11372_v14 = vld [vmem:[#allocation93_spill] sm:$0xff] }
 0x7af   : > { %6400 = vmatpush1.bf16.msra.mxu1 %v11362_v26  ;;  %6354 = vmatprep.subr.bf16.mxu0 %v11363_v35  ;;  %v11373_v26 = vld [vmem:[#allocation70_spill] sm:$0xff] }
 0x7b0   : > { %6402 = vmatprep.subr.bf16.mxu1 %v11364_v36  ;;  %v11374_v35 = vld [vmem:[#allocation94_spill] sm:$0xff]  ;;  %v11375_v36 = vld [vmem:[#allocation71_spill] sm:$0xff] }
 0x7b2   : > { %6356 = vmatpush1.bf16.msra.mxu0 %v11365_v13  ;;  %v11376_v13 = vld [vmem:[#allocation95_spill] sm:$0xff] }
 0x7b3   : > { %6404 = vmatpush1.bf16.msra.mxu1 %v11366_v7  ;;  %6358 = vmatprep.subr.bf16.mxu0 %v11367_v56  ;;  %v11377_v7 = vld [vmem:[#allocation72_spill] sm:$0xff] }
 0x7b4   : > { %6406 = vmatprep.subr.bf16.mxu1 %v11368_v51  ;;  %v11378_v56 = vld [vmem:[#allocation96_spill] sm:$0xff]  ;;  %v11379_v51 = vld [vmem:[#allocation73_spill] sm:$0xff] }
 0x7b6   : > { %6360 = vmatpush1.bf16.msra.mxu0 %v11369_v8  ;;  %v11380_v8 = vld [vmem:[#allocation97_spill] sm:$0xff] }
 0x7b7   : > { %6408 = vmatpush1.bf16.msra.mxu1 %v11370_v4  ;;  %6362 = vmatprep.subr.bf16.mxu0 %v11371_v25  ;;  %v11381_v4 = vld [vmem:[#allocation74_spill] sm:$0xff] }
 0x7b8   : > { %6410 = vmatprep.subr.bf16.mxu1 %v11372_v14  ;;  %v11382_v25 = vld [vmem:[#allocation98_spill] sm:$0xff]  ;;  %v11383_v14 = vld [vmem:[#allocation20_spill] sm:$0xff] }
 0x7ba   : > { %6364 = vmatpush1.bf16.msra.mxu0 %v11373_v26  ;;  %v11384_v26 = vld [vmem:[#allocation99_spill] sm:$0xff] }
 0x7bb   : > { %6412 = vmatpush1.bf16.msra.mxu1 %v11374_v35  ;;  %6366 = vmatprep.subr.bf16.mxu0 %v11375_v36 }
 0x7bc   : > { %6414 = vmatprep.subr.bf16.mxu1 %v11376_v13  ;;  %v11385_v13 = vld [vmem:[#allocation22_spill] sm:$0xff] }
 0x7be   : > { %6368 = vmatpush1.bf16.msra.mxu0 %v11377_v7 }
 0x7bf   : > { %6416 = vmatpush1.bf16.msra.mxu1 %v11378_v56  ;;  %6370 = vmatprep.subr.bf16.mxu0 %v11379_v51  ;;  %v11386_v56 = vld [vmem:[#allocation23_spill] sm:$0xff] }
 0x7c0   : > { %6418 = vmatprep.subr.bf16.mxu1 %v11380_v8 }
 0x7c2   : > { %6372 = vmatpush1.bf16.msra.mxu0 %v11381_v4 }
 0x7c3   : > { %6420 = vmatpush1.bf16.msra.mxu1 %v11382_v25  ;;  %6422 = vmatprep.subr.bf16.mxu0 %v11383_v14  ;;  %v11387_v25 = vld [vmem:[#allocation25_spill] sm:$0xff] }
 0x7c4   : > { %6454 = vmatprep.subr.bf16.mxu1 %v11384_v26  ;;  %v11388_v26 = vld [vmem:[#allocation27_spill] sm:$0xff] }
 0x7c5   : > { %3194 = vmatmul.mubr.f32.vlgmr.msra.gmra.mrb[16].mxu0 %v9662_v61 }
 0x7c6   : > { %3265 = vmatmul.mubr.f32.vlgmr.msra.gmra.mrb[14].mxu1 %v9662_v61  ;;  %6424 = vmatpush1.bf16.msra.mxu0 %v11385_v13  ;;  %v11389_v61 = vld [vmem:[#allocation29_spill] sm:$0xff] }
 0x7c7   : > { %6456 = vmatpush1.bf16.msra.mxu1 %v11196_v53  ;;  %6426 = vmatprep.subr.bf16.mxu0 %v11386_v56  ;;  %v11390_v53 = vld [vmem:[#allocation31_spill] sm:$0xff] }
 0x7c8   : > { %6458 = vmatprep.subr.bf16.mxu1 %v11198_v24  ;;  %3340 = vmatprep.mubr.f32.mxu0 %v10944_v43  ;;  %v11391_v24 = vld [vmem:[#allocation33_spill] sm:$0xff]  ;;  %v11392_v56 = vld [vmem:[#allocation39_spill] sm:$0xff] }
 0x7c9   : > { %3482 = vmatprep.mubr.f32.mxu1 %v10944_v43 }
 0x7ca   : > { %6428 = vmatpush1.bf16.msra.mxu0 %v11387_v25  ;;  %v11393_v25 = vld [vmem:[#allocation258_spill] sm:$0xff] }
 0x7cb   : > { %6460 = vmatpush1.bf16.msra.mxu1 %v11200_v50  ;;  %6430 = vmatprep.subr.bf16.mxu0 %v11388_v26 }
 0x7cc   : > { %6462 = vmatprep.subr.bf16.mxu1 %v11202_v23 }
 0x7ce   : > { %6432 = vmatpush1.bf16.msra.mxu0 %v11389_v61 }
 0x7cf   : > { %6464 = vmatpush1.bf16.msra.mxu1 %v11204_v19  ;;  %6434 = vmatprep.subr.bf16.mxu0 %v11390_v53  ;;  %v11394_v19 = vld [vmem:[#allocation259_spill] sm:$0xff] }
 0x7d0   : > { %6466 = vmatprep.subr.bf16.mxu1 %v11206_v37 }
 0x7d2   : > { %6436 = vmatpush1.bf16.msra.mxu0 %v11391_v24  ;;  %v11395_v24 = vld [vmem:[#allocation256_spill] sm:$0xff] }
 0x7d3   : > { %6468 = vmatpush1.bf16.msra.mxu1 %v11208_v52  ;;  %6438 = vmatprep.subr.bf16.mxu0 %v11392_v56 }
 0x7d4   : > { %6518 = vmatprep.subr.bf16.mxu1 %v11211_v60 }
 0x838   : > { %v2836_v50 = vpop.f32.mrb[10].mxu1  ;;  %v2907_v26 = vpop.f32.mrb[12].mxu0 }
 0x839   : > { %v2983_v23 = vadd.f32 %v2836_v50, %v11393_v25  ;;  %v2838_v13 = vpop.f32.mrb[11].mxu1  ;;  %v2909_v61 = vpop.f32.mrb[13].mxu0 }
 0x83a   : > { %v2986_v53 = vadd.f32 %v2909_v61, %v11394_v19  ;;  %v2984_v52 = vadd.f32 %v2838_v13, %v11395_v24  ;;  %v11397_v13 = vld [vmem:[#allocation260_spill] sm:$0xff] }
 0x83b   : > { %v5266_v14 = vmul.f32 -1.442695, %v2983_v23  ;;  %v11396_v23 = vld [vmem:[#allocation257_spill] sm:$0xff]  ;;  %v2985_v61 = vadd.f32 %v2907_v26, %v11397_v13 }
 0x83c   : > { %v5267_v51 = vmul.f32 -1.442695, %v2984_v52 }
 0x83d   : > { %7428 = vpow2.f32 %v5266_v14  ;;  %v5268_v52 = vmul.f32 -1.442695, %v2985_v61  ;;  %v11400_v61 = vld [vmem:[#allocation263_spill] sm:$0xff] }
 0x83e   : > { %7430 = vtanh.f32 %v2986_v53 }
 0x847   : > { %v7429_v4 = vpop.eup %7428 }
 0x848   : > { %v3004_v37 = vadd.f32 1.0, %v7429_v4  ;;  %v7431_v8 = vpop.eup %7430 }
 0x84a   : > { %7432 = vrcp.f32 %v3004_v37 }
 0x84b   : > { %7434 = vpow2.f32 %v5267_v51 }
 0x854   : > { %v7433_v56 = vpop.eup %7432 }
 0x855   : > { %v3023_v60 = vmul.f32 %v7433_v56, %v7431_v8  ;;  %v7435_v50 = vpop.eup %7434  ;;  %v11398_v56 = vld [vmem:[#allocation261_spill] sm:$0xff] }
 0x856   : > { %v3005_v25 = vadd.f32 1.0, %v7435_v50 }
 0x857   : > { %3027 = vrot.lane.b32.xlu1 %v3023_v60, %s7707_s12 }
 0x858   : > { %7436 = vrcp.f32 %v3005_v25 }
 0x862   : > { %v7437_v4 = vpop.eup %7436 }
 0x868   : > { %v2978_v7 = vpop.f32.mrb[12].mxu1 }
 0x869   : > { %v2987_v14 = vadd.f32 %v2978_v7, %v11396_v23  ;;  %v2980_v36 = vpop.f32.mrb[13].mxu1 }
 0x86a   : > { %v2988_v60 = vadd.f32 %v2980_v36, %v11398_v56 }
 0x86b   : > { %7438 = vtanh.f32 %v2987_v14  ;;  %v5269_v7 = vmul.f32 -1.442695, %v2987_v14 }
 0x86c   : > { %7440 = vpow2.f32 %v5268_v52  ;;  %v5270_v8 = vmul.f32 -1.442695, %v2988_v60  ;;  %v3021_v52 = vmul.f32 %v7437_v4, %v11400_v61 }
 0x86e   : > { %7442 = vpow2.f32 %v5270_v8 }
 0x875   : > { %v7439_v53 = vpop.eup %7438 }
 0x876   : > { %v3024_v37 = vmul.f32 %v7439_v53, %v7437_v4  ;;  %v7441_v51 = vpop.eup %7440  ;;  %v11399_v53 = vld [vmem:[#allocation262_spill] sm:$0xff] }
 0x877   : > { %v3006_v50 = vadd.f32 1.0, %v7441_v51 }
 0x878   : > { %3029 = vrot.lane.b32.xlu0 %v3024_v37, %s7707_s12  ;;  %v7443_v25 = vpop.eup %7442 }
 0x879   : > { %7444 = vrcp.f32 %v3006_v50  ;;  %v3008_v24 = vadd.f32 1.0, %v7443_v25  ;;  %v5248_v25 = vld [vmem:[#allocation2] ss:$0 sm:$0xff] }
 0x87a   : > { %7446 = vpow2.f32 %v5269_v7 }
 0x87b   : > { %7448 = vrcp.f32 %v3008_v24 }
 0x883   : > { %v7445_v23 = vpop.eup %7444 }
 0x884   : > { %v3022_v35 = vmul.f32 %v7445_v23, %v11399_v53  ;;  %v7447_v36 = vpop.eup %7446 }
 0x885   : > { %v3007_v14 = vadd.f32 1.0, %v7447_v36  ;;  %v7449_v51 = vpop.eup %7448  ;;  %v11404_v36 = vld [vmem:[#allocation40_spill] sm:$0xff] }
 0x8c9   : > { %v3028_v19 = vpop.permute.xlu1 %3027 }
 0x8ca   : > { %v9801_v60 = vadd.f32 %v3028_v19, %v3021_v52 }
 0x8ea   : > { %v3030_v37 = vpop.permute.xlu0 %3029 }
 0x8eb   : > { %v3031_v26 = vsel %vm672_vm0, %v3028_v19, %v3030_v37 }
 0x8ec   : > { %v9799_v13 = vadd.f32 %v3031_v26, %v3022_v35 }
 0x8ee   : > { %7450 = vtanh.f32 %v9799_v13 }
 0x8ef   : > { %7452 = vtanh.f32 %v9801_v60 }
 0x8f0   : > { %7454 = vrcp.f32 %v3007_v14  ;;  %v11405_v14 = vld [vmem:[#allocation143_spill] sm:$0xff] }
 0x8f8   : > { %v7451_v8 = vpop.eup %7450 }
 0x8f9   : > { %v3039_v23 = vmul.f32 %v7451_v8, %v7449_v51  ;;  %v7453_v7 = vpop.eup %7452  ;;  %v11406_v51 = vld [vmem:[#allocation42_spill] sm:$0xff]  ;;  %v11407_v8 = vld [vmem:[#allocation144_spill] sm:$0xff] }
 0x8fa   : > { %v7455_v4 = vpop.eup %7454 }
 0x8fb   : > { %v3040_v50 = vmax.f32 %v3039_v23, 0.0  ;;  %v3038_v35 = vmul.f32 %v7455_v4, %v7453_v7  ;;  %v11409_v7 = vld [vmem:[#allocation147_spill] sm:$0xff]  ;;  %v11410_v4 = vld [vmem:[#allocation44_spill] sm:$0xff] }
 0x8fd   : > { %3042 = vrot.lane.b32.xlu1 %v3040_v50, %s7707_s12 }
 0x901   : > { %3548 = vrot.lane.b32.xlu1 %v3038_v35, %s7707_s12 }
 0x96f   : > { %v3043_v24 = vpop.permute.xlu1 %3042 }
 0x970   : > { %v3045_v19 = vsub.f32 %v3038_v35, %v3043_v24  ;;  %v11412_v24 = vld [vmem:[#allocation47_spill] sm:$0xff] }
 0x972   : > { %v3046_v53 = vsel %vm2017_vm3, %v3045_v19, %v3038_v35  ;;  %v11411_v35 = vld [vmem:[#allocation148_spill] sm:$0xff]  ;;  %v11413_v19 = vld [vmem:[#allocation151_spill] sm:$0xff] }
 0x973   : > { %v3047_v37 = vadd.f32 %v3046_v53, %v3040_v50 }
 0x975   : > { %v9811_v61 = vsel %vm2024_vm4, %v3047_v37, %v3046_v53  ;;  %v11414_v53 = vld [vmem:[#allocation48_spill] sm:$0xff] }
 0x976   : > { %11403 = vst [vmem:[#allocation174_spill] sm:$0xff] %v9811_v61  ;;  %3272 = vrot.lane.b32.xlu0 %v9811_v61, %s7707_s12  ;;  %v11415_v37 = vld [vmem:[#allocation152_spill] sm:$0xff]  ;;  %v11416_v61 = vld [vmem:[#allocation51_spill] sm:$0xff] }
 0x97a   : > { %3550 = vrot.lane.b32.xlu0 %v3039_v23, %s7707_s12  ;;  %v11408_v23 = vld [vmem:[#allocation43_spill] sm:$0xff] }
 0x9e8   : > { %v3273_v52 = vpop.permute.xlu0 %3272 }
 0x9e9   : > { %5274 = vmatmul.mubr.msk.f32.vlgmr.msra.gmra.mrb[14].mxu0 %vm672_vm0, %v3273_v52  ;;  %5276 = vmatmul.mubr.msk.f32.vlgmr.msra.gmra.mrb[14].mxu1 %vm672_vm0, %v3273_v52 }
 0x9ea   : > { %6440 = vmatpush1.bf16.msra.mxu0 %v11404_v36  ;;  %6520 = vmatpush1.bf16.msra.mxu1 %v11405_v14 }
 0x9eb   : > { %6442 = vmatprep.subr.bf16.mxu0 %v11406_v51  ;;  %6522 = vmatprep.subr.bf16.mxu1 %v11407_v8  ;;  %v11417_v8 = vld [vmem:[#allocation155_spill] sm:$0xff]  ;;  %v11418_v51 = vld [vmem:[#allocation109_spill] sm:$0xff] }
 0x9ec   : > { %v9822_v50 = vpop.permute.xlu0 %3550  ;;  %3411 = vmatprep.mubr.f32.mxu0 %v10944_v43 }
 0x9ed   : > { %5283 = vmatprep.mubr.msk.f32.mxu1 %vm672_vm0, %v9822_v50 }
 0x9ee   : > { %6444 = vmatpush1.bf16.msra.mxu0 %v11408_v23  ;;  %6524 = vmatpush1.bf16.msra.mxu1 %v11409_v7  ;;  %v11419_v23 = vld [vmem:[#allocation156_spill] sm:$0xff] }
 0x9ef   : > { %6446 = vmatprep.subr.bf16.mxu0 %v11410_v4  ;;  %6526 = vmatprep.subr.bf16.mxu1 %v11411_v35  ;;  %v11420_v4 = vld [vmem:[#allocation110_spill] sm:$0xff]  ;;  %v11431_v35 = vld [vmem:[#allocation167_spill] sm:$0xff] }
 0x9f2   : > { %6448 = vmatpush1.bf16.msra.mxu0 %v11412_v24  ;;  %6528 = vmatpush1.bf16.msra.mxu1 %v11413_v19  ;;  %v11421_v19 = vld [vmem:[#allocation159_spill] sm:$0xff] }
 0x9f3   : > { %6450 = vmatprep.subr.bf16.mxu0 %v11414_v53  ;;  %6530 = vmatprep.subr.bf16.mxu1 %v11415_v37  ;;  %v11422_v53 = vld [vmem:[#allocation111_spill] sm:$0xff]  ;;  %v11423_v37 = vld [vmem:[#allocation160_spill] sm:$0xff] }
 0x9f4   : > { %v11430_v24 = vld [vmem:[#allocation115_spill] sm:$0xff] }
 0x9f6   : > { %6452 = vmatpush1.bf16.msra.mxu0 %v11416_v61  ;;  %6532 = vmatpush1.bf16.msra.mxu1 %v11417_v8  ;;  %v11424_v61 = vld [vmem:[#allocation112_spill] sm:$0xff]  ;;  %v11425_v8 = vld [vmem:[#allocation163_spill] sm:$0xff] }
 0x9f7   : > { %6470 = vmatprep.subr.bf16.mxu0 %v11418_v51  ;;  %6534 = vmatprep.subr.bf16.mxu1 %v11419_v23  ;;  %v11426_v51 = vld [vmem:[#allocation113_spill] sm:$0xff]  ;;  %v11427_v23 = vld [vmem:[#allocation164_spill] sm:$0xff] }
 0x9f9   : > { %5275 = vmatmul.mubr.msk.f32.vlgmr.msra.gmra.mrb[16].mxu0 %vm672_vm0, %v3273_v52  ;;  %v11428_v52 = vld [vmem:[#allocation114_spill] sm:$0xff] }
 0x9fa   : > { %6472 = vmatpush1.bf16.msra.mxu0 %v11420_v4  ;;  %5282 = vmatprep.mubr.msk.f32.mxu0 %vm672_vm0, %v9822_v50  ;;  %v11429_v4 = vld [vmem:[#allocation166_spill] sm:$0xff] }
 0x9fb   : > { %6536 = vmatpush1.bf16.msra.mxu1 %v11421_v19  ;;  %6474 = vmatprep.subr.bf16.mxu0 %v11422_v53  ;;  %v11432_v19 = vld [vmem:[#allocation118_spill] sm:$0xff]  ;;  %v11433_v53 = vld [vmem:[#allocation168_spill] sm:$0xff] }
 0x9fc   : > { %6538 = vmatprep.subr.bf16.mxu1 %v11423_v37  ;;  %v11434_v37 = vld [vmem:[#allocation119_spill] sm:$0xff] }
 0x9fe   : > { %6476 = vmatpush1.bf16.msra.mxu0 %v11424_v61  ;;  %v11435_v61 = vld [vmem:[#allocation169_spill] sm:$0xff] }
 0x9ff   : > { %6540 = vmatpush1.bf16.msra.mxu1 %v11425_v8  ;;  %6478 = vmatprep.subr.bf16.mxu0 %v11426_v51  ;;  %v11436_v8 = vld [vmem:[#allocation120_spill] sm:$0xff]  ;;  %v11437_v51 = vld [vmem:[#allocation170_spill] sm:$0xff] }
 0xa00   : > { %6542 = vmatprep.subr.bf16.mxu1 %v11427_v23  ;;  %v11438_v23 = vld [vmem:[#allocation121_spill] sm:$0xff] }
 0xa02   : > { %6480 = vmatpush1.bf16.msra.mxu0 %v11428_v52  ;;  %v11439_v52 = vld [vmem:[#allocation172_spill] sm:$0xff] }
 0xa03   : > { %6544 = vmatpush1.bf16.msra.mxu1 %v11429_v4  ;;  %6482 = vmatprep.subr.bf16.mxu0 %v11430_v24  ;;  %v11440_v4 = vld [vmem:[#allocation122_spill] sm:$0xff] }
 0xa04   : > { %6546 = vmatprep.subr.bf16.mxu1 %v11431_v35  ;;  %v11441_v35 = vld [vmem:[#allocation123_spill] sm:$0xff] }
 0xa06   : > { %6484 = vmatpush1.bf16.msra.mxu0 %v11432_v19 }
 0xa07   : > { %6548 = vmatpush1.bf16.msra.mxu1 %v11433_v53  ;;  %6486 = vmatprep.subr.bf16.mxu0 %v11434_v37  ;;  %v11442_v53 = vld [vmem:[#allocation124_spill] sm:$0xff] }
 0xa08   : > { %6550 = vmatprep.subr.bf16.mxu1 %v11435_v61  ;;  %v11443_v61 = vld [vmem:[#allocation125_spill] sm:$0xff] }
 0xa0a   : > { %6488 = vmatpush1.bf16.msra.mxu0 %v11436_v8 }
 0xa0b   : > { %6552 = vmatpush1.bf16.msra.mxu1 %v11437_v51  ;;  %6490 = vmatprep.subr.bf16.mxu0 %v11438_v23  ;;  %v11444_v51 = vld [vmem:[#allocation126_spill] sm:$0xff] }
 0xa0c   : > { %6554 = vmatprep.subr.bf16.mxu1 %v11439_v52  ;;  %v11445_v52 = vld [vmem:[#allocation127_spill] sm:$0xff] }
 0xa0e   : > { %6492 = vmatpush1.bf16.msra.mxu0 %v11440_v4  ;;  %v3549_v4 = vpop.permute.xlu1 %3548 }
 0xa0f   : > { %6556 = vmatpush1.bf16.msra.mxu1 %v11248_v39  ;;  %6494 = vmatprep.subr.bf16.mxu0 %v11441_v35 }
 0xa10   : > { %6558 = vmatprep.subr.bf16.mxu1 %v11250_v63  ;;  %v3552_v63 = vsel %vm672_vm0, %v3549_v4, %v9822_v50  ;;  %v11451_v4 = vld [vmem:[#allocation135_spill] sm:$0xff] }
 0xa12   : > { %6496 = vmatpush1.bf16.msra.mxu0 %v11442_v53  ;;  %v11446_v53 = vld [vmem:[#allocation128_spill] sm:$0xff] }
 0xa13   : > { %6560 = vmatpush1.bf16.msra.mxu1 %v11252_v0  ;;  %6498 = vmatprep.subr.bf16.mxu0 %v11443_v61  ;;  %v11447_v0 = vld [vmem:[#allocation129_spill] sm:$0xff] }
 0xa14   : > { %6562 = vmatprep.subr.bf16.mxu1 %v11254_v32 }
 0xa16   : > { %6500 = vmatpush1.bf16.msra.mxu0 %v11444_v51  ;;  %v11448_v51 = vld [vmem:[#allocation130_spill] sm:$0xff] }
 0xa17   : > { %6564 = vmatpush1.bf16.msra.mxu1 %v11256_v30  ;;  %6502 = vmatprep.subr.bf16.mxu0 %v11445_v52  ;;  %v11449_v30 = vld [vmem:[#allocation131_spill] sm:$0xff] }
 0xa18   : > { %6662 = vmatprep.subr.bf16.mxu1 %v9250_v38  ;;  %v11450_v38 = vld [vmem:[#allocation133_spill] sm:$0xff] }
 0xa1a   : > { %3692 = vmatmul.mubr.f32.vlgmr.msra.gmra.mrb[16].mxu1 %v3552_v63  ;;  %6504 = vmatpush1.bf16.msra.mxu0 %v11446_v53 }
 0xa1b   : > { %6506 = vmatprep.subr.bf16.mxu0 %v11447_v0  ;;  %6664 = vmatpush1.bf16.msra.mxu1 %v9256_v59  ;;  %v11452_v0 = vld [vmem:[#allocation138_spill] sm:$0xff]  ;;  %v11453_v59 = vld [vmem:[#allocation132_spill] sm:$0xff] }
 0xa1c   : > { %6666 = vmatprep.subr.bf16.mxu1 %v9268_v57 }
 0xa1e   : > { %6508 = vmatpush1.bf16.msra.mxu0 %v11448_v51 }
 0xa1f   : > { %6510 = vmatprep.subr.bf16.mxu0 %v11449_v30  ;;  %6668 = vmatpush1.bf16.msra.mxu1 %v9274_v42  ;;  %v11454_v42 = vld [vmem:[#allocation134_spill] sm:$0xff] }
 0xa20   : > { %6670 = vmatprep.subr.bf16.mxu1 %v9280_v12 }
 0xa22   : > { %6512 = vmatpush1.bf16.msra.mxu0 %v11450_v38  ;;  %v11455_v38 = vld [vmem:[#allocation136_spill] sm:$0xff] }
 0xa23   : > { %6514 = vmatprep.subr.bf16.mxu0 %v11451_v4  ;;  %6672 = vmatpush1.bf16.msra.mxu1 %v9286_v47 }
 0xa24   : > { %6674 = vmatprep.subr.bf16.mxu1 %v9290_v31  ;;  %v11456_v31 = vld [vmem:[#allocation137_spill] sm:$0xff] }
 0xa26   : > { %6516 = vmatpush1.bf16.msra.mxu0 %v11452_v0  ;;  %v11457_v0 = vld [vmem:[#allocation139_spill] sm:$0xff] }
 0xa27   : > { %6566 = vmatprep.subr.bf16.mxu0 %v11453_v59  ;;  %6676 = vmatpush1.bf16.msra.mxu1 %v9294_v10  ;;  %v11511_v59 = vld [vmem:[#allocation108_spill] sm:$0xff] }
 0xa28   : > { %6678 = vmatprep.subr.bf16.mxu1 %v9298_v34  ;;  %v11458_v34 = vld [vmem:[#allocation141_spill] sm:$0xff] }
 0xa29   : > { %3621 = vmatmul.mubr.f32.vlgmr.msra.gmra.mrb[18].mxu0 %v3552_v63 }
 0xa2a   : > { %6568 = vmatpush1.bf16.msra.mxu0 %v11454_v42  ;;  %5284 = vmatprep.mubr.msk.f32.mxu0 %vm672_vm0, %v9822_v50  ;;  %v11459_v42 = vld [vmem:[#allocation142_spill] sm:$0xff]  ;;  %v11460_v50 = vld [vmem:[#allocation145_spill] sm:$0xff] }
 0xa2b   : > { %6570 = vmatprep.subr.bf16.mxu0 %v11455_v38  ;;  %6680 = vmatpush1.bf16.msra.mxu1 %v9302_v15  ;;  %v11461_v15 = vld [vmem:[#allocation146_spill] sm:$0xff] }
 0xa2c   : > { %6682 = vmatprep.subr.bf16.mxu1 %v9306_v28 }
 0xa2e   : > { %6572 = vmatpush1.bf16.msra.mxu0 %v11456_v31 }
 0xa2f   : > { %6574 = vmatprep.subr.bf16.mxu0 %v11457_v0  ;;  %6684 = vmatpush1.bf16.msra.mxu1 %v9310_v21  ;;  %v11462_v0 = vld [vmem:[#allocation149_spill] sm:$0xff]  ;;  %v11463_v21 = vld [vmem:[#allocation150_spill] sm:$0xff] }
 0xa30   : > { %6686 = vmatprep.subr.bf16.mxu1 %v9314_v16  ;;  %v11509_v16 = vld [vmem:[#allocation116_spill] sm:$0xff] }
 0xa32   : > { %6576 = vmatpush1.bf16.msra.mxu0 %v11458_v34 }
 0xa33   : > { %6578 = vmatprep.subr.bf16.mxu0 %v11459_v42  ;;  %6688 = vmatpush1.bf16.msra.mxu1 %v9318_v29  ;;  %v11464_v42 = vld [vmem:[#allocation153_spill] sm:$0xff]  ;;  %v11465_v29 = vld [vmem:[#allocation154_spill] sm:$0xff] }
 0xa34   : > { %6690 = vmatprep.subr.bf16.mxu1 %v9322_v22  ;;  %v11466_v22 = vld [vmem:[#allocation251_spill] sm:$0xff] }
 0xa36   : > { %6580 = vmatpush1.bf16.msra.mxu0 %v11460_v50  ;;  %v11467_v50 = vld [vmem:[#allocation252_spill] sm:$0xff] }
 0xa37   : > { %6582 = vmatprep.subr.bf16.mxu0 %v11461_v15  ;;  %6692 = vmatpush1.bf16.msra.mxu1 %v9326_v44  ;;  %v11468_v15 = vld [vmem:[#allocation157_spill] sm:$0xff]  ;;  %v11469_v44 = vld [vmem:[#allocation158_spill] sm:$0xff] }
 0xa38   : > { %6694 = vmatprep.subr.bf16.mxu1 %v9330_v33  ;;  %v11470_v33 = vld [vmem:[#allocation253_spill] sm:$0xff] }
 0xa3a   : > { %6584 = vmatpush1.bf16.msra.mxu0 %v11462_v0  ;;  %v11471_v0 = vld [vmem:[#allocation254_spill] sm:$0xff] }
 0xa3b   : > { %6586 = vmatprep.subr.bf16.mxu0 %v11463_v21  ;;  %6696 = vmatpush1.bf16.msra.mxu1 %v9334_v58  ;;  %v11472_v21 = vld [vmem:[#allocation161_spill] sm:$0xff]  ;;  %v11473_v58 = vld [vmem:[#allocation162_spill] sm:$0xff] }
 0xa3c   : > { %6698 = vmatprep.subr.bf16.mxu1 %v9338_v48  ;;  %v11474_v48 = vld [vmem:[#allocation255_spill] sm:$0xff] }
 0xa3e   : > { %6588 = vmatpush1.bf16.msra.mxu0 %v11464_v42  ;;  %v11475_v42 = vld [vmem:[#allocation13_spill] sm:$0xff] }
 0xa3f   : > { %6590 = vmatprep.subr.bf16.mxu0 %v11465_v29  ;;  %6700 = vmatpush1.bf16.msra.mxu1 %v11466_v22  ;;  %v11476_v29 = vld [vmem:[#allocation165_spill] sm:$0xff] }
 0xa40   : > { %6702 = vmatprep.subr.bf16.mxu1 %v11467_v50  ;;  %v11477_v22 = vld [vmem:[#allocation173_spill] sm:$0xff]  ;;  %v11478_v50 = vld [vmem:[#allocation175_spill] sm:$0xff] }
 0xa42   : > { %6592 = vmatpush1.bf16.msra.mxu0 %v11468_v15  ;;  %v11479_v15 = vld [vmem:[#allocation177_spill] sm:$0xff] }
 0xa43   : > { %6594 = vmatprep.subr.bf16.mxu0 %v11469_v44  ;;  %6704 = vmatpush1.bf16.msra.mxu1 %v11470_v33  ;;  %v11480_v44 = vld [vmem:[#allocation179_spill] sm:$0xff]  ;;  %v11481_v33 = vld [vmem:[#allocation181_spill] sm:$0xff] }
 0xa44   : > { %6706 = vmatprep.subr.bf16.mxu1 %v11471_v0  ;;  %v11482_v0 = vld [vmem:[#allocation183_spill] sm:$0xff] }
 0xa46   : > { %6596 = vmatpush1.bf16.msra.mxu0 %v11472_v21  ;;  %v11483_v21 = vld [vmem:[#allocation184_spill] sm:$0xff] }
 0xa47   : > { %6598 = vmatprep.subr.bf16.mxu0 %v11473_v58  ;;  %6708 = vmatpush1.bf16.msra.mxu1 %v11474_v48  ;;  %v11484_v48 = vld [vmem:[#allocation186_spill] sm:$0xff]  ;;  %v11508_v58 = vld [vmem:[#allocation107_spill] sm:$0xff] }
 0xa48   : > { %6758 = vmatprep.subr.bf16.mxu1 %v11475_v42  ;;  %v11485_v42 = vld [vmem:[#allocation188_spill] sm:$0xff] }
 0xa4a   : > { %6600 = vmatpush1.bf16.msra.mxu0 %v11476_v29  ;;  %v11486_v29 = vld [vmem:[#allocation190_spill] sm:$0xff] }
 0xa4b   : > { %6602 = vmatprep.subr.bf16.mxu0 %v11477_v22  ;;  %v11487_v22 = vld [vmem:[#allocation193_spill] sm:$0xff] }
 0xa4e   : > { %6604 = vmatpush1.bf16.msra.mxu0 %v11478_v50  ;;  %v11488_v50 = vld [vmem:[#allocation195_spill] sm:$0xff] }
 0xa4f   : > { %6606 = vmatprep.subr.bf16.mxu0 %v11479_v15  ;;  %v11489_v15 = vld [vmem:[#allocation197_spill] sm:$0xff] }
 0xa52   : > { %6608 = vmatpush1.bf16.msra.mxu0 %v11480_v44  ;;  %v11490_v44 = vld [vmem:[#allocation199_spill] sm:$0xff] }
 0xa53   : > { %6610 = vmatprep.subr.bf16.mxu0 %v11481_v33  ;;  %v11491_v33 = vld [vmem:[#allocation201_spill] sm:$0xff] }
 0xa56   : > { %6612 = vmatpush1.bf16.msra.mxu0 %v11482_v0  ;;  %v11492_v0 = vld [vmem:[#allocation203_spill] sm:$0xff] }
 0xa57   : > { %6614 = vmatprep.subr.bf16.mxu0 %v11483_v21  ;;  %v11493_v21 = vld [vmem:[#allocation205_spill] sm:$0xff] }
 0xa59   : > { %3763 = vmatmul.mubr.f32.vlgmr.msra.gmra.mrb[20].mxu0 %v3552_v63  ;;  %v11494_v63 = vld [vmem:[#allocation207_spill] sm:$0xff] }
 0xa5a   : > { %6616 = vmatpush1.bf16.msra.mxu0 %v11484_v48  ;;  %v11495_v48 = vld [vmem:[#allocation210_spill] sm:$0xff] }
 0xa5b   : > { %6618 = vmatprep.subr.bf16.mxu0 %v11485_v42  ;;  %v11496_v42 = vld [vmem:[#allocation212_spill] sm:$0xff] }
 0xa5e   : > { %6620 = vmatpush1.bf16.msra.mxu0 %v11486_v29  ;;  %v11497_v29 = vld [vmem:[#allocation214_spill] sm:$0xff] }
 0xa5f   : > { %6622 = vmatprep.subr.bf16.mxu0 %v11487_v22  ;;  %v11498_v22 = vld [vmem:[#allocation216_spill] sm:$0xff] }
 0xa62   : > { %6624 = vmatpush1.bf16.msra.mxu0 %v11488_v50  ;;  %v11499_v50 = vld [vmem:[#allocation218_spill] sm:$0xff] }
 0xa63   : > { %6626 = vmatprep.subr.bf16.mxu0 %v11489_v15  ;;  %v11500_v15 = vld [vmem:[#allocation220_spill] sm:$0xff] }
 0xa66   : > { %6628 = vmatpush1.bf16.msra.mxu0 %v11490_v44  ;;  %v11501_v44 = vld [vmem:[#allocation222_spill] sm:$0xff] }
 0xa67   : > { %6630 = vmatprep.subr.bf16.mxu0 %v11491_v33  ;;  %v11502_v33 = vld [vmem:[#allocation224_spill] sm:$0xff] }
 0xa6a   : > { %6632 = vmatpush1.bf16.msra.mxu0 %v11492_v0  ;;  %v11503_v0 = vld [vmem:[#allocation226_spill] sm:$0xff] }
 0xa6b   : > { %6634 = vmatprep.subr.bf16.mxu0 %v11493_v21  ;;  %v11504_v21 = vld [vmem:[#allocation228_spill] sm:$0xff] }
 0xa6e   : > { %6636 = vmatpush1.bf16.msra.mxu0 %v11494_v63  ;;  %v11505_v63 = vld [vmem:[#allocation230_spill] sm:$0xff] }
 0xa6f   : > { %6638 = vmatprep.subr.bf16.mxu0 %v11495_v48  ;;  %v11506_v48 = vld [vmem:[#allocation232_spill] sm:$0xff] }
 0xa72   : > { %6640 = vmatpush1.bf16.msra.mxu0 %v11496_v42  ;;  %v11507_v42 = vld [vmem:[#allocation185_spill] sm:$0xff] }
 0xa73   : > { %6642 = vmatprep.subr.bf16.mxu0 %v11497_v29 }
 0xa76   : > { %6644 = vmatpush1.bf16.msra.mxu0 %v11498_v22 }
 0xa77   : > { %6646 = vmatprep.subr.bf16.mxu0 %v11499_v50 }
 0xa7a   : > { %6648 = vmatpush1.bf16.msra.mxu0 %v11500_v15 }
 0xa7b   : > { %6650 = vmatprep.subr.bf16.mxu0 %v11501_v44 }
 0xa7e   : > { %6652 = vmatpush1.bf16.msra.mxu0 %v11502_v33 }
 0xa7f   : > { %6654 = vmatprep.subr.bf16.mxu0 %v11503_v0 }
 0xa82   : > { %6656 = vmatpush1.bf16.msra.mxu0 %v11504_v21  ;;  %v11510_v21 = vld [vmem:[#allocation117_spill] sm:$0xff] }
 0xa83   : > { %6658 = vmatprep.subr.bf16.mxu0 %v11505_v63 }
 0xa86   : > { %6660 = vmatpush1.bf16.msra.mxu0 %v11506_v48 }
 0xa87   : > { %6710 = vmatprep.subr.bf16.mxu0 %v11507_v42 }
 0xabc   : > { %v3342_v29 = vpop.f32.mrb[14].mxu0  ;;  %v3484_v22 = vpop.f32.mrb[14].mxu1 }
 0xabd   : > { %v3489_v50 = vadd.f32 %v3342_v29, %v11508_v58  ;;  %v3344_v34 = vpop.f32.mrb[15].mxu0  ;;  %v3486_v15 = vpop.f32.mrb[15].mxu1  ;;  %v3493_v28 = vadd.f32 %v3484_v22, %v11510_v21 }
 0xabe   : > { %v3490_v44 = vadd.f32 %v3344_v34, %v11509_v16 }
 0xabf   : > { %v5277_v31 = vmul.f32 -1.442695, %v3489_v50 }
 0xac0   : > { %v5278_v33 = vmul.f32 -1.442695, %v3490_v44 }
 0xac1   : > { %7456 = vpow2.f32 %v5277_v31 }
 0xac2   : > { %7458 = vpow2.f32 %v5278_v33 }
 0xac3   : > { %7460 = vtanh.f32 %v3493_v28 }
 0xacb   : > { %v7457_v0 = vpop.eup %7456 }
 0xacc   : > { %v3413_v63 = vpop.f32.mrb[16].mxu0  ;;  %v7459_v38 = vpop.eup %7458  ;;  %v3510_v48 = vadd.f32 1.0, %v7457_v0 }
 0xacd   : > { %v3415_v10 = vpop.f32.mrb[17].mxu0  ;;  %v3511_v42 = vadd.f32 1.0, %v7459_v38  ;;  %v7461_v29 = vpop.eup %7460  ;;  %v3491_v22 = vadd.f32 %v3413_v63, %v11295_v5  ;;  %v3494_v38 = vadd.f32 %v3486_v15, %v11296_v20 }
 0xace   : > { %v3492_v47 = vadd.f32 %v3415_v10, %v11511_v59 }
 0xacf   : > { %7462 = vrcp.f32 %v3511_v42  ;;  %v5279_v0 = vmul.f32 -1.442695, %v3491_v22  ;;  %v5280_v42 = vmul.f32 -1.442695, %v3493_v28 }
 0xad0   : > { %7464 = vrcp.f32 %v3510_v48  ;;  %v5281_v48 = vmul.f32 -1.442695, %v3494_v38 }
 0xad1   : > { %7466 = vtanh.f32 %v3492_v47 }
 0xad2   : > { %7468 = vpow2.f32 %v5279_v0 }
 0xad3   : > { %7470 = vpow2.f32 %v5280_v42 }
 0xad4   : > { %7472 = vpow2.f32 %v5281_v48 }
 0xad9   : > { %v7463_v34 = vpop.eup %7462 }
 0xada   : > { %v7465_v50 = vpop.eup %7464  ;;  %v3530_v44 = vmul.f32 %v7463_v34, %v7461_v29 }
 0xadb   : > { %v7467_v31 = vpop.eup %7466 }
 0xadc   : > { %3535 = vrot.lane.b32.xlu0 %v3530_v44, %s7707_s12  ;;  %v3529_v33 = vmul.f32 %v7467_v31, %v7465_v50  ;;  %v7469_v10 = vpop.eup %7468 }
 0xadd   : > { %v3512_v47 = vadd.f32 1.0, %v7469_v10  ;;  %v7471_v29 = vpop.eup %7470 }
 0xade   : > { %3533 = vrot.lane.b32.xlu1 %v3529_v33, %s7707_s12  ;;  %v7473_v59 = vpop.eup %7472  ;;  %v3513_v44 = vadd.f32 1.0, %v7471_v29  ;;  %v3527_v33 = vmul.f32 %v7463_v34, %v9649_v6  ;;  %v11513_v29 = vld [vmem:[#allocation16_spill] sm:$0xff] }
 0xadf   : > { %7474 = vrcp.f32 %v3512_v47  ;;  %v3514_v50 = vadd.f32 1.0, %v7473_v59  ;;  %v11512_v47 = vld [vmem:[#allocation194_spill] sm:$0xff] }
 0xae0   : > { %7476 = vrcp.f32 %v3513_v44  ;;  %v11514_v44 = vld [vmem:[#allocation196_spill] sm:$0xff] }
 0xae1   : > { %7478 = vrcp.f32 %v3514_v50  ;;  %v11515_v50 = vld [vmem:[#allocation17_spill] sm:$0xff] }
 0xae9   : > { %v7475_v21 = vpop.eup %7474 }
 0xaea   : > { %v3528_v63 = vmul.f32 %v7475_v21, %v9654_v46  ;;  %v7477_v38 = vpop.eup %7476 }
 0xaeb   : > { %v7479_v59 = vpop.eup %7478 }
 0xb4e   : > { %v3536_v31 = vpop.permute.xlu0 %3535 }
 0xb50   : > { %v3534_v22 = vpop.permute.xlu1 %3533 }
 0xb51   : > { %v3537_v15 = vsel %vm672_vm0, %v3534_v22, %v3536_v31  ;;  %v9969_v28 = vadd.f32 %v3534_v22, %v3527_v33  ;;  %v11517_v31 = vld [vmem:[#allocation18_spill] sm:$0xff]  ;;  %v11518_v33 = vld [vmem:[#allocation200_spill] sm:$0xff]  ;;  %v11521_v22 = vld [vmem:[#allocation21_spill] sm:$0xff] }
 0xb52   : > { %v9971_v0 = vadd.f32 %v3537_v15, %v3528_v63  ;;  %v11519_v63 = vld [vmem:[#allocation19_spill] sm:$0xff]  ;;  %v11523_v15 = vld [vmem:[#allocation24_spill] sm:$0xff] }
 0xb53   : > { %7480 = vtanh.f32 %v9969_v28 }
 0xb54   : > { %7482 = vtanh.f32 %v9971_v0 }
 0xb5d   : > { %v7481_v10 = vpop.eup %7480 }
 0xb5e   : > { %v7483_v42 = vpop.eup %7482  ;;  %v3544_v6 = vmul.f32 %v7481_v10, %v7477_v38  ;;  %v11524_v38 = vld [vmem:[#allocation206_spill] sm:$0xff]  ;;  %v11526_v10 = vld [vmem:[#allocation209_spill] sm:$0xff] }
 0xb5f   : > { %v3545_v34 = vmul.f32 %v7483_v42, %v7479_v59  ;;  %v11525_v59 = vld [vmem:[#allocation26_spill] sm:$0xff]  ;;  %v11527_v42 = vld [vmem:[#allocation28_spill] sm:$0xff] }
 0xb60   : > { %3771 = vrot.lane.b32.xlu1 %v3544_v6, %s7707_s12  ;;  %v11528_v6 = vld [vmem:[#allocation30_spill] sm:$0xff] }
 0xb61   : > { %3773 = vrot.lane.b32.xlu0 %v3545_v34, %s7707_s12  ;;  %v11529_v34 = vld [vmem:[#allocation213_spill] sm:$0xff] }
 0xbd2   : > { %v3772_v21 = vpop.permute.xlu1 %3771 }
 0xbd3   : > { %v3774_v46 = vpop.permute.xlu0 %3773 }
 0xbd4   : > { %5285 = vmatprep.mubr.msk.f32.mxu0 %vm672_vm0, %v3774_v46  ;;  %5286 = vmatprep.mubr.msk.f32.mxu1 %vm672_vm0, %v3774_v46  ;;  %v9980_v48 = vsel %vm672_vm0, %v3772_v21, %v3774_v46  ;;  %v11530_v21 = vld [vmem:[#allocation32_spill] sm:$0xff] }
 0xbd5   : > { %3844 = vmatmul.mubr.f32.vlgmr.msra.gmra.mrb[18].mxu0 %v9980_v48  ;;  %3915 = vmatmul.mubr.f32.vlgmr.msra.gmra.mrb[16].mxu1 %v9980_v48 }
 0xbd6   : > { %6712 = vmatpush1.bf16.msra.mxu0 %v11298_v1  ;;  %6760 = vmatpush1.bf16.msra.mxu1 %v7942_v9  ;;  %v11516_v9 = vld [vmem:[#allocation198_spill] sm:$0xff] }
 0xbd7   : > { %5287 = vmatprep.mubr.msk.f32.mxu0 %vm672_vm0, %v3774_v46  ;;  %5293 = vmatprep.mubr.msk.f32.mxu1 %vm672_vm0, %v3774_v46 }
 0xbd8   : > { %6714 = vmatprep.subr.bf16.mxu0 %v11299_v3  ;;  %6762 = vmatprep.subr.bf16.mxu1 %v11300_v62  ;;  %v11520_v62 = vld [vmem:[#allocation202_spill] sm:$0xff] }
 0xbda   : > { %6716 = vmatpush1.bf16.msra.mxu0 %v11301_v2  ;;  %6764 = vmatpush1.bf16.msra.mxu1 %v11302_v49  ;;  %v11522_v49 = vld [vmem:[#allocation204_spill] sm:$0xff] }
 0xbdb   : > { %6718 = vmatprep.subr.bf16.mxu0 %v11512_v47  ;;  %6766 = vmatprep.subr.bf16.mxu1 %v11513_v29  ;;  %v11531_v29 = vld [vmem:[#allocation34_spill] sm:$0xff] }
 0xbde   : > { %6720 = vmatpush1.bf16.msra.mxu0 %v11514_v44  ;;  %6768 = vmatpush1.bf16.msra.mxu1 %v11515_v50  ;;  %v11532_v50 = vld [vmem:[#allocation35_spill] sm:$0xff] }
 0xbdf   : > { %6722 = vmatprep.subr.bf16.mxu0 %v11516_v9  ;;  %6770 = vmatprep.subr.bf16.mxu1 %v11517_v31  ;;  %v11533_v31 = vld [vmem:[#allocation36_spill] sm:$0xff] }
 0xbe2   : > { %6724 = vmatpush1.bf16.msra.mxu0 %v11518_v33  ;;  %6772 = vmatpush1.bf16.msra.mxu1 %v11519_v63  ;;  %v11534_v63 = vld [vmem:[#allocation37_spill] sm:$0xff] }
 0xbe3   : > { %6726 = vmatprep.subr.bf16.mxu0 %v11520_v62  ;;  %6774 = vmatprep.subr.bf16.mxu1 %v11521_v22  ;;  %v11535_v22 = vld [vmem:[#allocation227_spill] sm:$0xff] }
 0xbe6   : > { %6728 = vmatpush1.bf16.msra.mxu0 %v11522_v49  ;;  %6776 = vmatpush1.bf16.msra.mxu1 %v11523_v15  ;;  %v11536_v15 = vld [vmem:[#allocation41_spill] sm:$0xff] }
 0xbe7   : > { %6730 = vmatprep.subr.bf16.mxu0 %v11524_v38  ;;  %6778 = vmatprep.subr.bf16.mxu1 %v11525_v59  ;;  %v11537_v59 = vld [vmem:[#allocation229_spill] sm:$0xff] }
 0xbea   : > { %6732 = vmatpush1.bf16.msra.mxu0 %v11526_v10  ;;  %6780 = vmatpush1.bf16.msra.mxu1 %v11527_v42  ;;  %v11538_v42 = vld [vmem:[#allocation45_spill] sm:$0xff] }
 0xbeb   : > { %6734 = vmatprep.subr.bf16.mxu0 %v11319_v41  ;;  %6782 = vmatprep.subr.bf16.mxu1 %v11528_v6  ;;  %v11539_v6 = vld [vmem:[#allocation231_spill] sm:$0xff] }
 0xbee   : > { %6736 = vmatpush1.bf16.msra.mxu0 %v11529_v34  ;;  %6784 = vmatpush1.bf16.msra.mxu1 %v11530_v21  ;;  %v11540_v21 = vld [vmem:[#allocation46_spill] sm:$0xff] }
 0xbef   : > { %6738 = vmatprep.subr.bf16.mxu0 %v11323_v27  ;;  %6786 = vmatprep.subr.bf16.mxu1 %v11531_v29  ;;  %v11541_v29 = vld [vmem:[#allocation233_spill] sm:$0xff] }
 0xbf2   : > { %6740 = vmatpush1.bf16.msra.mxu0 %v11325_v11  ;;  %6788 = vmatpush1.bf16.msra.mxu1 %v11532_v50  ;;  %v11542_v50 = vld [vmem:[#allocation49_spill] sm:$0xff] }
 0xbf3   : > { %6742 = vmatprep.subr.bf16.mxu0 %v11327_v18  ;;  %6790 = vmatprep.subr.bf16.mxu1 %v11533_v31  ;;  %v11544_v31 = vld [vmem:[#allocation75_spill] sm:$0xff] }
 0xbf6   : > { %6744 = vmatpush1.bf16.msra.mxu0 %v11329_v17  ;;  %6792 = vmatpush1.bf16.msra.mxu1 %v11534_v63  ;;  %v11546_v63 = vld [vmem:[#allocation76_spill] sm:$0xff] }
 0xbf7   : > { %6746 = vmatprep.subr.bf16.mxu0 %v11330_v54  ;;  %6794 = vmatprep.subr.bf16.mxu1 %v11331_v40  ;;  %v11543_v40 = vld [vmem:[#allocation50_spill] sm:$0xff] }
 0xbfa   : > { %6748 = vmatpush1.bf16.msra.mxu0 %v11332_v55  ;;  %6796 = vmatpush1.bf16.msra.mxu1 %v8210_v45  ;;  %v11545_v45 = vld [vmem:[#allocation52_spill] sm:$0xff] }
 0xbfb   : > { %6750 = vmatprep.subr.bf16.mxu0 %v11535_v22  ;;  %6798 = vmatprep.subr.bf16.mxu1 %v11536_v15  ;;  %v11547_v15 = vld [vmem:[#allocation53_spill] sm:$0xff] }
 0xbfe   : > { %6752 = vmatpush1.bf16.msra.mxu0 %v11537_v59  ;;  %6800 = vmatpush1.bf16.msra.mxu1 %v11538_v42  ;;  %v11548_v42 = vld [vmem:[#allocation77_spill] sm:$0xff] }
 0xbff   : > { %6754 = vmatprep.subr.bf16.mxu0 %v11539_v6  ;;  %6802 = vmatprep.subr.bf16.mxu1 %v11540_v21  ;;  %v11549_v21 = vld [vmem:[#allocation54_spill] sm:$0xff]  ;;  %v11555_v6 = vld [vmem:[#allocation57_spill] sm:$0xff] }
 0xc02   : > { %6756 = vmatpush1.bf16.msra.mxu0 %v11541_v29  ;;  %6804 = vmatpush1.bf16.msra.mxu1 %v11542_v50  ;;  %v11550_v50 = vld [vmem:[#allocation78_spill] sm:$0xff]  ;;  %v11553_v29 = vld [vmem:[#allocation56_spill] sm:$0xff] }
 0xc03   : > { %6806 = vmatprep.subr.bf16.mxu1 %v11543_v40  ;;  %6854 = vmatprep.subr.bf16.mxu0 %v11544_v31  ;;  %v11551_v40 = vld [vmem:[#allocation55_spill] sm:$0xff] }
 0xc04   : > { %v11552_v31 = vld [vmem:[#allocation79_spill] sm:$0xff] }
 0xc05   : > { %3986 = vmatmul.mubr.f32.vlgmr.msra.gmra.mrb[20].mxu0 %v9980_v48  ;;  %4132 = vmatmul.mubr.f32.vlgmr.msra.gmra.mrb[18].mxu1 %v9980_v48 }
 0xc06   : > { %6808 = vmatpush1.bf16.msra.mxu1 %v11545_v45  ;;  %5294 = vmatprep.mubr.msk.f32.mxu1 %vm672_vm0, %v3774_v46  ;;  %v11554_v45 = vld [vmem:[#allocation80_spill] sm:$0xff] }
 0xc07   : > { %6856 = vmatpush1.bf16.msra.mxu0 %v11546_v63  ;;  %5295 = vmatprep.mubr.msk.f32.mxu0 %vm672_vm0, %v3774_v46  ;;  %v11556_v63 = vld [vmem:[#allocation81_spill] sm:$0xff]  ;;  %v11557_v46 = vld [vmem:[#allocation58_spill] sm:$0xff] }
 0xc08   : > { %6810 = vmatprep.subr.bf16.mxu1 %v11547_v15  ;;  %6858 = vmatprep.subr.bf16.mxu0 %v11548_v42  ;;  %v11558_v15 = vld [vmem:[#allocation82_spill] sm:$0xff]  ;;  %v11559_v42 = vld [vmem:[#allocation59_spill] sm:$0xff] }
 0xc0a   : > { %6812 = vmatpush1.bf16.msra.mxu1 %v11549_v21  ;;  %v11560_v21 = vld [vmem:[#allocation83_spill] sm:$0xff] }
 0xc0b   : > { %6860 = vmatpush1.bf16.msra.mxu0 %v11550_v50  ;;  %6814 = vmatprep.subr.bf16.mxu1 %v11551_v40  ;;  %v11561_v50 = vld [vmem:[#allocation60_spill] sm:$0xff] }
 0xc0c   : > { %6862 = vmatprep.subr.bf16.mxu0 %v11552_v31  ;;  %v11562_v40 = vld [vmem:[#allocation84_spill] sm:$0xff]  ;;  %v11563_v31 = vld [vmem:[#allocation61_spill] sm:$0xff] }
 0xc0e   : > { %6816 = vmatpush1.bf16.msra.mxu1 %v11553_v29  ;;  %v11564_v29 = vld [vmem:[#allocation85_spill] sm:$0xff] }
 0xc0f   : > { %6864 = vmatpush1.bf16.msra.mxu0 %v11554_v45  ;;  %6818 = vmatprep.subr.bf16.mxu1 %v11555_v6  ;;  %v11565_v45 = vld [vmem:[#allocation62_spill] sm:$0xff] }
 0xc10   : > { %6866 = vmatprep.subr.bf16.mxu0 %v11556_v63  ;;  %v11566_v6 = vld [vmem:[#allocation86_spill] sm:$0xff]  ;;  %v11567_v63 = vld [vmem:[#allocation63_spill] sm:$0xff] }
 0xc12   : > { %6820 = vmatpush1.bf16.msra.mxu1 %v11557_v46  ;;  %v11568_v46 = vld [vmem:[#allocation87_spill] sm:$0xff] }
 0xc13   : > { %6868 = vmatpush1.bf16.msra.mxu0 %v11558_v15  ;;  %6822 = vmatprep.subr.bf16.mxu1 %v11559_v42  ;;  %v11569_v15 = vld [vmem:[#allocation64_spill] sm:$0xff] }
 0xc14   : > { %6870 = vmatprep.subr.bf16.mxu0 %v11560_v21  ;;  %v11570_v42 = vld [vmem:[#allocation88_spill] sm:$0xff]  ;;  %v11571_v21 = vld [vmem:[#allocation65_spill] sm:$0xff] }
 0xc16   : > { %6824 = vmatpush1.bf16.msra.mxu1 %v11561_v50  ;;  %v11572_v50 = vld [vmem:[#allocation89_spill] sm:$0xff] }
 0xc17   : > { %6872 = vmatpush1.bf16.msra.mxu0 %v11562_v40  ;;  %6826 = vmatprep.subr.bf16.mxu1 %v11563_v31  ;;  %v11573_v40 = vld [vmem:[#allocation66_spill] sm:$0xff] }
 0xc18   : > { %6874 = vmatprep.subr.bf16.mxu0 %v11564_v29  ;;  %v11574_v31 = vld [vmem:[#allocation90_spill] sm:$0xff]  ;;  %v11575_v29 = vld [vmem:[#allocation67_spill] sm:$0xff] }
 0xc1a   : > { %6828 = vmatpush1.bf16.msra.mxu1 %v11565_v45  ;;  %v11576_v45 = vld [vmem:[#allocation91_spill] sm:$0xff] }
 0xc1b   : > { %6876 = vmatpush1.bf16.msra.mxu0 %v11566_v6  ;;  %6830 = vmatprep.subr.bf16.mxu1 %v11567_v63  ;;  %v11577_v6 = vld [vmem:[#allocation68_spill] sm:$0xff] }
 0xc1c   : > { %6878 = vmatprep.subr.bf16.mxu0 %v11568_v46  ;;  %v11578_v63 = vld [vmem:[#allocation92_spill] sm:$0xff]  ;;  %v11579_v46 = vld [vmem:[#allocation69_spill] sm:$0xff] }
 0xc1e   : > { %6832 = vmatpush1.bf16.msra.mxu1 %v11569_v15  ;;  %v11580_v15 = vld [vmem:[#allocation93_spill] sm:$0xff] }
 0xc1f   : > { %6880 = vmatpush1.bf16.msra.mxu0 %v11570_v42  ;;  %6834 = vmatprep.subr.bf16.mxu1 %v11571_v21  ;;  %v11581_v42 = vld [vmem:[#allocation70_spill] sm:$0xff] }
 0xc20   : > { %6882 = vmatprep.subr.bf16.mxu0 %v11572_v50  ;;  %v11582_v21 = vld [vmem:[#allocation94_spill] sm:$0xff]  ;;  %v11583_v50 = vld [vmem:[#allocation71_spill] sm:$0xff] }
 0xc22   : > { %6836 = vmatpush1.bf16.msra.mxu1 %v11573_v40  ;;  %v11584_v40 = vld [vmem:[#allocation95_spill] sm:$0xff] }
 0xc23   : > { %6884 = vmatpush1.bf16.msra.mxu0 %v11574_v31  ;;  %6838 = vmatprep.subr.bf16.mxu1 %v11575_v29  ;;  %v11585_v31 = vld [vmem:[#allocation72_spill] sm:$0xff] }
 0xc24   : > { %6886 = vmatprep.subr.bf16.mxu0 %v11576_v45  ;;  %v11586_v29 = vld [vmem:[#allocation96_spill] sm:$0xff]  ;;  %v11587_v45 = vld [vmem:[#allocation73_spill] sm:$0xff] }
 0xc26   : > { %6840 = vmatpush1.bf16.msra.mxu1 %v11577_v6  ;;  %v11588_v6 = vld [vmem:[#allocation97_spill] sm:$0xff] }
 0xc27   : > { %6888 = vmatpush1.bf16.msra.mxu0 %v11578_v63  ;;  %6842 = vmatprep.subr.bf16.mxu1 %v11579_v46  ;;  %v11589_v63 = vld [vmem:[#allocation74_spill] sm:$0xff] }
 0xc28   : > { %6890 = vmatprep.subr.bf16.mxu0 %v11580_v15  ;;  %v11590_v46 = vld [vmem:[#allocation98_spill] sm:$0xff]  ;;  %v11591_v15 = vld [vmem:[#allocation20_spill] sm:$0xff] }
 0xc2a   : > { %6844 = vmatpush1.bf16.msra.mxu1 %v11581_v42  ;;  %v11592_v42 = vld [vmem:[#allocation99_spill] sm:$0xff] }
 0xc2b   : > { %6892 = vmatpush1.bf16.msra.mxu0 %v11582_v21  ;;  %6846 = vmatprep.subr.bf16.mxu1 %v11583_v50  ;;  %v11593_v21 = vld [vmem:[#allocation22_spill] sm:$0xff]  ;;  %v11594_v50 = vld [vmem:[#allocation100_spill] sm:$0xff] }
 0xc2c   : > { %6894 = vmatprep.subr.bf16.mxu0 %v11584_v40  ;;  %v11595_v40 = vld [vmem:[#allocation23_spill] sm:$0xff] }
 0xc2e   : > { %6848 = vmatpush1.bf16.msra.mxu1 %v11585_v31  ;;  %v11596_v31 = vld [vmem:[#allocation101_spill] sm:$0xff] }
 0xc2f   : > { %6896 = vmatpush1.bf16.msra.mxu0 %v11586_v29  ;;  %6850 = vmatprep.subr.bf16.mxu1 %v11587_v45  ;;  %v11597_v29 = vld [vmem:[#allocation25_spill] sm:$0xff]  ;;  %v11598_v45 = vld [vmem:[#allocation102_spill] sm:$0xff] }
 0xc30   : > { %6898 = vmatprep.subr.bf16.mxu0 %v11588_v6  ;;  %v11599_v6 = vld [vmem:[#allocation27_spill] sm:$0xff] }
 0xc32   : > { %6852 = vmatpush1.bf16.msra.mxu1 %v11589_v63  ;;  %v11600_v63 = vld [vmem:[#allocation103_spill] sm:$0xff] }
 0xc33   : > { %6900 = vmatpush1.bf16.msra.mxu0 %v11590_v46  ;;  %6902 = vmatprep.subr.bf16.mxu1 %v11591_v15  ;;  %v11602_v46 = vld [vmem:[#allocation104_spill] sm:$0xff]  ;;  %v11603_v15 = vld [vmem:[#allocation31_spill] sm:$0xff] }
 0xc34   : > { %6934 = vmatprep.subr.bf16.mxu0 %v11592_v42  ;;  %v11604_v42 = vld [vmem:[#allocation105_spill] sm:$0xff] }
 0xc35   : > { %4203 = vmatmul.mubr.f32.vlgmr.msra.gmra.mrb[20].mxu1 %v9980_v48 }
 0xc36   : > { %4274 = vmatmul.mubr.f32.vlgmr.msra.gmra.mrb[22].mxu0 %v9980_v48  ;;  %6904 = vmatpush1.bf16.msra.mxu1 %v11593_v21  ;;  %v11601_v48 = vld [vmem:[#allocation29_spill] sm:$0xff] }
 0xc37   : > { %6936 = vmatpush1.bf16.msra.mxu0 %v11594_v50  ;;  %6906 = vmatprep.subr.bf16.mxu1 %v11595_v40  ;;  %v11605_v21 = vld [vmem:[#allocation33_spill] sm:$0xff]  ;;  %v11606_v50 = vld [vmem:[#allocation106_spill] sm:$0xff]  ;;  %v11607_v40 = vld [vmem:[#allocation39_spill] sm:$0xff] }
 0xc38   : > { %6938 = vmatprep.subr.bf16.mxu0 %v11596_v31  ;;  %4349 = vmatprep.mubr.f32.mxu1 %v10944_v43  ;;  %v11608_v31 = vld [vmem:[#allocation140_spill] sm:$0xff] }
 0xc39   : > { %4491 = vmatprep.mubr.f32.mxu0 %v10944_v43 }
 0xc3a   : > { %6908 = vmatpush1.bf16.msra.mxu1 %v11597_v29 }
 0xc3b   : > { %6940 = vmatpush1.bf16.msra.mxu0 %v11598_v45  ;;  %6910 = vmatprep.subr.bf16.mxu1 %v11599_v6  ;;  %v11609_v6 = vld [vmem:[#allocation258_spill] sm:$0xff] }
 0xc3c   : > { %6942 = vmatprep.subr.bf16.mxu0 %v11600_v63 }
 0xc3e   : > { %6912 = vmatpush1.bf16.msra.mxu1 %v11601_v48 }
 0xc3f   : > { %6944 = vmatpush1.bf16.msra.mxu0 %v11602_v46  ;;  %6914 = vmatprep.subr.bf16.mxu1 %v11603_v15  ;;  %v11610_v46 = vld [vmem:[#allocation259_spill] sm:$0xff] }
 0xc40   : > { %6946 = vmatprep.subr.bf16.mxu0 %v11604_v42 }
 0xc42   : > { %6916 = vmatpush1.bf16.msra.mxu1 %v11605_v21  ;;  %v11611_v21 = vld [vmem:[#allocation256_spill] sm:$0xff] }
 0xc43   : > { %6948 = vmatpush1.bf16.msra.mxu0 %v11606_v50  ;;  %6918 = vmatprep.subr.bf16.mxu1 %v11607_v40 }
 0xc44   : > { %6998 = vmatprep.subr.bf16.mxu0 %v11608_v31 }
 0xca8   : > { %v3845_v29 = vpop.f32.mrb[18].mxu0  ;;  %v3916_v45 = vpop.f32.mrb[16].mxu1 }
 0xca9   : > { %v3992_v63 = vadd.f32 %v3845_v29, %v11609_v6  ;;  %v3847_v59 = vpop.f32.mrb[19].mxu0  ;;  %v3918_v48 = vpop.f32.mrb[17].mxu1 }
 0xcaa   : > { %v3995_v15 = vadd.f32 %v3918_v48, %v11610_v46  ;;  %v3993_v50 = vadd.f32 %v3847_v59, %v11611_v21  ;;  %v11613_v59 = vld [vmem:[#allocation260_spill] sm:$0xff] }
 0xcab   : > { %v5288_v22 = vmul.f32 -1.442695, %v3992_v63  ;;  %v11612_v63 = vld [vmem:[#allocation257_spill] sm:$0xff] }
 0xcac   : > { %v5289_v17 = vmul.f32 -1.442695, %v3993_v50 }
 0xcad   : > { %7484 = vpow2.f32 %v5288_v22 }
 0xcae   : > { %7486 = vtanh.f32 %v3995_v15 }
 0xcb7   : > { %v7485_v55 = vpop.eup %7484 }
 0xcb8   : > { %v4013_v42 = vadd.f32 1.0, %v7485_v55  ;;  %v7487_v54 = vpop.eup %7486 }
 0xcba   : > { %7488 = vrcp.f32 %v4013_v42  ;;  %v3994_v42 = vadd.f32 %v3916_v45, %v11613_v59 }
 0xcbb   : > { %7490 = vpow2.f32 %v5289_v17 }
 0xcbc   : > { %v5290_v50 = vmul.f32 -1.442695, %v3994_v42 }
 0xcc4   : > { %v7489_v40 = vpop.eup %7488 }
 0xcc5   : > { %v4032_v31 = vmul.f32 %v7489_v40, %v7487_v54  ;;  %v7491_v29 = vpop.eup %7490 }
 0xcc6   : > { %v4014_v6 = vadd.f32 1.0, %v7491_v29 }
 0xcc7   : > { %4036 = vrot.lane.b32.xlu1 %v4032_v31, %s7707_s12 }
 0xcc8   : > { %7492 = vrcp.f32 %v4014_v6 }
 0xcd2   : > { %v7493_v55 = vpop.eup %7492 }
 0xcd3   : > { %v4030_v42 = vmul.f32 %v7493_v55, %v9801_v60 }
 0xcd8   : > { %v3987_v18 = vpop.f32.mrb[20].mxu0 }
 0xcd9   : > { %v3996_v22 = vadd.f32 %v3987_v18, %v11612_v63  ;;  %v3989_v11 = vpop.f32.mrb[21].mxu0 }
 0xcda   : > { %v3997_v54 = vadd.f32 %v3989_v11, %v11398_v56 }
 0xcdb   : > { %7494 = vtanh.f32 %v3996_v22  ;;  %v5291_v18 = vmul.f32 -1.442695, %v3996_v22 }
 0xcdc   : > { %7496 = vpow2.f32 %v5290_v50  ;;  %v5292_v40 = vmul.f32 -1.442695, %v3997_v54 }
 0xcde   : > { %7498 = vpow2.f32 %v5292_v40 }
 0xce5   : > { %v7495_v48 = vpop.eup %7494 }
 0xce6   : > { %v4033_v15 = vmul.f32 %v7495_v48, %v7493_v55  ;;  %v7497_v17 = vpop.eup %7496 }
 0xce7   : > { %v4015_v31 = vadd.f32 1.0, %v7497_v17 }
 0xce8   : > { %4038 = vrot.lane.b32.xlu0 %v4033_v15, %s7707_s12  ;;  %v7499_v6 = vpop.eup %7498 }
 0xce9   : > { %7500 = vrcp.f32 %v4015_v31  ;;  %v4017_v63 = vadd.f32 1.0, %v7499_v6 }
 0xcea   : > { %7502 = vpow2.f32 %v5291_v18 }
 0xceb   : > { %7504 = vrcp.f32 %v4017_v63 }
 0xcf3   : > { %v7501_v29 = vpop.eup %7500 }
 0xcf4   : > { %v4031_v48 = vmul.f32 %v7501_v29, %v9799_v13  ;;  %v7503_v11 = vpop.eup %7502 }
 0xcf5   : > { %v4016_v22 = vadd.f32 1.0, %v7503_v11  ;;  %v7505_v17 = vpop.eup %7504 }
 0xd39   : > { %v4037_v21 = vpop.permute.xlu1 %4036 }
 0xd3a   : > { %v10119_v54 = vadd.f32 %v4037_v21, %v4030_v42  ;;  %v11615_v42 = vld [vmem:[#allocation144_spill] sm:$0xff] }
 0xd5a   : > { %v4039_v15 = vpop.permute.xlu0 %4038 }
 0xd5b   : > { %v4040_v45 = vsel %vm672_vm0, %v4037_v21, %v4039_v15 }
 0xd5c   : > { %v10117_v50 = vadd.f32 %v4040_v45, %v4031_v48  ;;  %v11614_v45 = vld [vmem:[#allocation42_spill] sm:$0xff] }
 0xd5e   : > { %7506 = vtanh.f32 %v10117_v50 }
 0xd5f   : > { %7508 = vtanh.f32 %v10119_v54 }
 0xd60   : > { %7510 = vrcp.f32 %v4016_v22  ;;  %v11616_v22 = vld [vmem:[#allocation43_spill] sm:$0xff] }
 0xd68   : > { %v7507_v40 = vpop.eup %7506 }
 0xd69   : > { %v4048_v13 = vmul.f32 %v7507_v40, %v7505_v17  ;;  %v7509_v18 = vpop.eup %7508  ;;  %v11617_v17 = vld [vmem:[#allocation44_spill] sm:$0xff]  ;;  %v11620_v40 = vld [vmem:[#allocation151_spill] sm:$0xff] }
 0xd6a   : > { %v7511_v60 = vpop.eup %7510 }
 0xd6b   : > { %v4049_v31 = vmax.f32 %v4048_v13, 0.0  ;;  %v4047_v55 = vmul.f32 %v7511_v60, %v7509_v18  ;;  %v11624_v18 = vld [vmem:[#allocation155_spill] sm:$0xff]  ;;  %v11625_v60 = vld [vmem:[#allocation109_spill] sm:$0xff] }
 0xd6d   : > { %4051 = vrot.lane.b32.xlu1 %v4049_v31, %s7707_s12 }
 0xd71   : > { %4557 = vrot.lane.b32.xlu1 %v4047_v55, %s7707_s12 }
 0xddf   : > { %v4052_v63 = vpop.permute.xlu1 %4051 }
 0xde0   : > { %v4054_v21 = vsub.f32 %v4047_v55, %v4052_v63  ;;  %v11628_v63 = vld [vmem:[#allocation159_spill] sm:$0xff] }
 0xde2   : > { %v4055_v6 = vsel %vm2017_vm3, %v4054_v21, %v4047_v55  ;;  %v11626_v55 = vld [vmem:[#allocation156_spill] sm:$0xff]  ;;  %v11629_v21 = vld [vmem:[#allocation111_spill] sm:$0xff] }
 0xde3   : > { %v4056_v29 = vadd.f32 %v4055_v6, %v4049_v31  ;;  %v11622_v31 = vld [vmem:[#allocation152_spill] sm:$0xff] }
 0xde5   : > { %v10129_v48 = vsel %vm2024_vm4, %v4056_v29, %v4055_v6  ;;  %v11630_v6 = vld [vmem:[#allocation160_spill] sm:$0xff] }
 0xde6   : > { %4281 = vrot.lane.b32.xlu0 %v10129_v48, %s7707_s12  ;;  %v11631_v29 = vld [vmem:[#allocation112_spill] sm:$0xff] }
 0xdea   : > { %4559 = vrot.lane.b32.xlu0 %v4048_v13, %s7707_s12  ;;  %v11621_v13 = vld [vmem:[#allocation48_spill] sm:$0xff] }
 0xe58   : > { %v4282_v15 = vpop.permute.xlu0 %4281 }
 0xe59   : > { %5296 = vmatmul.mubr.msk.f32.vlgmr.msra.gmra.mrb[18].mxu1 %vm672_vm0, %v4282_v15  ;;  %5298 = vmatmul.mubr.msk.f32.vlgmr.msra.gmra.mrb[22].mxu0 %vm672_vm0, %v4282_v15 }
 0xe5a   : > { %6920 = vmatpush1.bf16.msra.mxu1 %v11404_v36  ;;  %7000 = vmatpush1.bf16.msra.mxu0 %v11405_v14  ;;  %v11618_v36 = vld [vmem:[#allocation148_spill] sm:$0xff]  ;;  %v11619_v14 = vld [vmem:[#allocation47_spill] sm:$0xff] }
 0xe5b   : > { %6922 = vmatprep.subr.bf16.mxu1 %v11614_v45  ;;  %7002 = vmatprep.subr.bf16.mxu0 %v11615_v42  ;;  %v11632_v45 = vld [vmem:[#allocation163_spill] sm:$0xff]  ;;  %v11633_v42 = vld [vmem:[#allocation113_spill] sm:$0xff] }
 0xe5c   : > { %v10140_v11 = vpop.permute.xlu0 %4559  ;;  %4420 = vmatprep.mubr.f32.mxu1 %v10944_v43  ;;  %v11623_v43 = vld [vmem:[#allocation51_spill] sm:$0xff] }
 0xe5d   : > { %5305 = vmatprep.mubr.msk.f32.mxu0 %vm672_vm0, %v10140_v11 }
 0xe5e   : > { %6924 = vmatpush1.bf16.msra.mxu1 %v11616_v22  ;;  %7004 = vmatpush1.bf16.msra.mxu0 %v11409_v7  ;;  %v11627_v7 = vld [vmem:[#allocation110_spill] sm:$0xff]  ;;  %v11634_v22 = vld [vmem:[#allocation164_spill] sm:$0xff] }
 0xe5f   : > { %6926 = vmatprep.subr.bf16.mxu1 %v11617_v17  ;;  %7006 = vmatprep.subr.bf16.mxu0 %v11618_v36  ;;  %v11636_v17 = vld [vmem:[#allocation166_spill] sm:$0xff]  ;;  %v11637_v36 = vld [vmem:[#allocation167_spill] sm:$0xff] }
 0xe62   : > { %6928 = vmatpush1.bf16.msra.mxu1 %v11619_v14  ;;  %7008 = vmatpush1.bf16.msra.mxu0 %v11620_v40  ;;  %v11638_v14 = vld [vmem:[#allocation168_spill] sm:$0xff]  ;;  %v11639_v40 = vld [vmem:[#allocation169_spill] sm:$0xff] }
 0xe63   : > { %6930 = vmatprep.subr.bf16.mxu1 %v11621_v13  ;;  %7010 = vmatprep.subr.bf16.mxu0 %v11622_v31  ;;  %v11640_v13 = vld [vmem:[#allocation170_spill] sm:$0xff]  ;;  %v11641_v31 = vld [vmem:[#allocation172_spill] sm:$0xff] }
 0xe66   : > { %6932 = vmatpush1.bf16.msra.mxu1 %v11623_v43  ;;  %7012 = vmatpush1.bf16.msra.mxu0 %v11624_v18  ;;  %v11642_v43 = vld [vmem:[#allocation122_spill] sm:$0xff]  ;;  %v4558_v18 = vpop.permute.xlu1 %4557 }
 0xe67   : > { %6950 = vmatprep.subr.bf16.mxu1 %v11625_v60  ;;  %7014 = vmatprep.subr.bf16.mxu0 %v11626_v55  ;;  %v11649_v60 = vld [vmem:[#allocation129_spill] sm:$0xff] }
 0xe68   : > { %v11653_v55 = vld [vmem:[#allocation237_spill] sm:$0xff] }
 0xe69   : > { %5297 = vmatmul.mubr.msk.f32.vlgmr.msra.gmra.mrb[20].mxu1 %vm672_vm0, %v4282_v15  ;;  %v11635_v15 = vld [vmem:[#allocation114_spill] sm:$0xff] }
 0xe6a   : > { %6952 = vmatpush1.bf16.msra.mxu1 %v11627_v7  ;;  %5304 = vmatprep.mubr.msk.f32.mxu1 %vm672_vm0, %v10140_v11  ;;  %v11655_v7 = vld [vmem:[#allocation138_spill] sm:$0xff] }
 0xe6b   : > { %7016 = vmatpush1.bf16.msra.mxu0 %v11628_v63  ;;  %6954 = vmatprep.subr.bf16.mxu1 %v11629_v21  ;;  %v11656_v63 = vld [vmem:[#allocation132_spill] sm:$0xff]  ;;  %v11662_v21 = vld [vmem:[#allocation242_spill] sm:$0xff] }
 0xe6c   : > { %7018 = vmatprep.subr.bf16.mxu0 %v11630_v6  ;;  %v11663_v6 = vld [vmem:[#allocation137_spill] sm:$0xff] }
 0xe6e   : > { %6956 = vmatpush1.bf16.msra.mxu1 %v11631_v29  ;;  %v11664_v29 = vld [vmem:[#allocation139_spill] sm:$0xff] }
 0xe6f   : > { %7020 = vmatpush1.bf16.msra.mxu0 %v11632_v45  ;;  %6958 = vmatprep.subr.bf16.mxu1 %v11633_v42  ;;  %v11665_v45 = vld [vmem:[#allocation243_spill] sm:$0xff]  ;;  %v11666_v42 = vld [vmem:[#allocation244_spill] sm:$0xff] }
 0xe70   : > { %7022 = vmatprep.subr.bf16.mxu0 %v11634_v22  ;;  %v11667_v22 = vld [vmem:[#allocation141_spill] sm:$0xff] }
 0xe72   : > { %6960 = vmatpush1.bf16.msra.mxu1 %v11635_v15  ;;  %v11668_v15 = vld [vmem:[#allocation142_spill] sm:$0xff] }
 0xe73   : > { %7024 = vmatpush1.bf16.msra.mxu0 %v11636_v17  ;;  %6962 = vmatprep.subr.bf16.mxu1 %v11430_v24  ;;  %v11643_v24 = vld [vmem:[#allocation176_spill] sm:$0xff]  ;;  %v11669_v17 = vld [vmem:[#allocation245_spill] sm:$0xff] }
 0xe74   : > { %7026 = vmatprep.subr.bf16.mxu0 %v11637_v36  ;;  %v11671_v36 = vld [vmem:[#allocation145_spill] sm:$0xff] }
 0xe76   : > { %6964 = vmatpush1.bf16.msra.mxu1 %v11432_v19  ;;  %v11644_v19 = vld [vmem:[#allocation124_spill] sm:$0xff] }
 0xe77   : > { %7028 = vmatpush1.bf16.msra.mxu0 %v11638_v14  ;;  %6966 = vmatprep.subr.bf16.mxu1 %v11434_v37  ;;  %v11645_v37 = vld [vmem:[#allocation178_spill] sm:$0xff] }
 0xe78   : > { %7030 = vmatprep.subr.bf16.mxu0 %v11639_v40  ;;  %v11672_v14 = vld [vmem:[#allocation146_spill] sm:$0xff]  ;;  %v11673_v40 = vld [vmem:[#allocation247_spill] sm:$0xff] }
 0xe7a   : > { %6968 = vmatpush1.bf16.msra.mxu1 %v11436_v8  ;;  %v11646_v8 = vld [vmem:[#allocation126_spill] sm:$0xff] }
 0xe7b   : > { %7032 = vmatpush1.bf16.msra.mxu0 %v11640_v13  ;;  %6970 = vmatprep.subr.bf16.mxu1 %v11438_v23  ;;  %v11647_v23 = vld [vmem:[#allocation182_spill] sm:$0xff]  ;;  %v11674_v13 = vld [vmem:[#allocation248_spill] sm:$0xff] }
 0xe7c   : > { %7034 = vmatprep.subr.bf16.mxu0 %v11641_v31  ;;  %v11675_v31 = vld [vmem:[#allocation149_spill] sm:$0xff] }
 0xe7e   : > { %6972 = vmatpush1.bf16.msra.mxu1 %v11642_v43  ;;  %v11676_v43 = vld [vmem:[#allocation150_spill] sm:$0xff] }
 0xe7f   : > { %7036 = vmatpush1.bf16.msra.mxu0 %v11248_v39  ;;  %6974 = vmatprep.subr.bf16.mxu1 %v11441_v35  ;;  %v11648_v39 = vld [vmem:[#allocation234_spill] sm:$0xff]  ;;  %v4561_v35 = vsel %vm672_vm0, %v4558_v18, %v10140_v11  ;;  %v11682_v18 = vld [vmem:[#allocation252_spill] sm:$0xff] }
 0xe80   : > { %7038 = vmatprep.subr.bf16.mxu0 %v11643_v24  ;;  %v11677_v24 = vld [vmem:[#allocation249_spill] sm:$0xff] }
 0xe82   : > { %6976 = vmatpush1.bf16.msra.mxu1 %v11644_v19  ;;  %v11678_v19 = vld [vmem:[#allocation250_spill] sm:$0xff] }
 0xe83   : > { %7040 = vmatpush1.bf16.msra.mxu0 %v11645_v37  ;;  %6978 = vmatprep.subr.bf16.mxu1 %v11443_v61  ;;  %v11650_v61 = vld [vmem:[#allocation235_spill] sm:$0xff]  ;;  %v11679_v37 = vld [vmem:[#allocation153_spill] sm:$0xff] }
 0xe84   : > { %7042 = vmatprep.subr.bf16.mxu0 %v11254_v32  ;;  %v11651_v32 = vld [vmem:[#allocation236_spill] sm:$0xff] }
 0xe86   : > { %6980 = vmatpush1.bf16.msra.mxu1 %v11646_v8  ;;  %v11680_v8 = vld [vmem:[#allocation154_spill] sm:$0xff] }
 0xe87   : > { %7044 = vmatpush1.bf16.msra.mxu0 %v11647_v23  ;;  %6982 = vmatprep.subr.bf16.mxu1 %v11445_v52  ;;  %v11652_v52 = vld [vmem:[#allocation133_spill] sm:$0xff]  ;;  %v11681_v23 = vld [vmem:[#allocation251_spill] sm:$0xff] }
 0xe88   : > { %7142 = vmatprep.subr.bf16.mxu0 %v11648_v39  ;;  %v11683_v39 = vld [vmem:[#allocation157_spill] sm:$0xff] }
 0xe8a   : > { %4701 = vmatmul.mubr.f32.vlgmr.msra.gmra.mrb[24].mxu0 %v4561_v35  ;;  %6984 = vmatpush1.bf16.msra.mxu1 %v11446_v53  ;;  %v11654_v53 = vld [vmem:[#allocation238_spill] sm:$0xff] }
 0xe8b   : > { %6986 = vmatprep.subr.bf16.mxu1 %v11649_v60  ;;  %7144 = vmatpush1.bf16.msra.mxu0 %v11650_v61  ;;  %v11684_v60 = vld [vmem:[#allocation158_spill] sm:$0xff]  ;;  %v11685_v61 = vld [vmem:[#allocation253_spill] sm:$0xff] }
 0xe8c   : > { %7146 = vmatprep.subr.bf16.mxu0 %v9268_v57  ;;  %v11657_v57 = vld [vmem:[#allocation239_spill] sm:$0xff] }
 0xe8e   : > { %6988 = vmatpush1.bf16.msra.mxu1 %v11448_v51  ;;  %v11658_v51 = vld [vmem:[#allocation240_spill] sm:$0xff] }
 0xe8f   : > { %6990 = vmatprep.subr.bf16.mxu1 %v11449_v30  ;;  %7148 = vmatpush1.bf16.msra.mxu0 %v11651_v32  ;;  %v11659_v30 = vld [vmem:[#allocation134_spill] sm:$0xff] }
 0xe90   : > { %7150 = vmatprep.subr.bf16.mxu0 %v9280_v12  ;;  %v11660_v12 = vld [vmem:[#allocation136_spill] sm:$0xff]  ;;  %v11686_v32 = vld [vmem:[#allocation254_spill] sm:$0xff] }
 0xe92   : > { %6992 = vmatpush1.bf16.msra.mxu1 %v11652_v52  ;;  %v11687_v52 = vld [vmem:[#allocation161_spill] sm:$0xff] }
 0xe93   : > { %6994 = vmatprep.subr.bf16.mxu1 %v11451_v4  ;;  %7152 = vmatpush1.bf16.msra.mxu0 %v11653_v55  ;;  %v11661_v4 = vld [vmem:[#allocation241_spill] sm:$0xff]  ;;  %v11688_v55 = vld [vmem:[#allocation162_spill] sm:$0xff] }
 0xe94   : > { %7154 = vmatprep.subr.bf16.mxu0 %v11654_v53  ;;  %v11689_v53 = vld [vmem:[#allocation255_spill] sm:$0xff] }
 0xe96   : > { %6996 = vmatpush1.bf16.msra.mxu1 %v11655_v7  ;;  %v11690_v7 = vld [vmem:[#allocation165_spill] sm:$0xff] }
 0xe97   : > { %7046 = vmatprep.subr.bf16.mxu1 %v11656_v63  ;;  %7156 = vmatpush1.bf16.msra.mxu0 %v11657_v57  ;;  %v11691_v63 = vld [vmem:[#allocation173_spill] sm:$0xff]  ;;  %v11692_v57 = vld [vmem:[#allocation175_spill] sm:$0xff] }
 0xe98   : > { %7158 = vmatprep.subr.bf16.mxu0 %v11658_v51  ;;  %v11693_v51 = vld [vmem:[#allocation177_spill] sm:$0xff] }
 0xe99   : > { %4630 = vmatmul.mubr.f32.vlgmr.msra.gmra.mrb[22].mxu1 %v4561_v35 }
 0xe9a   : > { %7048 = vmatpush1.bf16.msra.mxu1 %v11659_v30  ;;  %5306 = vmatprep.mubr.msk.f32.mxu1 %vm672_vm0, %v10140_v11  ;;  %v11670_v11 = vld [vmem:[#allocation246_spill] sm:$0xff]  ;;  %v11694_v30 = vld [vmem:[#allocation179_spill] sm:$0xff] }
 0xe9b   : > { %7050 = vmatprep.subr.bf16.mxu1 %v11660_v12  ;;  %7160 = vmatpush1.bf16.msra.mxu0 %v11661_v4  ;;  %v11695_v12 = vld [vmem:[#allocation181_spill] sm:$0xff]  ;;  %v11696_v4 = vld [vmem:[#allocation183_spill] sm:$0xff] }
 0xe9c   : > { %7162 = vmatprep.subr.bf16.mxu0 %v11662_v21  ;;  %v11697_v21 = vld [vmem:[#allocation184_spill] sm:$0xff] }
 0xe9e   : > { %7052 = vmatpush1.bf16.msra.mxu1 %v11663_v6  ;;  %v11698_v6 = vld [vmem:[#allocation186_spill] sm:$0xff] }
 0xe9f   : > { %7054 = vmatprep.subr.bf16.mxu1 %v11664_v29  ;;  %7164 = vmatpush1.bf16.msra.mxu0 %v11665_v45  ;;  %v11699_v29 = vld [vmem:[#allocation188_spill] sm:$0xff]  ;;  %v11700_v45 = vld [vmem:[#allocation190_spill] sm:$0xff] }
 0xea0   : > { %7166 = vmatprep.subr.bf16.mxu0 %v11666_v42  ;;  %v11701_v42 = vld [vmem:[#allocation193_spill] sm:$0xff] }
 0xea2   : > { %7056 = vmatpush1.bf16.msra.mxu1 %v11667_v22  ;;  %v11702_v22 = vld [vmem:[#allocation195_spill] sm:$0xff] }
 0xea3   : > { %7058 = vmatprep.subr.bf16.mxu1 %v11668_v15  ;;  %7168 = vmatpush1.bf16.msra.mxu0 %v11669_v17  ;;  %v11703_v15 = vld [vmem:[#allocation197_spill] sm:$0xff]  ;;  %v11704_v17 = vld [vmem:[#allocation199_spill] sm:$0xff] }
 0xea4   : > { %7170 = vmatprep.subr.bf16.mxu0 %v11670_v11  ;;  %v11705_v11 = vld [vmem:[#allocation201_spill] sm:$0xff] }
 0xea6   : > { %7060 = vmatpush1.bf16.msra.mxu1 %v11671_v36  ;;  %v11706_v36 = vld [vmem:[#allocation203_spill] sm:$0xff] }
 0xea7   : > { %7062 = vmatprep.subr.bf16.mxu1 %v11672_v14  ;;  %7172 = vmatpush1.bf16.msra.mxu0 %v11673_v40  ;;  %v11707_v14 = vld [vmem:[#allocation205_spill] sm:$0xff]  ;;  %v11709_v40 = vld [vmem:[#allocation210_spill] sm:$0xff] }
 0xea8   : > { %7174 = vmatprep.subr.bf16.mxu0 %v11674_v13  ;;  %v11710_v13 = vld [vmem:[#allocation212_spill] sm:$0xff] }
 0xeaa   : > { %7064 = vmatpush1.bf16.msra.mxu1 %v11675_v31  ;;  %v11711_v31 = vld [vmem:[#allocation214_spill] sm:$0xff] }
 0xeab   : > { %7066 = vmatprep.subr.bf16.mxu1 %v11676_v43  ;;  %7176 = vmatpush1.bf16.msra.mxu0 %v11677_v24  ;;  %v11712_v43 = vld [vmem:[#allocation216_spill] sm:$0xff]  ;;  %v11713_v24 = vld [vmem:[#allocation218_spill] sm:$0xff] }
 0xeac   : > { %7178 = vmatprep.subr.bf16.mxu0 %v11678_v19  ;;  %v11714_v19 = vld [vmem:[#allocation220_spill] sm:$0xff] }
 0xeae   : > { %7068 = vmatpush1.bf16.msra.mxu1 %v11679_v37  ;;  %v11715_v37 = vld [vmem:[#allocation222_spill] sm:$0xff] }
 0xeaf   : > { %7070 = vmatprep.subr.bf16.mxu1 %v11680_v8  ;;  %7180 = vmatpush1.bf16.msra.mxu0 %v11681_v23  ;;  %v11716_v8 = vld [vmem:[#allocation224_spill] sm:$0xff]  ;;  %v11717_v23 = vld [vmem:[#allocation226_spill] sm:$0xff] }
 0xeb0   : > { %7182 = vmatprep.subr.bf16.mxu0 %v11682_v18  ;;  %v11718_v18 = vld [vmem:[#allocation228_spill] sm:$0xff] }
 0xeb2   : > { %7072 = vmatpush1.bf16.msra.mxu1 %v11683_v39  ;;  %v11719_v39 = vld [vmem:[#allocation230_spill] sm:$0xff] }
 0xeb3   : > { %7074 = vmatprep.subr.bf16.mxu1 %v11684_v60  ;;  %7184 = vmatpush1.bf16.msra.mxu0 %v11685_v61  ;;  %v11720_v60 = vld [vmem:[#allocation232_spill] sm:$0xff]  ;;  %v11721_v61 = vld [vmem:[#allocation185_spill] sm:$0xff] }
 0xeb4   : > { %7186 = vmatprep.subr.bf16.mxu0 %v11686_v32 }
 0xeb6   : > { %7076 = vmatpush1.bf16.msra.mxu1 %v11687_v52 }
 0xeb7   : > { %7078 = vmatprep.subr.bf16.mxu1 %v11688_v55  ;;  %7188 = vmatpush1.bf16.msra.mxu0 %v11689_v53 }
 0xeba   : > { %7080 = vmatpush1.bf16.msra.mxu1 %v11690_v7 }
 0xebb   : > { %7082 = vmatprep.subr.bf16.mxu1 %v11691_v63 }
 0xebe   : > { %7084 = vmatpush1.bf16.msra.mxu1 %v11692_v57 }
 0xebf   : > { %7086 = vmatprep.subr.bf16.mxu1 %v11693_v51 }
 0xec2   : > { %7088 = vmatpush1.bf16.msra.mxu1 %v11694_v30 }
 0xec3   : > { %7090 = vmatprep.subr.bf16.mxu1 %v11695_v12  ;;  %v11722_v12 = vld [vmem:[#allocation117_spill] sm:$0xff] }
 0xec6   : > { %7092 = vmatpush1.bf16.msra.mxu1 %v11696_v4 }
 0xec7   : > { %7094 = vmatprep.subr.bf16.mxu1 %v11697_v21 }
 0xec9   : > { %4772 = vmatmul.mubr.f32.vlgmr.msra.gmra.mrb[24].mxu1 %v4561_v35  ;;  %v11708_v35 = vld [vmem:[#allocation207_spill] sm:$0xff] }
 0xeca   : > { %7096 = vmatpush1.bf16.msra.mxu1 %v11698_v6 }
 0xecb   : > { %7098 = vmatprep.subr.bf16.mxu1 %v11699_v29 }
 0xece   : > { %7100 = vmatpush1.bf16.msra.mxu1 %v11700_v45 }
 0xecf   : > { %7102 = vmatprep.subr.bf16.mxu1 %v11701_v42 }
 0xed2   : > { %7104 = vmatpush1.bf16.msra.mxu1 %v11702_v22  ;;  %v11723_v22 = vld [vmem:[#allocation108_spill] sm:$0xff] }
 0xed3   : > { %7106 = vmatprep.subr.bf16.mxu1 %v11703_v15 }
 0xed6   : > { %7108 = vmatpush1.bf16.msra.mxu1 %v11704_v17 }
 0xed7   : > { %7110 = vmatprep.subr.bf16.mxu1 %v11705_v11 }
 0xeda   : > { %7112 = vmatpush1.bf16.msra.mxu1 %v11706_v36 }
 0xedb   : > { %7114 = vmatprep.subr.bf16.mxu1 %v11707_v14 }
 0xede   : > { %7116 = vmatpush1.bf16.msra.mxu1 %v11708_v35 }
 0xedf   : > { %7118 = vmatprep.subr.bf16.mxu1 %v11709_v40 }
 0xee2   : > { %7120 = vmatpush1.bf16.msra.mxu1 %v11710_v13 }
 0xee3   : > { %7122 = vmatprep.subr.bf16.mxu1 %v11711_v31 }
 0xee6   : > { %7124 = vmatpush1.bf16.msra.mxu1 %v11712_v43 }
 0xee7   : > { %7126 = vmatprep.subr.bf16.mxu1 %v11713_v24 }
 0xeea   : > { %7128 = vmatpush1.bf16.msra.mxu1 %v11714_v19 }
 0xeeb   : > { %7130 = vmatprep.subr.bf16.mxu1 %v11715_v37 }
 0xeee   : > { %7132 = vmatpush1.bf16.msra.mxu1 %v11716_v8 }
 0xeef   : > { %7134 = vmatprep.subr.bf16.mxu1 %v11717_v23 }
 0xef2   : > { %7136 = vmatpush1.bf16.msra.mxu1 %v11718_v18 }
 0xef3   : > { %7138 = vmatprep.subr.bf16.mxu1 %v11719_v39 }
 0xef6   : > { %7140 = vmatpush1.bf16.msra.mxu1 %v11720_v60 }
 0xef7   : > { %7190 = vmatprep.subr.bf16.mxu1 %v11721_v61 }
 0xf2c   : > { %v4351_v32 = vpop.f32.mrb[18].mxu1  ;;  %v4493_v52 = vpop.f32.mrb[22].mxu0 }
 0xf2d   : > { %v4498_v55 = vadd.f32 %v4351_v32, %v11508_v58  ;;  %v4353_v53 = vpop.f32.mrb[19].mxu1  ;;  %v4495_v7 = vpop.f32.mrb[23].mxu0  ;;  %v4502_v4 = vadd.f32 %v4493_v52, %v11722_v12 }
 0xf2e   : > { %v4499_v63 = vadd.f32 %v4353_v53, %v11509_v16  ;;  %v4503_v13 = vadd.f32 %v4495_v7, %v11296_v20 }
 0xf2f   : > { %v5299_v57 = vmul.f32 -1.442695, %v4498_v55  ;;  %v5302_v43 = vmul.f32 -1.442695, %v4502_v4 }
 0xf30   : > { %v5300_v51 = vmul.f32 -1.442695, %v4499_v63  ;;  %v5303_v24 = vmul.f32 -1.442695, %v4503_v13 }
 0xf31   : > { %7512 = vpow2.f32 %v5299_v57 }
 0xf32   : > { %7514 = vpow2.f32 %v5300_v51 }
 0xf33   : > { %7516 = vtanh.f32 %v4502_v4 }
 0xf3b   : > { %v7513_v30 = vpop.eup %7512 }
 0xf3c   : > { %v4422_v21 = vpop.f32.mrb[20].mxu1  ;;  %v7515_v6 = vpop.eup %7514  ;;  %v4519_v29 = vadd.f32 1.0, %v7513_v30 }
 0xf3d   : > { %v4424_v45 = vpop.f32.mrb[21].mxu1  ;;  %v4520_v42 = vadd.f32 1.0, %v7515_v6  ;;  %v7517_v58 = vpop.eup %7516  ;;  %v4500_v35 = vadd.f32 %v4422_v21, %v11295_v5 }
 0xf3e   : > { %v4501_v15 = vadd.f32 %v4424_v45, %v11723_v22 }
 0xf3f   : > { %7518 = vrcp.f32 %v4520_v42  ;;  %v5301_v40 = vmul.f32 -1.442695, %v4500_v35  ;;  %v11734_v42 = vld [vmem:[#allocation256_spill] sm:$0xff]  ;;  %v11735_v35 = vld [vmem:[#allocation257_spill] sm:$0xff] }
 0xf40   : > { %7520 = vrcp.f32 %v4519_v29 }
 0xf41   : > { %7522 = vtanh.f32 %v4501_v15 }
 0xf42   : > { %7524 = vpow2.f32 %v5301_v40 }
 0xf43   : > { %7526 = vpow2.f32 %v5302_v43 }
 0xf44   : > { %7528 = vpow2.f32 %v5303_v24  ;;  %v5247_v24 = vld [vmem:[%s10362_s9] ss:$0 sm:$0xff] }
 0xf49   : > { %v7519_v16 = vpop.eup %7518 }
 0xf4a   : > { %v7521_v17 = vpop.eup %7520  ;;  %v4539_v11 = vmul.f32 %v7519_v16, %v7517_v58  ;;  %v4536_v61 = vmul.f32 %v7519_v16, %v9969_v28 }
 0xf4b   : > { %v7523_v36 = vpop.eup %7522 }
 0xf4c   : > { %4544 = vrot.lane.b32.xlu0 %v4539_v11, %s7707_s12  ;;  %v4538_v14 = vmul.f32 %v7523_v36, %v7521_v17  ;;  %v7525_v31 = vpop.eup %7524 }
 0xf4d   : > { %v4521_v19 = vadd.f32 1.0, %v7525_v31  ;;  %v7527_v37 = vpop.eup %7526 }
 0xf4e   : > { %4542 = vrot.lane.b32.xlu1 %v4538_v14, %s7707_s12  ;;  %v7529_v8 = vpop.eup %7528  ;;  %v4522_v18 = vadd.f32 1.0, %v7527_v37 }
 0xf4f   : > { %7530 = vrcp.f32 %v4521_v19  ;;  %v4523_v39 = vadd.f32 1.0, %v7529_v8 }
 0xf50   : > { %7532 = vrcp.f32 %v4522_v18 }
 0xf51   : > { %7534 = vrcp.f32 %v4523_v39 }
 0xf59   : > { %v7531_v23 = vpop.eup %7530 }
 0xf5a   : > { %v4537_v5 = vmul.f32 %v7531_v23, %v9971_v0  ;;  %v7533_v53 = vpop.eup %7532 }
 0xf5b   : > { %v7535_v7 = vpop.eup %7534 }
 0xfbe   : > { %v4545_v60 = vpop.permute.xlu0 %4544 }
 0xfc0   : > { %v4543_v32 = vpop.permute.xlu1 %4542 }
 0xfc1   : > { %v4546_v20 = vsel %vm672_vm0, %v4543_v32, %v4545_v60  ;;  %v4549_v52 = vadd.f32 %v4543_v32, %v4536_v61 }
 0xfc2   : > { %v4550_v55 = vadd.f32 %v4546_v20, %v4537_v5 }
 0xfc3   : > { %7536 = vtanh.f32 %v4549_v52 }
 0xfc4   : > { %7538 = vtanh.f32 %v4550_v55 }
 0xfcd   : > { %v7537_v63 = vpop.eup %7536 }
 0xfce   : > { %v7539_v57 = vpop.eup %7538  ;;  %v4553_v51 = vmul.f32 %v7537_v63, %v7533_v53 }
 0xfcf   : > { %v4554_v30 = vmul.f32 %v7539_v57, %v7535_v7 }
 0xfd0   : > { %4780 = vrot.lane.b32.xlu1 %v4553_v51, %s7707_s12 }
 0xfd1   : > { %4782 = vrot.lane.b32.xlu0 %v4554_v30, %s7707_s12 }
0x1042   : > { %v4781_v28 = vpop.permute.xlu1 %4780 }
0x1043   : > { %v4783_v0 = vpop.permute.xlu0 %4782 }
0x1044   : > { %5307 = vmatprep.mubr.msk.f32.mxu1 %vm672_vm0, %v4783_v0  ;;  %5308 = vmatprep.mubr.msk.f32.mxu0 %vm672_vm0, %v4783_v0  ;;  %v4784_v12 = vsel %vm672_vm0, %v4781_v28, %v4783_v0 }
0x1045   : > { %4853 = vmatmul.mubr.f32.vlgmr.msra.gmra.mrb[22].mxu1 %v4784_v12  ;;  %4924 = vmatmul.mubr.f32.vlgmr.msra.gmra.mrb[24].mxu0 %v4784_v12 }
0x1046   : > { %7192 = vmatpush1.bf16.msra.mxu1 %v11298_v1  ;;  %5309 = vmatprep.mubr.msk.f32.mxu1 %vm672_vm0, %v4783_v0  ;;  %v11724_v1 = vld [vmem:[#allocation217_spill] sm:$0xff] }
0x1047   : > { %7194 = vmatprep.subr.bf16.mxu1 %v11299_v3  ;;  %v11725_v3 = vld [vmem:[#allocation219_spill] sm:$0xff] }
0x104a   : > { %7196 = vmatpush1.bf16.msra.mxu1 %v11301_v2  ;;  %v11726_v2 = vld [vmem:[#allocation221_spill] sm:$0xff] }
0x104b   : > { %7198 = vmatprep.subr.bf16.mxu1 %v11512_v47  ;;  %v11727_v47 = vld [vmem:[#allocation223_spill] sm:$0xff] }
0x104e   : > { %7200 = vmatpush1.bf16.msra.mxu1 %v11514_v44  ;;  %v11728_v44 = vld [vmem:[#allocation225_spill] sm:$0xff] }
0x104f   : > { %7202 = vmatprep.subr.bf16.mxu1 %v11516_v9  ;;  %v11729_v9 = vld [vmem:[#allocation227_spill] sm:$0xff] }
0x1052   : > { %7204 = vmatpush1.bf16.msra.mxu1 %v11518_v33  ;;  %v11730_v33 = vld [vmem:[#allocation229_spill] sm:$0xff] }
0x1053   : > { %7206 = vmatprep.subr.bf16.mxu1 %v11520_v62  ;;  %v11731_v62 = vld [vmem:[#allocation231_spill] sm:$0xff] }
0x1056   : > { %7208 = vmatpush1.bf16.msra.mxu1 %v11522_v49 }
0x1057   : > { %7210 = vmatprep.subr.bf16.mxu1 %v11524_v38  ;;  %v11733_v38 = vld [vmem:[#allocation258_spill] sm:$0xff] }
0x105a   : > { %7212 = vmatpush1.bf16.msra.mxu1 %v11526_v10 }
0x105b   : > { %7214 = vmatprep.subr.bf16.mxu1 %v11319_v41  ;;  %v11732_v41 = vld [vmem:[#allocation233_spill] sm:$0xff] }
0x105e   : > { %7216 = vmatpush1.bf16.msra.mxu1 %v11529_v34 }
0x105f   : > { %7218 = vmatprep.subr.bf16.mxu1 %v11323_v27 }
0x1062   : > { %7220 = vmatpush1.bf16.msra.mxu1 %v11724_v1 }
0x1063   : > { %7222 = vmatprep.subr.bf16.mxu1 %v11725_v3 }
0x1066   : > { %7224 = vmatpush1.bf16.msra.mxu1 %v11726_v2 }
0x1067   : > { %7226 = vmatprep.subr.bf16.mxu1 %v11727_v47 }
0x106a   : > { %7228 = vmatpush1.bf16.msra.mxu1 %v11728_v44 }
0x106b   : > { %7230 = vmatprep.subr.bf16.mxu1 %v11729_v9 }
0x106e   : > { %7232 = vmatpush1.bf16.msra.mxu1 %v11730_v33 }
0x106f   : > { %7234 = vmatprep.subr.bf16.mxu1 %v11731_v62 }
0x1072   : > { %7236 = vmatpush1.bf16.msra.mxu1 %v11732_v41 }
0x1075   : > { %4995 = vmatmul.mubr.f32.vlgmr.msra.gmra.mrb[24].mxu1 %v4784_v12  ;;  %v11736_v12 = vld [vmem:[#allocation266_spill] sm:$0xff] }
0x1118   : > { %v4854_v27 = vpop.f32.mrb[22].mxu1  ;;  %v4925_v49 = vpop.f32.mrb[24].mxu0 }
0x1119   : > { %v5001_v10 = vadd.f32 %v4854_v27, %v11733_v38  ;;  %v4856_v34 = vpop.f32.mrb[23].mxu1  ;;  %v4927_v4 = vpop.f32.mrb[25].mxu0  ;;  %v5003_v37 = vadd.f32 %v4925_v49, %v11613_v59 }
0x111a   : > { %v5004_v6 = vadd.f32 %v4927_v4, %v11610_v46  ;;  %v5002_v22 = vadd.f32 %v4856_v34, %v11734_v42 }
0x111b   : > { %v5310_v21 = vmul.f32 -1.442695, %v5001_v10  ;;  %v5312_v23 = vmul.f32 -1.442695, %v5003_v37 }
0x111c   : > { %v5311_v16 = vmul.f32 -1.442695, %v5002_v22 }
0x111d   : > { %7540 = vpow2.f32 %v5310_v21 }
0x111e   : > { %7542 = vtanh.f32 %v5004_v6 }
0x1127   : > { %v7541_v29 = vpop.eup %7540 }
0x1128   : > { %v5022_v45 = vadd.f32 1.0, %v7541_v29  ;;  %v7543_v15 = vpop.eup %7542 }
0x112a   : > { %7544 = vrcp.f32 %v5022_v45 }
0x112b   : > { %7546 = vpow2.f32 %v5311_v16 }
0x1134   : > { %v7545_v58 = vpop.eup %7544 }
0x1135   : > { %v5041_v17 = vmul.f32 %v7545_v58, %v7543_v15  ;;  %v7547_v11 = vpop.eup %7546 }
0x1136   : > { %v5023_v36 = vadd.f32 1.0, %v7547_v11 }
0x1137   : > { %5045 = vrot.lane.b32.xlu1 %v5041_v17, %s7707_s12 }
0x1138   : > { %7548 = vrcp.f32 %v5023_v36 }
0x1142   : > { %v7549_v46 = vpop.eup %7548 }
0x1143   : > { %v5039_v39 = vmul.f32 %v7549_v46, %v10119_v54 }
0x1148   : > { %v4996_v14 = vpop.f32.mrb[24].mxu1 }
0x1149   : > { %v5005_v40 = vadd.f32 %v4996_v14, %v11735_v35  ;;  %v4998_v13 = vpop.f32.mrb[25].mxu1 }
0x114a   : > { %v5006_v32 = vadd.f32 %v4998_v13, %v11398_v56 }
0x114b   : > { %7550 = vtanh.f32 %v5005_v40  ;;  %v5313_v19 = vmul.f32 -1.442695, %v5005_v40 }
0x114c   : > { %v5314_v53 = vmul.f32 -1.442695, %v5006_v32 }
0x114d   : > { %7552 = vpow2.f32 %v5313_v19 }
0x114e   : > { %7554 = vpow2.f32 %v5312_v23 }
0x1155   : > { %v7551_v31 = vpop.eup %7550 }
0x1156   : > { %v5042_v43 = vmul.f32 %v7551_v31, %v7549_v46 }
0x1157   : > { %v7553_v8 = vpop.eup %7552 }
0x1158   : > { %5047 = vrot.lane.b32.xlu0 %v5042_v43, %s7707_s12  ;;  %v5025_v18 = vadd.f32 1.0, %v7553_v8  ;;  %v7555_v5 = vpop.eup %7554 }
0x1159   : > { %v5024_v7 = vadd.f32 1.0, %v7555_v5 }
0x115a   : > { %7556 = vrcp.f32 %v5025_v18 }
0x115c   : > { %2031 = vrot.lane.b32.xlu0 %v5247_v24, %s7707_s12 }
0x1164   : > { %v7557_v20 = vpop.eup %7556 }
0x11a9   : > { %v5046_v60 = vpop.permute.xlu1 %5045 }
0x11aa   : > { %v5052_v61 = vadd.f32 %v5046_v60, %v5039_v39 }
0x11ac   : > { %7558 = vtanh.f32 %v5052_v61 }
0x11ad   : > { %7560 = vpow2.f32 %v5314_v53 }
0x11ae   : > { %7562 = vrcp.f32 %v5024_v7 }
0x11b6   : > { %v7559_v52 = vpop.eup %7558 }
0x11b7   : > { %v5056_v55 = vmul.f32 %v7559_v52, %v7557_v20  ;;  %v7561_v59 = vpop.eup %7560 }
0x11b8   : > { %v7563_v63 = vpop.eup %7562  ;;  %v5026_v57 = vadd.f32 1.0, %v7561_v59 }
0x11b9   : > { %v5040_v54 = vmul.f32 %v7563_v63, %v10117_v50  ;;  %v11737_v50 = vld [vmem:[#allocation174_spill] sm:$0xff] }
0x11ba   : > { %7564 = vrcp.f32 %v5026_v57 }
0x11c4   : > { %v7565_v3 = vpop.eup %7564 }
0x11ca   : > { %v5048_v51 = vpop.permute.xlu0 %5047 }
0x11cb   : > { %v5049_v30 = vsel %vm672_vm0, %v5046_v60, %v5048_v51 }
0x11cc   : > { %v5053_v28 = vadd.f32 %v5049_v30, %v5040_v54 }
0x11ce   : > { %7566 = vtanh.f32 %v5053_v28  ;;  %v2032_v0 = vpop.permute.xlu0 %2031 }
0x11cf   : > { %v4058_v56 = vmul.f32 %v10129_v48, %v2032_v0  ;;  %v2034_v1 = vmul.f32 %v2032_v0, %v11736_v12  ;;  %v3049_v9 = vmul.f32 %v11737_v50, %v2032_v0 }
0x11d1   : > { %4060 = vrot.lane.b32.xlu0 %v4058_v56, %s7707_s12 }
0x11d5   : > { %2036 = vrot.lane.b32.xlu0 %v2034_v1, %s7707_s12 }
0x11d8   : > { %v7567_v2 = vpop.eup %7566 }
0x11d9   : > { %v5057_v47 = vmul.f32 %v7567_v2, %v7565_v3 }
0x11db   : > { %v5058_v44 = vmax.f32 %v5057_v47, 0.0 }
0x11dd   : > { %5060 = vrot.lane.b32.xlu1 %v5058_v44, %s7707_s12 }
0x11e1   : > { %3051 = vrot.lane.b32.xlu1 %v3049_v9, %s7707_s12 }
0x1243   : > { %v4061_v33 = vpop.permute.xlu0 %4060 }
0x1244   : > { %v4063_v62 = vsel %vm672_vm0, %v4061_v33, 0.0 }
0x1245   : > { %4064 = vadd.xlane.f32.xlu0 %v4063_v62 }
0x1247   : > { %v2037_v21 = vpop.permute.xlu0 %2036 }
0x1248   : > { %v2039_v6 = vsel %vm672_vm0, %v2037_v21, 0.0 }
0x124f   : > { %v5061_v48 = vpop.permute.xlu1 %5060 }
0x1250   : > { %v5063_v41 = vsub.f32 %v5056_v55, %v5061_v48 }
0x1252   : > { %v5064_v27 = vsel %vm2017_vm3, %v5063_v41, %v5056_v55 }
0x1253   : > { %v5065_v49 = vadd.f32 %v5064_v27, %v5058_v44  ;;  %v3052_v34 = vpop.permute.xlu1 %3051 }
0x1254   : > { %v3054_v4 = vsel %vm672_vm0, %v3052_v34, 0.0 }
0x1255   : > { %v5066_v38 = vsel %vm2024_vm4, %v5065_v49, %v5064_v27 }
0x1256   : > { %v5067_v10 = vmul.f32 %v5066_v38, %v2032_v0 }
0x1258   : > { %5069 = vrot.lane.b32.xlu1 %v5067_v10, %s7707_s12 }
0x127c   : > { %3055 = vadd.xlane.f32.xlu1 %v3054_v4 }
0x1280   : > { %2040 = vadd.xlane.f32.xlu1 %v2039_v6 }
0x12ca   : > { %v5070_v29 = vpop.permute.xlu1 %5069 }
0x12cb   : > { %v5072_v45 = vsel %vm672_vm0, %v5070_v29, 0.0 }
0x12cc   : > { %5073 = vadd.xlane.f32.xlu0 %v5072_v45 }
0x12d2   : > { %v4065_v42 = vpop.xlane.xlu0 %4064 }
0x12d3   : > { %v4066_v22 = vadd.f32 %v5248_v25, %v4065_v42 }
0x12d5   : > { %5081 = vrot.lane.b32.xlu1 %v4066_v22, %s7709_s10 }
0x1309   : > { %v3056_v26 = vpop.xlane.xlu1 %3055 }
0x130a   : > { %v3057_v15 = vadd.f32 %v5248_v25, %v3056_v26 }
0x130c   : > { %5077 = vrot.lane.b32.xlu0 %v3057_v15, %s7710_s25 }
0x130d   : > { %v2041_v17 = vpop.xlane.xlu1 %2040 }
0x130e   : > { %v2048_v36 = vadd.f32 %v5248_v25, %v2041_v17 }
0x1347   : > { %v5082_v14 = vpop.permute.xlu1 %5081 }
0x1359   : > { %v5074_v58 = vpop.xlane.xlu0 %5073 }
0x135a   : > { %v5075_v16 = vadd.f32 %v5248_v25, %v5074_v58 }
0x135c   : > { %5085 = vrot.lane.b32.xlu1 %v5075_v16, %s7711_s16 }
0x137e   : > { %v5078_v11 = vpop.permute.xlu0 %5077 }
0x137f   : > { %v5089_v35 = vsel %vm5088_vm5, %v2048_v36, %v5078_v11 }
0x1380   : > { %v5091_v40 = vsel %vm5090_vm6, %v5089_v35, %v5082_v14 }
0x13ce   : > { %v5086_v13 = vpop.permute.xlu1 %5085 }
0x13cf   : > { %v5093_v46 = vsel %vm5092_vm7, %v5091_v40, %v5086_v13 }
0x13d0   : > { %5095 = vst.msk [vmem:[%s472_s22] sm:$0xff] %vm5094_vm8, %v5093_v46 }
0x13d1 PF: > { %s26_s19 = sadd.s32 1, %s7698_s19  }
0x13d2   : > { %p23_p6 = scmp.ge.s32.totalorder %s26_s19, 4  }
0x13d4   :  { %25 = sbr.rel (!%p23_p6) target bundleno = 6 (0x6), region = 117 }
0x13db   :  { %5115 = vsyncpa [#allocation4], 1 }
0x13dc   :  { %5117 = vsyncpa [#allocation4 + $0x1], 1 }
0x13dd   :  { %5118 = vsyncpa [#allocation6], 1 }
0x13de   :  { %5119 = vsyncpa [#allocation9], 1 }

</bundles_post_ra>
